<compile_context>
chip_gen: v5e
topology: v5e:2x2
jax: 0.10.0
libtpu: 0.0.40
codegen_flags: <defaults>
</compile_context>

<pallas_src>
import jax
import jax.numpy as jnp
from jax.experimental import pallas as pl
from jax.experimental.pallas import tpu as pltpu


NUM_LAYERS = 5


def nerf_ain_kernel(x_ref,
                    w0, b0, w1, b1, w2, b2, w3, b3, w4, b4,
                    o_ref):
    """Fused 5-layer MLP for one (batch, point-tile) grid step.

    x_ref : (TN, D_in) f32   natural-layout point tile
    w0    : (D_in, H) bf16   per-batch folded weight (scale absorbed)
    w1-3  : (H, H)    bf16   per-batch folded weights
    b0-3  : (1, H)    f32    per-batch folded biases (shift*scale absorbed)
    w4    : (H, O)    bf16   final linear (batch independent)
    b4    : (1, O)    f32
    o_ref : (TN, O)   f32    natural-layout output tile
    """
    h = x_ref[...].astype(jnp.bfloat16)                       # (TN, D_in)
    for w_ref, b_ref in ((w0, b0), (w1, b1), (w2, b2), (w3, b3)):
        y = jnp.dot(h, w_ref[...], preferred_element_type=jnp.float32)
        y = y + b_ref[...]                                    # (1, d_out) broadcast
        h = jnp.maximum(y, 0.0).astype(jnp.bfloat16)          # ReLU f32, cast for MXU
    y = jnp.dot(h, w4[...], preferred_element_type=jnp.float32) + b4[...]
    o_ref[...] = y.astype(o_ref.dtype)


def fold_cond_params(c, params, num_layers=NUM_LAYERS):
    """Fold AIN conditioning into per-batch effective weights/biases (exact).

    (h + shift)*scale @ W + b  ==  h @ (scale[:,None]*W) + ((shift*scale) @ W + b)
    Weights are kept in natural (in, out) layout for the all-standard-dot kernel.
    """
    cond_params = params[: 2 * (num_layers - 1)]
    main_params = params[2 * (num_layers - 1):]
    folded = []
    for i in range(num_layers - 1):
        wc, bc = cond_params[2 * i], cond_params[2 * i + 1]
        w, b = main_params[2 * i], main_params[2 * i + 1]
        cond = c @ wc + bc[0]                                 # (B, 2*d_in)
        d = cond.shape[-1] // 2
        shift, scale = cond[:, :d], cond[:, d:]               # (B, d_in)
        w_eff = w[None, :, :] * scale[:, :, None]             # (B, d_in, d_out)
        b_eff = (shift * scale) @ w + b[0]                    # (B, d_out)
        folded.append(w_eff.astype(jnp.bfloat16))
        folded.append(b_eff[:, None, :].astype(jnp.float32))  # (B, 1, d_out)
    w_last, b_last = main_params[-2], main_params[-1]
    folded.append(w_last.astype(jnp.bfloat16))                # (H, O)
    folded.append(b_last.astype(jnp.float32))                 # (1, O)
    return folded


def nerf_ain_forward(x, c, params, o_dim, *, tile_n=2048, num_layers=NUM_LAYERS):
    B, N, D_in = x.shape
    assert num_layers == NUM_LAYERS, "kernel is specialized for num_layers=5"
    hidden = params[2 * (num_layers - 1)].shape[1]            # main layer 0 fan-out

    # Clamp the point tile to N and keep sublane (8) alignment.
    tile_n = max(8, min(tile_n, N))
    tile_n -= tile_n % 8
    grid = (B, pl.cdiv(N, tile_n))        # ragged N: edge block padded/masked

    folded = fold_cond_params(c, params, num_layers)

    x_spec = pl.BlockSpec((pl.Squeezed(), tile_n, D_in), lambda b, n: (b, n, 0))

    param_specs = []
    for i in range(num_layers - 1):
        w_eff, b_eff = folded[2 * i], folded[2 * i + 1]
        param_specs.append(pl.BlockSpec((pl.Squeezed(),) + w_eff.shape[1:],
                                        lambda b, n: (b, 0, 0)))
        param_specs.append(pl.BlockSpec((pl.Squeezed(),) + b_eff.shape[1:],
                                        lambda b, n: (b, 0, 0)))
    # Final layer is batch-independent: full-array blocks (not refetched per tile).
    param_specs.append(pl.BlockSpec(folded[-2].shape, lambda b, n: (0, 0)))
    param_specs.append(pl.BlockSpec(folded[-1].shape, lambda b, n: (0, 0)))

    out_spec = pl.BlockSpec((pl.Squeezed(), tile_n, o_dim), lambda b, n: (b, n, 0))

    # Per-step VMEM: double-buffered x/out tiles + params + f32/bf16 intermediates.
    param_bytes = sum(int(p.size) * p.dtype.itemsize for p in folded)
    step_bytes = (2 * tile_n * D_in * 4 + 2 * tile_n * o_dim * 4
                  + 2 * tile_n * hidden * (4 + 2) + 2 * param_bytes)
    vmem_limit = int(max(32 * 1024 * 1024, 4 * step_bytes))

    flops = 2 * B * N * (D_in * hidden
                         + (num_layers - 2) * hidden * hidden
                         + hidden * o_dim)
    bytes_accessed = int(x.size) * 4 + B * N * o_dim * 4 + param_bytes

    out = pl.pallas_call(
        nerf_ain_kernel,
        out_shape=jax.ShapeDtypeStruct((B, N, o_dim), jnp.float32),
        grid_spec=pltpu.PrefetchScalarGridSpec(
            num_scalar_prefetch=0,
            grid=grid,
            in_specs=[x_spec] + param_specs,
            out_specs=out_spec),
        compiler_params=pltpu.CompilerParams(
            dimension_semantics=("parallel", "parallel"),
            vmem_limit_bytes=vmem_limit),
        cost_estimate=pl.CostEstimate(flops=flops, transcendentals=0,
                                      bytes_accessed=bytes_accessed),
    )(x, *folded)
    return out                                                # (B, N, O)


def init_params(key, input_dims, c_dim, o_dim, hidden_size, num_layers=NUM_LAYERS):
    """Deterministic synthetic parameters. Weight layout: (in, out)."""
    def linear(key, fan_in, fan_out):
        kw, kb = jax.random.split(key)
        w = jax.random.normal(kw, (fan_in, fan_out), jnp.float32) * 0.1
        b = jax.random.normal(kb, (1, fan_out), jnp.float32) * 0.1
        return w, b

    keys = jax.random.split(key, 2 * num_layers - 1)
    params = []
    cond_outs = [2 * input_dims] + [2 * hidden_size] * (num_layers - 2)
    for i, d_out in enumerate(cond_outs):
        params.extend(linear(keys[i], c_dim, d_out))
    main_dims = [(input_dims, hidden_size)] \
        + [(hidden_size, hidden_size)] * (num_layers - 2) \
        + [(hidden_size, o_dim)]
    for j, (fi, fo) in enumerate(main_dims):
        params.extend(linear(keys[len(cond_outs) + j], fi, fo))
    return params


def reference_forward(x, c, params, num_layers=NUM_LAYERS):
    """Plain-JAX f32 reference mirroring the PyTorch forward literally."""
    cond_params = params[: 2 * (num_layers - 1)]
    main_params = params[2 * (num_layers - 1):]
    h = x
    for i in range(num_layers - 1):
        wc, bc = cond_params[2 * i], cond_params[2 * i + 1]
        cond = c @ wc + bc[0]                                 # (B, 2*d)
        d = cond.shape[-1] // 2
        shift = cond[:, None, :d]                             # unsqueeze(1)
        scale = cond[:, None, d:]
        h = (h + shift) * scale
        w, b = main_params[2 * i], main_params[2 * i + 1]
        h = jnp.maximum(h @ w + b[0], 0.0)
    w, b = main_params[-2], main_params[-1]
    return h @ w + b[0]


if __name__ == "__main__":
    # Small shapes consistent with the module; N chosen so tile_n=2048 gives a
    # (B, N//tile_n) = (2, 2) fully-parallel grid (keeps both v7x cores busy).
    B, N = 2, 4096
    INPUT_DIMS, C_DIM, O_DIM, HIDDEN = 16, 16, 4, 32

    key = jax.random.PRNGKey(0)
    kx, kc, kp = jax.random.split(key, 3)
    x = jax.random.normal(kx, (B, N, INPUT_DIMS), jnp.float32)
    c = jax.random.normal(kc, (B, C_DIM), jnp.float32)
    params = init_params(kp, INPUT_DIMS, C_DIM, O_DIM, HIDDEN, num_layers=5)

    out = nerf_ain_forward(x, c, params, O_DIM, tile_n=2048)
    out = jax.block_until_ready(out)

    ref = reference_forward(x, c, params)
    assert out.shape == (B, N, O_DIM)
    # bf16 matmul inputs (f32 accumulation) vs pure-f32 reference -> loose tol.
    assert jnp.allclose(out, ref, atol=2.5e-2, rtol=2.5e-2), "mismatch vs reference"
    print("KERNEL_OK")
</pallas_src>

<mosaic_0001>
module attributes {stable_mosaic.version = 11 : i64} {
  func.func @nerf_ain_kernel(%arg0: i32, %arg1: i32, %arg2: memref<1x2048x16xf32, #tpu.memory_space<vmem>>, %arg3: memref<1x16x32xbf16, #tpu.memory_space<vmem>>, %arg4: memref<1x1x32xf32, #tpu.memory_space<vmem>>, %arg5: memref<1x32x32xbf16, #tpu.memory_space<vmem>>, %arg6: memref<1x1x32xf32, #tpu.memory_space<vmem>>, %arg7: memref<1x32x32xbf16, #tpu.memory_space<vmem>>, %arg8: memref<1x1x32xf32, #tpu.memory_space<vmem>>, %arg9: memref<1x32x32xbf16, #tpu.memory_space<vmem>>, %arg10: memref<1x1x32xf32, #tpu.memory_space<vmem>>, %arg11: memref<32x4xbf16, #tpu.memory_space<vmem>>, %arg12: memref<1x4xf32, #tpu.memory_space<vmem>>, %arg13: memref<1x2048x4xf32, #tpu.memory_space<vmem>>) attributes {dimension_semantics = [#tpu.dimension_semantics<parallel>, #tpu.dimension_semantics<parallel>], iteration_bounds = array<i64: 2, 2>, scalar_prefetch = 0 : i64, scratch_operands = 0 : i64, tpu.core_type = #tpu.core_type<tc>, window_params = [{transform_indices = @transform_0, window_bounds = array<i64: 1, 2048, 16>}, {transform_indices = @transform_1, window_bounds = array<i64: 1, 16, 32>}, {transform_indices = @transform_2, window_bounds = array<i64: 1, 1, 32>}, {transform_indices = @transform_3, window_bounds = array<i64: 1, 32, 32>}, {transform_indices = @transform_4, window_bounds = array<i64: 1, 1, 32>}, {transform_indices = @transform_5, window_bounds = array<i64: 1, 32, 32>}, {transform_indices = @transform_6, window_bounds = array<i64: 1, 1, 32>}, {transform_indices = @transform_7, window_bounds = array<i64: 1, 32, 32>}, {transform_indices = @transform_8, window_bounds = array<i64: 1, 1, 32>}, {pipeline_mode = #tpu.pipeline_mode<synchronous>, transform_indices = @transform_9, window_bounds = array<i64: 32, 4>}, {pipeline_mode = #tpu.pipeline_mode<synchronous>, transform_indices = @transform_10, window_bounds = array<i64: 1, 4>}, {transform_indices = @transform_11, window_bounds = array<i64: 1, 2048, 4>}]} {
    %c0 = arith.constant 0 : index
    %c0_0 = arith.constant 0 : index
    %c0_1 = arith.constant 0 : index
    %0 = vector.load %arg2[%c0, %c0_0, %c0_1] : memref<1x2048x16xf32, #tpu.memory_space<vmem>>, vector<1x2048x16xf32>
    %1 = vector.shape_cast %0 : vector<1x2048x16xf32> to vector<2048x16xf32>
    %2 = arith.truncf %1 : vector<2048x16xf32> to vector<2048x16xbf16>
    %c0_2 = arith.constant 0 : index
    %c0_3 = arith.constant 0 : index
    %c0_4 = arith.constant 0 : index
    %3 = vector.load %arg3[%c0_2, %c0_3, %c0_4] : memref<1x16x32xbf16, #tpu.memory_space<vmem>>, vector<1x16x32xbf16>
    %4 = vector.shape_cast %3 : vector<1x16x32xbf16> to vector<16x32xbf16>
    %cst = arith.constant dense<0.000000e+00> : vector<2048x32xf32>
    %5 = tpu.matmul %2, %4, %cst {dimension_numbers = #tpu.dot_dimension_numbers<[1], [0], [0], [1], [0, 0, 1, 1], [], []>} : vector<2048x16xbf16>, vector<16x32xbf16>, vector<2048x32xf32> -> vector<2048x32xf32>
    %c0_5 = arith.constant 0 : index
    %c0_6 = arith.constant 0 : index
    %c0_7 = arith.constant 0 : index
    %6 = vector.load %arg4[%c0_5, %c0_6, %c0_7] : memref<1x1x32xf32, #tpu.memory_space<vmem>>, vector<1x1x32xf32>
    %7 = vector.shape_cast %6 : vector<1x1x32xf32> to vector<1x32xf32>
    %8 = vector.broadcast %7 : vector<1x32xf32> to vector<2048x32xf32>
    %9 = arith.addf %5, %8 : vector<2048x32xf32>
    %cst_8 = arith.constant 0.000000e+00 : f32
    %10 = vector.broadcast %cst_8 : f32 to vector<2048x32xf32>
    %11 = arith.maximumf %9, %10 : vector<2048x32xf32>
    %12 = arith.truncf %11 : vector<2048x32xf32> to vector<2048x32xbf16>
    %c0_9 = arith.constant 0 : index
    %c0_10 = arith.constant 0 : index
    %c0_11 = arith.constant 0 : index
    %13 = vector.load %arg5[%c0_9, %c0_10, %c0_11] : memref<1x32x32xbf16, #tpu.memory_space<vmem>>, vector<1x32x32xbf16>
    %14 = vector.shape_cast %13 : vector<1x32x32xbf16> to vector<32x32xbf16>
    %cst_12 = arith.constant dense<0.000000e+00> : vector<2048x32xf32>
    %15 = tpu.matmul %12, %14, %cst_12 {dimension_numbers = #tpu.dot_dimension_numbers<[1], [0], [0], [1], [0, 0, 1, 1], [], []>} : vector<2048x32xbf16>, vector<32x32xbf16>, vector<2048x32xf32> -> vector<2048x32xf32>
    %c0_13 = arith.constant 0 : index
    %c0_14 = arith.constant 0 : index
    %c0_15 = arith.constant 0 : index
    %16 = vector.load %arg6[%c0_13, %c0_14, %c0_15] : memref<1x1x32xf32, #tpu.memory_space<vmem>>, vector<1x1x32xf32>
    %17 = vector.shape_cast %16 : vector<1x1x32xf32> to vector<1x32xf32>
    %18 = vector.broadcast %17 : vector<1x32xf32> to vector<2048x32xf32>
    %19 = arith.addf %15, %18 : vector<2048x32xf32>
    %cst_16 = arith.constant 0.000000e+00 : f32
    %20 = vector.broadcast %cst_16 : f32 to vector<2048x32xf32>
    %21 = arith.maximumf %19, %20 : vector<2048x32xf32>
    %22 = arith.truncf %21 : vector<2048x32xf32> to vector<2048x32xbf16>
    %c0_17 = arith.constant 0 : index
    %c0_18 = arith.constant 0 : index
    %c0_19 = arith.constant 0 : index
    %23 = vector.load %arg7[%c0_17, %c0_18, %c0_19] : memref<1x32x32xbf16, #tpu.memory_space<vmem>>, vector<1x32x32xbf16>
    %24 = vector.shape_cast %23 : vector<1x32x32xbf16> to vector<32x32xbf16>
    %cst_20 = arith.constant dense<0.000000e+00> : vector<2048x32xf32>
    %25 = tpu.matmul %22, %24, %cst_20 {dimension_numbers = #tpu.dot_dimension_numbers<[1], [0], [0], [1], [0, 0, 1, 1], [], []>} : vector<2048x32xbf16>, vector<32x32xbf16>, vector<2048x32xf32> -> vector<2048x32xf32>
    %c0_21 = arith.constant 0 : index
    %c0_22 = arith.constant 0 : index
    %c0_23 = arith.constant 0 : index
    %26 = vector.load %arg8[%c0_21, %c0_22, %c0_23] : memref<1x1x32xf32, #tpu.memory_space<vmem>>, vector<1x1x32xf32>
    %27 = vector.shape_cast %26 : vector<1x1x32xf32> to vector<1x32xf32>
    %28 = vector.broadcast %27 : vector<1x32xf32> to vector<2048x32xf32>
    %29 = arith.addf %25, %28 : vector<2048x32xf32>
    %cst_24 = arith.constant 0.000000e+00 : f32
    %30 = vector.broadcast %cst_24 : f32 to vector<2048x32xf32>
    %31 = arith.maximumf %29, %30 : vector<2048x32xf32>
    %32 = arith.truncf %31 : vector<2048x32xf32> to vector<2048x32xbf16>
    %c0_25 = arith.constant 0 : index
    %c0_26 = arith.constant 0 : index
    %c0_27 = arith.constant 0 : index
    %33 = vector.load %arg9[%c0_25, %c0_26, %c0_27] : memref<1x32x32xbf16, #tpu.memory_space<vmem>>, vector<1x32x32xbf16>
    %34 = vector.shape_cast %33 : vector<1x32x32xbf16> to vector<32x32xbf16>
    %cst_28 = arith.constant dense<0.000000e+00> : vector<2048x32xf32>
    %35 = tpu.matmul %32, %34, %cst_28 {dimension_numbers = #tpu.dot_dimension_numbers<[1], [0], [0], [1], [0, 0, 1, 1], [], []>} : vector<2048x32xbf16>, vector<32x32xbf16>, vector<2048x32xf32> -> vector<2048x32xf32>
    %c0_29 = arith.constant 0 : index
    %c0_30 = arith.constant 0 : index
    %c0_31 = arith.constant 0 : index
    %36 = vector.load %arg10[%c0_29, %c0_30, %c0_31] : memref<1x1x32xf32, #tpu.memory_space<vmem>>, vector<1x1x32xf32>
    %37 = vector.shape_cast %36 : vector<1x1x32xf32> to vector<1x32xf32>
    %38 = vector.broadcast %37 : vector<1x32xf32> to vector<2048x32xf32>
    %39 = arith.addf %35, %38 : vector<2048x32xf32>
    %cst_32 = arith.constant 0.000000e+00 : f32
    %40 = vector.broadcast %cst_32 : f32 to vector<2048x32xf32>
    %41 = arith.maximumf %39, %40 : vector<2048x32xf32>
    %42 = arith.truncf %41 : vector<2048x32xf32> to vector<2048x32xbf16>
    %c0_33 = arith.constant 0 : index
    %c0_34 = arith.constant 0 : index
    %43 = vector.load %arg11[%c0_33, %c0_34] : memref<32x4xbf16, #tpu.memory_space<vmem>>, vector<32x4xbf16>
    %cst_35 = arith.constant dense<0.000000e+00> : vector<2048x4xf32>
    %44 = tpu.matmul %42, %43, %cst_35 {dimension_numbers = #tpu.dot_dimension_numbers<[1], [0], [0], [1], [0, 0, 1, 1], [], []>} : vector<2048x32xbf16>, vector<32x4xbf16>, vector<2048x4xf32> -> vector<2048x4xf32>
    %c0_36 = arith.constant 0 : index
    %c0_37 = arith.constant 0 : index
    %45 = vector.load %arg12[%c0_36, %c0_37] : memref<1x4xf32, #tpu.memory_space<vmem>>, vector<1x4xf32>
    %46 = vector.broadcast %45 : vector<1x4xf32> to vector<2048x4xf32>
    %47 = arith.addf %44, %46 : vector<2048x4xf32>
    %c0_38 = arith.constant 0 : index
    %c0_39 = arith.constant 0 : index
    %c0_40 = arith.constant 0 : index
    %48 = vector.load %arg13[%c0_38, %c0_39, %c0_40] : memref<1x2048x4xf32, #tpu.memory_space<vmem>>, vector<1x2048x4xf32>
    %49 = vector.shape_cast %48 : vector<1x2048x4xf32> to vector<2048x4xf32>
    %50 = vector.shape_cast %47 : vector<2048x4xf32> to vector<1x2048x4xf32>
    tpu.vector_store %arg13[%c0_38, %c0_39, %c0_40], %50 {strides = array<i32>} : memref<1x2048x4xf32, #tpu.memory_space<vmem>>, vector<1x2048x4xf32>,
    return
  }
  func.func @transform_0(%arg0: i32, %arg1: i32) -> (i32, i32, i32) {
    %c0_i32 = arith.constant 0 : i32
    %c0_i32_0 = arith.constant 0 : i32
    return %arg0, %arg1, %c0_i32 : i32, i32, i32
  }
  func.func @transform_1(%arg0: i32, %arg1: i32) -> (i32, i32, i32) {
    %c0_i32 = arith.constant 0 : i32
    %c0_i32_0 = arith.constant 0 : i32
    %c0_i32_1 = arith.constant 0 : i32
    return %arg0, %c0_i32, %c0_i32_0 : i32, i32, i32
  }
  func.func @transform_2(%arg0: i32, %arg1: i32) -> (i32, i32, i32) {
    %c0_i32 = arith.constant 0 : i32
    %c0_i32_0 = arith.constant 0 : i32
    %c0_i32_1 = arith.constant 0 : i32
    return %arg0, %c0_i32, %c0_i32_0 : i32, i32, i32
  }
  func.func @transform_3(%arg0: i32, %arg1: i32) -> (i32, i32, i32) {
    %c0_i32 = arith.constant 0 : i32
    %c0_i32_0 = arith.constant 0 : i32
    %c0_i32_1 = arith.constant 0 : i32
    return %arg0, %c0_i32, %c0_i32_0 : i32, i32, i32
  }
  func.func @transform_4(%arg0: i32, %arg1: i32) -> (i32, i32, i32) {
    %c0_i32 = arith.constant 0 : i32
    %c0_i32_0 = arith.constant 0 : i32
    %c0_i32_1 = arith.constant 0 : i32
    return %arg0, %c0_i32, %c0_i32_0 : i32, i32, i32
  }
  func.func @transform_5(%arg0: i32, %arg1: i32) -> (i32, i32, i32) {
    %c0_i32 = arith.constant 0 : i32
    %c0_i32_0 = arith.constant 0 : i32
    %c0_i32_1 = arith.constant 0 : i32
    return %arg0, %c0_i32, %c0_i32_0 : i32, i32, i32
  }
  func.func @transform_6(%arg0: i32, %arg1: i32) -> (i32, i32, i32) {
    %c0_i32 = arith.constant 0 : i32
    %c0_i32_0 = arith.constant 0 : i32
    %c0_i32_1 = arith.constant 0 : i32
    return %arg0, %c0_i32, %c0_i32_0 : i32, i32, i32
  }
  func.func @transform_7(%arg0: i32, %arg1: i32) -> (i32, i32, i32) {
    %c0_i32 = arith.constant 0 : i32
    %c0_i32_0 = arith.constant 0 : i32
    %c0_i32_1 = arith.constant 0 : i32
    return %arg0, %c0_i32, %c0_i32_0 : i32, i32, i32
  }
  func.func @transform_8(%arg0: i32, %arg1: i32) -> (i32, i32, i32) {
    %c0_i32 = arith.constant 0 : i32
    %c0_i32_0 = arith.constant 0 : i32
    %c0_i32_1 = arith.constant 0 : i32
    return %arg0, %c0_i32, %c0_i32_0 : i32, i32, i32
  }
  func.func @transform_9(%arg0: i32, %arg1: i32) -> (i32, i32) {
    %c0_i32 = arith.constant 0 : i32
    %c0_i32_0 = arith.constant 0 : i32
    %c0_i32_1 = arith.constant 0 : i32
    return %c0_i32, %c0_i32_0 : i32, i32
  }
  func.func @transform_10(%arg0: i32, %arg1: i32) -> (i32, i32) {
    %c0_i32 = arith.constant 0 : i32
    %c0_i32_0 = arith.constant 0 : i32
    %c0_i32_1 = arith.constant 0 : i32
    return %c0_i32, %c0_i32_0 : i32, i32
  }
  func.func @transform_11(%arg0: i32, %arg1: i32) -> (i32, i32, i32) {
    %c0_i32 = arith.constant 0 : i32
    %c0_i32_0 = arith.constant 0 : i32
    return %arg0, %arg1, %c0_i32 : i32, i32, i32
  }
}

</mosaic_0001>

<bundles_post_ra>
// kernel: tpu_custom_call.1
= control target key start
LH: loop header
LB: loop body
LE: loop exit
PB: predicated region body
PF: predicated region fallthrough
CT: control target
= control target key end

     0   :  { %s9064_s17 = smov 0   ;;  %s9066_s18 = smov 0   ;;  %s12463_s0 = inlined_call_operand.vmem [shape: f32[2,4096,16], index: 0, kind: input, shape index: {}]   ;;  %s12464_s1 = inlined_call_operand.vmem [shape: bf16[2,16,32], index: 1, kind: input, shape index: {}]   ;;  %s12465_s2 = inlined_call_operand.vmem [shape: f32[2,1,32], index: 2, kind: input, shape index: {}]   ;;  %s12466_s3 = inlined_call_operand.vmem [shape: bf16[2,32,32], index: 3, kind: input, shape index: {}]   ;;  %s12467_s4 = inlined_call_operand.vmem [shape: f32[2,1,32], index: 4, kind: input, shape index: {}]   ;;  %s12468_s5 = inlined_call_operand.vmem [shape: bf16[2,32,32], index: 5, kind: input, shape index: {}]   ;;  %s12469_s6 = inlined_call_operand.vmem [shape: f32[2,1,32], index: 6, kind: input, shape index: {}]   ;;  %s12470_s7 = inlined_call_operand.vmem [shape: bf16[2,32,32], index: 7, kind: input, shape index: {}]   ;;  %s12471_s8 = inlined_call_operand.vmem [shape: f32[2,1,32], index: 8, kind: input, shape index: {}]   ;;  %s12472_s9 = inlined_call_operand.vmem [shape: bf16[32,4], index: 9, kind: input, shape index: {}]   ;;  %s12473_s10 = inlined_call_operand.vmem [shape: f32[1,4], index: 10, kind: input, shape index: {}]   ;;  %s12474_s11 = inlined_call_operand.vmem [shape: f32[2,4096,4], index: 11, kind: output, shape index: {}]  }
   0x1   :  { %s9068_s19 = smov 0   ;;  %s9070_s20 = smov 0  }
   0x2   :  { %s9072_s21 = smov 0  }
   0x3 LB: > { %s30_s22 = sadd.s32 1, %s8994_s19  ;;  %s33_s23 = sadd.s32 1, %s8998_s20  ;;  %s9002_s21 = sphi %s9072_s21, %s21_s21   ;;  %s8998_s20 = sphi %s9070_s20, %s12650_s20   ;;  %s8994_s19 = sphi %s9068_s19, %s12649_s19   ;;  %s8990_s18 = sphi %s9066_s18, %s12648_s18   ;;  %s8986_s17 = sphi %s9064_s17, %s12647_s17  }
   0x4   : > { %p31_p0 = scmp.ge.s32.totalorder %s30_s22, 2  ;;  %p8177_p1 = scmp.ge.s32.totalorder %s9002_s21, 1 }
   0x5   : > { %p430_p2 = scmp.lt.s32.totalorder %s9002_s21, 5 }
   0x6   : > { %s12652_s22 = smov (%p31_p0, %s30_s22), 0  ;;  %s12654_s23 = smov (!%p31_p0, %s33_s23), %s8998_s20 }
   0x7   : > { %12475 = sst [smem:[#allocation2_spill]] %s12652_s22  ;;  %p431_p3 = pnand %p8177_p1, %p430_p2 }
   0x8   : > { %p35_p4 = scmp.ge.s32.totalorder %s12654_s23, 2 }
   0x9   : > { %434 = sbr.rel (%p431_p3) target bundleno = 3139 (0xc43), region = 64 }
   0xa   : > { %s12656_s23 = smov (%p35_p4, %s12654_s23), 0 }
   0xb   : > { %12476 = sst [smem:[#allocation3_spill]] %s12656_s23 }
   0xe   : > { %s8178_s24 = sshll.u32 %s8986_s17, 8  ;;  %p511_p5 = scmp.lt.s32.totalorder %s8990_s18, 1  ;;  %vm959_vm0 = vcmask 130048   ;;  %vm2397_vm1 = vcmask 261120   ;;  %vm7742_vm2 = vcmask 31744  }
   0xf   : > { %p513_p6 = scmp.lt.s32.totalorder %s8178_s24, 511 }
  0x10   : > { %s12658_s18 = smov (!%p511_p5, %s8990_s18), 1 }
  0x11   : > { %s12660_s24 = smov (!%p513_p6, %s8178_s24), 511  ;;  %s8179_s25 = sshll.u32 %s12658_s18, 9 }
  0x12   : > { %s8870_s26 = sshll.u32 %s12658_s18, 3  ;;  %s9094_s27 = sadd.s32 %s8179_s25, %s12660_s24 }
  0x13   : > { %s524_s30 = scalar_lea.vmem %s12464_s1, %s8870_s26  ;;  %s8180_s12 = sshll.u32 %s9094_s27, 3 }
  0x14   : > { %s9103_s15 = scalar_lea.vmem %s12465_s2, %s12658_s18  ;;  %v8874_v0 = vld [vmem:[%s524_s30] sm:$0xff]  ;;  %s9108_s23 = scalar_lea.vmem %s12467_s4, %s12658_s18 }
  0x15   : > { %s9113_s22 = scalar_lea.vmem %s12469_s6, %s12658_s18  ;;  %s9118_s26 = scalar_lea.vmem %s12471_s8, %s12658_s18  ;;  %8883 = vmatpush.bf16.msra.mxu1 %v8874_v0  ;;  %8884 = vmatpush.bf16.msra.mxu2 %v8874_v0  ;;  %v9176_v37 = vld [vmem:[%s9103_s15] ss:$0 sm:$0xff] }
  0x16   : > { %s9125_s30 = scalar_lea.vmem %s12463_s0, %s8180_s12  ;;  %8885 = vmatpush.bf16.msra.mxu3 %v8874_v0  ;;  %1351 = vmatpush.bf16.msra.mxu0 %v8874_v0  ;;  %s9129_s16 = sshll.u32 %s12658_s18, 4 }
  0x17   : > { %v627_v1 = vld [vmem:[%s9125_s30 + $0x200] sm:$0xff]  ;;  %v628_v2 = vld [vmem:[%s9125_s30 + $0x208] sm:$0xff]  ;;  %s9135_s25 = scalar_lea.vmem %s12466_s3, %s9129_s16  ;;  %v629_v5 = vld [vmem:[%s9125_s30 + $0x210] sm:$0xff]  ;;  %s9164_s29 = scalar_lea.vmem %s12468_s5, %s9129_s16 }
  0x18   : > { %v851_v3 = vpack.c.bf16 %v628_v2, %v627_v1  ;;  %v8876_v4 = vld [vmem:[%s9135_s25 + $0x8] sm:$0xff]  ;;  %v630_v6 = vld [vmem:[%s9125_s30 + $0x218] sm:$0xff]  ;;  %v631_v8 = vld [vmem:[%s9125_s30 + $0x220] sm:$0xff]  ;;  %s9271_s17 = scalar_lea.vmem %s12470_s7, %s9129_s16  ;;  %s10334_s14 = scalar_lea.vmem %s12474_s11, %s8180_s12 }
  0x19   : > { %2788 = vmatpush.bf16.msrb.mxu1 %v8876_v4  ;;  %v852_v7 = vpack.c.bf16 %v630_v6, %v629_v5  ;;  %v632_v9 = vld [vmem:[%s9125_s30 + $0x228] sm:$0xff]  ;;  %v633_v11 = vld [vmem:[%s9125_s30 + $0x230] sm:$0xff]  ;;  %v634_v12 = vld [vmem:[%s9125_s30 + $0x238] sm:$0xff] }
  0x1a   : > { %8228 = vmatmul.msk.bf16.vlgmr.msra.gmra.mxu1 %vm959_vm0, %v851_v3  ;;  %v853_v10 = vpack.c.bf16 %v632_v9, %v631_v8  ;;  %v854_v13 = vpack.c.bf16 %v634_v12, %v633_v11  ;;  %v635_v14 = vld [vmem:[%s9125_s30 + $0x240] sm:$0xff]  ;;  %v636_v15 = vld [vmem:[%s9125_s30 + $0x248] sm:$0xff]  ;;  %v637_v17 = vld [vmem:[%s9125_s30 + $0x250] sm:$0xff] }
  0x1b   : > { %v855_v16 = vpack.c.bf16 %v636_v15, %v635_v14  ;;  %v638_v18 = vld [vmem:[%s9125_s30 + $0x258] sm:$0xff]  ;;  %v639_v20 = vld [vmem:[%s9125_s30 + $0x260] sm:$0xff]  ;;  %v640_v21 = vld [vmem:[%s9125_s30 + $0x268] sm:$0xff] }
  0x1c   : > { %v856_v19 = vpack.c.bf16 %v638_v18, %v637_v17  ;;  %v857_v22 = vpack.c.bf16 %v640_v21, %v639_v20  ;;  %v691_v23 = vld [vmem:[%s9125_s30 + $0x400] sm:$0xff]  ;;  %v692_v24 = vld [vmem:[%s9125_s30 + $0x408] sm:$0xff]  ;;  %v641_v26 = vld [vmem:[%s9125_s30 + $0x270] sm:$0xff] }
  0x1d   : > { %v883_v25 = vpack.c.bf16 %v692_v24, %v691_v23  ;;  %v642_v27 = vld [vmem:[%s9125_s30 + $0x278] sm:$0xff]  ;;  %v8878_v28 = vld [vmem:[%s9164_s29 + $0x8] sm:$0xff]  ;;  %v693_v30 = vld [vmem:[%s9125_s30 + $0x410] sm:$0xff] }
  0x1e   : > { %v858_v29 = vpack.c.bf16 %v642_v27, %v641_v26  ;;  %4225 = vmatpush.bf16.msrb.mxu2 %v8878_v28  ;;  %v694_v31 = vld [vmem:[%s9125_s30 + $0x418] sm:$0xff]  ;;  %v643_v33 = vld [vmem:[%s9125_s30 + $0x280] sm:$0xff]  ;;  %v644_v34 = vld [vmem:[%s9125_s30 + $0x288] sm:$0xff] }
  0x1f   : > { %8260 = vmatmul.msk.bf16.vlgmr.msra.gmra.mxu2 %vm959_vm0, %v883_v25  ;;  %v884_v32 = vpack.c.bf16 %v694_v31, %v693_v30  ;;  %v859_v35 = vpack.c.bf16 %v644_v34, %v643_v33  ;;  %v695_v38 = vld [vmem:[%s9125_s30 + $0x420] sm:$0xff]  ;;  %v696_v39 = vld [vmem:[%s9125_s30 + $0x428] sm:$0xff]  ;;  %v645_v46 = vld [vmem:[%s9125_s30 + $0x290] sm:$0xff] }
  0x20   : > { %v885_v40 = vpack.c.bf16 %v696_v39, %v695_v38  ;;  %v646_v47 = vld [vmem:[%s9125_s30 + $0x298] sm:$0xff]  ;;  %v697_v51 = vld [vmem:[%s9125_s30 + $0x430] sm:$0xff]  ;;  %v647_v59 = vld [vmem:[%s9125_s30 + $0x2a0] sm:$0xff] }
  0x21   : > { %v860_v49 = vpack.c.bf16 %v646_v47, %v645_v46  ;;  %v698_v52 = vld [vmem:[%s9125_s30 + $0x438] sm:$0xff]  ;;  %v648_v60 = vld [vmem:[%s9125_s30 + $0x2a8] sm:$0xff]  ;;  %v699_v0 = vld [vmem:[%s9125_s30 + $0x440] sm:$0xff] }
  0x22   : > { %v886_v53 = vpack.c.bf16 %v698_v52, %v697_v51  ;;  %v861_v62 = vpack.c.bf16 %v648_v60, %v647_v59  ;;  %v700_v1 = vld [vmem:[%s9125_s30 + $0x448] sm:$0xff]  ;;  %v649_v8 = vld [vmem:[%s9125_s30 + $0x2b0] sm:$0xff]  ;;  %v650_v9 = vld [vmem:[%s9125_s30 + $0x2b8] sm:$0xff] }
  0x23   : > { %v887_v2 = vpack.c.bf16 %v700_v1, %v699_v0  ;;  %v862_v11 = vpack.c.bf16 %v650_v9, %v649_v8  ;;  %v702_v14 = vld [vmem:[%s9125_s30 + $0x458] sm:$0xff]  ;;  %v651_v21 = vld [vmem:[%s9125_s30 + $0x2c0] sm:$0xff]  ;;  %v704_v27 = vld [vmem:[%s9125_s30 + $0x468] sm:$0xff] }
  0x24   : > { %v703_v26 = vld [vmem:[%s9125_s30 + $0x460] sm:$0xff]  ;;  %v653_v34 = vld [vmem:[%s9125_s30 + $0x2d0] sm:$0xff] }
  0x25   : > { %v889_v28 = vpack.c.bf16 %v704_v27, %v703_v26  ;;  %v657_v1 = vld [vmem:[%s9125_s30 + $0x2f0] sm:$0xff]  ;;  %v659_v26 = vld [vmem:[%s9125_s30 + $0x300] sm:$0xff]  ;;  %v660_v27 = vld [vmem:[%s9125_s30 + $0x308] sm:$0xff] }
  0x2a   : > { %8229 = vmatmul.msk.bf16.gmra.mxu1 %vm959_vm0, %v852_v7 }
  0x2f   : > { %8261 = vmatmul.msk.bf16.gmra.mxu2 %vm959_vm0, %v884_v32 }
  0x3a   : > { %8230 = vmatmul.msk.bf16.gmra.mxu1 %vm959_vm0, %v853_v10 }
  0x3f   : > { %8262 = vmatmul.msk.bf16.gmra.mxu2 %vm959_vm0, %v885_v40  ;;  %v705_v40 = vld [vmem:[%s9125_s30 + $0x470] sm:$0xff] }
  0x4a   : > { %8231 = vmatmul.msk.bf16.gmra.mxu1 %vm959_vm0, %v854_v13  ;;  %v701_v13 = vld [vmem:[%s9125_s30 + $0x450] sm:$0xff] }
  0x4b   : > { %v888_v15 = vpack.c.bf16 %v702_v14, %v701_v13 }
  0x4f   : > { %8263 = vmatmul.msk.bf16.gmra.mxu2 %vm959_vm0, %v886_v53 }
  0x5a   : > { %8232 = vmatmul.msk.bf16.gmra.mxu1 %vm959_vm0, %v855_v16 }
  0x5f   : > { %8264 = vmatmul.msk.bf16.gmra.mxu2 %vm959_vm0, %v887_v2  ;;  %v658_v2 = vld [vmem:[%s9125_s30 + $0x2f8] sm:$0xff] }
  0x6a   : > { %8233 = vmatmul.msk.bf16.gmra.mxu1 %vm959_vm0, %v856_v19 }
  0x6f   : > { %8265 = vmatmul.msk.bf16.gmra.mxu2 %vm959_vm0, %v888_v15  ;;  %v755_v15 = vld [vmem:[%s9125_s30 + $0x600] sm:$0xff] }
  0x7a   : > { %8234 = vmatmul.msk.bf16.gmra.mxu1 %vm959_vm0, %v857_v22  ;;  %v652_v22 = vld [vmem:[%s9125_s30 + $0x2c8] sm:$0xff] }
  0x7b   : > { %v863_v24 = vpack.c.bf16 %v652_v22, %v651_v21 }
  0x7f   : > { %8266 = vmatmul.msk.bf16.gmra.mxu2 %vm959_vm0, %v889_v28 }
  0x8a   : > { %8235 = vmatmul.msk.bf16.gmra.mxu1 %vm959_vm0, %v858_v29 }
  0x97   : > { %v1513_v36 = vpop.f32.mrf.mxu1 }
  0x98   : > { %v1514_v41 = vadd.f32 %v9176_v37, %v1513_v36 }
  0x9a   : > { %8236 = vmatmul.msk.bf16.gmra.mxu1 %vm959_vm0, %v859_v35  ;;  %v2057_v44 = vmax.f32 %v1514_v41, 0.0  ;;  %v654_v35 = vld [vmem:[%s9125_s30 + $0x2d8] sm:$0xff] }
  0x9b   : > { %v864_v38 = vpack.c.bf16 %v654_v35, %v653_v34  ;;  %v706_v41 = vld [vmem:[%s9125_s30 + $0x478] sm:$0xff]  ;;  %v8880_v34 = vld [vmem:[%s9271_s17 + $0x8] sm:$0xff] }
  0x9c   : > { %5662 = vmatpush.bf16.msrb.mxu3 %v8880_v34 }
  0x9f   : > { %v1515_v42 = vpop.f32.mrf.mxu1 }
  0xa0   : > { %v1516_v43 = vadd.f32 %v9176_v37, %v1515_v42  ;;  %v890_v42 = vpack.c.bf16 %v706_v41, %v705_v40 }
  0xa2   : > { %v2058_v45 = vmax.f32 %v1516_v43, 0.0  ;;  %8267 = vmatmul.msk.bf16.gmra.mxu2 %vm959_vm0, %v890_v42  ;;  %v757_v42 = vld [vmem:[%s9125_s30 + $0x610] sm:$0xff] }
  0xa4   : > { %v9186_v48 = vpack.c.bf16 %v2058_v45, %v2057_v44 }
  0xa7   : > { %v1518_v50 = vpop.f32.mrf.mxu1 }
  0xa8   : > { %v1519_v54 = vadd.f32 %v9176_v37, %v1518_v50  ;;  %v656_v50 = vld [vmem:[%s9125_s30 + $0x2e8] sm:$0xff] }
  0xaa   : > { %8237 = vmatmul.msk.bf16.gmra.mxu1 %vm959_vm0, %v860_v49  ;;  %v2059_v57 = vmax.f32 %v1519_v54, 0.0  ;;  %v655_v49 = vld [vmem:[%s9125_s30 + $0x2e0] sm:$0xff] }
  0xab   : > { %v865_v52 = vpack.c.bf16 %v656_v50, %v655_v49  ;;  %v8875_v54 = vld [vmem:[%s9135_s25] sm:$0xff] }
  0xac   : > { %2789 = vmatpush.bf16.msrb.mxu1 %v8875_v54  ;;  %v661_v54 = vld [vmem:[%s9125_s30 + $0x310] sm:$0xff] }
  0xaf   : > { %v1520_v55 = vpop.f32.mrf.mxu1 }
  0xb0   : > { %v1521_v56 = vadd.f32 %v9176_v37, %v1520_v55  ;;  %v707_v55 = vld [vmem:[%s9125_s30 + $0x480] sm:$0xff] }
  0xb2   : > { %v2060_v58 = vmax.f32 %v1521_v56, 0.0  ;;  %v708_v56 = vld [vmem:[%s9125_s30 + $0x488] sm:$0xff] }
  0xb4   : > { %v9196_v61 = vpack.c.bf16 %v2060_v58, %v2059_v57  ;;  %v891_v57 = vpack.c.bf16 %v708_v56, %v707_v55  ;;  %v662_v55 = vld [vmem:[%s9125_s30 + $0x318] sm:$0xff] }
  0xb6   : > { %8268 = vmatmul.msk.bf16.gmra.mxu2 %vm959_vm0, %v891_v57  ;;  %v868_v57 = vpack.c.bf16 %v662_v55, %v661_v54 }
  0xb7   : > { %v1523_v63 = vpop.f32.mrf.mxu1 }
  0xb8   : > { %v1524_v3 = vadd.f32 %v9176_v37, %v1523_v63 }
  0xba   : > { %8238 = vmatmul.msk.bf16.gmra.mxu1 %vm959_vm0, %v861_v62  ;;  %v2061_v6 = vmax.f32 %v1524_v3, 0.0  ;;  %v1673_v62 = vpop.f32.mrf.mxu2 }
  0xbf   : > { %v1525_v4 = vpop.f32.mrf.mxu1 }
  0xc0   : > { %v1526_v5 = vadd.f32 %v9176_v37, %v1525_v4  ;;  %v866_v4 = vpack.c.bf16 %v658_v2, %v657_v1  ;;  %v714_v1 = vld [vmem:[%s9125_s30 + $0x4b8] sm:$0xff] }
  0xc2   : > { %v2062_v7 = vmax.f32 %v1526_v5, 0.0  ;;  %v1674_v5 = vadd.f32 %v9176_v37, %v1673_v62 }
  0xc4   : > { %v9206_v10 = vpack.c.bf16 %v2062_v7, %v2061_v6  ;;  %v1675_v7 = vpop.f32.mrf.mxu2  ;;  %v2121_v8 = vmax.f32 %v1674_v5, 0.0  ;;  %v759_v5 = vld [vmem:[%s9125_s30 + $0x620] sm:$0xff] }
  0xc5   : > { %v1676_v9 = vadd.f32 %v9176_v37, %v1675_v7 }
  0xc7   : > { %v1528_v12 = vpop.f32.mrf.mxu1  ;;  %v2122_v14 = vmax.f32 %v1676_v9, 0.0 }
  0xc8   : > { %v1529_v16 = vadd.f32 %v9176_v37, %v1528_v12  ;;  %v710_v12 = vld [vmem:[%s9125_s30 + $0x498] sm:$0xff] }
  0xca   : > { %8239 = vmatmul.msk.bf16.gmra.mxu1 %vm959_vm0, %v862_v11  ;;  %v2063_v19 = vmax.f32 %v1529_v16, 0.0  ;;  %v709_v11 = vld [vmem:[%s9125_s30 + $0x490] sm:$0xff]  ;;  %v756_v16 = vld [vmem:[%s9125_s30 + $0x608] sm:$0xff] }
  0xcb   : > { %v892_v13 = vpack.c.bf16 %v710_v12, %v709_v11 }
  0xcc   : > { %v1678_v22 = vpop.f32.mrf.mxu2 }
  0xcd   : > { %8269 = vmatmul.msk.bf16.gmra.mxu2 %vm959_vm0, %v892_v13 }
  0xcf   : > { %v1530_v17 = vpop.f32.mrf.mxu1 }
  0xd0   : > { %v1531_v18 = vadd.f32 %v9176_v37, %v1530_v17 }
  0xd2   : > { %v2064_v20 = vmax.f32 %v1531_v18, 0.0  ;;  %v9258_v18 = vpack.c.bf16 %v2122_v14, %v2121_v8 }
  0xd4   : > { %v9216_v23 = vpack.c.bf16 %v2064_v20, %v2063_v19  ;;  %v915_v19 = vpack.c.bf16 %v756_v16, %v755_v15  ;;  %v663_v16 = vld [vmem:[%s9125_s30 + $0x320] sm:$0xff] }
  0xd6   : > { %8292 = vmatmul.msk.bf16.vlgmr.msra.gmra.mxu3 %vm959_vm0, %v915_v19 }
  0xd7   : > { %v1533_v25 = vpop.f32.mrf.mxu1 }
  0xd8   : > { %v1534_v29 = vadd.f32 %v9176_v37, %v1533_v25 }
  0xda   : > { %8240 = vmatmul.msk.bf16.gmra.mxu1 %vm959_vm0, %v863_v24  ;;  %v2065_v32 = vmax.f32 %v1534_v29, 0.0  ;;  %v867_v29 = vpack.c.bf16 %v660_v27, %v659_v26  ;;  %v715_v27 = vld [vmem:[%s9125_s30 + $0x4c0] sm:$0xff] }
  0xdf   : > { %v1535_v30 = vpop.f32.mrf.mxu1 }
  0xe0   : > { %v1536_v31 = vadd.f32 %v9176_v37, %v1535_v30  ;;  %v1679_v30 = vadd.f32 %v9176_v37, %v1678_v22 }
  0xe2   : > { %v2066_v33 = vmax.f32 %v1536_v31, 0.0 }
  0xe4   : > { %v9226_v36 = vpack.c.bf16 %v2066_v33, %v2065_v32  ;;  %v1680_v32 = vpop.f32.mrf.mxu2  ;;  %v2123_v33 = vmax.f32 %v1679_v30, 0.0 }
  0xe5   : > { %v1681_v35 = vadd.f32 %v9176_v37, %v1680_v32  ;;  %v761_v32 = vld [vmem:[%s9125_s30 + $0x630] sm:$0xff] }
  0xe7   : > { %v1538_v39 = vpop.f32.mrf.mxu1  ;;  %v2124_v41 = vmax.f32 %v1681_v35, 0.0 }
  0xe8   : > { %v1539_v43 = vadd.f32 %v9176_v37, %v1538_v39  ;;  %v712_v39 = vld [vmem:[%s9125_s30 + $0x4a8] sm:$0xff] }
  0xea   : > { %8241 = vmatmul.msk.bf16.gmra.mxu1 %vm959_vm0, %v864_v38  ;;  %v2067_v46 = vmax.f32 %v1539_v43, 0.0  ;;  %v711_v38 = vld [vmem:[%s9125_s30 + $0x4a0] sm:$0xff]  ;;  %v758_v43 = vld [vmem:[%s9125_s30 + $0x618] sm:$0xff] }
  0xeb   : > { %v893_v40 = vpack.c.bf16 %v712_v39, %v711_v38 }
  0xec   : > { %v1683_v50 = vpop.f32.mrf.mxu2 }
  0xed   : > { %8270 = vmatmul.msk.bf16.gmra.mxu2 %vm959_vm0, %v893_v40 }
  0xef   : > { %v1540_v44 = vpop.f32.mrf.mxu1 }
  0xf0   : > { %v1541_v45 = vadd.f32 %v9176_v37, %v1540_v44 }
  0xf2   : > { %v2068_v47 = vmax.f32 %v1541_v45, 0.0  ;;  %v9282_v45 = vpack.c.bf16 %v2124_v41, %v2123_v33  ;;  %v762_v33 = vld [vmem:[%s9125_s30 + $0x638] sm:$0xff] }
  0xf3   : > { %v918_v38 = vpack.c.bf16 %v762_v33, %v761_v32 }
  0xf4   : > { %v9236_v51 = vpack.c.bf16 %v2068_v47, %v2067_v46  ;;  %v916_v46 = vpack.c.bf16 %v758_v43, %v757_v42 }
  0xf6   : > { %8293 = vmatmul.msk.bf16.gmra.mxu3 %vm959_vm0, %v916_v46  ;;  %v666_v46 = vld [vmem:[%s9125_s30 + $0x338] sm:$0xff] }
  0xf7   : > { %v1543_v53 = vpop.f32.mrf.mxu1 }
  0xf8   : > { %v1544_v58 = vadd.f32 %v9176_v37, %v1543_v53 }
  0xfa   : > { %8242 = vmatmul.msk.bf16.gmra.mxu1 %vm959_vm0, %v865_v52  ;;  %v2069_v63 = vmax.f32 %v1544_v58, 0.0  ;;  %v1684_v58 = vadd.f32 %v9176_v37, %v1683_v50 }
  0xfc   : > { %v2125_v62 = vmax.f32 %v1684_v58, 0.0  ;;  %v718_v58 = vld [vmem:[%s9125_s30 + $0x4d8] sm:$0xff] }
  0xff   : > { %v1545_v59 = vpop.f32.mrf.mxu1 }
 0x100   : > { %v1546_v60 = vadd.f32 %v9176_v37, %v1545_v59 }
 0x102   : > { %v2070_v0 = vmax.f32 %v1546_v60, 0.0  ;;  %v1685_v60 = vpop.f32.mrf.mxu2 }
 0x104   : > { %v9247_v3 = vpack.c.bf16 %v2070_v0, %v2069_v63  ;;  %v1686_v63 = vadd.f32 %v9176_v37, %v1685_v60  ;;  %v713_v0 = vld [vmem:[%s9125_s30 + $0x4b0] sm:$0xff] }
 0x105   : > { %v894_v2 = vpack.c.bf16 %v714_v1, %v713_v0 }
 0x107   : > { %v1548_v6 = vpop.f32.mrf.mxu1  ;;  %8271 = vmatmul.msk.bf16.gmra.mxu2 %vm959_vm0, %v894_v2 }
 0x108   : > { %v1549_v17 = vadd.f32 %v9176_v37, %v1548_v6  ;;  %v760_v6 = vld [vmem:[%s9125_s30 + $0x628] sm:$0xff] }
 0x109   : > { %v917_v9 = vpack.c.bf16 %v760_v6, %v759_v5 }
 0x10a   : > { %8243 = vmatmul.msk.bf16.gmra.mxu1 %vm959_vm0, %v866_v4  ;;  %v2071_v24 = vmax.f32 %v1549_v17, 0.0  ;;  %v2126_v4 = vmax.f32 %v1686_v63, 0.0  ;;  %v1688_v13 = vpop.f32.mrf.mxu2  ;;  %v664_v17 = vld [vmem:[%s9125_s30 + $0x328] sm:$0xff] }
 0x10b   : > { %8294 = vmatmul.msk.bf16.gmra.mxu3 %vm959_vm0, %v917_v9  ;;  %v764_v63 = vld [vmem:[%s9125_s30 + $0x648] sm:$0xff] }
 0x10c   : > { %v9299_v8 = vpack.c.bf16 %v2126_v4, %v2125_v62  ;;  %v763_v62 = vld [vmem:[%s9125_s30 + $0x640] sm:$0xff] }
 0x10d   : > { %v919_v2 = vpack.c.bf16 %v764_v63, %v763_v62  ;;  %v767_v63 = vld [vmem:[%s9125_s30 + $0x660] sm:$0xff] }
 0x10f   : > { %v1550_v20 = vpop.f32.mrf.mxu1 }
 0x110   : > { %v1551_v21 = vadd.f32 %v9176_v37, %v1550_v20  ;;  %v869_v20 = vpack.c.bf16 %v664_v17, %v663_v16 }
 0x112   : > { %v2072_v25 = vmax.f32 %v1551_v21, 0.0  ;;  %v1689_v21 = vadd.f32 %v9176_v37, %v1688_v13 }
 0x114   : > { %v9264_v28 = vpack.c.bf16 %v2072_v25, %v2071_v24  ;;  %v1690_v24 = vpop.f32.mrf.mxu2  ;;  %v2127_v25 = vmax.f32 %v1689_v21, 0.0 }
 0x115   : > { %v1691_v26 = vadd.f32 %v9176_v37, %v1690_v24  ;;  %v720_v24 = vld [vmem:[%s9125_s30 + $0x4e8] sm:$0xff] }
 0x117   : > { %v1553_v31 = vpop.f32.mrf.mxu1 }
 0x118   : > { %v1554_v44 = vadd.f32 %v9176_v37, %v1553_v31  ;;  %v2128_v31 = vmax.f32 %v1691_v26, 0.0 }
 0x11a   : > { %8244 = vmatmul.msk.bf16.gmra.mxu1 %vm959_vm0, %v867_v29  ;;  %v2073_v52 = vmax.f32 %v1554_v44, 0.0  ;;  %v716_v29 = vld [vmem:[%s9125_s30 + $0x4c8] sm:$0xff]  ;;  %v9316_v35 = vpack.c.bf16 %v2128_v31, %v2127_v25  ;;  %v665_v44 = vld [vmem:[%s9125_s30 + $0x330] sm:$0xff] }
 0x11b   : > { %v895_v30 = vpack.c.bf16 %v716_v29, %v715_v27  ;;  %8295 = vmatmul.msk.bf16.gmra.mxu3 %vm959_vm0, %v918_v38  ;;  %v765_v27 = vld [vmem:[%s9125_s30 + $0x650] sm:$0xff]  ;;  %v766_v29 = vld [vmem:[%s9125_s30 + $0x658] sm:$0xff] }
 0x11c   : > { %v1693_v41 = vpop.f32.mrf.mxu2  ;;  %v920_v32 = vpack.c.bf16 %v766_v29, %v765_v27 }
 0x11d   : > { %8272 = vmatmul.msk.bf16.gmra.mxu2 %vm959_vm0, %v895_v30  ;;  %v1694_v50 = vadd.f32 %v9176_v37, %v1693_v41  ;;  %v669_v41 = vld [vmem:[%s9125_s30 + $0x350] sm:$0xff] }
 0x11f   : > { %v1555_v47 = vpop.f32.mrf.mxu1  ;;  %v2129_v54 = vmax.f32 %v1694_v50, 0.0 }
 0x120   : > { %v1556_v49 = vadd.f32 %v9176_v37, %v1555_v47 }
 0x122   : > { %v2074_v53 = vmax.f32 %v1556_v49, 0.0  ;;  %v870_v49 = vpack.c.bf16 %v666_v46, %v665_v44  ;;  %v564_v44 = vld [vmem:[%s9125_s30 + $0x8] sm:$0xff] }
 0x124   : > { %v9288_v56 = vpack.c.bf16 %v2074_v53, %v2073_v52  ;;  %v1695_v53 = vpop.f32.mrf.mxu2 }
 0x125   : > { %v1696_v55 = vadd.f32 %v9176_v37, %v1695_v53 }
 0x127   : > { %v1558_v59 = vpop.f32.mrf.mxu1  ;;  %v2130_v60 = vmax.f32 %v1696_v55, 0.0 }
 0x128   : > { %v1559_v7 = vadd.f32 %v9176_v37, %v1558_v59 }
 0x129   : > { %v9333_v1 = vpack.c.bf16 %v2130_v60, %v2129_v54 }
 0x12a   : > { %8245 = vmatmul.msk.bf16.gmra.mxu1 %vm959_vm0, %v868_v57  ;;  %v2075_v14 = vmax.f32 %v1559_v7, 0.0  ;;  %v717_v57 = vld [vmem:[%s9125_s30 + $0x4d0] sm:$0xff] }
 0x12b   : > { %v896_v59 = vpack.c.bf16 %v718_v58, %v717_v57  ;;  %12477 = vst [vmem:[#allocation4_spill] sm:$0xff] %v9333_v1  ;;  %8296 = vmatmul.msk.bf16.gmra.mxu3 %vm959_vm0, %v919_v2  ;;  %v721_v58 = vld [vmem:[%s9125_s30 + $0x4f0] sm:$0xff] }
 0x12c   : > { %v1698_v6 = vpop.f32.mrf.mxu2 }
 0x12d   : > { %8273 = vmatmul.msk.bf16.gmra.mxu2 %vm959_vm0, %v896_v59  ;;  %v722_v59 = vld [vmem:[%s9125_s30 + $0x4f8] sm:$0xff] }
 0x12e   : > { %v898_v60 = vpack.c.bf16 %v722_v59, %v721_v58 }
 0x12f   : > { %v1560_v11 = vpop.f32.mrf.mxu1 }
 0x130   : > { %v1561_v12 = vadd.f32 %v9176_v37, %v1560_v11  ;;  %v667_v11 = vld [vmem:[%s9125_s30 + $0x340] sm:$0xff] }
 0x132   : > { %v2076_v15 = vmax.f32 %v1561_v12, 0.0  ;;  %v668_v12 = vld [vmem:[%s9125_s30 + $0x348] sm:$0xff] }
 0x134   : > { %v9305_v19 = vpack.c.bf16 %v2076_v15, %v2075_v14  ;;  %v871_v14 = vpack.c.bf16 %v668_v12, %v667_v11  ;;  %v1699_v15 = vadd.f32 %v9176_v37, %v1698_v6  ;;  %v1700_v17 = vpop.f32.mrf.mxu2 }
 0x135   : > { %v1701_v21 = vadd.f32 %v9176_v37, %v1700_v17  ;;  %v566_v17 = vld [vmem:[%s9125_s30 + $0x18] sm:$0xff] }
 0x137   : > { %v1563_v22 = vpop.f32.mrf.mxu1  ;;  %v2132_v26 = vmax.f32 %v1701_v21, 0.0 }
 0x138   : > { %v1564_v34 = vadd.f32 %v9176_v37, %v1563_v22  ;;  %v719_v22 = vld [vmem:[%s9125_s30 + $0x4e0] sm:$0xff] }
 0x139   : > { %v897_v25 = vpack.c.bf16 %v720_v24, %v719_v22 }
 0x13a   : > { %8246 = vmatmul.msk.bf16.gmra.mxu1 %vm959_vm0, %v869_v20  ;;  %v2077_v42 = vmax.f32 %v1564_v34, 0.0  ;;  %v2131_v20 = vmax.f32 %v1699_v15, 0.0  ;;  %v672_v15 = vld [vmem:[%s9125_s30 + $0x368] sm:$0xff] }
 0x13b   : > { %8297 = vmatmul.msk.bf16.gmra.mxu3 %vm959_vm0, %v920_v32  ;;  %v724_v32 = vld [vmem:[%s9125_s30 + $0x508] sm:$0xff] }
 0x13c   : > { %v9350_v31 = vpack.c.bf16 %v2132_v26, %v2131_v20  ;;  %v1703_v38 = vpop.f32.mrf.mxu2 }
 0x13d   : > { %8274 = vmatmul.msk.bf16.gmra.mxu2 %vm959_vm0, %v897_v25 }
 0x13e   : > { %12478 = vst [vmem:[#allocation5_spill] sm:$0xff] %v9350_v31 }
 0x13f   : > { %v1565_v39 = vpop.f32.mrf.mxu1 }
 0x140   : > { %v1566_v40 = vadd.f32 %v9176_v37, %v1565_v39 }
 0x142   : > { %v2078_v43 = vmax.f32 %v1566_v40, 0.0 }
 0x144   : > { %v9322_v47 = vpack.c.bf16 %v2078_v43, %v2077_v42  ;;  %v670_v42 = vld [vmem:[%s9125_s30 + $0x358] sm:$0xff]  ;;  %v563_v43 = vld [vmem:[%s9125_s30] sm:$0xff]  ;;  %v1705_v54 = vpop.f32.mrf.mxu2 }
 0x145   : > { %v872_v50 = vpack.c.bf16 %v670_v42, %v669_v41  ;;  %v1706_v57 = vadd.f32 %v9176_v37, %v1705_v54  ;;  %v674_v54 = vld [vmem:[%s9125_s30 + $0x378] sm:$0xff] }
 0x147   : > { %v1568_v52 = vpop.f32.mrf.mxu1  ;;  %v2134_v62 = vmax.f32 %v1706_v57, 0.0  ;;  %v568_v57 = vld [vmem:[%s9125_s30 + $0x28] sm:$0xff] }
 0x148   : > { %v1569_v0 = vadd.f32 %v9176_v37, %v1568_v52  ;;  %v1704_v52 = vadd.f32 %v9176_v37, %v1703_v38  ;;  %v769_v38 = vld [vmem:[%s9125_s30 + $0x670] sm:$0xff] }
 0x14a   : > { %8247 = vmatmul.msk.bf16.gmra.mxu1 %vm959_vm0, %v870_v49  ;;  %v2079_v7 = vmax.f32 %v1569_v0, 0.0  ;;  %v819_v49 = vpack.c.bf16 %v564_v44, %v563_v43  ;;  %v2133_v55 = vmax.f32 %v1704_v52, 0.0  ;;  %v768_v0 = vld [vmem:[%s9125_s30 + $0x668] sm:$0xff] }
 0x14c   : > { %8196 = vmatmul.msk.bf16.vlgmr.msra.gmra.mxu0 %vm959_vm0, %v819_v49 }
 0x14d   : > { %8275 = vmatmul.msk.bf16.gmra.mxu2 %vm959_vm0, %v898_v60  ;;  %v8877_v60 = vld [vmem:[%s9164_s29] sm:$0xff] }
 0x14e   : > { %4226 = vmatpush.bf16.msrb.mxu2 %v8877_v60 }
 0x14f   : > { %v1570_v4 = vpop.f32.mrf.mxu1 }
 0x150   : > { %v1571_v5 = vadd.f32 %v9176_v37, %v1570_v4  ;;  %v9370_v4 = vpack.c.bf16 %v2134_v62, %v2133_v55  ;;  %v567_v55 = vld [vmem:[%s9125_s30 + $0x20] sm:$0xff] }
 0x151   : > { %v821_v59 = vpack.c.bf16 %v568_v57, %v567_v55 }
 0x152   : > { %v2080_v9 = vmax.f32 %v1571_v5, 0.0  ;;  %12479 = vst [vmem:[#allocation6_spill] sm:$0xff] %v9370_v4  ;;  %v921_v5 = vpack.c.bf16 %v768_v0, %v767_v63 }
 0x154   : > { %v9339_v13 = vpack.c.bf16 %v2080_v9, %v2079_v7  ;;  %8298 = vmatmul.msk.bf16.gmra.mxu3 %vm959_vm0, %v921_v5  ;;  %v1708_v9 = vpop.f32.mrf.mxu2 }
 0x155   : > { %v1709_v24 = vadd.f32 %v9176_v37, %v1708_v9  ;;  %v726_v9 = vld [vmem:[%s9125_s30 + $0x518] sm:$0xff] }
 0x157   : > { %v1573_v16 = vpop.f32.mrf.mxu1  ;;  %v2135_v27 = vmax.f32 %v1709_v24, 0.0 }
 0x158   : > { %v1574_v30 = vadd.f32 %v9176_v37, %v1573_v16  ;;  %v565_v16 = vld [vmem:[%s9125_s30 + $0x10] sm:$0xff] }
 0x159   : > { %v820_v21 = vpack.c.bf16 %v566_v17, %v565_v16 }
 0x15a   : > { %8248 = vmatmul.msk.bf16.gmra.mxu1 %vm959_vm0, %v871_v14  ;;  %v2081_v39 = vmax.f32 %v1574_v30, 0.0  ;;  %v671_v14 = vld [vmem:[%s9125_s30 + $0x360] sm:$0xff] }
 0x15b   : > { %v873_v22 = vpack.c.bf16 %v672_v15, %v671_v14  ;;  %v723_v30 = vld [vmem:[%s9125_s30 + $0x500] sm:$0xff]  ;;  %v772_v15 = vld [vmem:[%s9125_s30 + $0x688] sm:$0xff] }
 0x15c   : > { %8197 = vmatmul.msk.bf16.gmra.mxu0 %vm959_vm0, %v820_v21  ;;  %v1710_v26 = vpop.f32.mrf.mxu2  ;;  %v771_v14 = vld [vmem:[%s9125_s30 + $0x680] sm:$0xff] }
 0x15d   : > { %v1711_v29 = vadd.f32 %v9176_v37, %v1710_v26  ;;  %v923_v21 = vpack.c.bf16 %v772_v15, %v771_v14 }
 0x15f   : > { %v1575_v33 = vpop.f32.mrf.mxu1 }
 0x160   : > { %v1576_v34 = vadd.f32 %v9176_v37, %v1575_v33  ;;  %v899_v33 = vpack.c.bf16 %v724_v32, %v723_v30  ;;  %v676_v30 = vld [vmem:[%s9125_s30 + $0x388] sm:$0xff]  ;;  %v1833_v32 = vpop.f32.mrf.mxu3 }
 0x162   : > { %v2082_v40 = vmax.f32 %v1576_v34, 0.0  ;;  %v2136_v34 = vmax.f32 %v1711_v29, 0.0  ;;  %8276 = vmatmul.msk.bf16.gmra.mxu2 %vm959_vm0, %v899_v33  ;;  %v675_v29 = vld [vmem:[%s9125_s30 + $0x380] sm:$0xff]  ;;  %v569_v33 = vld [vmem:[%s9125_s30 + $0x30] sm:$0xff] }
 0x164   : > { %v9358_v46 = vpack.c.bf16 %v2082_v40, %v2081_v39  ;;  %v770_v39 = vld [vmem:[%s9125_s30 + $0x678] sm:$0xff]  ;;  %v9390_v41 = vpack.c.bf16 %v2136_v34, %v2135_v27  ;;  %v1713_v49 = vpop.f32.mrf.mxu2 }
 0x165   : > { %v922_v42 = vpack.c.bf16 %v770_v39, %v769_v38  ;;  %v1714_v63 = vadd.f32 %v9176_v37, %v1713_v49  ;;  %v570_v34 = vld [vmem:[%s9125_s30 + $0x38] sm:$0xff] }
 0x166   : > { %12480 = vst [vmem:[#allocation7_spill] sm:$0xff] %v9390_v41  ;;  %v822_v39 = vpack.c.bf16 %v570_v34, %v569_v33 }
 0x167   : > { %v1578_v53 = vpop.f32.mrf.mxu1  ;;  %8299 = vmatmul.msk.bf16.gmra.mxu3 %vm959_vm0, %v922_v42  ;;  %v2137_v5 = vmax.f32 %v1714_v63, 0.0  ;;  %v773_v63 = vld [vmem:[%s9125_s30 + $0x690] sm:$0xff] }
 0x168   : > { %v1579_v2 = vadd.f32 %v9176_v37, %v1578_v53  ;;  %v673_v53 = vld [vmem:[%s9125_s30 + $0x370] sm:$0xff]  ;;  %v1835_v55 = vpop.f32.mrf.mxu3 }
 0x169   : > { %v874_v62 = vpack.c.bf16 %v674_v54, %v673_v53  ;;  %v727_v53 = vld [vmem:[%s9125_s30 + $0x520] sm:$0xff]  ;;  %v728_v54 = vld [vmem:[%s9125_s30 + $0x528] sm:$0xff] }
 0x16a   : > { %8249 = vmatmul.msk.bf16.gmra.mxu1 %vm959_vm0, %v872_v50  ;;  %v2083_v11 = vmax.f32 %v1579_v2, 0.0  ;;  %v901_v57 = vpack.c.bf16 %v728_v54, %v727_v53 }
 0x16c   : > { %8198 = vmatmul.msk.bf16.gmra.mxu0 %vm959_vm0, %v821_v59  ;;  %v1715_v2 = vpop.f32.mrf.mxu2 }
 0x16f   : > { %v1580_v6 = vpop.f32.mrf.mxu1 }
 0x170   : > { %v1581_v7 = vadd.f32 %v9176_v37, %v1580_v6  ;;  %v1716_v6 = vadd.f32 %v9176_v37, %v1715_v2 }
 0x172   : > { %v2084_v12 = vmax.f32 %v1581_v7, 0.0  ;;  %v725_v7 = vld [vmem:[%s9125_s30 + $0x510] sm:$0xff] }
 0x174   : > { %v9378_v20 = vpack.c.bf16 %v2084_v12, %v2083_v11  ;;  %v900_v11 = vpack.c.bf16 %v726_v9, %v725_v7  ;;  %v2138_v12 = vmax.f32 %v1716_v6, 0.0 }
 0x176   : > { %8277 = vmatmul.msk.bf16.gmra.mxu2 %vm959_vm0, %v900_v11  ;;  %v9411_v17 = vpack.c.bf16 %v2138_v12, %v2137_v5 }
 0x177   : > { %v1583_v25 = vpop.f32.mrf.mxu1  ;;  %8300 = vmatmul.msk.bf16.gmra.mxu3 %vm959_vm0, %v923_v21  ;;  %v677_v21 = vld [vmem:[%s9125_s30 + $0x390] sm:$0xff] }
 0x178   : > { %v1584_v40 = vadd.f32 %v9176_v37, %v1583_v25  ;;  %12481 = vst [vmem:[#allocation8_spill] sm:$0xff] %v9411_v17  ;;  %v1718_v25 = vpop.f32.mrf.mxu2 }
 0x179   : > { %v1719_v42 = vadd.f32 %v9176_v37, %v1718_v25  ;;  %v571_v25 = vld [vmem:[%s9125_s30 + $0x40] sm:$0xff] }
 0x17a   : > { %8250 = vmatmul.msk.bf16.gmra.mxu1 %vm959_vm0, %v873_v22  ;;  %v2085_v50 = vmax.f32 %v1584_v40, 0.0  ;;  %v875_v40 = vpack.c.bf16 %v676_v30, %v675_v29 }
 0x17c   : > { %8199 = vmatmul.msk.bf16.gmra.mxu0 %vm959_vm0, %v822_v39 }
 0x17f   : > { %v1585_v43 = vpop.f32.mrf.mxu1 }
 0x180   : > { %v1586_v44 = vadd.f32 %v9176_v37, %v1585_v43  ;;  %v1720_v49 = vpop.f32.mrf.mxu2 }
 0x182   : > { %v2086_v52 = vmax.f32 %v1586_v44, 0.0  ;;  %v1834_v44 = vadd.f32 %v9176_v37, %v1833_v32 }
 0x184   : > { %v9398_v58 = vpack.c.bf16 %v2086_v52, %v2085_v50  ;;  %v2139_v50 = vmax.f32 %v1719_v42, 0.0  ;;  %v1721_v52 = vadd.f32 %v9176_v37, %v1720_v49  ;;  %v2185_v59 = vmax.f32 %v1834_v44, 0.0  ;;  %v729_v44 = vld [vmem:[%s9125_s30 + $0x530] sm:$0xff]  ;;  %v730_v49 = vld [vmem:[%s9125_s30 + $0x538] sm:$0xff] }
 0x186   : > { %v2140_v60 = vmax.f32 %v1721_v52, 0.0  ;;  %8278 = vmatmul.msk.bf16.gmra.mxu2 %vm959_vm0, %v901_v57  ;;  %v902_v52 = vpack.c.bf16 %v730_v49, %v729_v44  ;;  %v775_v57 = vld [vmem:[%s9125_s30 + $0x6a0] sm:$0xff] }
 0x187   : > { %v1588_v0 = vpop.f32.mrf.mxu1 }
 0x188   : > { %v1589_v16 = vadd.f32 %v9176_v37, %v1588_v0  ;;  %v774_v0 = vld [vmem:[%s9125_s30 + $0x698] sm:$0xff]  ;;  %v9433_v5 = vpack.c.bf16 %v2140_v60, %v2139_v50  ;;  %v1723_v14 = vpop.f32.mrf.mxu2 }
 0x189   : > { %v924_v7 = vpack.c.bf16 %v774_v0, %v773_v63  ;;  %v1724_v32 = vadd.f32 %v9176_v37, %v1723_v14 }
 0x18a   : > { %8251 = vmatmul.msk.bf16.gmra.mxu1 %vm959_vm0, %v874_v62  ;;  %v2087_v26 = vmax.f32 %v1589_v16, 0.0  ;;  %v1836_v62 = vadd.f32 %v9176_v37, %v1835_v55  ;;  %12482 = vst [vmem:[#allocation9_spill] sm:$0xff] %v9433_v5 }
 0x18b   : > { %8301 = vmatmul.msk.bf16.gmra.mxu3 %vm959_vm0, %v924_v7 }
 0x18c   : > { %v2186_v6 = vmax.f32 %v1836_v62, 0.0 }
 0x18e   : > { %v9436_v12 = vpack.c.bf16 %v2186_v6, %v2185_v59  ;;  %v776_v59 = vld [vmem:[%s9125_s30 + $0x6a8] sm:$0xff] }
 0x18f   : > { %v1590_v22 = vpop.f32.mrf.mxu1  ;;  %v925_v0 = vpack.c.bf16 %v776_v59, %v775_v57 }
 0x190   : > { %v1591_v24 = vadd.f32 %v9176_v37, %v1590_v22  ;;  %12483 = vst [vmem:[#allocation10_spill] sm:$0xff] %v9436_v12  ;;  %v678_v22 = vld [vmem:[%s9125_s30 + $0x398] sm:$0xff]  ;;  %v1725_v39 = vpop.f32.mrf.mxu2 }
 0x191   : > { %v876_v30 = vpack.c.bf16 %v678_v22, %v677_v21  ;;  %v1726_v42 = vadd.f32 %v9176_v37, %v1725_v39  ;;  %v573_v22 = vld [vmem:[%s9125_s30 + $0x50] sm:$0xff] }
 0x192   : > { %v2088_v27 = vmax.f32 %v1591_v24, 0.0  ;;  %v1838_v24 = vpop.f32.mrf.mxu3 }
 0x193   : > { %v1839_v34 = vadd.f32 %v9176_v37, %v1838_v24  ;;  %v2142_v54 = vmax.f32 %v1726_v42, 0.0  ;;  %v574_v24 = vld [vmem:[%s9125_s30 + $0x58] sm:$0xff]  ;;  %v731_v42 = vld [vmem:[%s9125_s30 + $0x540] sm:$0xff] }
 0x194   : > { %v9419_v38 = vpack.c.bf16 %v2088_v27, %v2087_v26  ;;  %v572_v26 = vld [vmem:[%s9125_s30 + $0x48] sm:$0xff] }
 0x195   : > { %v823_v29 = vpack.c.bf16 %v572_v26, %v571_v25  ;;  %v2187_v53 = vmax.f32 %v1839_v34, 0.0  ;;  %v824_v26 = vpack.c.bf16 %v574_v24, %v573_v22  ;;  %v575_v22 = vld [vmem:[%s9125_s30 + $0x60] sm:$0xff]  ;;  %v576_v24 = vld [vmem:[%s9125_s30 + $0x68] sm:$0xff] }
 0x196   : > { %8279 = vmatmul.msk.bf16.gmra.mxu2 %vm959_vm0, %v902_v52 }
 0x197   : > { %v1593_v43 = vpop.f32.mrf.mxu1  ;;  %8200 = vmatmul.msk.bf16.gmra.mxu0 %vm959_vm0, %v823_v29 }
 0x198   : > { %v1594_v2 = vadd.f32 %v9176_v37, %v1593_v43  ;;  %v8882_v43 = vld [vmem:[%s12472_s9 + $0x8] sm:$0xff] }
 0x199   : > { %7099 = vmatpush.bf16.msrb.mxu0 %v8882_v43  ;;  %v732_v43 = vld [vmem:[%s9125_s30 + $0x548] sm:$0xff] }
 0x19a   : > { %8252 = vmatmul.msk.bf16.gmra.mxu1 %vm959_vm0, %v875_v40  ;;  %v2089_v15 = vmax.f32 %v1594_v2, 0.0  ;;  %v2141_v40 = vmax.f32 %v1724_v32, 0.0  ;;  %v1840_v50 = vpop.f32.mrf.mxu3  ;;  %v903_v49 = vpack.c.bf16 %v732_v43, %v731_v42  ;;  %v733_v43 = vld [vmem:[%s9125_s30 + $0x550] sm:$0xff] }
 0x19b   : > { %v1841_v55 = vadd.f32 %v9176_v37, %v1840_v50  ;;  %8302 = vmatmul.msk.bf16.gmra.mxu3 %vm959_vm0, %v925_v0 }
 0x19c   : > { %v9460_v62 = vpack.c.bf16 %v2142_v54, %v2141_v40  ;;  %v777_v54 = vld [vmem:[%s9125_s30 + $0x6b0] sm:$0xff] }
 0x19d   : > { %v2188_v63 = vmax.f32 %v1841_v55, 0.0  ;;  %v778_v55 = vld [vmem:[%s9125_s30 + $0x6b8] sm:$0xff] }
 0x19e   : > { %12484 = vst [vmem:[#allocation11_spill] sm:$0xff] %v9460_v62 }
 0x19f   : > { %v1595_v9 = vpop.f32.mrf.mxu1  ;;  %v9463_v7 = vpack.c.bf16 %v2188_v63, %v2187_v53  ;;  %v926_v63 = vpack.c.bf16 %v778_v55, %v777_v54  ;;  %v779_v55 = vld [vmem:[%s9125_s30 + $0x6c0] sm:$0xff] }
 0x1a0   : > { %v1596_v11 = vadd.f32 %v9176_v37, %v1595_v9  ;;  %v1728_v9 = vpop.f32.mrf.mxu2 }
 0x1a1   : > { %12485 = vst [vmem:[#allocation12_spill] sm:$0xff] %v9463_v7 }
 0x1a2   : > { %v2090_v16 = vmax.f32 %v1596_v11, 0.0  ;;  %v1843_v21 = vpop.f32.mrf.mxu3 }
 0x1a4   : > { %v9443_v27 = vpack.c.bf16 %v2090_v16, %v2089_v15  ;;  %v679_v15 = vld [vmem:[%s9125_s30 + $0x3a0] sm:$0xff]  ;;  %v680_v16 = vld [vmem:[%s9125_s30 + $0x3a8] sm:$0xff] }
 0x1a5   : > { %v877_v29 = vpack.c.bf16 %v680_v16, %v679_v15  ;;  %v681_v15 = vld [vmem:[%s9125_s30 + $0x3b0] sm:$0xff]  ;;  %v682_v16 = vld [vmem:[%s9125_s30 + $0x3b8] sm:$0xff] }
 0x1a6   : > { %8280 = vmatmul.msk.bf16.gmra.mxu2 %vm959_vm0, %v903_v49 }
 0x1a7   : > { %v1598_v33 = vpop.f32.mrf.mxu1  ;;  %8201 = vmatmul.msk.bf16.gmra.mxu0 %vm959_vm0, %v824_v26 }
 0x1a8   : > { %v1599_v60 = vadd.f32 %v9176_v37, %v1598_v33  ;;  %v1844_v33 = vadd.f32 %v9176_v37, %v1843_v21  ;;  %v1730_v34 = vpop.f32.mrf.mxu2 }
 0x1a9   : > { %v1731_v40 = vadd.f32 %v9176_v37, %v1730_v34 }
 0x1aa   : > { %8253 = vmatmul.msk.bf16.gmra.mxu1 %vm959_vm0, %v876_v30  ;;  %v2091_v11 = vmax.f32 %v1599_v60, 0.0  ;;  %v1729_v30 = vadd.f32 %v9176_v37, %v1728_v9  ;;  %v1845_v44 = vpop.f32.mrf.mxu3  ;;  %v2189_v50 = vmax.f32 %v1844_v33, 0.0 }
 0x1ab   : > { %v2144_v52 = vmax.f32 %v1731_v40, 0.0  ;;  %v1846_v53 = vadd.f32 %v9176_v37, %v1845_v44  ;;  %8303 = vmatmul.msk.bf16.gmra.mxu3 %vm959_vm0, %v926_v63  ;;  %v734_v44 = vld [vmem:[%s9125_s30 + $0x558] sm:$0xff] }
 0x1ac   : > { %v2143_v39 = vmax.f32 %v1729_v30, 0.0  ;;  %v878_v30 = vpack.c.bf16 %v682_v16, %v681_v15 }
 0x1ad   : > { %v2190_v60 = vmax.f32 %v1846_v53, 0.0 }
 0x1ae   : > { %v9484_v59 = vpack.c.bf16 %v2144_v52, %v2143_v39 }
 0x1af   : > { %v1600_v2 = vpop.f32.mrf.mxu1 }
 0x1b0   : > { %v1601_v6 = vadd.f32 %v9176_v37, %v1600_v2  ;;  %12486 = vst [vmem:[#allocation13_spill] sm:$0xff] %v9484_v59  ;;  %v1733_v9 = vpop.f32.mrf.mxu2  ;;  %v597_v59 = vld [vmem:[%s9125_s30 + $0x110] sm:$0xff] }
 0x1b2   : > { %v2092_v14 = vmax.f32 %v1601_v6, 0.0  ;;  %v9487_v6 = vpack.c.bf16 %v2190_v60, %v2189_v50  ;;  %v1848_v21 = vpop.f32.mrf.mxu3  ;;  %v904_v50 = vpack.c.bf16 %v734_v44, %v733_v43 }
 0x1b3   : > { %v1849_v34 = vadd.f32 %v9176_v37, %v1848_v21 }
 0x1b4   : > { %v9470_v25 = vpack.c.bf16 %v2092_v14, %v2091_v11  ;;  %12487 = vst [vmem:[#allocation14_spill] sm:$0xff] %v9487_v6 }
 0x1b5   : > { %v2191_v52 = vmax.f32 %v1849_v34, 0.0 }
 0x1b6   : > { %8281 = vmatmul.msk.bf16.gmra.mxu2 %vm959_vm0, %v904_v50 }
 0x1b7   : > { %v1603_v32 = vpop.f32.mrf.mxu1 }
 0x1b8   : > { %v1604_v57 = vadd.f32 %v9176_v37, %v1603_v32  ;;  %v1734_v32 = vadd.f32 %v9176_v37, %v1733_v9  ;;  %v1735_v39 = vpop.f32.mrf.mxu2 }
 0x1b9   : > { %v1736_v42 = vadd.f32 %v9176_v37, %v1735_v39 }
 0x1ba   : > { %8254 = vmatmul.msk.bf16.gmra.mxu1 %vm959_vm0, %v877_v29  ;;  %v2093_v11 = vmax.f32 %v1604_v57, 0.0  ;;  %v825_v29 = vpack.c.bf16 %v576_v24, %v575_v22  ;;  %v2145_v40 = vmax.f32 %v1734_v32, 0.0  ;;  %v1850_v49 = vpop.f32.mrf.mxu3  ;;  %v780_v57 = vld [vmem:[%s9125_s30 + $0x6c8] sm:$0xff]  ;;  %v683_v22 = vld [vmem:[%s9125_s30 + $0x3c0] sm:$0xff]  ;;  %v578_v32 = vld [vmem:[%s9125_s30 + $0x78] sm:$0xff] }
 0x1bb   : > { %v2146_v53 = vmax.f32 %v1736_v42, 0.0  ;;  %v1851_v54 = vadd.f32 %v9176_v37, %v1850_v49  ;;  %v684_v24 = vld [vmem:[%s9125_s30 + $0x3c8] sm:$0xff] }
 0x1bc   : > { %8202 = vmatmul.msk.bf16.gmra.mxu0 %vm959_vm0, %v825_v29  ;;  %v879_v39 = vpack.c.bf16 %v684_v24, %v683_v22 }
 0x1bd   : > { %v9508_v63 = vpack.c.bf16 %v2146_v53, %v2145_v40  ;;  %v9521_v40 = vld [vmem:[%s9103_s15] ss:$0 sm:$0xff]  ;;  %v736_v53 = vld [vmem:[%s9125_s30 + $0x568] sm:$0xff] }
 0x1bf   : > { %v1605_v0 = vpop.f32.mrf.mxu1  ;;  %12488 = vst [vmem:[#allocation15_spill] sm:$0xff] %v9508_v63 }
 0x1c0   : > { %v1606_v2 = vadd.f32 %v9176_v37, %v1605_v0  ;;  %v2192_v0 = vmax.f32 %v1851_v54, 0.0  ;;  %v1738_v15 = vpop.f32.mrf.mxu2 }
 0x1c2   : > { %v2094_v14 = vmax.f32 %v1606_v2, 0.0  ;;  %v927_v2 = vpack.c.bf16 %v780_v57, %v779_v55  ;;  %v1853_v29 = vpop.f32.mrf.mxu3 }
 0x1c3   : > { %v1854_v43 = vadd.f32 %v9521_v40, %v1853_v29 }
 0x1c4   : > { %v9494_v26 = vpack.c.bf16 %v2094_v14, %v2093_v11  ;;  %v9511_v14 = vpack.c.bf16 %v2192_v0, %v2191_v52  ;;  %8304 = vmatmul.msk.bf16.gmra.mxu3 %vm959_vm0, %v927_v2  ;;  %v735_v52 = vld [vmem:[%s9125_s30 + $0x560] sm:$0xff]  ;;  %v781_v2 = vld [vmem:[%s9125_s30 + $0x6d0] sm:$0xff] }
 0x1c5   : > { %v905_v55 = vpack.c.bf16 %v736_v53, %v735_v52  ;;  %v2193_v57 = vmax.f32 %v1854_v43, 0.0 }
 0x1c6   : > { %12489 = vst [vmem:[#allocation16_spill] sm:$0xff] %v9511_v14  ;;  %v690_v14 = vld [vmem:[%s9125_s30 + $0x3f8] sm:$0xff] }
 0x1c7   : > { %v1608_v33 = vpop.f32.mrf.mxu1  ;;  %8282 = vmatmul.msk.bf16.gmra.mxu2 %vm959_vm0, %v905_v55 }
 0x1c8   : > { %v1609_v60 = vadd.f32 %v9176_v37, %v1608_v33  ;;  %v1740_v44 = vpop.f32.mrf.mxu2 }
 0x1c9   : > { %v1741_v50 = vadd.f32 %v9521_v40, %v1740_v44  ;;  %v9543_v43 = vpop.f32.mrf.mxu0  ;;  %v579_v44 = vld [vmem:[%s9125_s30 + $0x80] sm:$0xff] }
 0x1ca   : > { %8255 = vmatmul.msk.bf16.gmra.mxu1 %vm959_vm0, %v878_v30  ;;  %v2095_v16 = vmax.f32 %v1609_v60, 0.0  ;;  %v577_v30 = vld [vmem:[%s9125_s30 + $0x70] sm:$0xff]  ;;  %v1855_v54 = vpop.f32.mrf.mxu3 }
 0x1cb   : > { %v826_v34 = vpack.c.bf16 %v578_v32, %v577_v30  ;;  %v2148_v60 = vmax.f32 %v1741_v50, 0.0  ;;  %v1856_v0 = vadd.f32 %v9521_v40, %v1855_v54 }
 0x1cd   : > { %8203 = vmatmul.msk.bf16.gmra.mxu0 %vm959_vm0, %v826_v34 }
 0x1cf   : > { %v1610_v9 = vpop.f32.mrf.mxu1 }
 0x1d0   : > { %v1611_v11 = vadd.f32 %v9176_v37, %v1610_v9  ;;  %v1739_v37 = vadd.f32 %v9521_v40, %v1738_v15  ;;  %v782_v9 = vld [vmem:[%s9125_s30 + $0x6d8] sm:$0xff]  ;;  %v1743_v30 = vpop.f32.mrf.mxu2 }
 0x1d1   : > { %v1744_v54 = vadd.f32 %v9521_v40, %v1743_v30 }
 0x1d2   : > { %v2096_v21 = vmax.f32 %v1611_v11, 0.0  ;;  %v2147_v49 = vmax.f32 %v1739_v37, 0.0  ;;  %v686_v37 = vld [vmem:[%s9125_s30 + $0x3d8] sm:$0xff] }
 0x1d4   : > { %v9518_v33 = vpack.c.bf16 %v2096_v21, %v2095_v16  ;;  %v9535_v15 = vpack.c.bf16 %v2148_v60, %v2147_v49  ;;  %v2194_v16 = vmax.f32 %v1856_v0, 0.0  ;;  %v928_v21 = vpack.c.bf16 %v782_v9, %v781_v2  ;;  %v580_v49 = vld [vmem:[%s9125_s30 + $0x88] sm:$0xff]  ;;  %v737_v9 = vld [vmem:[%s9125_s30 + $0x570] sm:$0xff] }
 0x1d5   : > { %v827_v52 = vpack.c.bf16 %v580_v49, %v579_v44  ;;  %v2149_v0 = vmax.f32 %v1744_v54, 0.0 }
 0x1d6   : > { %12490 = vst [vmem:[#allocation17_spill] sm:$0xff] %v9535_v15  ;;  %v9538_v29 = vpack.c.bf16 %v2194_v16, %v2193_v57  ;;  %8305 = vmatmul.msk.bf16.gmra.mxu3 %vm959_vm0, %v928_v21  ;;  %v9556_v16 = vpop.f32.mrf.mxu0 }
 0x1d7   : > { %v1613_v42 = vpop.f32.mrf.mxu1 }
 0x1d8   : > { %v1614_v11 = vadd.f32 %v9521_v40, %v1613_v42  ;;  %12491 = vst [vmem:[#allocation18_spill] sm:$0xff] %v9538_v29  ;;  %v1858_v42 = vpop.f32.mrf.mxu3  ;;  %v1745_v60 = vpop.f32.mrf.mxu2 }
 0x1d9   : > { %v1859_v57 = vadd.f32 %v9521_v40, %v1858_v42  ;;  %v1746_v2 = vadd.f32 %v9521_v40, %v1745_v60 }
 0x1da   : > { %8256 = vmatmul.msk.bf16.gmra.mxu1 %vm959_vm0, %v879_v39  ;;  %v2097_v32 = vmax.f32 %v1614_v11, 0.0  ;;  %v685_v39 = vld [vmem:[%s9125_s30 + $0x3d0] sm:$0xff]  ;;  %v738_v11 = vld [vmem:[%s9125_s30 + $0x578] sm:$0xff] }
 0x1db   : > { %v880_v53 = vpack.c.bf16 %v686_v37, %v685_v39  ;;  %v2150_v30 = vmax.f32 %v1746_v2, 0.0  ;;  %v784_v39 = vld [vmem:[%s9125_s30 + $0x6e8] sm:$0xff] }
 0x1dd   : > { %8204 = vmatmul.msk.bf16.gmra.mxu0 %vm959_vm0, %v827_v52  ;;  %v9563_v42 = vpack.c.bf16 %v2150_v30, %v2149_v0  ;;  %v581_v0 = vld [vmem:[%s9125_s30 + $0x90] sm:$0xff] }
 0x1df   : > { %v1615_v22 = vpop.f32.mrf.mxu1  ;;  %12492 = vst [vmem:[#allocation19_spill] sm:$0xff] %v9563_v42 }
 0x1e0   : > { %v1616_v24 = vadd.f32 %v9521_v40, %v1615_v22  ;;  %v1860_v21 = vpop.f32.mrf.mxu3  ;;  %v906_v22 = vpack.c.bf16 %v738_v11, %v737_v9  ;;  %v687_v9 = vld [vmem:[%s9125_s30 + $0x3e0] sm:$0xff]  ;;  %v688_v11 = vld [vmem:[%s9125_s30 + $0x3e8] sm:$0xff] }
 0x1e2   : > { %v2098_v34 = vmax.f32 %v1616_v24, 0.0  ;;  %v2195_v24 = vmax.f32 %v1859_v57, 0.0  ;;  %8283 = vmatmul.msk.bf16.gmra.mxu2 %vm959_vm0, %v906_v22  ;;  %v1748_v57 = vpop.f32.mrf.mxu2  ;;  %v582_v22 = vld [vmem:[%s9125_s30 + $0x98] sm:$0xff] }
 0x1e4   : > { %v9547_v50 = vpack.c.bf16 %v2098_v34, %v2097_v32  ;;  %v1861_v32 = vadd.f32 %v9521_v40, %v1860_v21  ;;  %v783_v34 = vld [vmem:[%s9125_s30 + $0x6e0] sm:$0xff]  ;;  %v9571_v21 = vpop.f32.mrf.mxu0 }
 0x1e5   : > { %v929_v49 = vpack.c.bf16 %v784_v39, %v783_v34  ;;  %v881_v34 = vpack.c.bf16 %v688_v11, %v687_v9 }
 0x1e6   : > { %v2196_v44 = vmax.f32 %v1861_v32, 0.0  ;;  %v828_v32 = vpack.c.bf16 %v582_v22, %v581_v0 }
 0x1e7   : > { %v1618_v55 = vpop.f32.mrf.mxu1  ;;  %8306 = vmatmul.msk.bf16.gmra.mxu3 %vm959_vm0, %v929_v49 }
 0x1e8   : > { %v1619_v37 = vadd.f32 %v9521_v40, %v1618_v55  ;;  %v9566_v54 = vpack.c.bf16 %v2196_v44, %v2195_v24  ;;  %v1863_v55 = vpop.f32.mrf.mxu3  ;;  %v1749_v24 = vadd.f32 %v9521_v40, %v1748_v57 }
 0x1ea   : > { %8257 = vmatmul.msk.bf16.gmra.mxu1 %vm959_vm0, %v880_v53  ;;  %12493 = vst [vmem:[#allocation20_spill] sm:$0xff] %v9566_v54  ;;  %v2099_v60 = vmax.f32 %v1619_v37, 0.0  ;;  %v1864_v37 = vadd.f32 %v9521_v40, %v1863_v55  ;;  %v1750_v44 = vpop.f32.mrf.mxu2  ;;  %v2151_v49 = vmax.f32 %v1749_v24, 0.0  ;;  %v785_v55 = vld [vmem:[%s9125_s30 + $0x6f0] sm:$0xff] }
 0x1ec   : > { %v2197_v57 = vmax.f32 %v1864_v37, 0.0 }
 0x1ed   : > { %8205 = vmatmul.msk.bf16.gmra.mxu0 %vm959_vm0, %v828_v32  ;;  %v786_v32 = vld [vmem:[%s9125_s30 + $0x6f8] sm:$0xff] }
 0x1ee   : > { %v930_v54 = vpack.c.bf16 %v786_v32, %v785_v55 }
 0x1ef   : > { %v1620_v52 = vpop.f32.mrf.mxu1 }
 0x1f0   : > { %v1621_v53 = vadd.f32 %v9521_v40, %v1620_v52  ;;  %v1751_v52 = vadd.f32 %v9521_v40, %v1750_v44  ;;  %v1865_v9 = vpop.f32.mrf.mxu3 }
 0x1f1   : > { %v1866_v22 = vadd.f32 %v9521_v40, %v1865_v9 }
 0x1f2   : > { %v2100_v2 = vmax.f32 %v1621_v53, 0.0  ;;  %v739_v53 = vld [vmem:[%s9125_s30 + $0x580] sm:$0xff]  ;;  %v2152_v0 = vmax.f32 %v1751_v52, 0.0 }
 0x1f3   : > { %v2198_v44 = vmax.f32 %v1866_v22, 0.0 }
 0x1f4   : > { %v9575_v30 = vpack.c.bf16 %v2100_v2, %v2099_v60  ;;  %v740_v60 = vld [vmem:[%s9125_s30 + $0x588] sm:$0xff]  ;;  %v9584_v2 = vpop.f32.mrf.mxu0  ;;  %v9591_v24 = vpack.c.bf16 %v2152_v0, %v2151_v49  ;;  %v583_v49 = vld [vmem:[%s9125_s30 + $0xa0] sm:$0xff] }
 0x1f5   : > { %v907_v11 = vpack.c.bf16 %v740_v60, %v739_v53  ;;  %v9594_v52 = vpack.c.bf16 %v2198_v44, %v2197_v57  ;;  %v1753_v53 = vpop.f32.mrf.mxu2  ;;  %v584_v0 = vld [vmem:[%s9125_s30 + $0xa8] sm:$0xff] }
 0x1f6   : > { %12494 = vst [vmem:[#allocation21_spill] sm:$0xff] %v9591_v24  ;;  %v829_v55 = vpack.c.bf16 %v584_v0, %v583_v49  ;;  %v1754_v57 = vadd.f32 %v9521_v40, %v1753_v53 }
 0x1f7   : > { %v1623_v39 = vpop.f32.mrf.mxu1  ;;  %8284 = vmatmul.msk.bf16.gmra.mxu2 %vm959_vm0, %v907_v11  ;;  %12495 = vst [vmem:[#allocation22_spill] sm:$0xff] %v9594_v52  ;;  %8307 = vmatmul.msk.bf16.gmra.mxu3 %vm959_vm0, %v930_v54  ;;  %v689_v11 = vld [vmem:[%s9125_s30 + $0x3f0] sm:$0xff] }
 0x1f8   : > { %v2153_v44 = vmax.f32 %v1754_v57, 0.0  ;;  %v741_v52 = vld [vmem:[%s9125_s30 + $0x590] sm:$0xff] }
 0x1fa   : > { %8258 = vmatmul.msk.bf16.gmra.mxu1 %vm959_vm0, %v881_v34  ;;  %v1624_v34 = vadd.f32 %v9521_v40, %v1623_v39  ;;  %v1868_v39 = vpop.f32.mrf.mxu3 }
 0x1fb   : > { %v1869_v54 = vadd.f32 %v9521_v40, %v1868_v39  ;;  %v788_v39 = vld [vmem:[%s9125_s30 + $0x708] sm:$0xff] }
 0x1fc   : > { %v2101_v60 = vmax.f32 %v1624_v34, 0.0  ;;  %v9599_v6 = vpop.f32.mrf.mxu0 }
 0x1fd   : > { %8206 = vmatmul.msk.bf16.gmra.mxu0 %vm959_vm0, %v829_v55  ;;  %v1755_v34 = vpop.f32.mrf.mxu2  ;;  %v2199_v53 = vmax.f32 %v1869_v54, 0.0  ;;  %v787_v55 = vld [vmem:[%s9125_s30 + $0x700] sm:$0xff]  ;;  %v1356_v54 = vadd.f32 %v9521_v40, %v9556_v16 }
 0x1fe   : > { %v931_v7 = vpack.c.bf16 %v788_v39, %v787_v55  ;;  %v586_v55 = vld [vmem:[%s9125_s30 + $0xb8] sm:$0xff] }
 0x1ff   : > { %v1625_v29 = vpop.f32.mrf.mxu1  ;;  %v1994_v39 = vmax.f32 %v1356_v54, 0.0 }
 0x200   : > { %v1626_v37 = vadd.f32 %v9521_v40, %v1625_v29  ;;  %v882_v29 = vpack.c.bf16 %v690_v14, %v689_v11 }
 0x202   : > { %v2102_v9 = vmax.f32 %v1626_v37, 0.0  ;;  %v1756_v37 = vadd.f32 %v9521_v40, %v1755_v34  ;;  %v1870_v14 = vpop.f32.mrf.mxu3 }
 0x203   : > { %v1871_v0 = vadd.f32 %v9521_v40, %v1870_v14 }
 0x204   : > { %v9603_v22 = vpack.c.bf16 %v2102_v9, %v2101_v60  ;;  %v742_v60 = vld [vmem:[%s9125_s30 + $0x598] sm:$0xff]  ;;  %v9612_v9 = vpop.f32.mrf.mxu0  ;;  %v2154_v49 = vmax.f32 %v1756_v37, 0.0 }
 0x205   : > { %v908_v11 = vpack.c.bf16 %v742_v60, %v741_v52  ;;  %v2200_v34 = vmax.f32 %v1871_v0, 0.0  ;;  %v1354_v52 = vadd.f32 %v9521_v40, %v9543_v43  ;;  %v1758_v14 = vpop.f32.mrf.mxu2  ;;  %v585_v0 = vld [vmem:[%s9125_s30 + $0xb0] sm:$0xff] }
 0x206   : > { %v9619_v57 = vpack.c.bf16 %v2154_v49, %v2153_v44 }
 0x207   : > { %v1628_v32 = vpop.f32.mrf.mxu1  ;;  %8285 = vmatmul.msk.bf16.gmra.mxu2 %vm959_vm0, %v908_v11  ;;  %v9626_v60 = vpack.c.bf16 %v2200_v34, %v2199_v53  ;;  %8308 = vmatmul.msk.bf16.gmra.mxu3 %vm959_vm0, %v931_v7  ;;  %v1993_v43 = vmax.f32 %v1354_v52, 0.0  ;;  %v1759_v53 = vadd.f32 %v9521_v40, %v1758_v14 }
 0x208   : > { %12496 = vst [vmem:[#allocation23_spill] sm:$0xff] %v9619_v57 }
 0x209   : > { %12497 = vst [vmem:[#allocation24_spill] sm:$0xff] %v9626_v60  ;;  %v2249_v7 = vpack.c.bf16 %v1994_v39, %v1993_v43  ;;  %v2155_v52 = vmax.f32 %v1759_v53, 0.0  ;;  %v8879_v60 = vld [vmem:[%s9271_s17] sm:$0xff]  ;;  %v789_v39 = vld [vmem:[%s9125_s30 + $0x710] sm:$0xff] }
 0x20a   : > { %8259 = vmatmul.msk.bf16.gmra.mxu1 %vm959_vm0, %v882_v29  ;;  %v1629_v29 = vadd.f32 %v9521_v40, %v1628_v32  ;;  %v1873_v49 = vpop.f32.mrf.mxu3  ;;  %5663 = vmatpush.bf16.msrb.mxu3 %v8879_v60  ;;  %v1361_v60 = vadd.f32 %v9521_v40, %v9584_v2 }
 0x20c   : > { %v2103_v32 = vmax.f32 %v1629_v29, 0.0  ;;  %v9629_v44 = vpop.f32.mrf.mxu0  ;;  %v1874_v29 = vadd.f32 %v9521_v40, %v1873_v49 }
 0x20e   : > { %v2201_v57 = vmax.f32 %v1874_v29, 0.0  ;;  %v1359_v29 = vadd.f32 %v9521_v40, %v9571_v21 }
 0x20f   : > { %v1630_v12 = vpop.f32.mrf.mxu1 }
 0x210   : > { %v1631_v37 = vadd.f32 %v9521_v40, %v1630_v12  ;;  %v830_v12 = vpack.c.bf16 %v586_v55, %v585_v0  ;;  %v1995_v21 = vmax.f32 %v1359_v29, 0.0 }
 0x212   : > { %v2104_v11 = vmax.f32 %v1631_v37, 0.0  ;;  %8207 = vmatmul.msk.bf16.gmra.mxu0 %vm959_vm0, %v830_v12  ;;  %v1760_v37 = vpop.f32.mrf.mxu2  ;;  %v1875_v14 = vpop.f32.mrf.mxu3  ;;  %v790_v12 = vld [vmem:[%s9125_s30 + $0x718] sm:$0xff] }
 0x213   : > { %v1761_v54 = vadd.f32 %v9521_v40, %v1760_v37  ;;  %v1876_v49 = vadd.f32 %v9521_v40, %v1875_v14  ;;  %v932_v24 = vpack.c.bf16 %v790_v12, %v789_v39  ;;  %v1996_v39 = vmax.f32 %v1361_v60, 0.0  ;;  %v745_v60 = vld [vmem:[%s9125_s30 + $0x5b0] sm:$0xff] }
 0x214   : > { %v9633_v16 = vpack.c.bf16 %v2104_v11, %v2103_v32  ;;  %v743_v32 = vld [vmem:[%s9125_s30 + $0x5a0] sm:$0xff]  ;;  %v744_v11 = vld [vmem:[%s9125_s30 + $0x5a8] sm:$0xff]  ;;  %v9643_v0 = vpop.f32.mrf.mxu0 }
 0x215   : > { %v909_v55 = vpack.c.bf16 %v744_v11, %v743_v32  ;;  %v2156_v43 = vmax.f32 %v1761_v54, 0.0  ;;  %v2202_v37 = vmax.f32 %v1876_v49, 0.0  ;;  %v588_v49 = vld [vmem:[%s9125_s30 + $0xc8] sm:$0xff] }
 0x217   : > { %v1633_v34 = vpop.f32.mrf.mxu1  ;;  %8286 = vmatmul.msk.bf16.gmra.mxu2 %vm959_vm0, %v909_v55  ;;  %v9657_v32 = vpack.c.bf16 %v2202_v37, %v2201_v57  ;;  %8309 = vmatmul.msk.bf16.gmra.mxu3 %vm959_vm0, %v932_v24  ;;  %v2250_v24 = vpack.c.bf16 %v1996_v39, %v1995_v21  ;;  %v791_v21 = vld [vmem:[%s9125_s30 + $0x720] sm:$0xff] }
 0x218   : > { %v1634_v53 = vadd.f32 %v9521_v40, %v1633_v34 }
 0x219   : > { %12499 = vst [vmem:[#allocation26_spill] sm:$0xff] %v9657_v32 }
 0x21a   : > { %8332 = vmatmul.msk.bf16.vlgmr.msrb.gmra.mxu1 %vm2397_vm1, %v2249_v7  ;;  %v9650_v7 = vpack.c.bf16 %v2156_v43, %v2155_v52  ;;  %v1763_v11 = vpop.f32.mrf.mxu2  ;;  %v2105_v34 = vmax.f32 %v1634_v53, 0.0  ;;  %v1878_v55 = vpop.f32.mrf.mxu3  ;;  %v587_v43 = vld [vmem:[%s9125_s30 + $0xc0] sm:$0xff] }
 0x21b   : > { %v831_v2 = vpack.c.bf16 %v588_v49, %v587_v43  ;;  %v1879_v53 = vadd.f32 %v9521_v40, %v1878_v55  ;;  %v792_v55 = vld [vmem:[%s9125_s30 + $0x728] sm:$0xff] }
 0x21c   : > { %12498 = vst [vmem:[#allocation25_spill] sm:$0xff] %v9650_v7  ;;  %v9660_v52 = vpop.f32.mrf.mxu0 }
 0x21d   : > { %v2203_v49 = vmax.f32 %v1879_v53, 0.0  ;;  %v1366_v53 = vadd.f32 %v9521_v40, %v9612_v9 }
 0x21f   : > { %v1635_v42 = vpop.f32.mrf.mxu1 }
 0x220   : > { %v1636_v54 = vadd.f32 %v9521_v40, %v1635_v42  ;;  %v1764_v42 = vadd.f32 %v9521_v40, %v1763_v11 }
 0x222   : > { %v2106_v14 = vmax.f32 %v1636_v54, 0.0  ;;  %8208 = vmatmul.msk.bf16.gmra.mxu0 %vm959_vm0, %v831_v2  ;;  %v1765_v37 = vpop.f32.mrf.mxu2  ;;  %v2157_v54 = vmax.f32 %v1764_v42, 0.0  ;;  %v1880_v43 = vpop.f32.mrf.mxu3 }
 0x223   : > { %v1766_v29 = vadd.f32 %v9521_v40, %v1765_v37  ;;  %v1881_v2 = vadd.f32 %v9521_v40, %v1880_v43  ;;  %v933_v37 = vpack.c.bf16 %v792_v55, %v791_v21  ;;  %v590_v21 = vld [vmem:[%s9125_s30 + $0xd8] sm:$0xff]  ;;  %v1998_v55 = vmax.f32 %v1366_v53, 0.0  ;;  %v747_v53 = vld [vmem:[%s9125_s30 + $0x5c0] sm:$0xff] }
 0x224   : > { %v9664_v12 = vpack.c.bf16 %v2106_v14, %v2105_v34  ;;  %v746_v34 = vld [vmem:[%s9125_s30 + $0x5b8] sm:$0xff]  ;;  %v9673_v14 = vpop.f32.mrf.mxu0 }
 0x225   : > { %v910_v11 = vpack.c.bf16 %v746_v34, %v745_v60  ;;  %v2158_v32 = vmax.f32 %v1766_v29, 0.0  ;;  %v1364_v60 = vadd.f32 %v9521_v40, %v9599_v6 }
 0x227   : > { %v1638_v57 = vpop.f32.mrf.mxu1  ;;  %8287 = vmatmul.msk.bf16.gmra.mxu2 %vm959_vm0, %v910_v11  ;;  %v9680_v42 = vpack.c.bf16 %v2158_v32, %v2157_v54  ;;  %8310 = vmatmul.msk.bf16.gmra.mxu3 %vm959_vm0, %v933_v37  ;;  %v1997_v6 = vmax.f32 %v1364_v60, 0.0 }
 0x228   : > { %v1639_v39 = vadd.f32 %v9521_v40, %v1638_v57 }
 0x229   : > { %12500 = vst [vmem:[#allocation27_spill] sm:$0xff] %v9680_v42 }
 0x22a   : > { %8333 = vmatmul.msk.bf16.gmra.mxu1 %vm2397_vm1, %v2250_v24  ;;  %v2204_v24 = vmax.f32 %v1881_v2, 0.0  ;;  %v1768_v43 = vpop.f32.mrf.mxu2  ;;  %v2107_v57 = vmax.f32 %v1639_v39, 0.0  ;;  %v1883_v54 = vpop.f32.mrf.mxu3  ;;  %v589_v2 = vld [vmem:[%s9125_s30 + $0xd0] sm:$0xff]  ;;  %v2251_v39 = vpack.c.bf16 %v1998_v55, %v1997_v6 }
 0x22b   : > { %v832_v9 = vpack.c.bf16 %v590_v21, %v589_v2  ;;  %v793_v6 = vld [vmem:[%s9125_s30 + $0x730] sm:$0xff] }
 0x22c   : > { %v9687_v34 = vpack.c.bf16 %v2204_v24, %v2203_v49  ;;  %v9690_v32 = vpop.f32.mrf.mxu0  ;;  %v1884_v24 = vadd.f32 %v9521_v40, %v1883_v54  ;;  %v794_v54 = vld [vmem:[%s9125_s30 + $0x738] sm:$0xff] }
 0x22e   : > { %12501 = vst [vmem:[#allocation28_spill] sm:$0xff] %v9687_v34  ;;  %v2205_v21 = vmax.f32 %v1884_v24, 0.0  ;;  %v1371_v24 = vadd.f32 %v9521_v40, %v9643_v0 }
 0x22f   : > { %v1640_v7 = vpop.f32.mrf.mxu1 }
 0x230   : > { %v1641_v29 = vadd.f32 %v9521_v40, %v1640_v7  ;;  %v1769_v7 = vadd.f32 %v9521_v40, %v1768_v43 }
 0x232   : > { %v2108_v11 = vmax.f32 %v1641_v29, 0.0  ;;  %8209 = vmatmul.msk.bf16.gmra.mxu0 %vm959_vm0, %v832_v9  ;;  %v1770_v37 = vpop.f32.mrf.mxu2  ;;  %v2159_v29 = vmax.f32 %v1769_v7, 0.0  ;;  %v1885_v2 = vpop.f32.mrf.mxu3 }
 0x233   : > { %v1771_v60 = vadd.f32 %v9521_v40, %v1770_v37  ;;  %v1886_v9 = vadd.f32 %v9521_v40, %v1885_v2  ;;  %v934_v37 = vpack.c.bf16 %v794_v54, %v793_v6  ;;  %v2000_v54 = vmax.f32 %v1371_v24, 0.0 }
 0x234   : > { %v9694_v42 = vpack.c.bf16 %v2108_v11, %v2107_v57  ;;  %v748_v57 = vld [vmem:[%s9125_s30 + $0x5c8] sm:$0xff]  ;;  %v9703_v11 = vpop.f32.mrf.mxu0 }
 0x235   : > { %v911_v43 = vpack.c.bf16 %v748_v57, %v747_v53  ;;  %v2160_v34 = vmax.f32 %v1771_v60, 0.0  ;;  %v1369_v53 = vadd.f32 %v9521_v40, %v9629_v44  ;;  %v592_v44 = vld [vmem:[%s9125_s30 + $0xe8] sm:$0xff] }
 0x237   : > { %v1643_v49 = vpop.f32.mrf.mxu1  ;;  %8288 = vmatmul.msk.bf16.gmra.mxu2 %vm959_vm0, %v911_v43  ;;  %v9710_v7 = vpack.c.bf16 %v2160_v34, %v2159_v29  ;;  %8311 = vmatmul.msk.bf16.gmra.mxu3 %vm959_vm0, %v934_v37  ;;  %v1999_v6 = vmax.f32 %v1369_v53, 0.0 }
 0x238   : > { %v1644_v55 = vadd.f32 %v9521_v40, %v1643_v49 }
 0x239   : > { %12502 = vst [vmem:[#allocation29_spill] sm:$0xff] %v9710_v7 }
 0x23a   : > { %8334 = vmatmul.msk.bf16.gmra.mxu1 %vm2397_vm1, %v2251_v39  ;;  %v2206_v39 = vmax.f32 %v1886_v9, 0.0  ;;  %v9720_v2 = vpop.f32.mrf.mxu2  ;;  %v2109_v49 = vmax.f32 %v1644_v55, 0.0  ;;  %v1888_v43 = vpop.f32.mrf.mxu3  ;;  %v591_v9 = vld [vmem:[%s9125_s30 + $0xe0] sm:$0xff] }
 0x23b   : > { %12504 = vst [vmem:[#allocation31_spill] sm:$0xff] %v9720_v2  ;;  %v1889_v55 = vadd.f32 %v9521_v40, %v1888_v43 }
 0x23c   : > { %v9717_v57 = vpack.c.bf16 %v2206_v39, %v2205_v21  ;;  %v9722_v29 = vpop.f32.mrf.mxu0  ;;  %v2252_v39 = vpack.c.bf16 %v2000_v54, %v1999_v6 }
 0x23e   : > { %12503 = vst [vmem:[#allocation30_spill] sm:$0xff] %v9717_v57  ;;  %v750_v57 = vld [vmem:[%s9125_s30 + $0x5d8] sm:$0xff] }
 0x23f   : > { %v1645_v15 = vpop.f32.mrf.mxu1 }
 0x240   : > { %v1646_v60 = vadd.f32 %v9521_v40, %v1645_v15  ;;  %v833_v15 = vpack.c.bf16 %v592_v44, %v591_v9  ;;  %v795_v9 = vld [vmem:[%s9125_s30 + $0x740] sm:$0xff]  ;;  %v796_v44 = vld [vmem:[%s9125_s30 + $0x748] sm:$0xff] }
 0x241   : > { %v935_v54 = vpack.c.bf16 %v796_v44, %v795_v9  ;;  %v593_v44 = vld [vmem:[%s9125_s30 + $0xf0] sm:$0xff] }
 0x242   : > { %v2110_v34 = vmax.f32 %v1646_v60, 0.0  ;;  %8210 = vmatmul.msk.bf16.gmra.mxu0 %vm959_vm0, %v833_v15  ;;  %v9730_v37 = vpop.f32.mrf.mxu2  ;;  %v749_v60 = vld [vmem:[%s9125_s30 + $0x5d0] sm:$0xff]  ;;  %v1890_v53 = vpop.f32.mrf.mxu3 }
 0x243   : > { %12505 = vst [vmem:[#allocation32_spill] sm:$0xff] %v9730_v37  ;;  %v912_v24 = vpack.c.bf16 %v750_v57, %v749_v60  ;;  %v1376_v57 = vadd.f32 %v9521_v40, %v9673_v14 }
 0x244   : > { %v9726_v0 = vpack.c.bf16 %v2110_v34, %v2109_v49  ;;  %v9735_v2 = vpop.f32.mrf.mxu0  ;;  %v2207_v49 = vmax.f32 %v1889_v55, 0.0  ;;  %v1891_v34 = vadd.f32 %v9521_v40, %v1890_v53 }
 0x245   : > { %v2002_v7 = vmax.f32 %v1376_v57, 0.0 }
 0x246   : > { %v2208_v6 = vmax.f32 %v1891_v34, 0.0 }
 0x247   : > { %v1648_v21 = vpop.f32.mrf.mxu1  ;;  %8289 = vmatmul.msk.bf16.gmra.mxu2 %vm959_vm0, %v912_v24  ;;  %8312 = vmatmul.msk.bf16.gmra.mxu3 %vm959_vm0, %v935_v54 }
 0x248   : > { %v1649_v43 = vadd.f32 %v9521_v40, %v1648_v21  ;;  %v9747_v60 = vpack.c.bf16 %v2208_v6, %v2207_v49 }
 0x24a   : > { %8335 = vmatmul.msk.bf16.gmra.mxu1 %vm2397_vm1, %v2252_v39  ;;  %v1374_v39 = vadd.f32 %v9521_v40, %v9660_v52  ;;  %12506 = vst [vmem:[#allocation33_spill] sm:$0xff] %v9747_v60  ;;  %v9750_v53 = vpop.f32.mrf.mxu2  ;;  %v2111_v24 = vmax.f32 %v1649_v43, 0.0  ;;  %v1893_v9 = vpop.f32.mrf.mxu3  ;;  %v594_v52 = vld [vmem:[%s9125_s30 + $0xf8] sm:$0xff]  ;;  %v752_v60 = vld [vmem:[%s9125_s30 + $0x5e8] sm:$0xff] }
 0x24b   : > { %12507 = vst [vmem:[#allocation34_spill] sm:$0xff] %v9750_v53  ;;  %v834_v49 = vpack.c.bf16 %v594_v52, %v593_v44  ;;  %v1894_v43 = vadd.f32 %v9521_v40, %v1893_v9  ;;  %v797_v44 = vld [vmem:[%s9125_s30 + $0x750] sm:$0xff] }
 0x24c   : > { %v9752_v34 = vpop.f32.mrf.mxu0  ;;  %v2001_v37 = vmax.f32 %v1374_v39, 0.0 }
 0x24e   : > { %v2253_v54 = vpack.c.bf16 %v2002_v7, %v2001_v37  ;;  %v798_v7 = vld [vmem:[%s9125_s30 + $0x758] sm:$0xff] }
 0x24f   : > { %v1650_v15 = vpop.f32.mrf.mxu1  ;;  %v936_v52 = vpack.c.bf16 %v798_v7, %v797_v44  ;;  %v595_v44 = vld [vmem:[%s9125_s30 + $0x100] sm:$0xff]  ;;  %v596_v7 = vld [vmem:[%s9125_s30 + $0x108] sm:$0xff] }
 0x250   : > { %v1651_v55 = vadd.f32 %v9521_v40, %v1650_v15 }
 0x252   : > { %v2112_v21 = vmax.f32 %v1651_v55, 0.0  ;;  %8211 = vmatmul.msk.bf16.gmra.mxu0 %vm959_vm0, %v834_v49  ;;  %v9760_v15 = vpop.f32.mrf.mxu2  ;;  %v751_v55 = vld [vmem:[%s9125_s30 + $0x5e0] sm:$0xff]  ;;  %v1895_v39 = vpop.f32.mrf.mxu3 }
 0x253   : > { %12508 = vst [vmem:[#allocation35_spill] sm:$0xff] %v9760_v15  ;;  %v913_v57 = vpack.c.bf16 %v752_v60, %v751_v55  ;;  %v1381_v60 = vadd.f32 %v9521_v40, %v9703_v11 }
 0x254   : > { %v9756_v14 = vpack.c.bf16 %v2112_v21, %v2111_v24  ;;  %v9765_v53 = vpop.f32.mrf.mxu0  ;;  %v2209_v24 = vmax.f32 %v1894_v43, 0.0  ;;  %v1896_v21 = vadd.f32 %v9521_v40, %v1895_v39 }
 0x256   : > { %v2210_v9 = vmax.f32 %v1896_v21, 0.0 }
 0x257   : > { %v1653_v6 = vpop.f32.mrf.mxu1  ;;  %8290 = vmatmul.msk.bf16.gmra.mxu2 %vm959_vm0, %v913_v57  ;;  %8313 = vmatmul.msk.bf16.gmra.mxu3 %vm959_vm0, %v936_v52 }
 0x258   : > { %v1654_v37 = vadd.f32 %v9521_v40, %v1653_v6  ;;  %v9777_v55 = vpack.c.bf16 %v2210_v9, %v2209_v24  ;;  %v835_v24 = vpack.c.bf16 %v596_v7, %v595_v44  ;;  %v800_v44 = vld [vmem:[%s9125_s30 + $0x768] sm:$0xff] }
 0x25a   : > { %8336 = vmatmul.msk.bf16.gmra.mxu1 %vm2397_vm1, %v2253_v54  ;;  %v1379_v54 = vadd.f32 %v9521_v40, %v9690_v32  ;;  %12509 = vst [vmem:[#allocation36_spill] sm:$0xff] %v9777_v55  ;;  %v2113_v39 = vmax.f32 %v1654_v37, 0.0  ;;  %v9780_v6 = vpop.f32.mrf.mxu2  ;;  %v1898_v21 = vpop.f32.mrf.mxu3  ;;  %v2004_v32 = vmax.f32 %v1381_v60, 0.0 }
 0x25b   : > { %12510 = vst [vmem:[#allocation37_spill] sm:$0xff] %v9780_v6  ;;  %v1899_v52 = vadd.f32 %v9521_v40, %v1898_v21 }
 0x25c   : > { %v2003_v15 = vmax.f32 %v1379_v54, 0.0  ;;  %v9786_v11 = vpop.f32.mrf.mxu0 }
 0x25d   : > { %v2211_v60 = vmax.f32 %v1899_v52, 0.0  ;;  %v1386_v52 = vadd.f32 %v9521_v40, %v9735_v2 }
 0x25e   : > { %v2254_v37 = vpack.c.bf16 %v2004_v32, %v2003_v15  ;;  %v799_v15 = vld [vmem:[%s9125_s30 + $0x760] sm:$0xff] }
 0x25f   : > { %v1655_v49 = vpop.f32.mrf.mxu1  ;;  %v937_v32 = vpack.c.bf16 %v800_v44, %v799_v15  ;;  %v2006_v15 = vmax.f32 %v1386_v52, 0.0 }
 0x260   : > { %v1656_v43 = vadd.f32 %v9521_v40, %v1655_v49  ;;  %v753_v49 = vld [vmem:[%s9125_s30 + $0x5f0] sm:$0xff] }
 0x262   : > { %v2114_v57 = vmax.f32 %v1656_v43, 0.0  ;;  %8212 = vmatmul.msk.bf16.gmra.mxu0 %vm959_vm0, %v835_v24  ;;  %v754_v43 = vld [vmem:[%s9125_s30 + $0x5f8] sm:$0xff]  ;;  %v1900_v55 = vpop.f32.mrf.mxu3  ;;  %v9796_v6 = vpop.f32.mrf.mxu2 }
 0x263   : > { %v914_v54 = vpack.c.bf16 %v754_v43, %v753_v49  ;;  %12511 = vst [vmem:[#allocation38_spill] sm:$0xff] %v9796_v6 }
 0x264   : > { %v9784_v63 = vpack.c.bf16 %v2114_v57, %v2113_v39  ;;  %v9793_v39 = vpop.f32.mrf.mxu0  ;;  %v1901_v57 = vadd.f32 %v9521_v40, %v1900_v55 }
 0x266   : > { %v2212_v7 = vmax.f32 %v1901_v57, 0.0 }
 0x267   : > { %v1658_v9 = vpop.f32.mrf.mxu1  ;;  %8291 = vmatmul.msk.bf16.gmra.mxu2 %vm959_vm0, %v914_v54  ;;  %8314 = vmatmul.msk.bf16.gmra.mxu3 %vm959_vm0, %v937_v32 }
 0x268   : > { %v1659_v21 = vadd.f32 %v9521_v40, %v1658_v9  ;;  %v9807_v49 = vpack.c.bf16 %v2212_v7, %v2211_v60  ;;  %v598_v9 = vld [vmem:[%s9125_s30 + $0x118] sm:$0xff] }
 0x269   : > { %v836_v2 = vpack.c.bf16 %v598_v9, %v597_v59  ;;  %v802_v59 = vld [vmem:[%s9125_s30 + $0x778] sm:$0xff] }
 0x26a   : > { %8337 = vmatmul.msk.bf16.gmra.mxu1 %vm2397_vm1, %v2254_v37  ;;  %v1384_v37 = vadd.f32 %v9521_v40, %v9722_v29  ;;  %12512 = vst [vmem:[#allocation39_spill] sm:$0xff] %v9807_v49  ;;  %v2115_v43 = vmax.f32 %v1659_v21, 0.0  ;;  %v1903_v6 = vpop.f32.mrf.mxu3 }
 0x26b   : > { %v1904_v21 = vadd.f32 %v9521_v40, %v1903_v6  ;;  %v1389_v6 = vadd.f32 %v9521_v40, %v9752_v34 }
 0x26c   : > { %v2005_v57 = vmax.f32 %v1384_v37, 0.0  ;;  %v9814_v29 = vpop.f32.mrf.mxu0 }
 0x26d   : > { %v2213_v32 = vmax.f32 %v1904_v21, 0.0 }
 0x26e   : > { %v2255_v60 = vpack.c.bf16 %v2006_v15, %v2005_v57  ;;  %v1391_v57 = vadd.f32 %v9521_v40, %v9765_v53 }
 0x26f   : > { %v1660_v24 = vpop.f32.mrf.mxu1 }
 0x270   : > { %v1661_v55 = vadd.f32 %v9521_v40, %v1660_v24  ;;  %v9816_v24 = vpop.f32.mrf.mxu2  ;;  %v2008_v34 = vmax.f32 %v1391_v57, 0.0  ;;  %v803_v57 = vld [vmem:[%s9125_s30 + $0x780] sm:$0xff] }
 0x271   : > { %12513 = vst [vmem:[#allocation40_spill] sm:$0xff] %v9816_v24 }
 0x272   : > { %v2116_v54 = vmax.f32 %v1661_v55, 0.0  ;;  %8213 = vmatmul.msk.bf16.gmra.mxu0 %vm959_vm0, %v836_v2  ;;  %v1905_v7 = vpop.f32.mrf.mxu3  ;;  %v801_v55 = vld [vmem:[%s9125_s30 + $0x770] sm:$0xff] }
 0x273   : > { %v1906_v52 = vadd.f32 %v9521_v40, %v1905_v7  ;;  %v938_v9 = vpack.c.bf16 %v802_v59, %v801_v55  ;;  %v600_v55 = vld [vmem:[%s9125_s30 + $0x128] sm:$0xff]  ;;  %v2007_v59 = vmax.f32 %v1389_v6, 0.0 }
 0x274   : > { %v9812_v44 = vpack.c.bf16 %v2116_v54, %v2115_v43  ;;  %v9821_v37 = vpop.f32.mrf.mxu0 }
 0x275   : > { %v2214_v54 = vmax.f32 %v1906_v52, 0.0  ;;  %v599_v52 = vld [vmem:[%s9125_s30 + $0x120] sm:$0xff] }
 0x277   : > { %v1663_v62 = vpop.f32.mrf.mxu1  ;;  %8315 = vmatmul.msk.bf16.gmra.mxu3 %vm959_vm0, %v938_v9 }
 0x278   : > { %v1664_v43 = vadd.f32 %v9521_v40, %v1663_v62  ;;  %v9835_v21 = vpop.f32.mrf.mxu2 }
 0x279   : > { %12515 = vst [vmem:[#allocation42_spill] sm:$0xff] %v9835_v21 }
 0x27a   : > { %8338 = vmatmul.msk.bf16.gmra.mxu1 %vm2397_vm1, %v2255_v60  ;;  %v9832_v60 = vpack.c.bf16 %v2214_v54, %v2213_v32  ;;  %v2117_v7 = vmax.f32 %v1664_v43, 0.0  ;;  %v1908_v62 = vpop.f32.mrf.mxu3  ;;  %v2256_v54 = vpack.c.bf16 %v2008_v34, %v2007_v59 }
 0x27b   : > { %v1909_v9 = vadd.f32 %v9521_v40, %v1908_v62  ;;  %v1394_v62 = vadd.f32 %v9521_v40, %v9786_v11 }
 0x27c   : > { %12514 = vst [vmem:[#allocation41_spill] sm:$0xff] %v9832_v60  ;;  %v9841_v53 = vpop.f32.mrf.mxu0 }
 0x27d   : > { %v2215_v60 = vmax.f32 %v1909_v9, 0.0 }
 0x27f   : > { %v1665_v2 = vpop.f32.mrf.mxu1 }
 0x280   : > { %v1666_v15 = vadd.f32 %v9521_v40, %v1665_v2  ;;  %v837_v2 = vpack.c.bf16 %v600_v55, %v599_v52  ;;  %v9846_v43 = vpop.f32.mrf.mxu2 }
 0x281   : > { %12516 = vst [vmem:[#allocation43_spill] sm:$0xff] %v9846_v43 }
 0x282   : > { %v2118_v49 = vmax.f32 %v1666_v15, 0.0  ;;  %8214 = vmatmul.msk.bf16.gmra.mxu0 %vm959_vm0, %v837_v2  ;;  %v1910_v15 = vpop.f32.mrf.mxu3  ;;  %v1396_v2 = vadd.f32 %v9521_v40, %v9793_v39 }
 0x284   : > { %v9839_v24 = vpack.c.bf16 %v2118_v49, %v2117_v7  ;;  %v9848_v6 = vpop.f32.mrf.mxu0  ;;  %v1911_v49 = vadd.f32 %v9521_v40, %v1910_v15  ;;  %v804_v7 = vld [vmem:[%s9125_s30 + $0x788] sm:$0xff] }
 0x285   : > { %v939_v59 = vpack.c.bf16 %v804_v7, %v803_v57  ;;  %v2009_v57 = vmax.f32 %v1394_v62, 0.0  ;;  %v2010_v7 = vmax.f32 %v1396_v2, 0.0 }
 0x286   : > { %v2216_v55 = vmax.f32 %v1911_v49, 0.0  ;;  %v602_v49 = vld [vmem:[%s9125_s30 + $0x138] sm:$0xff] }
 0x287   : > { %v1668_v32 = vpop.f32.mrf.mxu1  ;;  %8316 = vmatmul.msk.bf16.gmra.mxu3 %vm959_vm0, %v939_v59  ;;  %v9873_v59 = vld [vmem:[%s9108_s23] ss:$0 sm:$0xff] }
 0x288   : > { %v1669_v52 = vadd.f32 %v9521_v40, %v1668_v32  ;;  %v9859_v9 = vpack.c.bf16 %v2216_v55, %v2215_v60  ;;  %v601_v32 = vld [vmem:[%s9125_s30 + $0x130] sm:$0xff]  ;;  %v2257_v55 = vpack.c.bf16 %v2010_v7, %v2009_v57 }
 0x289   : > { %v838_v39 = vpack.c.bf16 %v602_v49, %v601_v32  ;;  %v806_v32 = vld [vmem:[%s9125_s30 + $0x798] sm:$0xff] }
 0x28a   : > { %8339 = vmatmul.msk.bf16.gmra.mxu1 %vm2397_vm1, %v2256_v54  ;;  %12517 = vst [vmem:[#allocation44_spill] sm:$0xff] %v9859_v9  ;;  %v2119_v15 = vmax.f32 %v1669_v52, 0.0  ;;  %v1913_v21 = vpop.f32.mrf.mxu3 }
 0x28b   : > { %v1914_v52 = vadd.f32 %v9521_v40, %v1913_v21 }
 0x28d   : > { %v2217_v2 = vmax.f32 %v1914_v52, 0.0  ;;  %v1401_v52 = vadd.f32 %v9521_v40, %v9821_v37 }
 0x28f   : > { %v1670_v34 = vpop.f32.mrf.mxu1  ;;  %v9866_v5 = vpop.f32.mrf.mxu0  ;;  %v2012_v41 = vmax.f32 %v1401_v52, 0.0 }
 0x290   : > { %v1671_v54 = vadd.f32 %v9521_v40, %v1670_v34  ;;  %v9868_v34 = vpop.f32.mrf.mxu2 }
 0x291   : > { %12518 = vst [vmem:[#allocation45_spill] sm:$0xff] %v9868_v34 }
 0x292   : > { %v2120_v43 = vmax.f32 %v1671_v54, 0.0  ;;  %8215 = vmatmul.msk.bf16.gmra.mxu0 %vm959_vm0, %v838_v39  ;;  %v1915_v62 = vpop.f32.mrf.mxu3 }
 0x294   : > { %v9864_v11 = vpack.c.bf16 %v2120_v43, %v2119_v15  ;;  %v1916_v43 = vadd.f32 %v9521_v40, %v1915_v62  ;;  %v805_v15 = vld [vmem:[%s9125_s30 + $0x790] sm:$0xff] }
 0x295   : > { %v940_v57 = vpack.c.bf16 %v806_v32, %v805_v15  ;;  %v604_v15 = vld [vmem:[%s9125_s30 + $0x148] sm:$0xff] }
 0x296   : > { %v2218_v39 = vmax.f32 %v1916_v43, 0.0  ;;  %v603_v43 = vld [vmem:[%s9125_s30 + $0x140] sm:$0xff] }
 0x297   : > { %v2791_v60 = vpop.f32.mrf.mxu1  ;;  %v9876_v54 = vpop.f32.mrf.mxu0  ;;  %8317 = vmatmul.msk.bf16.gmra.mxu3 %vm959_vm0, %v940_v57 }
 0x298   : > { %v2792_v49 = vadd.f32 %v9873_v59, %v2791_v60  ;;  %v9882_v21 = vpop.f32.mrf.mxu2  ;;  %v9889_v62 = vpack.c.bf16 %v2218_v39, %v2217_v2 }
 0x299   : > { %12519 = vst [vmem:[#allocation46_spill] sm:$0xff] %v9882_v21 }
 0x29a   : > { %8340 = vmatmul.msk.bf16.gmra.mxu1 %vm2397_vm1, %v2257_v55  ;;  %v1399_v55 = vadd.f32 %v9521_v40, %v9814_v29  ;;  %12520 = vst [vmem:[#allocation47_spill] sm:$0xff] %v9889_v62  ;;  %v3431_v34 = vmax.f32 %v2792_v49, 0.0  ;;  %v1918_v60 = vpop.f32.mrf.mxu3  ;;  %v839_v29 = vpack.c.bf16 %v604_v15, %v603_v43  ;;  %v1404_v15 = vadd.f32 %v9521_v40, %v9841_v53 }
 0x29b   : > { %v1919_v49 = vadd.f32 %v9521_v40, %v1918_v60 }
 0x29c   : > { %v2011_v32 = vmax.f32 %v1399_v55, 0.0 }
 0x29d   : > { %v2219_v39 = vmax.f32 %v1919_v49, 0.0 }
 0x29e   : > { %v2258_v2 = vpack.c.bf16 %v2012_v41, %v2011_v32  ;;  %v808_v41 = vld [vmem:[%s9125_s30 + $0x7a8] sm:$0xff]  ;;  %v1406_v32 = vadd.f32 %v9521_v40, %v9848_v6 }
 0x29f   : > { %v2793_v7 = vpop.f32.mrf.mxu1  ;;  %v9894_v4 = vpop.f32.mrf.mxu0 }
 0x2a0   : > { %v2794_v9 = vadd.f32 %v9873_v59, %v2793_v7  ;;  %v2014_v62 = vmax.f32 %v1406_v32, 0.0 }
 0x2a2   : > { %v3432_v17 = vmax.f32 %v2794_v9, 0.0  ;;  %8216 = vmatmul.msk.bf16.gmra.mxu0 %vm959_vm0, %v839_v29  ;;  %v9899_v9 = vpop.f32.mrf.mxu2 }
 0x2a3   : > { %12521 = vst [vmem:[#allocation48_spill] sm:$0xff] %v9899_v9 }
 0x2a4   : > { %v3687_v21 = vpack.c.bf16 %v3432_v17, %v3431_v34  ;;  %v8881_v17 = vld [vmem:[%s12472_s9] sm:$0xff]  ;;  %v1920_v34 = vpop.f32.mrf.mxu3 }
 0x2a5   : > { %7100 = vmatpush.bf16.msrb.mxu0 %v8881_v17  ;;  %v1921_v7 = vadd.f32 %v9521_v40, %v1920_v34 }
 0x2a6   : > { %8468 = vmatmul.msk.bf16.vlgmr.msrb.gmra.mxu2 %vm2397_vm1, %v3687_v21  ;;  %v807_v21 = vld [vmem:[%s9125_s30 + $0x7a0] sm:$0xff] }
 0x2a7   : > { %v2796_v37 = vpop.f32.mrf.mxu1  ;;  %v9905_v57 = vpop.f32.mrf.mxu0  ;;  %v2220_v52 = vmax.f32 %v1921_v7, 0.0  ;;  %v941_v60 = vpack.c.bf16 %v808_v41, %v807_v21  ;;  %v605_v7 = vld [vmem:[%s9125_s30 + $0x150] sm:$0xff]  ;;  %v606_v21 = vld [vmem:[%s9125_s30 + $0x158] sm:$0xff]  ;;  %v2013_v41 = vmax.f32 %v1404_v15, 0.0 }
 0x2a8   : > { %v2797_v55 = vadd.f32 %v9873_v59, %v2796_v37  ;;  %v840_v6 = vpack.c.bf16 %v606_v21, %v605_v7  ;;  %v810_v7 = vld [vmem:[%s9125_s30 + $0x7b8] sm:$0xff] }
 0x2a9   : > { %8318 = vmatmul.msk.bf16.gmra.mxu3 %vm959_vm0, %v941_v60 }
 0x2aa   : > { %8341 = vmatmul.msk.bf16.gmra.mxu1 %vm2397_vm1, %v2258_v2  ;;  %v9916_v2 = vpack.c.bf16 %v2220_v52, %v2219_v39  ;;  %v3433_v49 = vmax.f32 %v2797_v55, 0.0  ;;  %v9919_v34 = vpop.f32.mrf.mxu2  ;;  %v2259_v55 = vpack.c.bf16 %v2014_v62, %v2013_v41  ;;  %v9928_v52 = vld [vmem:[%s9103_s15] ss:$0 sm:$0xff] }
 0x2ab   : > { %12523 = vst [vmem:[#allocation50_spill] sm:$0xff] %v9919_v34  ;;  %v607_v34 = vld [vmem:[%s9125_s30 + $0x160] sm:$0xff] }
 0x2ac   : > { %12522 = vst [vmem:[#allocation49_spill] sm:$0xff] %v9916_v2  ;;  %v1923_v37 = vpop.f32.mrf.mxu3 }
 0x2ad   : > { %v1924_v60 = vadd.f32 %v9928_v52, %v1923_v37  ;;  %v1409_v37 = vadd.f32 %v9928_v52, %v9866_v5 }
 0x2af   : > { %v2798_v43 = vpop.f32.mrf.mxu1  ;;  %v9923_v40 = vpop.f32.mrf.mxu0  ;;  %v2221_v15 = vmax.f32 %v1924_v60, 0.0 }
 0x2b0   : > { %v2799_v29 = vadd.f32 %v9873_v59, %v2798_v43 }
 0x2b2   : > { %v3434_v17 = vmax.f32 %v2799_v29, 0.0  ;;  %8217 = vmatmul.msk.bf16.gmra.mxu0 %vm959_vm0, %v840_v6  ;;  %v1411_v6 = vadd.f32 %v9928_v52, %v9876_v54 }
 0x2b4   : > { %v3688_v53 = vpack.c.bf16 %v3434_v17, %v3433_v49  ;;  %v1925_v43 = vpop.f32.mrf.mxu3  ;;  %v9935_v49 = vpop.f32.mrf.mxu2  ;;  %v809_v17 = vld [vmem:[%s9125_s30 + $0x7b0] sm:$0xff] }
 0x2b5   : > { %v1926_v29 = vadd.f32 %v9928_v52, %v1925_v43  ;;  %12524 = vst [vmem:[#allocation51_spill] sm:$0xff] %v9935_v49  ;;  %v942_v41 = vpack.c.bf16 %v810_v7, %v809_v17  ;;  %v2016_v17 = vmax.f32 %v1411_v6, 0.0  ;;  %v812_v6 = vld [vmem:[%s9125_s30 + $0x7c8] sm:$0xff] }
 0x2b6   : > { %8469 = vmatmul.msk.bf16.gmra.mxu2 %vm2397_vm1, %v3688_v53 }
 0x2b7   : > { %v2801_v39 = vpop.f32.mrf.mxu1  ;;  %v9932_v32 = vpop.f32.mrf.mxu0  ;;  %v2222_v21 = vmax.f32 %v1926_v29, 0.0  ;;  %v2015_v29 = vmax.f32 %v1409_v37, 0.0 }
 0x2b8   : > { %v2802_v62 = vadd.f32 %v9873_v59, %v2801_v39  ;;  %v608_v39 = vld [vmem:[%s9125_s30 + $0x168] sm:$0xff] }
 0x2b9   : > { %v9945_v60 = vpack.c.bf16 %v2222_v21, %v2221_v15  ;;  %8319 = vmatmul.msk.bf16.gmra.mxu3 %vm959_vm0, %v942_v41  ;;  %v841_v9 = vpack.c.bf16 %v608_v39, %v607_v34  ;;  %v811_v34 = vld [vmem:[%s9125_s30 + $0x7c0] sm:$0xff] }
 0x2ba   : > { %8342 = vmatmul.msk.bf16.gmra.mxu1 %vm2397_vm1, %v2259_v55  ;;  %v3435_v43 = vmax.f32 %v2802_v62, 0.0  ;;  %v2260_v62 = vpack.c.bf16 %v2016_v17, %v2015_v29  ;;  %v943_v39 = vpack.c.bf16 %v812_v6, %v811_v34  ;;  %v1416_v29 = vadd.f32 %v9928_v52, %v9905_v57  ;;  %v610_v34 = vld [vmem:[%s9125_s30 + $0x178] sm:$0xff] }
 0x2bb   : > { %12525 = vst [vmem:[#allocation52_spill] sm:$0xff] %v9945_v60 }
 0x2bc   : > { %v1928_v49 = vpop.f32.mrf.mxu3  ;;  %v9953_v15 = vpop.f32.mrf.mxu2  ;;  %v2018_v6 = vmax.f32 %v1416_v29, 0.0  ;;  %v813_v29 = vld [vmem:[%s9125_s30 + $0x7d0] sm:$0xff] }
 0x2bd   : > { %12526 = vst [vmem:[#allocation53_spill] sm:$0xff] %v9953_v15  ;;  %v1929_v21 = vadd.f32 %v9928_v52, %v1928_v49  ;;  %v1414_v49 = vadd.f32 %v9928_v52, %v9894_v4 }
 0x2bf   : > { %v2803_v53 = vpop.f32.mrf.mxu1  ;;  %v9950_v5 = vpop.f32.mrf.mxu0  ;;  %v2017_v4 = vmax.f32 %v1414_v49, 0.0 }
 0x2c0   : > { %v2804_v55 = vadd.f32 %v9873_v59, %v2803_v53  ;;  %v2223_v53 = vmax.f32 %v1929_v21, 0.0 }
 0x2c2   : > { %v3436_v2 = vmax.f32 %v2804_v55, 0.0  ;;  %8218 = vmatmul.msk.bf16.gmra.mxu0 %vm959_vm0, %v841_v9 }
 0x2c4   : > { %v3689_v7 = vpack.c.bf16 %v3436_v2, %v3435_v43  ;;  %v1930_v41 = vpop.f32.mrf.mxu3 }
 0x2c5   : > { %v1931_v2 = vadd.f32 %v9928_v52, %v1930_v41 }
 0x2c6   : > { %8470 = vmatmul.msk.bf16.gmra.mxu2 %vm2397_vm1, %v3689_v7 }
 0x2c7   : > { %v2806_v54 = vpop.f32.mrf.mxu1  ;;  %v9958_v37 = vpop.f32.mrf.mxu0  ;;  %v2224_v43 = vmax.f32 %v1931_v2, 0.0  ;;  %v609_v2 = vld [vmem:[%s9125_s30 + $0x170] sm:$0xff] }
 0x2c8   : > { %v2807_v55 = vadd.f32 %v9873_v59, %v2806_v54 }
 0x2c9   : > { %v9969_v7 = vpack.c.bf16 %v2224_v43, %v2223_v53  ;;  %8320 = vmatmul.msk.bf16.gmra.mxu3 %vm959_vm0, %v943_v39  ;;  %v2261_v43 = vpack.c.bf16 %v2018_v6, %v2017_v4 }
 0x2ca   : > { %8343 = vmatmul.msk.bf16.gmra.mxu1 %vm2397_vm1, %v2260_v62  ;;  %v9972_v62 = vpop.f32.mrf.mxu2  ;;  %v3437_v21 = vmax.f32 %v2807_v55, 0.0 }
 0x2cb   : > { %12527 = vst [vmem:[#allocation54_spill] sm:$0xff] %v9969_v7 }
 0x2cc   : > { %12528 = vst [vmem:[#allocation55_spill] sm:$0xff] %v9972_v62  ;;  %v9974_v54 = vpop.f32.mrf.mxu3  ;;  %v621_v62 = vld [vmem:[%s9125_s30 + $0x1d0] sm:$0xff] }
 0x2cd   : > { %12529 = vst [vmem:[#allocation56_spill] sm:$0xff] %v9974_v54 }
 0x2cf   : > { %v2808_v9 = vpop.f32.mrf.mxu1  ;;  %v9978_v57 = vpop.f32.mrf.mxu0 }
 0x2d0   : > { %v2809_v17 = vadd.f32 %v9873_v59, %v2808_v9  ;;  %v842_v9 = vpack.c.bf16 %v610_v34, %v609_v2  ;;  %v1421_v34 = vadd.f32 %v9928_v52, %v9932_v32 }
 0x2d2   : > { %v3438_v41 = vmax.f32 %v2809_v17, 0.0  ;;  %8219 = vmatmul.msk.bf16.gmra.mxu0 %vm959_vm0, %v842_v9  ;;  %v9983_v55 = vpop.f32.mrf.mxu2  ;;  %v814_v17 = vld [vmem:[%s9125_s30 + $0x7d8] sm:$0xff] }
 0x2d3   : > { %12530 = vst [vmem:[#allocation57_spill] sm:$0xff] %v9983_v55 }
 0x2d4   : > { %v3690_v60 = vpack.c.bf16 %v3438_v41, %v3437_v21  ;;  %v9985_v39 = vpop.f32.mrf.mxu3  ;;  %v944_v41 = vpack.c.bf16 %v814_v17, %v813_v29  ;;  %v2020_v17 = vmax.f32 %v1421_v34, 0.0  ;;  %v816_v34 = vld [vmem:[%s9125_s30 + $0x7e8] sm:$0xff] }
 0x2d5   : > { %12531 = vst [vmem:[#allocation58_spill] sm:$0xff] %v9985_v39  ;;  %v611_v39 = vld [vmem:[%s9125_s30 + $0x180] sm:$0xff] }
 0x2d6   : > { %8471 = vmatmul.msk.bf16.gmra.mxu2 %vm2397_vm1, %v3690_v60  ;;  %v1419_v60 = vadd.f32 %v9928_v52, %v9923_v40 }
 0x2d7   : > { %v2811_v53 = vpop.f32.mrf.mxu1  ;;  %v1430_v49 = vpop.f32.mrf.mxu0 }
 0x2d8   : > { %v2812_v21 = vadd.f32 %v9873_v59, %v2811_v53  ;;  %v612_v53 = vld [vmem:[%s9125_s30 + $0x188] sm:$0xff]  ;;  %v2019_v29 = vmax.f32 %v1419_v60, 0.0  ;;  %v815_v60 = vld [vmem:[%s9125_s30 + $0x7e0] sm:$0xff] }
 0x2d9   : > { %8321 = vmatmul.msk.bf16.gmra.mxu3 %vm959_vm0, %v944_v41  ;;  %v843_v40 = vpack.c.bf16 %v612_v53, %v611_v39  ;;  %v945_v39 = vpack.c.bf16 %v816_v34, %v815_v60  ;;  %v1426_v53 = vadd.f32 %v9928_v52, %v9958_v37 }
 0x2da   : > { %8344 = vmatmul.msk.bf16.gmra.mxu1 %vm2397_vm1, %v2261_v43  ;;  %v3439_v6 = vmax.f32 %v2812_v21, 0.0  ;;  %v10002_v55 = vpop.f32.mrf.mxu2  ;;  %v2262_v21 = vpack.c.bf16 %v2020_v17, %v2019_v29 }
 0x2db   : > { %12533 = vst [vmem:[#allocation60_spill] sm:$0xff] %v10002_v55  ;;  %v2022_v34 = vmax.f32 %v1426_v53, 0.0  ;;  %v818_v53 = vld [vmem:[%s9125_s30 + $0x7f8] sm:$0xff] }
 0x2dc   : > { %v9996_v43 = vpop.f32.mrf.mxu3 }
 0x2dd   : > { %12532 = vst [vmem:[#allocation59_spill] sm:$0xff] %v9996_v43 }
 0x2df   : > { %v2813_v2 = vpop.f32.mrf.mxu1  ;;  %v10000_v7 = vpop.f32.mrf.mxu0 }
 0x2e0   : > { %v2814_v4 = vadd.f32 %v9873_v59, %v2813_v2 }
 0x2e2   : > { %v3440_v9 = vmax.f32 %v2814_v4, 0.0  ;;  %8220 = vmatmul.msk.bf16.gmra.mxu0 %vm959_vm0, %v843_v40 }
 0x2e4   : > { %v3691_v54 = vpack.c.bf16 %v3440_v9, %v3439_v6  ;;  %v10007_v41 = vpop.f32.mrf.mxu3  ;;  %v10012_v9 = vpop.f32.mrf.mxu2 }
 0x2e5   : > { %12534 = vst [vmem:[#allocation61_spill] sm:$0xff] %v10007_v41 }
 0x2e6   : > { %8472 = vmatmul.msk.bf16.gmra.mxu2 %vm2397_vm1, %v3691_v54  ;;  %12535 = vst [vmem:[#allocation62_spill] sm:$0xff] %v10012_v9  ;;  %v1424_v54 = vadd.f32 %v9928_v52, %v9950_v5 }
 0x2e7   : > { %v2816_v32 = vpop.f32.mrf.mxu1  ;;  %v1435_v2 = vpop.f32.mrf.mxu0 }
 0x2e8   : > { %v2817_v4 = vadd.f32 %v9873_v59, %v2816_v32  ;;  %v614_v32 = vld [vmem:[%s9125_s30 + $0x198] sm:$0xff]  ;;  %v2021_v60 = vmax.f32 %v1424_v54, 0.0  ;;  %v817_v54 = vld [vmem:[%s9125_s30 + $0x7f0] sm:$0xff] }
 0x2e9   : > { %8322 = vmatmul.msk.bf16.gmra.mxu3 %vm959_vm0, %v945_v39 }
 0x2ea   : > { %8345 = vmatmul.msk.bf16.gmra.mxu1 %vm2397_vm1, %v2262_v21  ;;  %v3441_v17 = vmax.f32 %v2817_v4, 0.0  ;;  %v613_v21 = vld [vmem:[%s9125_s30 + $0x190] sm:$0xff]  ;;  %v2263_v39 = vpack.c.bf16 %v2022_v34, %v2021_v60 }
 0x2eb   : > { %v844_v9 = vpack.c.bf16 %v614_v32, %v613_v21 }
 0x2ec   : > { %v10024_v5 = vpop.f32.mrf.mxu3  ;;  %v10028_v4 = vpop.f32.mrf.mxu2 }
 0x2ed   : > { %12536 = vst [vmem:[#allocation63_spill] sm:$0xff] %v10024_v5  ;;  %v615_v5 = vld [vmem:[%s9125_s30 + $0x1a0] sm:$0xff] }
 0x2ee   : > { %12537 = vst [vmem:[#allocation64_spill] sm:$0xff] %v10028_v4  ;;  %v616_v4 = vld [vmem:[%s9125_s30 + $0x1a8] sm:$0xff] }
 0x2ef   : > { %v2818_v6 = vpop.f32.mrf.mxu1  ;;  %v10022_v43 = vpop.f32.mrf.mxu0 }
 0x2f0   : > { %v2819_v29 = vadd.f32 %v9873_v59, %v2818_v6 }
 0x2f2   : > { %v3442_v40 = vmax.f32 %v2819_v29, 0.0  ;;  %8221 = vmatmul.msk.bf16.gmra.mxu0 %vm959_vm0, %v844_v9  ;;  %v1431_v9 = vadd.f32 %v9928_v52, %v1430_v49 }
 0x2f4   : > { %v3692_v41 = vpack.c.bf16 %v3442_v40, %v3441_v17  ;;  %v946_v17 = vpack.c.bf16 %v818_v53, %v817_v54  ;;  %v10034_v21 = vpop.f32.mrf.mxu3  ;;  %v2024_v54 = vmax.f32 %v1431_v9, 0.0 }
 0x2f5   : > { %12538 = vst [vmem:[#allocation65_spill] sm:$0xff] %v10034_v21  ;;  %v845_v21 = vpack.c.bf16 %v616_v4, %v615_v5  ;;  %v1434_v5 = vadd.f32 %v9928_v52, %v10000_v7  ;;  %v1436_v4 = vadd.f32 %v9928_v52, %v1435_v2 }
 0x2f6   : > { %8473 = vmatmul.msk.bf16.gmra.mxu2 %vm2397_vm1, %v3692_v41  ;;  %v1429_v41 = vadd.f32 %v9928_v52, %v9978_v57 }
 0x2f7   : > { %v2821_v37 = vpop.f32.mrf.mxu1  ;;  %v1440_v6 = vpop.f32.mrf.mxu0 }
 0x2f8   : > { %v2822_v29 = vadd.f32 %v9873_v59, %v2821_v37  ;;  %v2023_v37 = vmax.f32 %v1429_v41, 0.0 }
 0x2f9   : > { %8323 = vmatmul.msk.bf16.gmra.mxu3 %vm959_vm0, %v946_v17 }
 0x2fa   : > { %8346 = vmatmul.msk.bf16.gmra.mxu1 %vm2397_vm1, %v2263_v39  ;;  %v3443_v60 = vmax.f32 %v2822_v29, 0.0  ;;  %v10041_v39 = vpop.f32.mrf.mxu2  ;;  %v2264_v49 = vpack.c.bf16 %v2024_v54, %v2023_v37  ;;  %v617_v37 = vld [vmem:[%s9125_s30 + $0x1b0] sm:$0xff]  ;;  %v618_v54 = vld [vmem:[%s9125_s30 + $0x1b8] sm:$0xff] }
 0x2fb   : > { %12539 = vst [vmem:[#allocation66_spill] sm:$0xff] %v10041_v39 }
 0x2fc   : > { %v10047_v17 = vpop.f32.mrf.mxu3 }
 0x2fd   : > { %12540 = vst [vmem:[#allocation67_spill] sm:$0xff] %v10047_v17 }
 0x2ff   : > { %v2823_v40 = vpop.f32.mrf.mxu1  ;;  %v1443_v55 = vpop.f32.mrf.mxu0 }
 0x300   : > { %v2824_v32 = vadd.f32 %v9873_v59, %v2823_v40 }
 0x302   : > { %v3444_v34 = vmax.f32 %v2824_v32, 0.0  ;;  %8222 = vmatmul.msk.bf16.gmra.mxu0 %vm959_vm0, %v845_v21  ;;  %v10050_v40 = vpop.f32.mrf.mxu2 }
 0x303   : > { %12541 = vst [vmem:[#allocation68_spill] sm:$0xff] %v10050_v40 }
 0x304   : > { %v3693_v53 = vpack.c.bf16 %v3444_v34, %v3443_v60  ;;  %v10057_v34 = vpop.f32.mrf.mxu3 }
 0x305   : > { %12542 = vst [vmem:[#allocation69_spill] sm:$0xff] %v10057_v34 }
 0x306   : > { %8474 = vmatmul.msk.bf16.gmra.mxu2 %vm2397_vm1, %v3693_v53  ;;  %v2025_v53 = vmax.f32 %v1434_v5, 0.0 }
 0x307   : > { %v2826_v57 = vpop.f32.mrf.mxu1  ;;  %v1445_v29 = vpop.f32.mrf.mxu0 }
 0x308   : > { %v2827_v41 = vadd.f32 %v9873_v59, %v2826_v57  ;;  %v846_v57 = vpack.c.bf16 %v618_v54, %v617_v37 }
 0x30a   : > { %8347 = vmatmul.msk.bf16.gmra.mxu1 %vm2397_vm1, %v2264_v49  ;;  %v3445_v60 = vmax.f32 %v2827_v41, 0.0  ;;  %v2026_v49 = vmax.f32 %v1436_v4, 0.0  ;;  %v10064_v7 = vpop.f32.mrf.mxu2 }
 0x30b   : > { %12543 = vst [vmem:[#allocation70_spill] sm:$0xff] %v10064_v7 }
 0x30c   : > { %v2265_v41 = vpack.c.bf16 %v2026_v49, %v2025_v53  ;;  %v619_v49 = vld [vmem:[%s9125_s30 + $0x1c0] sm:$0xff] }
 0x30f   : > { %v2828_v9 = vpop.f32.mrf.mxu1  ;;  %v10061_v40 = vpop.f32.mrf.mxu0 }
 0x310   : > { %v2829_v32 = vadd.f32 %v9873_v59, %v2828_v9 }
 0x312   : > { %v3446_v21 = vmax.f32 %v2829_v32, 0.0  ;;  %8223 = vmatmul.msk.bf16.gmra.mxu0 %vm959_vm0, %v846_v57  ;;  %v10068_v32 = vpop.f32.mrf.mxu3  ;;  %v10075_v37 = vpop.f32.mrf.mxu2  ;;  %v620_v57 = vld [vmem:[%s9125_s30 + $0x1c8] sm:$0xff] }
 0x313   : > { %12544 = vst [vmem:[#allocation71_spill] sm:$0xff] %v10068_v32 }
 0x314   : > { %v3694_v17 = vpack.c.bf16 %v3446_v21, %v3445_v60  ;;  %v1439_v60 = vadd.f32 %v9928_v52, %v10022_v43  ;;  %12545 = vst [vmem:[#allocation72_spill] sm:$0xff] %v10075_v37 }
 0x316   : > { %8475 = vmatmul.msk.bf16.gmra.mxu2 %vm2397_vm1, %v3694_v17  ;;  %v1441_v17 = vadd.f32 %v9928_v52, %v1440_v6 }
 0x317   : > { %v2831_v2 = vpop.f32.mrf.mxu1  ;;  %v1450_v9 = vpop.f32.mrf.mxu0 }
 0x318   : > { %v2832_v5 = vadd.f32 %v9873_v59, %v2831_v2  ;;  %v2028_v34 = vmax.f32 %v1441_v17, 0.0  ;;  %v847_v2 = vpack.c.bf16 %v620_v57, %v619_v49 }
 0x31a   : > { %8348 = vmatmul.msk.bf16.gmra.mxu1 %vm2397_vm1, %v2265_v41  ;;  %v3447_v54 = vmax.f32 %v2832_v5, 0.0  ;;  %v2027_v41 = vmax.f32 %v1439_v60, 0.0  ;;  %v10082_v39 = vpop.f32.mrf.mxu3  ;;  %v10087_v5 = vld [vmem:[%s9113_s22] ss:$0 sm:$0xff] }
 0x31b   : > { %12546 = vst [vmem:[#allocation73_spill] sm:$0xff] %v10082_v39 }
 0x31c   : > { %v2266_v6 = vpack.c.bf16 %v2028_v34, %v2027_v41 }
 0x31f   : > { %v2833_v4 = vpop.f32.mrf.mxu1  ;;  %v10079_v7 = vpop.f32.mrf.mxu0 }
 0x320   : > { %v2834_v21 = vadd.f32 %v9873_v59, %v2833_v4 }
 0x322   : > { %v3448_v53 = vmax.f32 %v2834_v21, 0.0  ;;  %8224 = vmatmul.msk.bf16.gmra.mxu0 %vm959_vm0, %v847_v2  ;;  %v1444_v21 = vadd.f32 %v9928_v52, %v1443_v55  ;;  %v10094_v57 = vpop.f32.mrf.mxu3 }
 0x323   : > { %12547 = vst [vmem:[#allocation74_spill] sm:$0xff] %v10094_v57 }
 0x324   : > { %v3695_v32 = vpack.c.bf16 %v3448_v53, %v3447_v54  ;;  %v2029_v39 = vmax.f32 %v1444_v21, 0.0 }
 0x326   : > { %8476 = vmatmul.msk.bf16.gmra.mxu2 %vm2397_vm1, %v3695_v32  ;;  %v1446_v32 = vadd.f32 %v9928_v52, %v1445_v29 }
 0x327   : > { %v2836_v43 = vpop.f32.mrf.mxu1  ;;  %v1455_v60 = vpop.f32.mrf.mxu0 }
 0x328   : > { %v2837_v17 = vadd.f32 %v9873_v59, %v2836_v43  ;;  %v2030_v37 = vmax.f32 %v1446_v32, 0.0  ;;  %v622_v43 = vld [vmem:[%s9125_s30 + $0x1d8] sm:$0xff] }
 0x329   : > { %v4228_v4 = vpop.f32.mrf.mxu2  ;;  %v848_v1 = vpack.c.bf16 %v622_v43, %v621_v62 }
 0x32a   : > { %8349 = vmatmul.msk.bf16.gmra.mxu1 %vm2397_vm1, %v2266_v6  ;;  %v4229_v53 = vadd.f32 %v10087_v5, %v4228_v4  ;;  %v3449_v41 = vmax.f32 %v2837_v17, 0.0  ;;  %v2267_v17 = vpack.c.bf16 %v2030_v37, %v2029_v39  ;;  %v10105_v21 = vpop.f32.mrf.mxu3 }
 0x32b   : > { %12548 = vst [vmem:[#allocation75_spill] sm:$0xff] %v10105_v21 }
 0x32c   : > { %v4868_v15 = vmax.f32 %v4229_v53, 0.0 }
 0x32f   : > { %v2838_v54 = vpop.f32.mrf.mxu1  ;;  %v10099_v29 = vpop.f32.mrf.mxu0 }
 0x330   : > { %v2839_v49 = vadd.f32 %v9873_v59, %v2838_v54 }
 0x331   : > { %v4230_v34 = vpop.f32.mrf.mxu2 }
 0x332   : > { %v3450_v2 = vmax.f32 %v2839_v49, 0.0  ;;  %v4231_v6 = vadd.f32 %v10087_v5, %v4230_v34  ;;  %8225 = vmatmul.msk.bf16.gmra.mxu0 %vm959_vm0, %v848_v1  ;;  %v10120_v57 = vpop.f32.mrf.mxu3 }
 0x333   : > { %12549 = vst [vmem:[#allocation76_spill] sm:$0xff] %v10120_v57 }
 0x334   : > { %v3696_v55 = vpack.c.bf16 %v3450_v2, %v3449_v41  ;;  %v4869_v31 = vmax.f32 %v4231_v6, 0.0 }
 0x336   : > { %v5124_v4 = vpack.c.bf16 %v4869_v31, %v4868_v15  ;;  %8477 = vmatmul.msk.bf16.gmra.mxu2 %vm2397_vm1, %v3696_v55  ;;  %v1449_v31 = vadd.f32 %v9928_v52, %v10061_v40  ;;  %v1451_v15 = vadd.f32 %v9928_v52, %v1450_v9  ;;  %v623_v55 = vld [vmem:[%s9125_s30 + $0x1e0] sm:$0xff] }
 0x337   : > { %v2841_v54 = vpop.f32.mrf.mxu1  ;;  %v10107_v32 = vpop.f32.mrf.mxu0 }
 0x338   : > { %8604 = vmatmul.msk.bf16.vlgmr.msrb.gmra.mxu3 %vm2397_vm1, %v5124_v4  ;;  %v2842_v62 = vadd.f32 %v9873_v59, %v2841_v54  ;;  %v2031_v6 = vmax.f32 %v1449_v31, 0.0  ;;  %v2032_v43 = vmax.f32 %v1451_v15, 0.0  ;;  %v624_v4 = vld [vmem:[%s9125_s30 + $0x1e8] sm:$0xff] }
 0x339   : > { %v4233_v49 = vpop.f32.mrf.mxu2  ;;  %v849_v9 = vpack.c.bf16 %v624_v4, %v623_v55 }
 0x33a   : > { %8350 = vmatmul.msk.bf16.gmra.mxu1 %vm2397_vm1, %v2267_v17  ;;  %v4234_v39 = vadd.f32 %v10087_v5, %v4233_v49  ;;  %v3451_v34 = vmax.f32 %v2842_v62, 0.0  ;;  %v2268_v62 = vpack.c.bf16 %v2032_v43, %v2031_v6 }
 0x33c   : > { %v4870_v54 = vmax.f32 %v4234_v39, 0.0 }
 0x33f   : > { %v2843_v1 = vpop.f32.mrf.mxu1  ;;  %v10118_v40 = vpop.f32.mrf.mxu0 }
 0x340   : > { %v2844_v37 = vadd.f32 %v9873_v59, %v2843_v1 }
 0x341   : > { %v4235_v53 = vpop.f32.mrf.mxu2 }
 0x342   : > { %v3452_v41 = vmax.f32 %v2844_v37, 0.0  ;;  %v4236_v2 = vadd.f32 %v10087_v5, %v4235_v53  ;;  %8226 = vmatmul.msk.bf16.gmra.mxu0 %vm959_vm0, %v849_v9  ;;  %v1454_v37 = vadd.f32 %v9928_v52, %v10079_v7  ;;  %v625_v9 = vld [vmem:[%s9125_s30 + $0x1f0] sm:$0xff] }
 0x344   : > { %v3697_v17 = vpack.c.bf16 %v3452_v41, %v3451_v34  ;;  %v4871_v21 = vmax.f32 %v4236_v2, 0.0  ;;  %v10130_v34 = vpop.f32.mrf.mxu3 }
 0x345   : > { %12550 = vst [vmem:[#allocation77_spill] sm:$0xff] %v10130_v34 }
 0x346   : > { %v5125_v49 = vpack.c.bf16 %v4871_v21, %v4870_v54  ;;  %8478 = vmatmul.msk.bf16.gmra.mxu2 %vm2397_vm1, %v3697_v17  ;;  %v1456_v21 = vadd.f32 %v9928_v52, %v1455_v60  ;;  %v2033_v54 = vmax.f32 %v1454_v37, 0.0 }
 0x347   : > { %v2846_v1 = vpop.f32.mrf.mxu1  ;;  %v1465_v15 = vpop.f32.mrf.mxu0 }
 0x348   : > { %8605 = vmatmul.msk.bf16.gmra.mxu3 %vm2397_vm1, %v5125_v49  ;;  %v2847_v39 = vadd.f32 %v9873_v59, %v2846_v1  ;;  %v2034_v17 = vmax.f32 %v1456_v21, 0.0  ;;  %v626_v49 = vld [vmem:[%s9125_s30 + $0x1f8] sm:$0xff] }
 0x349   : > { %v4238_v31 = vpop.f32.mrf.mxu2  ;;  %v850_v57 = vpack.c.bf16 %v626_v49, %v625_v9 }
 0x34a   : > { %8351 = vmatmul.msk.bf16.gmra.mxu1 %vm2397_vm1, %v2268_v62  ;;  %v4239_v41 = vadd.f32 %v10087_v5, %v4238_v31  ;;  %v3453_v43 = vmax.f32 %v2847_v39, 0.0  ;;  %v2269_v39 = vpack.c.bf16 %v2034_v17, %v2033_v54 }
 0x34c   : > { %v4872_v1 = vmax.f32 %v4239_v41, 0.0  ;;  %v10142_v37 = vpop.f32.mrf.mxu3 }
 0x34d   : > { %12551 = vst [vmem:[#allocation78_spill] sm:$0xff] %v10142_v37 }
 0x34f   : > { %v2848_v53 = vpop.f32.mrf.mxu1  ;;  %v10137_v60 = vpop.f32.mrf.mxu0 }
 0x350   : > { %v2849_v2 = vadd.f32 %v9873_v59, %v2848_v53 }
 0x351   : > { %v4240_v6 = vpop.f32.mrf.mxu2 }
 0x352   : > { %v3454_v55 = vmax.f32 %v2849_v2, 0.0  ;;  %v4241_v4 = vadd.f32 %v10087_v5, %v4240_v6  ;;  %8227 = vmatmul.msk.bf16.gmra.mxu0 %vm959_vm0, %v850_v57  ;;  %v1459_v2 = vadd.f32 %v9928_v52, %v10099_v29  ;;  %v1461_v57 = vadd.f32 %v9928_v52, %v10107_v32 }
 0x354   : > { %v3698_v7 = vpack.c.bf16 %v3454_v55, %v3453_v43  ;;  %v4873_v62 = vmax.f32 %v4241_v4, 0.0  ;;  %v2035_v9 = vmax.f32 %v1459_v2, 0.0  ;;  %v10153_v49 = vpop.f32.mrf.mxu3 }
 0x355   : > { %12552 = vst [vmem:[#allocation79_spill] sm:$0xff] %v10153_v49 }
 0x356   : > { %v5126_v34 = vpack.c.bf16 %v4873_v62, %v4872_v1  ;;  %8479 = vmatmul.msk.bf16.gmra.mxu2 %vm2397_vm1, %v3698_v7  ;;  %v2036_v7 = vmax.f32 %v1461_v57, 0.0 }
 0x357   : > { %v2851_v31 = vpop.f32.mrf.mxu1  ;;  %v1470_v21 = vpop.f32.mrf.mxu0 }
 0x358   : > { %8606 = vmatmul.msk.bf16.gmra.mxu3 %vm2397_vm1, %v5126_v34  ;;  %v2852_v41 = vadd.f32 %v9873_v59, %v2851_v31  ;;  %v2270_v32 = vpack.c.bf16 %v2036_v7, %v2035_v9 }
 0x359   : > { %v4243_v53 = vpop.f32.mrf.mxu2 }
 0x35a   : > { %8352 = vmatmul.msk.bf16.gmra.mxu1 %vm2397_vm1, %v2269_v39  ;;  %v4244_v43 = vadd.f32 %v10087_v5, %v4243_v53  ;;  %v3455_v4 = vmax.f32 %v2852_v41, 0.0 }
 0x35c   : > { %v4874_v1 = vmax.f32 %v4244_v43, 0.0  ;;  %v10158_v41 = vpop.f32.mrf.mxu3  ;;  %v1464_v43 = vadd.f32 %v9928_v52, %v10118_v40 }
 0x35d   : > { %12553 = vst [vmem:[#allocation80_spill] sm:$0xff] %v10158_v41 }
 0x35f   : > { %v2853_v6 = vpop.f32.mrf.mxu1  ;;  %v1473_v39 = vpop.f32.mrf.mxu0 }
 0x360   : > { %v2854_v55 = vadd.f32 %v9873_v59, %v2853_v6 }
 0x361   : > { %v4245_v34 = vpop.f32.mrf.mxu2 }
 0x362   : > { %v3456_v54 = vmax.f32 %v2854_v55, 0.0  ;;  %v4246_v17 = vadd.f32 %v10087_v5, %v4245_v34  ;;  %v1466_v34 = vadd.f32 %v9928_v52, %v1465_v15 }
 0x364   : > { %v3699_v62 = vpack.c.bf16 %v3456_v54, %v3455_v4  ;;  %v4875_v29 = vmax.f32 %v4246_v17, 0.0 }
 0x366   : > { %v5127_v31 = vpack.c.bf16 %v4875_v29, %v4874_v1  ;;  %8480 = vmatmul.msk.bf16.gmra.mxu2 %vm2397_vm1, %v3699_v62  ;;  %v2037_v62 = vmax.f32 %v1464_v43, 0.0  ;;  %v1469_v43 = vadd.f32 %v9928_v52, %v10137_v60 }
 0x367   : > { %v2856_v53 = vpop.f32.mrf.mxu1  ;;  %v1475_v54 = vpop.f32.mrf.mxu0 }
 0x368   : > { %8607 = vmatmul.msk.bf16.gmra.mxu3 %vm2397_vm1, %v5127_v31  ;;  %v2857_v2 = vadd.f32 %v9873_v59, %v2856_v53  ;;  %v2038_v31 = vmax.f32 %v1466_v34, 0.0 }
 0x369   : > { %v4248_v6 = vpop.f32.mrf.mxu2 }
 0x36a   : > { %8353 = vmatmul.msk.bf16.gmra.mxu1 %vm2397_vm1, %v2270_v32  ;;  %v4249_v55 = vadd.f32 %v10087_v5, %v4248_v6  ;;  %v3457_v9 = vmax.f32 %v2857_v2, 0.0  ;;  %v10168_v6 = vpop.f32.mrf.mxu3  ;;  %v2271_v15 = vpack.c.bf16 %v2038_v31, %v2037_v62  ;;  %v2039_v31 = vmax.f32 %v1469_v43, 0.0 }
 0x36b   : > { %12554 = vst [vmem:[#allocation81_spill] sm:$0xff] %v10168_v6 }
 0x36c   : > { %v4876_v29 = vmax.f32 %v4249_v55, 0.0 }
 0x36f   : > { %v2858_v57 = vpop.f32.mrf.mxu1  ;;  %v1478_v2 = vpop.f32.mrf.mxu0 }
 0x370   : > { %v2859_v4 = vadd.f32 %v9873_v59, %v2858_v57 }
 0x371   : > { %v4250_v17 = vpop.f32.mrf.mxu2 }
 0x372   : > { %v3458_v1 = vmax.f32 %v2859_v4, 0.0  ;;  %v4251_v7 = vadd.f32 %v10087_v5, %v4250_v17  ;;  %v1471_v17 = vadd.f32 %v9928_v52, %v1470_v21 }
 0x374   : > { %v3700_v53 = vpack.c.bf16 %v3458_v1, %v3457_v9  ;;  %v4877_v32 = vmax.f32 %v4251_v7, 0.0  ;;  %v10178_v7 = vpop.f32.mrf.mxu3 }
 0x375   : > { %12555 = vst [vmem:[#allocation82_spill] sm:$0xff] %v10178_v7 }
 0x376   : > { %v5128_v41 = vpack.c.bf16 %v4877_v32, %v4876_v29  ;;  %8481 = vmatmul.msk.bf16.gmra.mxu2 %vm2397_vm1, %v3700_v53  ;;  %v2040_v32 = vmax.f32 %v1471_v17, 0.0 }
 0x377   : > { %v2861_v40 = vpop.f32.mrf.mxu1  ;;  %v1480_v60 = vpop.f32.mrf.mxu0 }
 0x378   : > { %8608 = vmatmul.msk.bf16.gmra.mxu3 %vm2397_vm1, %v5128_v41  ;;  %v2862_v4 = vadd.f32 %v9873_v59, %v2861_v40  ;;  %v2272_v21 = vpack.c.bf16 %v2040_v32, %v2039_v31 }
 0x379   : > { %v4253_v57 = vpop.f32.mrf.mxu2 }
 0x37a   : > { %8354 = vmatmul.msk.bf16.gmra.mxu1 %vm2397_vm1, %v2271_v15  ;;  %v4254_v34 = vadd.f32 %v10087_v5, %v4253_v57  ;;  %v3459_v41 = vmax.f32 %v2862_v4, 0.0 }
 0x37c   : > { %v4878_v53 = vmax.f32 %v4254_v34, 0.0  ;;  %v10184_v4 = vpop.f32.mrf.mxu3  ;;  %v1474_v34 = vadd.f32 %v9928_v52, %v1473_v39 }
 0x37d   : > { %12556 = vst [vmem:[#allocation83_spill] sm:$0xff] %v10184_v4 }
 0x37e   : > { %v2041_v32 = vmax.f32 %v1474_v34, 0.0  ;;  %v1479_v34 = vadd.f32 %v9928_v52, %v1478_v2 }
 0x37f   : > { %v2863_v55 = vpop.f32.mrf.mxu1  ;;  %v1483_v43 = vpop.f32.mrf.mxu0 }
 0x380   : > { %v2864_v9 = vadd.f32 %v9873_v59, %v2863_v55 }
 0x381   : > { %v4255_v1 = vpop.f32.mrf.mxu2 }
 0x382   : > { %v3460_v62 = vmax.f32 %v2864_v9, 0.0  ;;  %v4256_v29 = vadd.f32 %v10087_v5, %v4255_v1 }
 0x384   : > { %v3701_v40 = vpack.c.bf16 %v3460_v62, %v3459_v41  ;;  %v4879_v15 = vmax.f32 %v4256_v29, 0.0  ;;  %v1476_v41 = vadd.f32 %v9928_v52, %v1475_v54  ;;  %v10192_v4 = vpop.f32.mrf.mxu3 }
 0x385   : > { %12557 = vst [vmem:[#allocation84_spill] sm:$0xff] %v10192_v4 }
 0x386   : > { %v5129_v6 = vpack.c.bf16 %v4879_v15, %v4878_v53  ;;  %8482 = vmatmul.msk.bf16.gmra.mxu2 %vm2397_vm1, %v3701_v40  ;;  %v2042_v15 = vmax.f32 %v1476_v41, 0.0 }
 0x387   : > { %v2866_v57 = vpop.f32.mrf.mxu1  ;;  %v1485_v54 = vpop.f32.mrf.mxu0 }
 0x388   : > { %8609 = vmatmul.msk.bf16.gmra.mxu3 %vm2397_vm1, %v5129_v6  ;;  %v2867_v9 = vadd.f32 %v9873_v59, %v2866_v57  ;;  %v2273_v7 = vpack.c.bf16 %v2042_v15, %v2041_v32 }
 0x389   : > { %v4258_v55 = vpop.f32.mrf.mxu2 }
 0x38a   : > { %8355 = vmatmul.msk.bf16.gmra.mxu1 %vm2397_vm1, %v2272_v21  ;;  %v4259_v1 = vadd.f32 %v10087_v5, %v4258_v55  ;;  %v3461_v31 = vmax.f32 %v2867_v9, 0.0 }
 0x38c   : > { %v4880_v40 = vmax.f32 %v4259_v1, 0.0  ;;  %v10199_v1 = vpop.f32.mrf.mxu3 }
 0x38d   : > { %12558 = vst [vmem:[#allocation85_spill] sm:$0xff] %v10199_v1 }
 0x38f   : > { %v2868_v17 = vpop.f32.mrf.mxu1  ;;  %v1488_v15 = vpop.f32.mrf.mxu0 }
 0x390   : > { %v2869_v62 = vadd.f32 %v9873_v59, %v2868_v17 }
 0x391   : > { %v4260_v29 = vpop.f32.mrf.mxu2 }
 0x392   : > { %v3462_v6 = vmax.f32 %v2869_v62, 0.0  ;;  %v4261_v53 = vadd.f32 %v10087_v5, %v4260_v29  ;;  %v1481_v29 = vadd.f32 %v9928_v52, %v1480_v60 }
 0x394   : > { %v3702_v21 = vpack.c.bf16 %v3462_v6, %v3461_v31  ;;  %v4881_v57 = vmax.f32 %v4261_v53, 0.0  ;;  %v10207_v60 = vpop.f32.mrf.mxu3 }
 0x395   : > { %12559 = vst [vmem:[#allocation86_spill] sm:$0xff] %v10207_v60 }
 0x396   : > { %v5130_v39 = vpack.c.bf16 %v4881_v57, %v4880_v40  ;;  %8483 = vmatmul.msk.bf16.gmra.mxu2 %vm2397_vm1, %v3702_v21  ;;  %v2044_v57 = vmax.f32 %v1481_v29, 0.0 }
 0x397   : > { %v2871_v55 = vpop.f32.mrf.mxu1 }
 0x398   : > { %8610 = vmatmul.msk.bf16.gmra.mxu3 %vm2397_vm1, %v5130_v39  ;;  %v2872_v9 = vadd.f32 %v9873_v59, %v2871_v55 }
 0x399   : > { %v4263_v17 = vpop.f32.mrf.mxu2 }
 0x39a   : > { %8356 = vmatmul.msk.bf16.gmra.mxu1 %vm2397_vm1, %v2273_v7  ;;  %v4264_v62 = vadd.f32 %v10087_v5, %v4263_v17  ;;  %v3463_v53 = vmax.f32 %v2872_v9, 0.0  ;;  %v2043_v7 = vmax.f32 %v1479_v34, 0.0  ;;  %v1490_v9 = vpop.f32.mrf.mxu0  ;;  %v1484_v34 = vadd.f32 %v9928_v52, %v1483_v43 }
 0x39c   : > { %v4882_v21 = vmax.f32 %v4264_v62, 0.0  ;;  %v2274_v17 = vpack.c.bf16 %v2044_v57, %v2043_v7  ;;  %v2045_v57 = vmax.f32 %v1484_v34, 0.0 }
 0x39f   : > { %v2873_v41 = vpop.f32.mrf.mxu1 }
 0x3a0   : > { %v2874_v31 = vadd.f32 %v9873_v59, %v2873_v41 }
 0x3a1   : > { %v4265_v6 = vpop.f32.mrf.mxu2 }
 0x3a2   : > { %v3464_v32 = vmax.f32 %v2874_v31, 0.0  ;;  %v4266_v40 = vadd.f32 %v10087_v5, %v4265_v6  ;;  %v1486_v6 = vadd.f32 %v9928_v52, %v1485_v54 }
 0x3a4   : > { %v3703_v39 = vpack.c.bf16 %v3464_v32, %v3463_v53  ;;  %v4883_v2 = vmax.f32 %v4266_v40, 0.0 }
 0x3a6   : > { %v5131_v55 = vpack.c.bf16 %v4883_v2, %v4882_v21  ;;  %8484 = vmatmul.msk.bf16.gmra.mxu2 %vm2397_vm1, %v3703_v39  ;;  %v10216_v39 = vpop.f32.mrf.mxu3 }
 0x3a7   : > { %v2876_v1 = vpop.f32.mrf.mxu1  ;;  %12560 = vst [vmem:[#allocation87_spill] sm:$0xff] %v10216_v39 }
 0x3a8   : > { %8611 = vmatmul.msk.bf16.gmra.mxu3 %vm2397_vm1, %v5131_v55  ;;  %v2877_v31 = vadd.f32 %v9873_v59, %v2876_v1  ;;  %v2046_v1 = vmax.f32 %v1486_v6, 0.0  ;;  %v1491_v6 = vadd.f32 %v9928_v52, %v1490_v9 }
 0x3a9   : > { %v4268_v41 = vpop.f32.mrf.mxu2 }
 0x3aa   : > { %8357 = vmatmul.msk.bf16.gmra.mxu1 %vm2397_vm1, %v2274_v17  ;;  %v4269_v29 = vadd.f32 %v10087_v5, %v4268_v41  ;;  %v3465_v40 = vmax.f32 %v2877_v31, 0.0  ;;  %v1493_v41 = vpop.f32.mrf.mxu0  ;;  %v2275_v60 = vpack.c.bf16 %v2046_v1, %v2045_v57 }
 0x3ac   : > { %v4884_v2 = vmax.f32 %v4269_v29, 0.0  ;;  %v1489_v29 = vadd.f32 %v9928_v52, %v1488_v15 }
 0x3af   : > { %v2878_v62 = vpop.f32.mrf.mxu1 }
 0x3b0   : > { %v2879_v53 = vadd.f32 %v9873_v59, %v2878_v62 }
 0x3b1   : > { %v4270_v32 = vpop.f32.mrf.mxu2 }
 0x3b2   : > { %v3466_v7 = vmax.f32 %v2879_v53, 0.0  ;;  %v4271_v21 = vadd.f32 %v10087_v5, %v4270_v32  ;;  %v10222_v53 = vld [vmem:[%s9118_s26] ss:$0 sm:$0xff] }
 0x3b4   : > { %v3704_v55 = vpack.c.bf16 %v3466_v7, %v3465_v40  ;;  %v4885_v43 = vmax.f32 %v4271_v21, 0.0  ;;  %v1495_v21 = vpop.f32.mrf.mxu0 }
 0x3b6   : > { %v5132_v17 = vpack.c.bf16 %v4885_v43, %v4884_v2  ;;  %8485 = vmatmul.msk.bf16.gmra.mxu2 %vm2397_vm1, %v3704_v55  ;;  %v2047_v43 = vmax.f32 %v1489_v29, 0.0 }
 0x3b7   : > { %v2881_v54 = vpop.f32.mrf.mxu1 }
 0x3b8   : > { %8612 = vmatmul.msk.bf16.gmra.mxu3 %vm2397_vm1, %v5132_v17  ;;  %v2882_v34 = vadd.f32 %v9873_v59, %v2881_v54  ;;  %v2048_v17 = vmax.f32 %v1491_v6, 0.0 }
 0x3b9   : > { %v4273_v31 = vpop.f32.mrf.mxu2 }
 0x3ba   : > { %8358 = vmatmul.msk.bf16.gmra.mxu1 %vm2397_vm1, %v2275_v60  ;;  %v4274_v40 = vadd.f32 %v10087_v5, %v4273_v31  ;;  %v3467_v2 = vmax.f32 %v2882_v34, 0.0 }
 0x3bb   : > { %v5665_v62 = vpop.f32.mrf.mxu3 }
 0x3bc   : > { %v5666_v1 = vadd.f32 %v10222_v53, %v5665_v62  ;;  %v4886_v39 = vmax.f32 %v4274_v40, 0.0  ;;  %v1498_v29 = vpop.f32.mrf.mxu0  ;;  %v10237_v40 = vld [vmem:[%s9108_s23] ss:$0 sm:$0xff] }
 0x3be   : > { %v6305_v31 = vmax.f32 %v5666_v1, 0.0 }
 0x3bf   : > { %v2883_v32 = vpop.f32.mrf.mxu1 }
 0x3c0   : > { %v2884_v7 = vadd.f32 %v9873_v59, %v2883_v32  ;;  %v2276_v32 = vpack.c.bf16 %v2048_v17, %v2047_v43 }
 0x3c1   : > { %v4275_v57 = vpop.f32.mrf.mxu2 }
 0x3c2   : > { %v3468_v60 = vmax.f32 %v2884_v7, 0.0  ;;  %v4276_v55 = vadd.f32 %v10087_v5, %v4275_v57 }
 0x3c3   : > { %v5667_v54 = vpop.f32.mrf.mxu3 }
 0x3c4   : > { %v3705_v15 = vpack.c.bf16 %v3468_v60, %v3467_v2  ;;  %v4887_v9 = vmax.f32 %v4276_v55, 0.0  ;;  %v5668_v4 = vadd.f32 %v10222_v53, %v5667_v54 }
 0x3c6   : > { %v5133_v49 = vpack.c.bf16 %v4887_v9, %v4886_v39  ;;  %v6306_v59 = vmax.f32 %v5668_v4, 0.0  ;;  %8486 = vmatmul.msk.bf16.gmra.mxu2 %vm2397_vm1, %v3705_v15  ;;  %v1494_v4 = vadd.f32 %v9928_v52, %v1493_v41  ;;  %v1496_v39 = vadd.f32 %v9928_v52, %v1495_v21 }
 0x3c7   : > { %v2886_v34 = vpop.f32.mrf.mxu1 }
 0x3c8   : > { %v6561_v62 = vpack.c.bf16 %v6306_v59, %v6305_v31  ;;  %8613 = vmatmul.msk.bf16.gmra.mxu3 %vm2397_vm1, %v5133_v49  ;;  %v2887_v57 = vadd.f32 %v10237_v40, %v2886_v34  ;;  %v2049_v15 = vmax.f32 %v1494_v4, 0.0  ;;  %v2050_v9 = vmax.f32 %v1496_v39, 0.0 }
 0x3c9   : > { %v4278_v7 = vpop.f32.mrf.mxu2 }
 0x3ca   : > { %8359 = vmatmul.msk.bf16.gmra.mxu1 %vm2397_vm1, %v2276_v32  ;;  %8740 = vmatmul.msk.bf16.vlgmr.msrb.gmra.mxu0 %vm2397_vm1, %v6561_v62  ;;  %v4279_v1 = vadd.f32 %v10087_v5, %v4278_v7  ;;  %v3469_v55 = vmax.f32 %v2887_v57, 0.0  ;;  %v1500_v32 = vpop.f32.mrf.mxu0 }
 0x3cb   : > { %v5670_v6 = vpop.f32.mrf.mxu3 }
 0x3cc   : > { %v5671_v43 = vadd.f32 %v10222_v53, %v5670_v6  ;;  %v4888_v59 = vmax.f32 %v4279_v1, 0.0 }
 0x3ce   : > { %v6307_v62 = vmax.f32 %v5671_v43, 0.0 }
 0x3cf   : > { %v2888_v2 = vpop.f32.mrf.mxu1 }
 0x3d0   : > { %v2889_v49 = vadd.f32 %v10237_v40, %v2888_v2  ;;  %v2277_v2 = vpack.c.bf16 %v2050_v9, %v2049_v15 }
 0x3d1   : > { %v4280_v60 = vpop.f32.mrf.mxu2 }
 0x3d2   : > { %v3470_v17 = vmax.f32 %v2889_v49, 0.0  ;;  %v4281_v54 = vadd.f32 %v10087_v5, %v4280_v60  ;;  %v1503_v1 = vpop.f32.mrf.mxu0  ;;  %v1499_v60 = vadd.f32 %v9928_v52, %v1498_v29 }
 0x3d3   : > { %v5672_v31 = vpop.f32.mrf.mxu3 }
 0x3d4   : > { %v3706_v34 = vpack.c.bf16 %v3470_v17, %v3469_v55  ;;  %v4889_v41 = vmax.f32 %v4281_v54, 0.0  ;;  %v5673_v21 = vadd.f32 %v10222_v53, %v5672_v31  ;;  %v1501_v55 = vadd.f32 %v9928_v52, %v1500_v32 }
 0x3d6   : > { %v5134_v7 = vpack.c.bf16 %v4889_v41, %v4888_v59  ;;  %v6308_v37 = vmax.f32 %v5673_v21, 0.0  ;;  %8487 = vmatmul.msk.bf16.gmra.mxu2 %vm2397_vm1, %v3706_v34  ;;  %v2051_v34 = vmax.f32 %v1499_v60, 0.0  ;;  %v2052_v41 = vmax.f32 %v1501_v55, 0.0 }
 0x3d7   : > { %v2891_v57 = vpop.f32.mrf.mxu1 }
 0x3d8   : > { %v6562_v6 = vpack.c.bf16 %v6308_v37, %v6307_v62  ;;  %8614 = vmatmul.msk.bf16.gmra.mxu3 %vm2397_vm1, %v5134_v7  ;;  %v2892_v39 = vadd.f32 %v10237_v40, %v2891_v57 }
 0x3d9   : > { %v4283_v49 = vpop.f32.mrf.mxu2 }
 0x3da   : > { %8360 = vmatmul.msk.bf16.gmra.mxu1 %vm2397_vm1, %v2277_v2  ;;  %8741 = vmatmul.msk.bf16.gmra.mxu0 %vm2397_vm1, %v6562_v6  ;;  %v4284_v17 = vadd.f32 %v10087_v5, %v4283_v49  ;;  %v3471_v15 = vmax.f32 %v2892_v39, 0.0  ;;  %v2278_v49 = vpack.c.bf16 %v2052_v41, %v2051_v34  ;;  %v1505_v39 = vpop.f32.mrf.mxu0 }
 0x3db   : > { %v5675_v4 = vpop.f32.mrf.mxu3 }
 0x3dc   : > { %v5676_v9 = vadd.f32 %v10222_v53, %v5675_v4  ;;  %v4890_v62 = vmax.f32 %v4284_v17, 0.0  ;;  %v8934_v17 = vld [vmem:[%s9103_s15] ss:$0 sm:$0xff] }
 0x3de   : > { %v6309_v32 = vmax.f32 %v5676_v9, 0.0 }
 0x3df   : > { %v2893_v43 = vpop.f32.mrf.mxu1 }
 0x3e0   : > { %v2894_v37 = vadd.f32 %v10237_v40, %v2893_v43 }
 0x3e1   : > { %v4285_v54 = vpop.f32.mrf.mxu2 }
 0x3e2   : > { %v3472_v31 = vmax.f32 %v2894_v37, 0.0  ;;  %v4286_v59 = vadd.f32 %v10087_v5, %v4285_v54  ;;  %v1504_v37 = vadd.f32 %v8934_v17, %v1503_v1  ;;  %v1506_v54 = vadd.f32 %v8934_v17, %v1505_v39 }
 0x3e3   : > { %v5677_v21 = vpop.f32.mrf.mxu3 }
 0x3e4   : > { %v3707_v7 = vpack.c.bf16 %v3472_v31, %v3471_v15  ;;  %v4891_v29 = vmax.f32 %v4286_v59, 0.0  ;;  %v5678_v52 = vadd.f32 %v10222_v53, %v5677_v21 }
 0x3e6   : > { %v5135_v57 = vpack.c.bf16 %v4891_v29, %v4890_v62  ;;  %v6310_v2 = vmax.f32 %v5678_v52, 0.0  ;;  %8488 = vmatmul.msk.bf16.gmra.mxu2 %vm2397_vm1, %v3707_v7  ;;  %v1508_v7 = vpop.f32.mrf.mxu0  ;;  %v2053_v29 = vmax.f32 %v1504_v37, 0.0  ;;  %v2054_v52 = vmax.f32 %v1506_v54, 0.0 }
 0x3e7   : > { %v2896_v6 = vpop.f32.mrf.mxu1 }
 0x3e8   : > { %v6563_v4 = vpack.c.bf16 %v6310_v2, %v6309_v32  ;;  %8615 = vmatmul.msk.bf16.gmra.mxu3 %vm2397_vm1, %v5135_v57  ;;  %v2897_v43 = vadd.f32 %v10237_v40, %v2896_v6 }
 0x3e9   : > { %v4288_v60 = vpop.f32.mrf.mxu2 }
 0x3ea   : > { %8361 = vmatmul.msk.bf16.gmra.mxu1 %vm2397_vm1, %v2278_v49  ;;  %8742 = vmatmul.msk.bf16.gmra.mxu0 %vm2397_vm1, %v6563_v4  ;;  %v4289_v9 = vadd.f32 %v10087_v5, %v4288_v60  ;;  %v3473_v34 = vmax.f32 %v2897_v43, 0.0  ;;  %v2279_v43 = vpack.c.bf16 %v2054_v52, %v2053_v29 }
 0x3eb   : > { %v5680_v55 = vpop.f32.mrf.mxu3 }
 0x3ec   : > { %v5681_v41 = vadd.f32 %v10222_v53, %v5680_v55  ;;  %v4892_v57 = vmax.f32 %v4289_v9, 0.0 }
 0x3ee   : > { %v6311_v49 = vmax.f32 %v5681_v41, 0.0  ;;  %v1510_v54 = vpop.f32.mrf.mxu0 }
 0x3ef   : > { %v2898_v15 = vpop.f32.mrf.mxu1 }
 0x3f0   : > { %v2899_v31 = vadd.f32 %v10237_v40, %v2898_v15 }
 0x3f1   : > { %v4290_v59 = vpop.f32.mrf.mxu2 }
 0x3f2   : > { %v3474_v21 = vmax.f32 %v2899_v31, 0.0  ;;  %v4291_v62 = vadd.f32 %v10087_v5, %v4290_v59  ;;  %v1509_v31 = vadd.f32 %v8934_v17, %v1508_v7  ;;  %v1511_v59 = vadd.f32 %v8934_v17, %v1510_v54 }
 0x3f3   : > { %v5682_v32 = vpop.f32.mrf.mxu3 }
 0x3f4   : > { %v3708_v2 = vpack.c.bf16 %v3474_v21, %v3473_v34  ;;  %v4893_v1 = vmax.f32 %v4291_v62, 0.0  ;;  %v5683_v6 = vadd.f32 %v10222_v53, %v5682_v32 }
 0x3f6   : > { %v5136_v4 = vpack.c.bf16 %v4893_v1, %v4892_v57  ;;  %v6312_v39 = vmax.f32 %v5683_v6, 0.0  ;;  %8489 = vmatmul.msk.bf16.gmra.mxu2 %vm2397_vm1, %v3708_v2  ;;  %v2055_v2 = vmax.f32 %v1509_v31, 0.0  ;;  %v2056_v1 = vmax.f32 %v1511_v59, 0.0 }
 0x3f7   : > { %v2901_v60 = vpop.f32.mrf.mxu1 }
 0x3f8   : > { %v6564_v55 = vpack.c.bf16 %v6312_v39, %v6311_v49  ;;  %8616 = vmatmul.msk.bf16.gmra.mxu3 %vm2397_vm1, %v5136_v4  ;;  %v2902_v9 = vadd.f32 %v10237_v40, %v2901_v60 }
 0x3f9   : > { %v4293_v15 = vpop.f32.mrf.mxu2 }
 0x3fa   : > { %8362 = vmatmul.msk.bf16.gmra.mxu1 %vm2397_vm1, %v2279_v43  ;;  %8743 = vmatmul.msk.bf16.gmra.mxu0 %vm2397_vm1, %v6564_v55  ;;  %v4294_v41 = vadd.f32 %v10087_v5, %v4293_v15  ;;  %v3475_v29 = vmax.f32 %v2902_v9, 0.0  ;;  %v2280_v15 = vpack.c.bf16 %v2056_v1, %v2055_v2 }
 0x3fb   : > { %v5685_v37 = vpop.f32.mrf.mxu3 }
 0x3fc   : > { %v5686_v52 = vadd.f32 %v10222_v53, %v5685_v37  ;;  %v4894_v49 = vmax.f32 %v4294_v41, 0.0 }
 0x3fe   : > { %v6313_v7 = vmax.f32 %v5686_v52, 0.0 }
 0x3ff   : > { %v2903_v34 = vpop.f32.mrf.mxu1 }
 0x400   : > { %v2904_v21 = vadd.f32 %v10237_v40, %v2903_v34 }
 0x401   : > { %v4295_v62 = vpop.f32.mrf.mxu2 }
 0x402   : > { %v3476_v32 = vmax.f32 %v2904_v21, 0.0  ;;  %v4296_v57 = vadd.f32 %v10087_v5, %v4295_v62 }
 0x403   : > { %v5687_v6 = vpop.f32.mrf.mxu3 }
 0x404   : > { %v3709_v4 = vpack.c.bf16 %v3476_v32, %v3475_v29  ;;  %v4895_v39 = vmax.f32 %v4296_v57, 0.0  ;;  %v5688_v17 = vadd.f32 %v10222_v53, %v5687_v6 }
 0x406   : > { %v5137_v60 = vpack.c.bf16 %v4895_v39, %v4894_v49  ;;  %v6314_v43 = vmax.f32 %v5688_v17, 0.0  ;;  %8490 = vmatmul.msk.bf16.gmra.mxu2 %vm2397_vm1, %v3709_v4 }
 0x407   : > { %v2906_v55 = vpop.f32.mrf.mxu1 }
 0x408   : > { %v6565_v54 = vpack.c.bf16 %v6314_v43, %v6313_v7  ;;  %8617 = vmatmul.msk.bf16.gmra.mxu3 %vm2397_vm1, %v5137_v60  ;;  %v2907_v31 = vadd.f32 %v10237_v40, %v2906_v55 }
 0x409   : > { %v4298_v37 = vpop.f32.mrf.mxu2 }
 0x40a   : > { %8363 = vmatmul.msk.bf16.gmra.mxu1 %vm2397_vm1, %v2280_v15  ;;  %8744 = vmatmul.msk.bf16.gmra.mxu0 %vm2397_vm1, %v6565_v54  ;;  %v4299_v34 = vadd.f32 %v10087_v5, %v4298_v37  ;;  %v3477_v62 = vmax.f32 %v2907_v31, 0.0 }
 0x40b   : > { %v5690_v9 = vpop.f32.mrf.mxu3 }
 0x40c   : > { %v5691_v29 = vadd.f32 %v10222_v53, %v5690_v9  ;;  %v4896_v2 = vmax.f32 %v4299_v34, 0.0 }
 0x40e   : > { %v6315_v4 = vmax.f32 %v5691_v29, 0.0 }
 0x40f   : > { %v2908_v59 = vpop.f32.mrf.mxu1 }
 0x410   : > { %v2909_v41 = vadd.f32 %v10237_v40, %v2908_v59 }
 0x411   : > { %v4300_v21 = vpop.f32.mrf.mxu2 }
 0x412   : > { %v3478_v52 = vmax.f32 %v2909_v41, 0.0  ;;  %v4301_v32 = vadd.f32 %v10087_v5, %v4300_v21 }
 0x413   : > { %v5692_v57 = vpop.f32.mrf.mxu3 }
 0x414   : > { %v3710_v1 = vpack.c.bf16 %v3478_v52, %v3477_v62  ;;  %v4897_v6 = vmax.f32 %v4301_v32, 0.0  ;;  %v5693_v49 = vadd.f32 %v10222_v53, %v5692_v57 }
 0x416   : > { %v5138_v39 = vpack.c.bf16 %v4897_v6, %v4896_v2  ;;  %v6316_v17 = vmax.f32 %v5693_v49, 0.0  ;;  %8491 = vmatmul.msk.bf16.gmra.mxu2 %vm2397_vm1, %v3710_v1 }
 0x417   : > { %v2911_v7 = vpop.f32.mrf.mxu1 }
 0x418   : > { %v6566_v60 = vpack.c.bf16 %v6316_v17, %v6315_v4  ;;  %8618 = vmatmul.msk.bf16.gmra.mxu3 %vm2397_vm1, %v5138_v39  ;;  %v2912_v15 = vadd.f32 %v10237_v40, %v2911_v7 }
 0x419   : > { %v4303_v43 = vpop.f32.mrf.mxu2 }
 0x41a   : > { %8364 = vmatmul.msk.bf16.gmra.mxu1 %vm2397_vm1, %v9186_v48  ;;  %8745 = vmatmul.msk.bf16.gmra.mxu0 %vm2397_vm1, %v6566_v60  ;;  %v4304_v37 = vadd.f32 %v10087_v5, %v4303_v43  ;;  %v3479_v59 = vmax.f32 %v2912_v15, 0.0 }
 0x41b   : > { %v5695_v55 = vpop.f32.mrf.mxu3 }
 0x41c   : > { %v5696_v34 = vadd.f32 %v10222_v53, %v5695_v55  ;;  %v4898_v29 = vmax.f32 %v4304_v37, 0.0 }
 0x41e   : > { %v6317_v57 = vmax.f32 %v5696_v34, 0.0 }
 0x41f   : > { %v2913_v54 = vpop.f32.mrf.mxu1 }
 0x420   : > { %v2914_v9 = vadd.f32 %v10237_v40, %v2913_v54 }
 0x421   : > { %v4305_v31 = vpop.f32.mrf.mxu2 }
 0x422   : > { %v3480_v41 = vmax.f32 %v2914_v9, 0.0  ;;  %v4306_v21 = vadd.f32 %v10087_v5, %v4305_v31 }
 0x423   : > { %v5697_v62 = vpop.f32.mrf.mxu3 }
 0x424   : > { %v3711_v48 = vpack.c.bf16 %v3480_v41, %v3479_v59  ;;  %v4899_v52 = vmax.f32 %v4306_v21, 0.0  ;;  %v5698_v32 = vadd.f32 %v10222_v53, %v5697_v62 }
 0x426   : > { %v5139_v2 = vpack.c.bf16 %v4899_v52, %v4898_v29  ;;  %v6318_v1 = vmax.f32 %v5698_v32, 0.0  ;;  %8492 = vmatmul.msk.bf16.gmra.mxu2 %vm2397_vm1, %v3711_v48 }
 0x427   : > { %v2916_v6 = vpop.f32.mrf.mxu1 }
 0x428   : > { %v6567_v49 = vpack.c.bf16 %v6318_v1, %v6317_v57  ;;  %8619 = vmatmul.msk.bf16.gmra.mxu3 %vm2397_vm1, %v5139_v2  ;;  %v2917_v17 = vadd.f32 %v10237_v40, %v2916_v6 }
 0x429   : > { %v4308_v4 = vpop.f32.mrf.mxu2 }
 0x42a   : > { %8365 = vmatmul.msk.bf16.gmra.mxu1 %vm2397_vm1, %v9196_v61  ;;  %8746 = vmatmul.msk.bf16.gmra.mxu0 %vm2397_vm1, %v6567_v49  ;;  %v4309_v60 = vadd.f32 %v10087_v5, %v4308_v4  ;;  %v3481_v15 = vmax.f32 %v2917_v17, 0.0 }
 0x42b   : > { %v5700_v39 = vpop.f32.mrf.mxu3 }
 0x42c   : > { %v5701_v54 = vadd.f32 %v10222_v53, %v5700_v39  ;;  %v4900_v59 = vmax.f32 %v4309_v60, 0.0 }
 0x42e   : > { %v6319_v21 = vmax.f32 %v5701_v54, 0.0 }
 0x42f   : > { %v2918_v7 = vpop.f32.mrf.mxu1 }
 0x430   : > { %v2919_v43 = vadd.f32 %v10237_v40, %v2918_v7 }
 0x431   : > { %v4310_v55 = vpop.f32.mrf.mxu2 }
 0x432   : > { %v3482_v37 = vmax.f32 %v2919_v43, 0.0  ;;  %v4311_v9 = vadd.f32 %v10087_v5, %v4310_v55 }
 0x433   : > { %v5702_v31 = vpop.f32.mrf.mxu3 }
 0x434   : > { %v3712_v61 = vpack.c.bf16 %v3482_v37, %v3481_v15  ;;  %v4901_v34 = vmax.f32 %v4311_v9, 0.0  ;;  %v5703_v41 = vadd.f32 %v10222_v53, %v5702_v31  ;;  %v10326_v37 = vld [vmem:[%s12473_s10] ss:$0 sm:$0xff] }
 0x436   : > { %v5140_v62 = vpack.c.bf16 %v4901_v34, %v4900_v59  ;;  %v6320_v29 = vmax.f32 %v5703_v41, 0.0  ;;  %8493 = vmatmul.msk.bf16.gmra.mxu2 %vm2397_vm1, %v3712_v61 }
 0x437   : > { %v2921_v48 = vpop.f32.mrf.mxu1 }
 0x438   : > { %v6568_v52 = vpack.c.bf16 %v6320_v29, %v6319_v21  ;;  %8620 = vmatmul.msk.bf16.gmra.mxu3 %vm2397_vm1, %v5140_v62  ;;  %v2922_v2 = vadd.f32 %v10237_v40, %v2921_v48 }
 0x439   : > { %v4313_v32 = vpop.f32.mrf.mxu2 }
 0x43a   : > { %8366 = vmatmul.msk.bf16.gmra.mxu1 %vm2397_vm1, %v9206_v10  ;;  %8747 = vmatmul.msk.bf16.gmra.mxu0 %vm2397_vm1, %v6568_v52  ;;  %v4314_v6 = vadd.f32 %v10087_v5, %v4313_v32  ;;  %v3483_v39 = vmax.f32 %v2922_v2, 0.0 }
 0x43b   : > { %v5705_v57 = vpop.f32.mrf.mxu3 }
 0x43c   : > { %v5706_v17 = vadd.f32 %v10222_v53, %v5705_v57  ;;  %v4902_v10 = vmax.f32 %v4314_v6, 0.0 }
 0x43e   : > { %v6321_v9 = vmax.f32 %v5706_v17, 0.0 }
 0x43f   : > { %v2923_v1 = vpop.f32.mrf.mxu1 }
 0x440   : > { %v2924_v49 = vadd.f32 %v10237_v40, %v2923_v1 }
 0x441   : > { %v4315_v4 = vpop.f32.mrf.mxu2 }
 0x442   : > { %v3484_v7 = vmax.f32 %v2924_v49, 0.0  ;;  %v4316_v60 = vadd.f32 %v10087_v5, %v4315_v4 }
 0x443   : > { %v5707_v43 = vpop.f32.mrf.mxu3 }
 0x444   : > { %v3713_v55 = vpack.c.bf16 %v3484_v7, %v3483_v39  ;;  %v4903_v15 = vmax.f32 %v4316_v60, 0.0  ;;  %v5708_v54 = vadd.f32 %v10222_v53, %v5707_v43 }
 0x446   : > { %v5141_v31 = vpack.c.bf16 %v4903_v15, %v4902_v10  ;;  %v6322_v59 = vmax.f32 %v5708_v54, 0.0  ;;  %8494 = vmatmul.msk.bf16.gmra.mxu2 %vm2397_vm1, %v3713_v55 }
 0x447   : > { %v2926_v61 = vpop.f32.mrf.mxu1  ;;  %v7102_v34 = vpop.f32.mrf.mxu0 }
 0x448   : > { %v6569_v41 = vpack.c.bf16 %v6322_v59, %v6321_v9  ;;  %v7103_v21 = vadd.f32 %v10326_v37, %v7102_v34  ;;  %8621 = vmatmul.msk.bf16.gmra.mxu3 %vm2397_vm1, %v5141_v31  ;;  %v2927_v48 = vadd.f32 %v10237_v40, %v2926_v61 }
 0x449   : > { %v4318_v62 = vpop.f32.mrf.mxu2 }
 0x44a   : > { %7743 = vst.msk [vmem:[%s10334_s14] sm:$0xff] %vm7742_vm2, %v7103_v21  ;;  %8367 = vmatmul.msk.bf16.gmra.mxu1 %vm2397_vm1, %v9216_v23  ;;  %8748 = vmatmul.msk.bf16.gmra.mxu0 %vm2397_vm1, %v6569_v41  ;;  %v4319_v57 = vadd.f32 %v10087_v5, %v4318_v62  ;;  %v3485_v49 = vmax.f32 %v2927_v48, 0.0  ;;  %v10351_v23 = vld [vmem:[%s9113_s22] ss:$0 sm:$0xff] }
 0x44b   : > { %v5710_v29 = vpop.f32.mrf.mxu3 }
 0x44c   : > { %v5711_v4 = vadd.f32 %v10222_v53, %v5710_v29  ;;  %v4904_v60 = vmax.f32 %v4319_v57, 0.0 }
 0x44e   : > { %v6323_v55 = vmax.f32 %v5711_v4, 0.0 }
 0x44f   : > { %v2928_v52 = vpop.f32.mrf.mxu1  ;;  %v7104_v32 = vpop.f32.mrf.mxu0 }
 0x450   : > { %v2929_v2 = vadd.f32 %v10237_v40, %v2928_v52  ;;  %v7105_v1 = vadd.f32 %v10326_v37, %v7104_v32 }
 0x451   : > { %v4320_v6 = vpop.f32.mrf.mxu2 }
 0x452   : > { %v3486_v39 = vmax.f32 %v2929_v2, 0.0  ;;  %7744 = vst.msk [vmem:[%s10334_s14 + $0x8] sm:$0xff] %vm7742_vm2, %v7105_v1  ;;  %v4321_v17 = vadd.f32 %v10351_v23, %v4320_v6 }
 0x453   : > { %v5712_v7 = vpop.f32.mrf.mxu3 }
 0x454   : > { %v3714_v43 = vpack.c.bf16 %v3486_v39, %v3485_v49  ;;  %v4905_v5 = vmax.f32 %v4321_v17, 0.0  ;;  %v5713_v10 = vadd.f32 %v10222_v53, %v5712_v7 }
 0x456   : > { %v5142_v15 = vpack.c.bf16 %v4905_v5, %v4904_v60  ;;  %v6324_v54 = vmax.f32 %v5713_v10, 0.0  ;;  %8495 = vmatmul.msk.bf16.gmra.mxu2 %vm2397_vm1, %v3714_v43 }
 0x457   : > { %v2931_v9 = vpop.f32.mrf.mxu1  ;;  %v7107_v31 = vpop.f32.mrf.mxu0 }
 0x458   : > { %v6570_v59 = vpack.c.bf16 %v6324_v54, %v6323_v55  ;;  %v7108_v61 = vadd.f32 %v10326_v37, %v7107_v31  ;;  %8622 = vmatmul.msk.bf16.gmra.mxu3 %vm2397_vm1, %v5142_v15  ;;  %v2932_v21 = vadd.f32 %v10237_v40, %v2931_v9 }
 0x459   : > { %v4323_v34 = vpop.f32.mrf.mxu2 }
 0x45a   : > { %7745 = vst.msk [vmem:[%s10334_s14 + $0x10] sm:$0xff] %vm7742_vm2, %v7108_v61  ;;  %8368 = vmatmul.msk.bf16.gmra.mxu1 %vm2397_vm1, %v9226_v36  ;;  %8749 = vmatmul.msk.bf16.gmra.mxu0 %vm2397_vm1, %v6570_v59  ;;  %v4324_v48 = vadd.f32 %v10351_v23, %v4323_v34  ;;  %v3487_v2 = vmax.f32 %v2932_v21, 0.0 }
 0x45b   : > { %v5715_v41 = vpop.f32.mrf.mxu3 }
 0x45c   : > { %v5716_v1 = vadd.f32 %v10222_v53, %v5715_v41  ;;  %v4906_v4 = vmax.f32 %v4324_v48, 0.0 }
 0x45e   : > { %v6325_v60 = vmax.f32 %v5716_v1, 0.0 }
 0x45f   : > { %v2933_v62 = vpop.f32.mrf.mxu1  ;;  %v7109_v29 = vpop.f32.mrf.mxu0 }
 0x460   : > { %v2934_v52 = vadd.f32 %v10237_v40, %v2933_v62  ;;  %v7110_v32 = vadd.f32 %v10326_v37, %v7109_v29 }
 0x461   : > { %v4325_v57 = vpop.f32.mrf.mxu2 }
 0x462   : > { %v3488_v6 = vmax.f32 %v2934_v52, 0.0  ;;  %7746 = vst.msk [vmem:[%s10334_s14 + $0x18] sm:$0xff] %vm7742_vm2, %v7110_v32  ;;  %v4326_v36 = vadd.f32 %v10351_v23, %v4325_v57 }
 0x463   : > { %v5717_v49 = vpop.f32.mrf.mxu3 }
 0x464   : > { %v3715_v39 = vpack.c.bf16 %v3488_v6, %v3487_v2  ;;  %v4907_v17 = vmax.f32 %v4326_v36, 0.0  ;;  %v5718_v7 = vadd.f32 %v10222_v53, %v5717_v49 }
 0x466   : > { %v5143_v43 = vpack.c.bf16 %v4907_v17, %v4906_v4  ;;  %v6326_v5 = vmax.f32 %v5718_v7, 0.0  ;;  %8496 = vmatmul.msk.bf16.gmra.mxu2 %vm2397_vm1, %v3715_v39 }
 0x467   : > { %v2936_v10 = vpop.f32.mrf.mxu1  ;;  %v7112_v55 = vpop.f32.mrf.mxu0 }
 0x468   : > { %v6571_v15 = vpack.c.bf16 %v6326_v5, %v6325_v60  ;;  %v7113_v54 = vadd.f32 %v10326_v37, %v7112_v55  ;;  %8623 = vmatmul.msk.bf16.gmra.mxu3 %vm2397_vm1, %v5143_v43  ;;  %v2937_v59 = vadd.f32 %v10237_v40, %v2936_v10 }
 0x469   : > { %v4328_v9 = vpop.f32.mrf.mxu2 }
 0x46a   : > { %7747 = vst.msk [vmem:[%s10334_s14 + $0x20] sm:$0xff] %vm7742_vm2, %v7113_v54  ;;  %8369 = vmatmul.msk.bf16.gmra.mxu1 %vm2397_vm1, %v9236_v51  ;;  %8750 = vmatmul.msk.bf16.gmra.mxu0 %vm2397_vm1, %v6571_v15  ;;  %v4329_v41 = vadd.f32 %v10351_v23, %v4328_v9  ;;  %v3489_v48 = vmax.f32 %v2937_v59, 0.0 }
 0x46b   : > { %v5720_v31 = vpop.f32.mrf.mxu3 }
 0x46c   : > { %v5721_v52 = vadd.f32 %v10222_v53, %v5720_v31  ;;  %v4908_v2 = vmax.f32 %v4329_v41, 0.0 }
 0x46e   : > { %v6327_v49 = vmax.f32 %v5721_v52, 0.0 }
 0x46f   : > { %v2938_v61 = vpop.f32.mrf.mxu1  ;;  %v7114_v34 = vpop.f32.mrf.mxu0 }
 0x470   : > { %v2939_v21 = vadd.f32 %v10237_v40, %v2938_v61  ;;  %v7115_v62 = vadd.f32 %v10326_v37, %v7114_v34 }
 0x471   : > { %v4330_v29 = vpop.f32.mrf.mxu2 }
 0x472   : > { %v3490_v32 = vmax.f32 %v2939_v21, 0.0  ;;  %7748 = vst.msk [vmem:[%s10334_s14 + $0x28] sm:$0xff] %vm7742_vm2, %v7115_v62  ;;  %v4331_v51 = vadd.f32 %v10351_v23, %v4330_v29 }
 0x473   : > { %v5722_v57 = vpop.f32.mrf.mxu3 }
 0x474   : > { %v3716_v1 = vpack.c.bf16 %v3490_v32, %v3489_v48  ;;  %v4909_v6 = vmax.f32 %v4331_v51, 0.0  ;;  %v5723_v36 = vadd.f32 %v10222_v53, %v5722_v57 }
 0x476   : > { %v5144_v4 = vpack.c.bf16 %v4909_v6, %v4908_v2  ;;  %v6328_v39 = vmax.f32 %v5723_v36, 0.0  ;;  %8497 = vmatmul.msk.bf16.gmra.mxu2 %vm2397_vm1, %v3716_v1 }
 0x477   : > { %v2941_v17 = vpop.f32.mrf.mxu1  ;;  %v7117_v7 = vpop.f32.mrf.mxu0 }
 0x478   : > { %v6572_v60 = vpack.c.bf16 %v6328_v39, %v6327_v49  ;;  %v7118_v43 = vadd.f32 %v10326_v37, %v7117_v7  ;;  %8624 = vmatmul.msk.bf16.gmra.mxu3 %vm2397_vm1, %v5144_v4  ;;  %v2942_v55 = vadd.f32 %v10237_v40, %v2941_v17 }
 0x479   : > { %v4333_v5 = vpop.f32.mrf.mxu2 }
 0x47a   : > { %7749 = vst.msk [vmem:[%s10334_s14 + $0x30] sm:$0xff] %vm7742_vm2, %v7118_v43  ;;  %8370 = vmatmul.msk.bf16.gmra.mxu1 %vm2397_vm1, %v9247_v3  ;;  %8751 = vmatmul.msk.bf16.gmra.mxu0 %vm2397_vm1, %v6572_v60  ;;  %v4334_v9 = vadd.f32 %v10351_v23, %v4333_v5  ;;  %v3491_v34 = vmax.f32 %v2942_v55, 0.0 }
 0x47b   : > { %v5725_v10 = vpop.f32.mrf.mxu3 }
 0x47c   : > { %v5726_v41 = vadd.f32 %v10222_v53, %v5725_v10  ;;  %v4910_v29 = vmax.f32 %v4334_v9, 0.0 }
 0x47e   : > { %v6329_v51 = vmax.f32 %v5726_v41, 0.0 }
 0x47f   : > { %v2943_v15 = vpop.f32.mrf.mxu1  ;;  %v7119_v54 = vpop.f32.mrf.mxu0 }
 0x480   : > { %v2944_v31 = vadd.f32 %v10237_v40, %v2943_v15  ;;  %v7120_v59 = vadd.f32 %v10326_v37, %v7119_v54 }
 0x481   : > { %v4335_v61 = vpop.f32.mrf.mxu2 }
 0x482   : > { %v3492_v21 = vmax.f32 %v2944_v31, 0.0  ;;  %7750 = vst.msk [vmem:[%s10334_s14 + $0x38] sm:$0xff] %vm7742_vm2, %v7120_v59  ;;  %v4336_v3 = vadd.f32 %v10351_v23, %v4335_v61 }
 0x483   : > { %v5727_v62 = vpop.f32.mrf.mxu3 }
 0x484   : > { %v3717_v48 = vpack.c.bf16 %v3492_v21, %v3491_v34  ;;  %v4911_v52 = vmax.f32 %v4336_v3, 0.0  ;;  %v5728_v32 = vadd.f32 %v10222_v53, %v5727_v62 }
 0x486   : > { %v5145_v57 = vpack.c.bf16 %v4911_v52, %v4910_v29  ;;  %v6330_v2 = vmax.f32 %v5728_v32, 0.0  ;;  %8498 = vmatmul.msk.bf16.gmra.mxu2 %vm2397_vm1, %v3717_v48 }
 0x487   : > { %v2946_v1 = vpop.f32.mrf.mxu1  ;;  %v7122_v6 = vpop.f32.mrf.mxu0 }
 0x488   : > { %v6573_v36 = vpack.c.bf16 %v6330_v2, %v6329_v51  ;;  %v7123_v49 = vadd.f32 %v10326_v37, %v7122_v6  ;;  %8625 = vmatmul.msk.bf16.gmra.mxu3 %vm2397_vm1, %v5145_v57  ;;  %v2947_v17 = vadd.f32 %v10237_v40, %v2946_v1 }
 0x489   : > { %v4338_v4 = vpop.f32.mrf.mxu2 }
 0x48a   : > { %7751 = vst.msk [vmem:[%s10334_s14 + $0x40] sm:$0xff] %vm7742_vm2, %v7123_v49  ;;  %8371 = vmatmul.msk.bf16.gmra.mxu1 %vm2397_vm1, %v9264_v28  ;;  %8752 = vmatmul.msk.bf16.gmra.mxu0 %vm2397_vm1, %v6573_v36  ;;  %v4339_v43 = vadd.f32 %v10351_v23, %v4338_v4  ;;  %v3493_v15 = vmax.f32 %v2947_v17, 0.0 }
 0x48b   : > { %v5730_v39 = vpop.f32.mrf.mxu3 }
 0x48c   : > { %v5731_v54 = vadd.f32 %v10222_v53, %v5730_v39  ;;  %v4912_v59 = vmax.f32 %v4339_v43, 0.0 }
 0x48e   : > { %v6331_v21 = vmax.f32 %v5731_v54, 0.0 }
 0x48f   : > { %v2948_v7 = vpop.f32.mrf.mxu1  ;;  %v7124_v60 = vpop.f32.mrf.mxu0 }
 0x490   : > { %v2949_v5 = vadd.f32 %v10237_v40, %v2948_v7  ;;  %v7125_v10 = vadd.f32 %v10326_v37, %v7124_v60 }
 0x491   : > { %v4340_v55 = vpop.f32.mrf.mxu2 }
 0x492   : > { %v3494_v9 = vmax.f32 %v2949_v5, 0.0  ;;  %7752 = vst.msk [vmem:[%s10334_s14 + $0x48] sm:$0xff] %vm7742_vm2, %v7125_v10  ;;  %v4341_v28 = vadd.f32 %v10351_v23, %v4340_v55 }
 0x493   : > { %v5732_v31 = vpop.f32.mrf.mxu3 }
 0x494   : > { %v3718_v61 = vpack.c.bf16 %v3494_v9, %v3493_v15  ;;  %v4913_v34 = vmax.f32 %v4341_v28, 0.0  ;;  %v5733_v41 = vadd.f32 %v10222_v53, %v5732_v31 }
 0x496   : > { %v5146_v3 = vpack.c.bf16 %v4913_v34, %v4912_v59  ;;  %v6332_v62 = vmax.f32 %v5733_v41, 0.0  ;;  %8499 = vmatmul.msk.bf16.gmra.mxu2 %vm2397_vm1, %v3718_v61 }
 0x497   : > { %v2951_v29 = vpop.f32.mrf.mxu1  ;;  %v7127_v48 = vpop.f32.mrf.mxu0 }
 0x498   : > { %v6574_v52 = vpack.c.bf16 %v6332_v62, %v6331_v21  ;;  %v7128_v32 = vadd.f32 %v10326_v37, %v7127_v48  ;;  %8626 = vmatmul.msk.bf16.gmra.mxu3 %vm2397_vm1, %v5146_v3  ;;  %v2952_v2 = vadd.f32 %v10237_v40, %v2951_v29 }
 0x499   : > { %v4343_v51 = vpop.f32.mrf.mxu2 }
 0x49a   : > { %7753 = vst.msk [vmem:[%s10334_s14 + $0x50] sm:$0xff] %vm7742_vm2, %v7128_v32  ;;  %8372 = vmatmul.msk.bf16.gmra.mxu1 %vm2397_vm1, %v9288_v56  ;;  %8753 = vmatmul.msk.bf16.gmra.mxu0 %vm2397_vm1, %v6574_v52  ;;  %v4344_v36 = vadd.f32 %v10351_v23, %v4343_v51  ;;  %v3495_v17 = vmax.f32 %v2952_v2, 0.0 }
 0x49b   : > { %v5735_v57 = vpop.f32.mrf.mxu3 }
 0x49c   : > { %v5736_v7 = vadd.f32 %v10222_v53, %v5735_v57  ;;  %v4914_v5 = vmax.f32 %v4344_v36, 0.0 }
 0x49e   : > { %v6333_v54 = vmax.f32 %v5736_v7, 0.0 }
 0x49f   : > { %v2953_v1 = vpop.f32.mrf.mxu1  ;;  %v7129_v6 = vpop.f32.mrf.mxu0 }
 0x4a0   : > { %v2954_v49 = vadd.f32 %v10237_v40, %v2953_v1  ;;  %v7130_v4 = vadd.f32 %v10326_v37, %v7129_v6 }
 0x4a1   : > { %v4345_v39 = vpop.f32.mrf.mxu2 }
 0x4a2   : > { %v3496_v60 = vmax.f32 %v2954_v49, 0.0  ;;  %7754 = vst.msk [vmem:[%s10334_s14 + $0x58] sm:$0xff] %vm7742_vm2, %v7130_v4  ;;  %v4346_v56 = vadd.f32 %v10351_v23, %v4345_v39 }
 0x4a3   : > { %v5737_v43 = vpop.f32.mrf.mxu3 }
 0x4a4   : > { %v3719_v10 = vpack.c.bf16 %v3496_v60, %v3495_v17  ;;  %v4915_v55 = vmax.f32 %v4346_v56, 0.0  ;;  %v5738_v15 = vadd.f32 %v10222_v53, %v5737_v43 }
 0x4a6   : > { %v5147_v9 = vpack.c.bf16 %v4915_v55, %v4914_v5  ;;  %v6334_v28 = vmax.f32 %v5738_v15, 0.0  ;;  %8500 = vmatmul.msk.bf16.gmra.mxu2 %vm2397_vm1, %v3719_v10 }
 0x4a7   : > { %v2956_v31 = vpop.f32.mrf.mxu1  ;;  %v7132_v59 = vpop.f32.mrf.mxu0 }
 0x4a8   : > { %v6575_v61 = vpack.c.bf16 %v6334_v28, %v6333_v54  ;;  %v7133_v34 = vadd.f32 %v10326_v37, %v7132_v59  ;;  %8627 = vmatmul.msk.bf16.gmra.mxu3 %vm2397_vm1, %v5147_v9  ;;  %v2957_v3 = vadd.f32 %v10237_v40, %v2956_v31 }
 0x4a9   : > { %v4348_v41 = vpop.f32.mrf.mxu2 }
 0x4aa   : > { %7755 = vst.msk [vmem:[%s10334_s14 + $0x60] sm:$0xff] %vm7742_vm2, %v7133_v34  ;;  %8373 = vmatmul.msk.bf16.gmra.mxu1 %vm2397_vm1, %v9305_v19  ;;  %8754 = vmatmul.msk.bf16.gmra.mxu0 %vm2397_vm1, %v6575_v61  ;;  %v4349_v48 = vadd.f32 %v10351_v23, %v4348_v41  ;;  %v3497_v57 = vmax.f32 %v2957_v3, 0.0 }
 0x4ab   : > { %v5740_v21 = vpop.f32.mrf.mxu3 }
 0x4ac   : > { %v5741_v2 = vadd.f32 %v10222_v53, %v5740_v21  ;;  %v4916_v36 = vmax.f32 %v4349_v48, 0.0 }
 0x4ae   : > { %v6335_v17 = vmax.f32 %v5741_v2, 0.0 }
 0x4af   : > { %v2958_v62 = vpop.f32.mrf.mxu1  ;;  %v7134_v29 = vpop.f32.mrf.mxu0 }
 0x4b0   : > { %v2959_v52 = vadd.f32 %v10237_v40, %v2958_v62  ;;  %v7135_v32 = vadd.f32 %v10326_v37, %v7134_v29 }
 0x4b1   : > { %v4350_v51 = vpop.f32.mrf.mxu2 }
 0x4b2   : > { %v3498_v1 = vmax.f32 %v2959_v52, 0.0  ;;  %7756 = vst.msk [vmem:[%s10334_s14 + $0x68] sm:$0xff] %vm7742_vm2, %v7135_v32  ;;  %v4351_v19 = vadd.f32 %v10351_v23, %v4350_v51 }
 0x4b3   : > { %v5742_v6 = vpop.f32.mrf.mxu3 }
 0x4b4   : > { %v3720_v49 = vpack.c.bf16 %v3498_v1, %v3497_v57  ;;  %v4917_v4 = vmax.f32 %v4351_v19, 0.0  ;;  %v5743_v39 = vadd.f32 %v10222_v53, %v5742_v6 }
 0x4b6   : > { %v5148_v7 = vpack.c.bf16 %v4917_v4, %v4916_v36  ;;  %v6336_v60 = vmax.f32 %v5743_v39, 0.0  ;;  %8501 = vmatmul.msk.bf16.gmra.mxu2 %vm2397_vm1, %v3720_v49 }
 0x4b7   : > { %v2961_v56 = vpop.f32.mrf.mxu1  ;;  %v7137_v43 = vpop.f32.mrf.mxu0 }
 0x4b8   : > { %v6576_v5 = vpack.c.bf16 %v6336_v60, %v6335_v17  ;;  %v7138_v10 = vadd.f32 %v10326_v37, %v7137_v43  ;;  %8628 = vmatmul.msk.bf16.gmra.mxu3 %vm2397_vm1, %v5148_v7  ;;  %v2962_v54 = vadd.f32 %v10237_v40, %v2961_v56 }
 0x4b9   : > { %v4353_v55 = vpop.f32.mrf.mxu2 }
 0x4ba   : > { %7757 = vst.msk [vmem:[%s10334_s14 + $0x70] sm:$0xff] %vm7742_vm2, %v7138_v10  ;;  %8374 = vmatmul.msk.bf16.gmra.mxu1 %vm2397_vm1, %v9322_v47  ;;  %8755 = vmatmul.msk.bf16.gmra.mxu0 %vm2397_vm1, %v6576_v5  ;;  %v4354_v31 = vadd.f32 %v10351_v23, %v4353_v55  ;;  %v3499_v41 = vmax.f32 %v2962_v54, 0.0  ;;  %v10487_v10 = vld [vmem:[%s9118_s26] ss:$0 sm:$0xff] }
 0x4bb   : > { %v5745_v15 = vpop.f32.mrf.mxu3 }
 0x4bc   : > { %v5746_v21 = vadd.f32 %v10222_v53, %v5745_v15  ;;  %v4918_v29 = vmax.f32 %v4354_v31, 0.0 }
 0x4be   : > { %v6337_v51 = vmax.f32 %v5746_v21, 0.0 }
 0x4bf   : > { %v2963_v9 = vpop.f32.mrf.mxu1  ;;  %v7139_v28 = vpop.f32.mrf.mxu0 }
 0x4c0   : > { %v2964_v59 = vadd.f32 %v10237_v40, %v2963_v9  ;;  %v7140_v61 = vadd.f32 %v10326_v37, %v7139_v28 }
 0x4c1   : > { %v4355_v34 = vpop.f32.mrf.mxu2 }
 0x4c2   : > { %v3500_v3 = vmax.f32 %v2964_v59, 0.0  ;;  %7758 = vst.msk [vmem:[%s10334_s14 + $0x78] sm:$0xff] %vm7742_vm2, %v7140_v61  ;;  %v4356_v47 = vadd.f32 %v10351_v23, %v4355_v34 }
 0x4c3   : > { %v5747_v62 = vpop.f32.mrf.mxu3 }
 0x4c4   : > { %v3721_v48 = vpack.c.bf16 %v3500_v3, %v3499_v41  ;;  %v4919_v52 = vmax.f32 %v4356_v47, 0.0  ;;  %v5748_v32 = vadd.f32 %v10222_v53, %v5747_v62 }
 0x4c6   : > { %v5149_v57 = vpack.c.bf16 %v4919_v52, %v4918_v29  ;;  %v6338_v2 = vmax.f32 %v5748_v32, 0.0  ;;  %8502 = vmatmul.msk.bf16.gmra.mxu2 %vm2397_vm1, %v3721_v48 }
 0x4c7   : > { %v2966_v1 = vpop.f32.mrf.mxu1  ;;  %v7142_v19 = vpop.f32.mrf.mxu0 }
 0x4c8   : > { %v6577_v6 = vpack.c.bf16 %v6338_v2, %v6337_v51  ;;  %v7143_v36 = vadd.f32 %v10326_v37, %v7142_v19  ;;  %8629 = vmatmul.msk.bf16.gmra.mxu3 %vm2397_vm1, %v5149_v57  ;;  %v2967_v4 = vadd.f32 %v10237_v40, %v2966_v1  ;;  %v10505_v2 = vld [vmem:[%s9108_s23] ss:$0 sm:$0xff] }
 0x4c9   : > { %v4358_v49 = vpop.f32.mrf.mxu2 }
 0x4ca   : > { %7759 = vst.msk [vmem:[%s10334_s14 + $0x80] sm:$0xff] %vm7742_vm2, %v7143_v36  ;;  %8375 = vmatmul.msk.bf16.gmra.mxu1 %vm2397_vm1, %v9339_v13  ;;  %8756 = vmatmul.msk.bf16.gmra.mxu0 %vm2397_vm1, %v6577_v6  ;;  %v4359_v7 = vadd.f32 %v10351_v23, %v4358_v49  ;;  %v3501_v5 = vmax.f32 %v2967_v4, 0.0 }
 0x4cb   : > { %v5750_v53 = vpop.f32.mrf.mxu3 }
 0x4cc   : > { %v5751_v55 = vadd.f32 %v10487_v10, %v5750_v53  ;;  %v4920_v9 = vmax.f32 %v4359_v7, 0.0 }
 0x4ce   : > { %v6339_v61 = vmax.f32 %v5751_v55, 0.0 }
 0x4cf   : > { %v2968_v39 = vpop.f32.mrf.mxu1  ;;  %v7144_v17 = vpop.f32.mrf.mxu0 }
 0x4d0   : > { %v2969_v60 = vadd.f32 %v10237_v40, %v2968_v39  ;;  %v7145_v56 = vadd.f32 %v10326_v37, %v7144_v17 }
 0x4d1   : > { %v4360_v43 = vpop.f32.mrf.mxu2 }
 0x4d2   : > { %v3502_v13 = vmax.f32 %v2969_v60, 0.0  ;;  %7760 = vst.msk [vmem:[%s10334_s14 + $0x88] sm:$0xff] %vm7742_vm2, %v7145_v56  ;;  %v4361_v15 = vadd.f32 %v10351_v23, %v4360_v43 }
 0x4d3   : > { %v5752_v54 = vpop.f32.mrf.mxu3 }
 0x4d4   : > { %v3722_v28 = vpack.c.bf16 %v3502_v13, %v3501_v5  ;;  %v4921_v31 = vmax.f32 %v4361_v15, 0.0  ;;  %v5753_v59 = vadd.f32 %v10487_v10, %v5752_v54 }
 0x4d6   : > { %v5150_v34 = vpack.c.bf16 %v4921_v31, %v4920_v9  ;;  %v6340_v41 = vmax.f32 %v5753_v59, 0.0  ;;  %8503 = vmatmul.msk.bf16.gmra.mxu2 %vm2397_vm1, %v3722_v28 }
 0x4d7   : > { %v2971_v21 = vpop.f32.mrf.mxu1  ;;  %v7147_v3 = vpop.f32.mrf.mxu0 }
 0x4d8   : > { %v6578_v47 = vpack.c.bf16 %v6340_v41, %v6339_v61  ;;  %v7148_v62 = vadd.f32 %v10326_v37, %v7147_v3  ;;  %8630 = vmatmul.msk.bf16.gmra.mxu3 %vm2397_vm1, %v5150_v34  ;;  %v2972_v52 = vadd.f32 %v10237_v40, %v2971_v21 }
 0x4d9   : > { %v4363_v29 = vpop.f32.mrf.mxu2 }
 0x4da   : > { %7761 = vst.msk [vmem:[%s10334_s14 + $0x90] sm:$0xff] %vm7742_vm2, %v7148_v62  ;;  %8376 = vmatmul.msk.bf16.gmra.mxu1 %vm2397_vm1, %v9358_v46  ;;  %8757 = vmatmul.msk.bf16.gmra.mxu0 %vm2397_vm1, %v6578_v47  ;;  %v4364_v57 = vadd.f32 %v10351_v23, %v4363_v29  ;;  %v3503_v36 = vmax.f32 %v2972_v52, 0.0 }
 0x4db   : > { %v5755_v48 = vpop.f32.mrf.mxu3 }
 0x4dc   : > { %v5756_v49 = vadd.f32 %v10487_v10, %v5755_v48  ;;  %v4922_v4 = vmax.f32 %v4364_v57, 0.0 }
 0x4de   : > { %v6341_v60 = vmax.f32 %v5756_v49, 0.0 }
 0x4df   : > { %v2973_v32 = vpop.f32.mrf.mxu1  ;;  %v7149_v51 = vpop.f32.mrf.mxu0 }
 0x4e0   : > { %v2974_v1 = vadd.f32 %v10505_v2, %v2973_v32  ;;  %v7150_v19 = vadd.f32 %v10326_v37, %v7149_v51 }
 0x4e1   : > { %v4365_v6 = vpop.f32.mrf.mxu2 }
 0x4e2   : > { %v3504_v46 = vmax.f32 %v2974_v1, 0.0  ;;  %7762 = vst.msk [vmem:[%s10334_s14 + $0x98] sm:$0xff] %vm7742_vm2, %v7150_v19  ;;  %v4366_v53 = vadd.f32 %v10351_v23, %v4365_v6 }
 0x4e3   : > { %v5757_v40 = vpop.f32.mrf.mxu3 }
 0x4e4   : > { %v3723_v39 = vpack.c.bf16 %v3504_v46, %v3503_v36  ;;  %v4923_v17 = vmax.f32 %v4366_v53, 0.0  ;;  %v5758_v7 = vadd.f32 %v10487_v10, %v5757_v40 }
 0x4e6   : > { %v5151_v56 = vpack.c.bf16 %v4923_v17, %v4922_v4  ;;  %v6342_v43 = vmax.f32 %v5758_v7, 0.0  ;;  %8504 = vmatmul.msk.bf16.gmra.mxu2 %vm2397_vm1, %v3723_v39 }
 0x4e7   : > { %v2976_v5 = vpop.f32.mrf.mxu1  ;;  %v7152_v55 = vpop.f32.mrf.mxu0 }
 0x4e8   : > { %v6579_v13 = vpack.c.bf16 %v6342_v43, %v6341_v60  ;;  %v7153_v15 = vadd.f32 %v10326_v37, %v7152_v55  ;;  %8631 = vmatmul.msk.bf16.gmra.mxu3 %vm2397_vm1, %v5151_v56  ;;  %v2977_v28 = vadd.f32 %v10505_v2, %v2976_v5 }
 0x4e9   : > { %v4368_v54 = vpop.f32.mrf.mxu2 }
 0x4ea   : > { %7763 = vst.msk [vmem:[%s10334_s14 + $0xa0] sm:$0xff] %vm7742_vm2, %v7153_v15  ;;  %8377 = vmatmul.msk.bf16.gmra.mxu1 %vm2397_vm1, %v9378_v20  ;;  %8758 = vmatmul.msk.bf16.gmra.mxu0 %vm2397_vm1, %v6579_v13  ;;  %v4369_v61 = vadd.f32 %v10351_v23, %v4368_v54  ;;  %v3505_v3 = vmax.f32 %v2977_v28, 0.0 }
 0x4eb   : > { %v5760_v9 = vpop.f32.mrf.mxu3 }
 0x4ec   : > { %v5761_v47 = vadd.f32 %v10487_v10, %v5760_v9  ;;  %v4924_v48 = vmax.f32 %v4369_v61, 0.0 }
 0x4ee   : > { %v6343_v57 = vmax.f32 %v5761_v47, 0.0 }
 0x4ef   : > { %v2978_v31 = vpop.f32.mrf.mxu1  ;;  %v7154_v59 = vpop.f32.mrf.mxu0 }
 0x4f0   : > { %v2979_v34 = vadd.f32 %v10505_v2, %v2978_v31  ;;  %v7155_v41 = vadd.f32 %v10326_v37, %v7154_v59 }
 0x4f1   : > { %v4370_v21 = vpop.f32.mrf.mxu2 }
 0x4f2   : > { %v3506_v62 = vmax.f32 %v2979_v34, 0.0  ;;  %7764 = vst.msk [vmem:[%s10334_s14 + $0xa8] sm:$0xff] %vm7742_vm2, %v7155_v41  ;;  %v4371_v20 = vadd.f32 %v10351_v23, %v4370_v21 }
 0x4f3   : > { %v5762_v29 = vpop.f32.mrf.mxu3 }
 0x4f4   : > { %v3724_v52 = vpack.c.bf16 %v3506_v62, %v3505_v3  ;;  %v4925_v32 = vmax.f32 %v4371_v20, 0.0  ;;  %v5763_v51 = vadd.f32 %v10487_v10, %v5762_v29 }
 0x4f6   : > { %v5152_v1 = vpack.c.bf16 %v4925_v32, %v4924_v48  ;;  %v6344_v19 = vmax.f32 %v5763_v51, 0.0  ;;  %8505 = vmatmul.msk.bf16.gmra.mxu2 %vm2397_vm1, %v3724_v52 }
 0x4f7   : > { %v2981_v6 = vpop.f32.mrf.mxu1  ;;  %v7157_v36 = vpop.f32.mrf.mxu0 }
 0x4f8   : > { %v6580_v49 = vpack.c.bf16 %v6344_v19, %v6343_v57  ;;  %v7158_v46 = vadd.f32 %v10326_v37, %v7157_v36  ;;  %8632 = vmatmul.msk.bf16.gmra.mxu3 %vm2397_vm1, %v5152_v1  ;;  %v2982_v4 = vadd.f32 %v10505_v2, %v2981_v6 }
 0x4f9   : > { %v4373_v53 = vpop.f32.mrf.mxu2 }
 0x4fa   : > { %7765 = vst.msk [vmem:[%s10334_s14 + $0xb0] sm:$0xff] %vm7742_vm2, %v7158_v46  ;;  %8378 = vmatmul.msk.bf16.gmra.mxu1 %vm2397_vm1, %v9398_v58  ;;  %8759 = vmatmul.msk.bf16.gmra.mxu0 %vm2397_vm1, %v6580_v49  ;;  %v4374_v7 = vadd.f32 %v10351_v23, %v4373_v53  ;;  %v3507_v5 = vmax.f32 %v2982_v4, 0.0 }
 0x4fb   : > { %v5765_v40 = vpop.f32.mrf.mxu3 }
 0x4fc   : > { %v5766_v55 = vadd.f32 %v10487_v10, %v5765_v40  ;;  %v4926_v54 = vmax.f32 %v4374_v7, 0.0 }
 0x4fe   : > { %v6345_v59 = vmax.f32 %v5766_v55, 0.0 }
 0x4ff   : > { %v2983_v39 = vpop.f32.mrf.mxu1  ;;  %v7159_v17 = vpop.f32.mrf.mxu0 }
 0x500   : > { %v2984_v60 = vadd.f32 %v10505_v2, %v2983_v39  ;;  %v7160_v56 = vadd.f32 %v10326_v37, %v7159_v17 }
 0x501   : > { %v4375_v43 = vpop.f32.mrf.mxu2 }
 0x502   : > { %v3508_v13 = vmax.f32 %v2984_v60, 0.0  ;;  %7766 = vst.msk [vmem:[%s10334_s14 + $0xb8] sm:$0xff] %vm7742_vm2, %v7160_v56  ;;  %v4376_v58 = vadd.f32 %v10351_v23, %v4375_v43 }
 0x503   : > { %v5767_v15 = vpop.f32.mrf.mxu3 }
 0x504   : > { %v3725_v9 = vpack.c.bf16 %v3508_v13, %v3507_v5  ;;  %v4927_v28 = vmax.f32 %v4376_v58, 0.0  ;;  %v5768_v31 = vadd.f32 %v10487_v10, %v5767_v15 }
 0x506   : > { %v5153_v61 = vpack.c.bf16 %v4927_v28, %v4926_v54  ;;  %v6346_v34 = vmax.f32 %v5768_v31, 0.0  ;;  %8506 = vmatmul.msk.bf16.gmra.mxu2 %vm2397_vm1, %v3725_v9 }
 0x507   : > { %v2986_v41 = vpop.f32.mrf.mxu1  ;;  %v7162_v21 = vpop.f32.mrf.mxu0 }
 0x508   : > { %v6581_v3 = vpack.c.bf16 %v6346_v34, %v6345_v59  ;;  %v7163_v47 = vadd.f32 %v10326_v37, %v7162_v21  ;;  %8633 = vmatmul.msk.bf16.gmra.mxu3 %vm2397_vm1, %v5153_v61  ;;  %v2987_v29 = vadd.f32 %v10505_v2, %v2986_v41 }
 0x509   : > { %v4378_v62 = vpop.f32.mrf.mxu2 }
 0x50a   : > { %7767 = vst.msk [vmem:[%s10334_s14 + $0xc0] sm:$0xff] %vm7742_vm2, %v7163_v47  ;;  %8379 = vmatmul.msk.bf16.gmra.mxu1 %vm2397_vm1, %v9419_v38  ;;  %8760 = vmatmul.msk.bf16.gmra.mxu0 %vm2397_vm1, %v6581_v3  ;;  %v4379_v32 = vadd.f32 %v10351_v23, %v4378_v62  ;;  %v3509_v19 = vmax.f32 %v2987_v29, 0.0 }
 0x50b   : > { %v5770_v20 = vpop.f32.mrf.mxu3 }
 0x50c   : > { %v5771_v6 = vadd.f32 %v10487_v10, %v5770_v20  ;;  %v4928_v46 = vmax.f32 %v4379_v32, 0.0 }
 0x50e   : > { %v6347_v39 = vmax.f32 %v5771_v6, 0.0 }
 0x50f   : > { %v2988_v48 = vpop.f32.mrf.mxu1  ;;  %v7164_v52 = vpop.f32.mrf.mxu0 }
 0x510   : > { %v2989_v51 = vadd.f32 %v10505_v2, %v2988_v48  ;;  %v7165_v57 = vadd.f32 %v10326_v37, %v7164_v52 }
 0x511   : > { %v4380_v1 = vpop.f32.mrf.mxu2 }
 0x512   : > { %v3510_v36 = vmax.f32 %v2989_v51, 0.0  ;;  %7768 = vst.msk [vmem:[%s10334_s14 + $0xc8] sm:$0xff] %vm7742_vm2, %v7165_v57  ;;  %v4381_v38 = vadd.f32 %v10351_v23, %v4380_v1 }
 0x513   : > { %v5772_v49 = vpop.f32.mrf.mxu3 }
 0x514   : > { %v3726_v53 = vpack.c.bf16 %v3510_v36, %v3509_v19  ;;  %v4929_v40 = vmax.f32 %v4381_v38, 0.0  ;;  %v5773_v4 = vadd.f32 %v10487_v10, %v5772_v49 }
 0x516   : > { %v5154_v17 = vpack.c.bf16 %v4929_v40, %v4928_v46  ;;  %v6348_v7 = vmax.f32 %v5773_v4, 0.0  ;;  %8507 = vmatmul.msk.bf16.gmra.mxu2 %vm2397_vm1, %v3726_v53 }
 0x517   : > { %v2991_v60 = vpop.f32.mrf.mxu1  ;;  %v7167_v56 = vpop.f32.mrf.mxu0 }
 0x518   : > { %v6582_v43 = vpack.c.bf16 %v6348_v7, %v6347_v39  ;;  %v7168_v5 = vadd.f32 %v10326_v37, %v7167_v56  ;;  %8634 = vmatmul.msk.bf16.gmra.mxu3 %vm2397_vm1, %v5154_v17  ;;  %v2992_v58 = vadd.f32 %v10505_v2, %v2991_v60 }
 0x519   : > { %v4383_v55 = vpop.f32.mrf.mxu2 }
 0x51a   : > { %7769 = vst.msk [vmem:[%s10334_s14 + $0xd0] sm:$0xff] %vm7742_vm2, %v7168_v5  ;;  %8380 = vmatmul.msk.bf16.gmra.mxu1 %vm2397_vm1, %v9443_v27  ;;  %8761 = vmatmul.msk.bf16.gmra.mxu0 %vm2397_vm1, %v6582_v43  ;;  %v4384_v9 = vadd.f32 %v10351_v23, %v4383_v55  ;;  %v3511_v61 = vmax.f32 %v2992_v58, 0.0 }
 0x51b   : > { %v5775_v13 = vpop.f32.mrf.mxu3 }
 0x51c   : > { %v5776_v34 = vadd.f32 %v10487_v10, %v5775_v13  ;;  %v4930_v3 = vmax.f32 %v4384_v9, 0.0 }
 0x51e   : > { %v6349_v29 = vmax.f32 %v5776_v34, 0.0 }
 0x51f   : > { %v2993_v15 = vpop.f32.mrf.mxu1  ;;  %v7169_v54 = vpop.f32.mrf.mxu0 }
 0x520   : > { %v2994_v28 = vadd.f32 %v10505_v2, %v2993_v15  ;;  %v7170_v31 = vadd.f32 %v10326_v37, %v7169_v54 }
 0x521   : > { %v4385_v59 = vpop.f32.mrf.mxu2 }
 0x522   : > { %v3512_v41 = vmax.f32 %v2994_v28, 0.0  ;;  %7770 = vst.msk [vmem:[%s10334_s14 + $0xd8] sm:$0xff] %vm7742_vm2, %v7170_v31  ;;  %v4386_v27 = vadd.f32 %v10351_v23, %v4385_v59 }
 0x523   : > { %v5777_v21 = vpop.f32.mrf.mxu3 }
 0x524   : > { %v3727_v47 = vpack.c.bf16 %v3512_v41, %v3511_v61  ;;  %v4931_v62 = vmax.f32 %v4386_v27, 0.0  ;;  %v5778_v20 = vadd.f32 %v10487_v10, %v5777_v21 }
 0x526   : > { %v5155_v48 = vpack.c.bf16 %v4931_v62, %v4930_v3  ;;  %v6350_v52 = vmax.f32 %v5778_v20, 0.0  ;;  %8508 = vmatmul.msk.bf16.gmra.mxu2 %vm2397_vm1, %v3727_v47 }
 0x527   : > { %v2996_v32 = vpop.f32.mrf.mxu1  ;;  %v7172_v51 = vpop.f32.mrf.mxu0 }
 0x528   : > { %v6583_v57 = vpack.c.bf16 %v6350_v52, %v6349_v29  ;;  %v7173_v1 = vadd.f32 %v10326_v37, %v7172_v51  ;;  %8635 = vmatmul.msk.bf16.gmra.mxu3 %vm2397_vm1, %v5155_v48  ;;  %v2997_v36 = vadd.f32 %v10505_v2, %v2996_v32 }
 0x529   : > { %v4388_v19 = vpop.f32.mrf.mxu2 }
 0x52a   : > { %7771 = vst.msk [vmem:[%s10334_s14 + $0xe0] sm:$0xff] %vm7742_vm2, %v7173_v1  ;;  %8381 = vmatmul.msk.bf16.gmra.mxu1 %vm2397_vm1, %v9470_v25  ;;  %8762 = vmatmul.msk.bf16.gmra.mxu0 %vm2397_vm1, %v6583_v57  ;;  %v4389_v46 = vadd.f32 %v10351_v23, %v4388_v19  ;;  %v3513_v39 = vmax.f32 %v2997_v36, 0.0 }
 0x52b   : > { %v5780_v6 = vpop.f32.mrf.mxu3 }
 0x52c   : > { %v5781_v17 = vadd.f32 %v10487_v10, %v5780_v6  ;;  %v4932_v56 = vmax.f32 %v4389_v46, 0.0 }
 0x52e   : > { %v6351_v13 = vmax.f32 %v5781_v17, 0.0 }
 0x52f   : > { %v2998_v38 = vpop.f32.mrf.mxu1  ;;  %v7174_v49 = vpop.f32.mrf.mxu0 }
 0x530   : > { %v2999_v53 = vadd.f32 %v10505_v2, %v2998_v38  ;;  %v7175_v40 = vadd.f32 %v10326_v37, %v7174_v49 }
 0x531   : > { %v4390_v4 = vpop.f32.mrf.mxu2 }
 0x532   : > { %v3514_v7 = vmax.f32 %v2999_v53, 0.0  ;;  %7772 = vst.msk [vmem:[%s10334_s14 + $0xe8] sm:$0xff] %vm7742_vm2, %v7175_v40  ;;  %v4391_v25 = vadd.f32 %v10351_v23, %v4390_v4 }
 0x533   : > { %v5782_v60 = vpop.f32.mrf.mxu3 }
 0x534   : > { %v3728_v43 = vpack.c.bf16 %v3514_v7, %v3513_v39  ;;  %v4933_v5 = vmax.f32 %v4391_v25, 0.0  ;;  %v5783_v55 = vadd.f32 %v10487_v10, %v5782_v60  ;;  %v10630_v60 = vld [vmem:[%s12473_s10] ss:$0 sm:$0xff] }
 0x536   : > { %v5156_v58 = vpack.c.bf16 %v4933_v5, %v4932_v56  ;;  %v6352_v15 = vmax.f32 %v5783_v55, 0.0  ;;  %8509 = vmatmul.msk.bf16.gmra.mxu2 %vm2397_vm1, %v3728_v43 }
 0x537   : > { %v3001_v54 = vpop.f32.mrf.mxu1  ;;  %v7177_v9 = vpop.f32.mrf.mxu0 }
 0x538   : > { %v6584_v28 = vpack.c.bf16 %v6352_v15, %v6351_v13  ;;  %v7178_v31 = vadd.f32 %v10326_v37, %v7177_v9  ;;  %8636 = vmatmul.msk.bf16.gmra.mxu3 %vm2397_vm1, %v5156_v58  ;;  %v3002_v34 = vadd.f32 %v10505_v2, %v3001_v54 }
 0x539   : > { %v4393_v59 = vpop.f32.mrf.mxu2 }
 0x53a   : > { %7773 = vst.msk [vmem:[%s10334_s14 + $0xf0] sm:$0xff] %vm7742_vm2, %v7178_v31  ;;  %8382 = vmatmul.msk.bf16.gmra.mxu1 %vm2397_vm1, %v9494_v26  ;;  %8763 = vmatmul.msk.bf16.gmra.mxu0 %vm2397_vm1, %v6584_v28  ;;  %v4394_v21 = vadd.f32 %v10351_v23, %v4393_v59  ;;  %v3515_v20 = vmax.f32 %v3002_v34, 0.0 }
 0x53b   : > { %v5785_v61 = vpop.f32.mrf.mxu3 }
 0x53c   : > { %v5786_v29 = vadd.f32 %v10487_v10, %v5785_v61  ;;  %v4934_v32 = vmax.f32 %v4394_v21, 0.0 }
 0x53e   : > { %v6353_v19 = vmax.f32 %v5786_v29, 0.0  ;;  %v10648_v29 = vld [vmem:[%s9113_s22] ss:$0 sm:$0xff] }
 0x53f   : > { %v3003_v41 = vpop.f32.mrf.mxu1  ;;  %v7179_v27 = vpop.f32.mrf.mxu0 }
 0x540   : > { %v3004_v3 = vadd.f32 %v10505_v2, %v3003_v41  ;;  %v7180_v47 = vadd.f32 %v10326_v37, %v7179_v27 }
 0x541   : > { %v4395_v62 = vpop.f32.mrf.mxu2 }
 0x542   : > { %v3516_v48 = vmax.f32 %v3004_v3, 0.0  ;;  %7774 = vst.msk [vmem:[%s10334_s14 + $0xf8] sm:$0xff] %vm7742_vm2, %v7180_v47  ;;  %v4396_v26 = vadd.f32 %v10351_v23, %v4395_v62 }
 0x543   : > { %v5787_v52 = vpop.f32.mrf.mxu3 }
 0x544   : > { %v3729_v51 = vpack.c.bf16 %v3516_v48, %v3515_v20  ;;  %v4935_v57 = vmax.f32 %v4396_v26, 0.0  ;;  %v5788_v1 = vadd.f32 %v10487_v10, %v5787_v52 }
 0x546   : > { %v5157_v6 = vpack.c.bf16 %v4935_v57, %v4934_v32  ;;  %v6354_v36 = vmax.f32 %v5788_v1, 0.0  ;;  %8510 = vmatmul.msk.bf16.gmra.mxu2 %vm2397_vm1, %v3729_v51 }
 0x547   : > { %v3006_v38 = vpop.f32.mrf.mxu1  ;;  %v7182_v49 = vpop.f32.mrf.mxu0 }
 0x548   : > { %v6585_v46 = vpack.c.bf16 %v6354_v36, %v6353_v19  ;;  %v7183_v53 = vadd.f32 %v10326_v37, %v7182_v49  ;;  %8637 = vmatmul.msk.bf16.gmra.mxu3 %vm2397_vm1, %v5157_v6  ;;  %v3007_v39 = vadd.f32 %v10505_v2, %v3006_v38 }
 0x549   : > { %v4398_v40 = vpop.f32.mrf.mxu2 }
 0x54a   : > { %7775 = vst.msk [vmem:[%s10334_s14 + $0x100] sm:$0xff] %vm7742_vm2, %v7183_v53  ;;  %8383 = vmatmul.msk.bf16.gmra.mxu1 %vm2397_vm1, %v9518_v33  ;;  %8764 = vmatmul.msk.bf16.gmra.mxu0 %vm2397_vm1, %v6585_v46  ;;  %v4399_v25 = vadd.f32 %v10351_v23, %v4398_v40  ;;  %v3517_v33 = vmax.f32 %v3007_v39, 0.0 }
 0x54b   : > { %v5790_v4 = vpop.f32.mrf.mxu3 }
 0x54c   : > { %v5791_v5 = vadd.f32 %v10487_v10, %v5790_v4  ;;  %v4936_v15 = vmax.f32 %v4399_v25, 0.0 }
 0x54e   : > { %v6355_v31 = vmax.f32 %v5791_v5, 0.0 }
 0x54f   : > { %v3008_v17 = vpop.f32.mrf.mxu1  ;;  %v7184_v7 = vpop.f32.mrf.mxu0 }
 0x550   : > { %v3009_v37 = vadd.f32 %v10505_v2, %v3008_v17  ;;  %v7185_v56 = vadd.f32 %v10630_v60, %v7184_v7 }
 0x551   : > { %v4400_v43 = vpop.f32.mrf.mxu2 }
 0x552   : > { %v3518_v55 = vmax.f32 %v3009_v37, 0.0  ;;  %7776 = vst.msk [vmem:[%s10334_s14 + $0x108] sm:$0xff] %vm7742_vm2, %v7185_v56  ;;  %v4401_v13 = vadd.f32 %v10351_v23, %v4400_v43 }
 0x553   : > { %v5792_v58 = vpop.f32.mrf.mxu3 }
 0x554   : > { %v3730_v54 = vpack.c.bf16 %v3518_v55, %v3517_v33  ;;  %v4937_v9 = vmax.f32 %v4401_v13, 0.0  ;;  %v5793_v28 = vadd.f32 %v10487_v10, %v5792_v58 }
 0x556   : > { %v5158_v59 = vpack.c.bf16 %v4937_v9, %v4936_v15  ;;  %v6356_v61 = vmax.f32 %v5793_v28, 0.0  ;;  %8511 = vmatmul.msk.bf16.gmra.mxu2 %vm2397_vm1, %v3730_v54 }
 0x557   : > { %v3011_v34 = vpop.f32.mrf.mxu1  ;;  %v7187_v41 = vpop.f32.mrf.mxu0 }
 0x558   : > { %v6586_v27 = vpack.c.bf16 %v6356_v61, %v6355_v31  ;;  %v7188_v21 = vadd.f32 %v10630_v60, %v7187_v41  ;;  %8638 = vmatmul.msk.bf16.gmra.mxu3 %vm2397_vm1, %v5158_v59  ;;  %v3012_v47 = vadd.f32 %v10505_v2, %v3011_v34 }
 0x559   : > { %v4403_v23 = vpop.f32.mrf.mxu2 }
 0x55a   : > { %7777 = vst.msk [vmem:[%s10334_s14 + $0x110] sm:$0xff] %vm7742_vm2, %v7188_v21  ;;  %8384 = vmatmul.msk.bf16.gmra.mxu1 %vm2397_vm1, %v9547_v50  ;;  %8765 = vmatmul.msk.bf16.gmra.mxu0 %vm2397_vm1, %v6586_v27  ;;  %v4404_v48 = vadd.f32 %v10648_v29, %v4403_v23  ;;  %v3519_v51 = vmax.f32 %v3012_v47, 0.0 }
 0x55b   : > { %v5795_v3 = vpop.f32.mrf.mxu3 }
 0x55c   : > { %v5796_v57 = vadd.f32 %v10487_v10, %v5795_v3  ;;  %v4938_v6 = vmax.f32 %v4404_v48, 0.0 }
 0x55e   : > { %v6357_v46 = vmax.f32 %v5796_v57, 0.0 }
 0x55f   : > { %v3013_v62 = vpop.f32.mrf.mxu1  ;;  %v7189_v20 = vpop.f32.mrf.mxu0 }
 0x560   : > { %v3014_v26 = vadd.f32 %v10505_v2, %v3013_v62  ;;  %v7190_v52 = vadd.f32 %v10630_v60, %v7189_v20 }
 0x561   : > { %v4405_v32 = vpop.f32.mrf.mxu2 }
 0x562   : > { %v3520_v50 = vmax.f32 %v3014_v26, 0.0  ;;  %7778 = vst.msk [vmem:[%s10334_s14 + $0x118] sm:$0xff] %vm7742_vm2, %v7190_v52  ;;  %v4406_v1 = vadd.f32 %v10648_v29, %v4405_v32 }
 0x563   : > { %v5797_v19 = vpop.f32.mrf.mxu3 }
 0x564   : > { %v3731_v36 = vpack.c.bf16 %v3520_v50, %v3519_v51  ;;  %v4939_v38 = vmax.f32 %v4406_v1, 0.0  ;;  %v5798_v49 = vadd.f32 %v10487_v10, %v5797_v19 }
 0x566   : > { %v5159_v53 = vpack.c.bf16 %v4939_v38, %v4938_v6  ;;  %v6358_v40 = vmax.f32 %v5798_v49, 0.0  ;;  %8512 = vmatmul.msk.bf16.gmra.mxu2 %vm2397_vm1, %v3731_v36 }
 0x567   : > { %v3016_v4 = vpop.f32.mrf.mxu1  ;;  %v7192_v39 = vpop.f32.mrf.mxu0 }
 0x568   : > { %v6587_v17 = vpack.c.bf16 %v6358_v40, %v6357_v46  ;;  %v7193_v7 = vadd.f32 %v10630_v60, %v7192_v39  ;;  %8639 = vmatmul.msk.bf16.gmra.mxu3 %vm2397_vm1, %v5159_v53  ;;  %v3017_v56 = vadd.f32 %v10505_v2, %v3016_v4 }
 0x569   : > { %v4408_v25 = vpop.f32.mrf.mxu2 }
 0x56a   : > { %7779 = vst.msk [vmem:[%s10334_s14 + $0x120] sm:$0xff] %vm7742_vm2, %v7193_v7  ;;  %8385 = vmatmul.msk.bf16.gmra.mxu1 %vm2397_vm1, %v9575_v30  ;;  %8766 = vmatmul.msk.bf16.gmra.mxu0 %vm2397_vm1, %v6587_v17  ;;  %v4409_v5 = vadd.f32 %v10648_v29, %v4408_v25  ;;  %v3521_v15 = vmax.f32 %v3017_v56, 0.0 }
 0x56b   : > { %v5800_v37 = vpop.f32.mrf.mxu3 }
 0x56c   : > { %v5801_v54 = vadd.f32 %v10487_v10, %v5800_v37  ;;  %v4940_v31 = vmax.f32 %v4409_v5, 0.0 }
 0x56e   : > { %v6359_v41 = vmax.f32 %v5801_v54, 0.0 }
 0x56f   : > { %v3018_v43 = vpop.f32.mrf.mxu1  ;;  %v7194_v33 = vpop.f32.mrf.mxu0 }
 0x570   : > { %v3019_v55 = vadd.f32 %v10505_v2, %v3018_v43  ;;  %v7195_v13 = vadd.f32 %v10630_v60, %v7194_v33 }
 0x571   : > { %v4410_v58 = vpop.f32.mrf.mxu2 }
 0x572   : > { %v3522_v9 = vmax.f32 %v3019_v55, 0.0  ;;  %7780 = vst.msk [vmem:[%s10334_s14 + $0x128] sm:$0xff] %vm7742_vm2, %v7195_v13  ;;  %v4411_v30 = vadd.f32 %v10648_v29, %v4410_v58 }
 0x573   : > { %v5802_v28 = vpop.f32.mrf.mxu3 }
 0x574   : > { %v3732_v59 = vpack.c.bf16 %v3522_v9, %v3521_v15  ;;  %v4941_v61 = vmax.f32 %v4411_v30, 0.0  ;;  %v5803_v34 = vadd.f32 %v10487_v10, %v5802_v28 }
 0x576   : > { %v5160_v27 = vpack.c.bf16 %v4941_v61, %v4940_v31  ;;  %v6360_v21 = vmax.f32 %v5803_v34, 0.0  ;;  %8513 = vmatmul.msk.bf16.gmra.mxu2 %vm2397_vm1, %v3732_v59 }
 0x577   : > { %v3021_v23 = vpop.f32.mrf.mxu1  ;;  %v7197_v3 = vpop.f32.mrf.mxu0 }
 0x578   : > { %v6588_v47 = vpack.c.bf16 %v6360_v21, %v6359_v41  ;;  %v7198_v62 = vadd.f32 %v10630_v60, %v7197_v3  ;;  %8640 = vmatmul.msk.bf16.gmra.mxu3 %vm2397_vm1, %v5160_v27  ;;  %v3022_v26 = vadd.f32 %v10505_v2, %v3021_v23 }
 0x579   : > { %v4413_v20 = vpop.f32.mrf.mxu2 }
 0x57a   : > { %7781 = vst.msk [vmem:[%s10334_s14 + $0x130] sm:$0xff] %vm7742_vm2, %v7198_v62  ;;  %8386 = vmatmul.msk.bf16.gmra.mxu1 %vm2397_vm1, %v9603_v22  ;;  %8767 = vmatmul.msk.bf16.gmra.mxu0 %vm2397_vm1, %v6588_v47  ;;  %v4414_v51 = vadd.f32 %v10648_v29, %v4413_v20  ;;  %v3523_v19 = vmax.f32 %v3022_v26, 0.0 }
 0x57b   : > { %v5805_v48 = vpop.f32.mrf.mxu3 }
 0x57c   : > { %v5806_v6 = vadd.f32 %v10487_v10, %v5805_v48  ;;  %v4942_v49 = vmax.f32 %v4414_v51, 0.0 }
 0x57e   : > { %v6361_v4 = vmax.f32 %v5806_v6, 0.0 }
 0x57f   : > { %v3023_v52 = vpop.f32.mrf.mxu1  ;;  %v7199_v32 = vpop.f32.mrf.mxu0 }
 0x580   : > { %v3024_v57 = vadd.f32 %v10505_v2, %v3023_v52  ;;  %v7200_v50 = vadd.f32 %v10630_v60, %v7199_v32 }
 0x581   : > { %v4415_v1 = vpop.f32.mrf.mxu2 }
 0x582   : > { %v3524_v36 = vmax.f32 %v3024_v57, 0.0  ;;  %7782 = vst.msk [vmem:[%s10334_s14 + $0x138] sm:$0xff] %vm7742_vm2, %v7200_v50  ;;  %v4416_v22 = vadd.f32 %v10648_v29, %v4415_v1 }
 0x583   : > { %v5807_v38 = vpop.f32.mrf.mxu3 }
 0x584   : > { %v3733_v46 = vpack.c.bf16 %v3524_v36, %v3523_v19  ;;  %v4943_v53 = vmax.f32 %v4416_v22, 0.0  ;;  %v5808_v40 = vadd.f32 %v10487_v10, %v5807_v38 }
 0x586   : > { %v5161_v39 = vpack.c.bf16 %v4943_v53, %v4942_v49  ;;  %v6362_v17 = vmax.f32 %v5808_v40, 0.0  ;;  %8514 = vmatmul.msk.bf16.gmra.mxu2 %vm2397_vm1, %v3733_v46 }
 0x587   : > { %v3026_v7 = vpop.f32.mrf.mxu1  ;;  %v7202_v25 = vpop.f32.mrf.mxu0 }
 0x588   : > { %v6589_v37 = vpack.c.bf16 %v6362_v17, %v6361_v4  ;;  %v7203_v56 = vadd.f32 %v10630_v60, %v7202_v25  ;;  %8641 = vmatmul.msk.bf16.gmra.mxu3 %vm2397_vm1, %v5161_v39  ;;  %v3027_v5 = vadd.f32 %v10505_v2, %v3026_v7 }
 0x589   : > { %v4418_v43 = vpop.f32.mrf.mxu2 }
 0x58a   : > { %7783 = vst.msk [vmem:[%s10334_s14 + $0x140] sm:$0xff] %vm7742_vm2, %v7203_v56  ;;  %8387 = vmatmul.msk.bf16.gmra.mxu1 %vm2397_vm1, %v9633_v16  ;;  %8768 = vmatmul.msk.bf16.gmra.mxu0 %vm2397_vm1, %v6589_v37  ;;  %v4419_v58 = vadd.f32 %v10648_v29, %v4418_v43  ;;  %v3525_v30 = vmax.f32 %v3027_v5, 0.0 }
 0x58b   : > { %v5810_v33 = vpop.f32.mrf.mxu3 }
 0x58c   : > { %v5811_v28 = vadd.f32 %v10487_v10, %v5810_v33  ;;  %v4944_v61 = vmax.f32 %v4419_v58, 0.0 }
 0x58e   : > { %v6363_v21 = vmax.f32 %v5811_v28, 0.0 }
 0x58f   : > { %v3028_v55 = vpop.f32.mrf.mxu1  ;;  %v7204_v13 = vpop.f32.mrf.mxu0 }
 0x590   : > { %v3029_v15 = vadd.f32 %v10505_v2, %v3028_v55  ;;  %v7205_v54 = vadd.f32 %v10630_v60, %v7204_v13 }
 0x591   : > { %v4420_v9 = vpop.f32.mrf.mxu2 }
 0x592   : > { %v3526_v31 = vmax.f32 %v3029_v15, 0.0  ;;  %7784 = vst.msk [vmem:[%s10334_s14 + $0x148] sm:$0xff] %vm7742_vm2, %v7205_v54  ;;  %v4421_v16 = vadd.f32 %v10648_v29, %v4420_v9 }
 0x593   : > { %v5812_v59 = vpop.f32.mrf.mxu3 }
 0x594   : > { %v3734_v34 = vpack.c.bf16 %v3526_v31, %v3525_v30  ;;  %v4945_v41 = vmax.f32 %v4421_v16, 0.0  ;;  %v5813_v27 = vadd.f32 %v10487_v10, %v5812_v59 }
 0x596   : > { %v5162_v23 = vpack.c.bf16 %v4945_v41, %v4944_v61  ;;  %v6364_v3 = vmax.f32 %v5813_v27, 0.0  ;;  %8515 = vmatmul.msk.bf16.gmra.mxu2 %vm2397_vm1, %v3734_v34 }
 0x597   : > { %v3031_v47 = vpop.f32.mrf.mxu1  ;;  %v7207_v62 = vpop.f32.mrf.mxu0 }
 0x598   : > { %v6590_v20 = vpack.c.bf16 %v6364_v3, %v6363_v21  ;;  %v7208_v48 = vadd.f32 %v10630_v60, %v7207_v62  ;;  %8642 = vmatmul.msk.bf16.gmra.mxu3 %vm2397_vm1, %v5162_v23  ;;  %v3032_v32 = vadd.f32 %v10505_v2, %v3031_v47 }
 0x599   : > { %v4423_v26 = vpop.f32.mrf.mxu2 }
 0x59a   : > { %7785 = vst.msk [vmem:[%s10334_s14 + $0x150] sm:$0xff] %vm7742_vm2, %v7208_v48  ;;  %8388 = vmatmul.msk.bf16.gmra.mxu1 %vm2397_vm1, %v9664_v12  ;;  %8769 = vmatmul.msk.bf16.gmra.mxu0 %vm2397_vm1, %v6590_v20  ;;  %v4424_v50 = vadd.f32 %v10648_v29, %v4423_v26  ;;  %v3527_v36 = vmax.f32 %v3032_v32, 0.0 }
 0x59b   : > { %v5815_v52 = vpop.f32.mrf.mxu3 }
 0x59c   : > { %v5816_v22 = vadd.f32 %v10487_v10, %v5815_v52  ;;  %v4946_v46 = vmax.f32 %v4424_v50, 0.0 }
 0x59e   : > { %v6365_v39 = vmax.f32 %v5816_v22, 0.0 }
 0x59f   : > { %v3033_v51 = vpop.f32.mrf.mxu1  ;;  %v7209_v57 = vpop.f32.mrf.mxu0 }
 0x5a0   : > { %v3034_v1 = vadd.f32 %v10505_v2, %v3033_v51  ;;  %v7210_v19 = vadd.f32 %v10630_v60, %v7209_v57 }
 0x5a1   : > { %v4425_v6 = vpop.f32.mrf.mxu2 }
 0x5a2   : > { %v3528_v38 = vmax.f32 %v3034_v1, 0.0  ;;  %7786 = vst.msk [vmem:[%s10334_s14 + $0x158] sm:$0xff] %vm7742_vm2, %v7210_v19  ;;  %v4426_v12 = vadd.f32 %v10648_v29, %v4425_v6 }
 0x5a3   : > { %v5817_v49 = vpop.f32.mrf.mxu3 }
 0x5a4   : > { %v3735_v53 = vpack.c.bf16 %v3528_v38, %v3527_v36  ;;  %v4947_v40 = vmax.f32 %v4426_v12, 0.0  ;;  %v5818_v4 = vadd.f32 %v10487_v10, %v5817_v49 }
 0x5a6   : > { %v5163_v17 = vpack.c.bf16 %v4947_v40, %v4946_v46  ;;  %v6366_v7 = vmax.f32 %v5818_v4, 0.0  ;;  %8516 = vmatmul.msk.bf16.gmra.mxu2 %vm2397_vm1, %v3735_v53 }
 0x5a7   : > { %v3036_v25 = vpop.f32.mrf.mxu1  ;;  %v7212_v37 = vpop.f32.mrf.mxu0 }
 0x5a8   : > { %v6591_v56 = vpack.c.bf16 %v6366_v7, %v6365_v39  ;;  %v7213_v43 = vadd.f32 %v10630_v60, %v7212_v37  ;;  %8643 = vmatmul.msk.bf16.gmra.mxu3 %vm2397_vm1, %v5163_v17  ;;  %v3037_v55 = vadd.f32 %v10505_v2, %v3036_v25 }
 0x5a9   : > { %v4428_v33 = vpop.f32.mrf.mxu2 }
 0x5aa   : > { %7787 = vst.msk [vmem:[%s10334_s14 + $0x160] sm:$0xff] %vm7742_vm2, %v7213_v43  ;;  %8389 = vmatmul.msk.bf16.gmra.mxu1 %vm2397_vm1, %v9694_v42  ;;  %8770 = vmatmul.msk.bf16.gmra.mxu0 %vm2397_vm1, %v6591_v56  ;;  %v4429_v15 = vadd.f32 %v10648_v29, %v4428_v33  ;;  %v3529_v28 = vmax.f32 %v3037_v55, 0.0 }
 0x5ab   : > { %v5820_v5 = vpop.f32.mrf.mxu3 }
 0x5ac   : > { %v5821_v31 = vadd.f32 %v10487_v10, %v5820_v5  ;;  %v4948_v61 = vmax.f32 %v4429_v15, 0.0 }
 0x5ae   : > { %v6367_v21 = vmax.f32 %v5821_v31, 0.0 }
 0x5af   : > { %v3038_v13 = vpop.f32.mrf.mxu1  ;;  %v7214_v58 = vpop.f32.mrf.mxu0 }
 0x5b0   : > { %v3039_v54 = vadd.f32 %v10505_v2, %v3038_v13  ;;  %v7215_v9 = vadd.f32 %v10630_v60, %v7214_v58 }
 0x5b1   : > { %v4430_v30 = vpop.f32.mrf.mxu2 }
 0x5b2   : > { %v3530_v16 = vmax.f32 %v3039_v54, 0.0  ;;  %7788 = vst.msk [vmem:[%s10334_s14 + $0x168] sm:$0xff] %vm7742_vm2, %v7215_v9  ;;  %v4431_v42 = vadd.f32 %v10648_v29, %v4430_v30 }
 0x5b3   : > { %v5822_v59 = vpop.f32.mrf.mxu3 }
 0x5b4   : > { %v3736_v34 = vpack.c.bf16 %v3530_v16, %v3529_v28  ;;  %v4949_v41 = vmax.f32 %v4431_v42, 0.0  ;;  %v5823_v27 = vadd.f32 %v10487_v10, %v5822_v59 }
 0x5b6   : > { %v5164_v23 = vpack.c.bf16 %v4949_v41, %v4948_v61  ;;  %v6368_v3 = vmax.f32 %v5823_v27, 0.0  ;;  %8517 = vmatmul.msk.bf16.gmra.mxu2 %vm2397_vm1, %v3736_v34 }
 0x5b7   : > { %v3041_v47 = vpop.f32.mrf.mxu1  ;;  %v7217_v62 = vpop.f32.mrf.mxu0 }
 0x5b8   : > { %v6592_v20 = vpack.c.bf16 %v6368_v3, %v6367_v21  ;;  %v7218_v48 = vadd.f32 %v10630_v60, %v7217_v62  ;;  %8644 = vmatmul.msk.bf16.gmra.mxu3 %vm2397_vm1, %v5164_v23  ;;  %v3042_v32 = vadd.f32 %v10505_v2, %v3041_v47 }
 0x5b9   : > { %v4433_v26 = vpop.f32.mrf.mxu2 }
 0x5ba   : > { %7789 = vst.msk [vmem:[%s10334_s14 + $0x170] sm:$0xff] %vm7742_vm2, %v7218_v48  ;;  %8390 = vmatmul.msk.bf16.gmra.mxu1 %vm2397_vm1, %v9726_v0  ;;  %8771 = vmatmul.msk.bf16.gmra.mxu0 %vm2397_vm1, %v6592_v20  ;;  %v4434_v50 = vadd.f32 %v10648_v29, %v4433_v26  ;;  %v3531_v36 = vmax.f32 %v3042_v32, 0.0 }
 0x5bb   : > { %v5825_v52 = vpop.f32.mrf.mxu3 }
 0x5bc   : > { %v5826_v22 = vadd.f32 %v10487_v10, %v5825_v52  ;;  %v4950_v49 = vmax.f32 %v4434_v50, 0.0 }
 0x5be   : > { %v6369_v4 = vmax.f32 %v5826_v22, 0.0 }
 0x5bf   : > { %v3043_v51 = vpop.f32.mrf.mxu1  ;;  %v7219_v57 = vpop.f32.mrf.mxu0 }
 0x5c0   : > { %v3044_v1 = vadd.f32 %v10505_v2, %v3043_v51  ;;  %v7220_v19 = vadd.f32 %v10630_v60, %v7219_v57 }
 0x5c1   : > { %v4435_v6 = vpop.f32.mrf.mxu2 }
 0x5c2   : > { %v3532_v38 = vmax.f32 %v3044_v1, 0.0  ;;  %7790 = vst.msk [vmem:[%s10334_s14 + $0x178] sm:$0xff] %vm7742_vm2, %v7220_v19  ;;  %v4436_v0 = vadd.f32 %v10648_v29, %v4435_v6  ;;  %v10790_v19 = vld [vmem:[%s9118_s26] ss:$0 sm:$0xff] }
 0x5c3   : > { %v5827_v12 = vpop.f32.mrf.mxu3 }
 0x5c4   : > { %v3737_v46 = vpack.c.bf16 %v3532_v38, %v3531_v36  ;;  %v4951_v53 = vmax.f32 %v4436_v0, 0.0  ;;  %v5828_v40 = vadd.f32 %v10487_v10, %v5827_v12 }
 0x5c6   : > { %v5165_v39 = vpack.c.bf16 %v4951_v53, %v4950_v49  ;;  %v6370_v17 = vmax.f32 %v5828_v40, 0.0  ;;  %8518 = vmatmul.msk.bf16.gmra.mxu2 %vm2397_vm1, %v3737_v46 }
 0x5c7   : > { %v3046_v7 = vpop.f32.mrf.mxu1  ;;  %v7222_v25 = vpop.f32.mrf.mxu0 }
 0x5c8   : > { %v6593_v37 = vpack.c.bf16 %v6370_v17, %v6369_v4  ;;  %v7223_v56 = vadd.f32 %v10630_v60, %v7222_v25  ;;  %8645 = vmatmul.msk.bf16.gmra.mxu3 %vm2397_vm1, %v5165_v39  ;;  %v3047_v5 = vadd.f32 %v10505_v2, %v3046_v7 }
 0x5c9   : > { %v4438_v43 = vpop.f32.mrf.mxu2 }
 0x5ca   : > { %7791 = vst.msk [vmem:[%s10334_s14 + $0x180] sm:$0xff] %vm7742_vm2, %v7223_v56  ;;  %8391 = vmatmul.msk.bf16.gmra.mxu1 %vm2397_vm1, %v9756_v14  ;;  %8772 = vmatmul.msk.bf16.gmra.mxu0 %vm2397_vm1, %v6593_v37  ;;  %v4439_v58 = vadd.f32 %v10648_v29, %v4438_v43  ;;  %v3533_v30 = vmax.f32 %v3047_v5, 0.0  ;;  %v10806_v37 = vld [vmem:[%s9108_s23] ss:$0 sm:$0xff] }
 0x5cb   : > { %v5830_v33 = vpop.f32.mrf.mxu3 }
 0x5cc   : > { %v5831_v28 = vadd.f32 %v10487_v10, %v5830_v33  ;;  %v4952_v42 = vmax.f32 %v4439_v58, 0.0 }
 0x5ce   : > { %v6371_v41 = vmax.f32 %v5831_v28, 0.0 }
 0x5cf   : > { %v3048_v55 = vpop.f32.mrf.mxu1  ;;  %v7224_v13 = vpop.f32.mrf.mxu0 }
 0x5d0   : > { %v3049_v15 = vadd.f32 %v10505_v2, %v3048_v55  ;;  %v7225_v54 = vadd.f32 %v10630_v60, %v7224_v13 }
 0x5d1   : > { %v4440_v9 = vpop.f32.mrf.mxu2 }
 0x5d2   : > { %v3534_v31 = vmax.f32 %v3049_v15, 0.0  ;;  %7792 = vst.msk [vmem:[%s10334_s14 + $0x188] sm:$0xff] %vm7742_vm2, %v7225_v54  ;;  %v4441_v14 = vadd.f32 %v10648_v29, %v4440_v9 }
 0x5d3   : > { %v5832_v16 = vpop.f32.mrf.mxu3 }
 0x5d4   : > { %v3738_v59 = vpack.c.bf16 %v3534_v31, %v3533_v30  ;;  %v4953_v61 = vmax.f32 %v4441_v14, 0.0  ;;  %v5833_v34 = vadd.f32 %v10487_v10, %v5832_v16 }
 0x5d6   : > { %v5166_v27 = vpack.c.bf16 %v4953_v61, %v4952_v42  ;;  %v6372_v21 = vmax.f32 %v5833_v34, 0.0  ;;  %8519 = vmatmul.msk.bf16.gmra.mxu2 %vm2397_vm1, %v3738_v59 }
 0x5d7   : > { %v3051_v23 = vpop.f32.mrf.mxu1  ;;  %v7227_v3 = vpop.f32.mrf.mxu0 }
 0x5d8   : > { %v6594_v47 = vpack.c.bf16 %v6372_v21, %v6371_v41  ;;  %v7228_v62 = vadd.f32 %v10630_v60, %v7227_v3  ;;  %8646 = vmatmul.msk.bf16.gmra.mxu3 %vm2397_vm1, %v5166_v27  ;;  %v3052_v48 = vadd.f32 %v10505_v2, %v3051_v23 }
 0x5d9   : > { %v4443_v20 = vpop.f32.mrf.mxu2 }
 0x5da   : > { %7793 = vst.msk [vmem:[%s10334_s14 + $0x190] sm:$0xff] %vm7742_vm2, %v7228_v62  ;;  %8392 = vmatmul.msk.bf16.gmra.mxu1 %vm2397_vm1, %v9784_v63  ;;  %8773 = vmatmul.msk.bf16.gmra.mxu0 %vm2397_vm1, %v6594_v47  ;;  %v4444_v32 = vadd.f32 %v10648_v29, %v4443_v20  ;;  %v3535_v1 = vmax.f32 %v3052_v48, 0.0 }
 0x5db   : > { %v5835_v10 = vpop.f32.mrf.mxu3 }
 0x5dc   : > { %v5836_v6 = vadd.f32 %v10790_v19, %v5835_v10  ;;  %v4954_v38 = vmax.f32 %v4444_v32, 0.0 }
 0x5de   : > { %v6373_v49 = vmax.f32 %v5836_v6, 0.0 }
 0x5df   : > { %v3053_v26 = vpop.f32.mrf.mxu1  ;;  %v7229_v52 = vpop.f32.mrf.mxu0 }
 0x5e0   : > { %v3054_v51 = vadd.f32 %v10505_v2, %v3053_v26  ;;  %v7230_v57 = vadd.f32 %v10630_v60, %v7229_v52 }
 0x5e1   : > { %v4445_v50 = vpop.f32.mrf.mxu2 }
 0x5e2   : > { %v3536_v63 = vmax.f32 %v3054_v51, 0.0  ;;  %7794 = vst.msk [vmem:[%s10334_s14 + $0x198] sm:$0xff] %vm7742_vm2, %v7230_v57  ;;  %v4446_v36 = vadd.f32 %v10648_v29, %v4445_v50 }
 0x5e3   : > { %v5837_v22 = vpop.f32.mrf.mxu3 }
 0x5e4   : > { %v3739_v0 = vpack.c.bf16 %v3536_v63, %v3535_v1  ;;  %v4955_v12 = vmax.f32 %v4446_v36, 0.0  ;;  %v5838_v2 = vadd.f32 %v10790_v19, %v5837_v22 }
 0x5e6   : > { %v5167_v46 = vpack.c.bf16 %v4955_v12, %v4954_v38  ;;  %v6374_v53 = vmax.f32 %v5838_v2, 0.0  ;;  %8520 = vmatmul.msk.bf16.gmra.mxu2 %vm2397_vm1, %v3739_v0 }
 0x5e7   : > { %v3056_v40 = vpop.f32.mrf.mxu1  ;;  %v7232_v4 = vpop.f32.mrf.mxu0 }
 0x5e8   : > { %v6595_v39 = vpack.c.bf16 %v6374_v53, %v6373_v49  ;;  %v7233_v17 = vadd.f32 %v10630_v60, %v7232_v4  ;;  %8647 = vmatmul.msk.bf16.gmra.mxu3 %vm2397_vm1, %v5167_v46  ;;  %v3057_v56 = vadd.f32 %v10806_v37, %v3056_v40 }
 0x5e9   : > { %v4448_v7 = vpop.f32.mrf.mxu2 }
 0x5ea   : > { %7795 = vst.msk [vmem:[%s10334_s14 + $0x1a0] sm:$0xff] %vm7742_vm2, %v7233_v17  ;;  %8393 = vmatmul.msk.bf16.gmra.mxu1 %vm2397_vm1, %v9812_v44  ;;  %8774 = vmatmul.msk.bf16.gmra.mxu0 %vm2397_vm1, %v6595_v39  ;;  %v4449_v5 = vadd.f32 %v10648_v29, %v4448_v7  ;;  %v3537_v15 = vmax.f32 %v3057_v56, 0.0 }
 0x5eb   : > { %v5840_v25 = vpop.f32.mrf.mxu3 }
 0x5ec   : > { %v5841_v54 = vadd.f32 %v10790_v19, %v5840_v25  ;;  %v4956_v28 = vmax.f32 %v4449_v5, 0.0 }
 0x5ee   : > { %v6375_v42 = vmax.f32 %v5841_v54, 0.0 }
 0x5ef   : > { %v3058_v43 = vpop.f32.mrf.mxu1  ;;  %v7234_v33 = vpop.f32.mrf.mxu0 }
 0x5f0   : > { %v3059_v55 = vadd.f32 %v10806_v37, %v3058_v43  ;;  %v7235_v13 = vadd.f32 %v10630_v60, %v7234_v33 }
 0x5f1   : > { %v4450_v58 = vpop.f32.mrf.mxu2 }
 0x5f2   : > { %v3538_v44 = vmax.f32 %v3059_v55, 0.0  ;;  %7796 = vst.msk [vmem:[%s10334_s14 + $0x1a8] sm:$0xff] %vm7742_vm2, %v7235_v13  ;;  %v4451_v9 = vadd.f32 %v10648_v29, %v4450_v58 }
 0x5f3   : > { %v5842_v30 = vpop.f32.mrf.mxu3 }
 0x5f4   : > { %v3740_v31 = vpack.c.bf16 %v3538_v44, %v3537_v15  ;;  %v4957_v14 = vmax.f32 %v4451_v9, 0.0  ;;  %v5843_v16 = vadd.f32 %v10790_v19, %v5842_v30 }
 0x5f6   : > { %v5168_v59 = vpack.c.bf16 %v4957_v14, %v4956_v28  ;;  %v6376_v61 = vmax.f32 %v5843_v16, 0.0  ;;  %8521 = vmatmul.msk.bf16.gmra.mxu2 %vm2397_vm1, %v3740_v31 }
 0x5f7   : > { %v3061_v34 = vpop.f32.mrf.mxu1  ;;  %v7237_v41 = vpop.f32.mrf.mxu0 }
 0x5f8   : > { %v6596_v27 = vpack.c.bf16 %v6376_v61, %v6375_v42  ;;  %v7238_v21 = vadd.f32 %v10630_v60, %v7237_v41  ;;  %8648 = vmatmul.msk.bf16.gmra.mxu3 %vm2397_vm1, %v5168_v59  ;;  %v3062_v47 = vadd.f32 %v10806_v37, %v3061_v34 }
 0x5f9   : > { %v4453_v23 = vpop.f32.mrf.mxu2 }
 0x5fa   : > { %7797 = vst.msk [vmem:[%s10334_s14 + $0x1b0] sm:$0xff] %vm7742_vm2, %v7238_v21  ;;  %8394 = vmatmul.msk.bf16.gmra.mxu1 %vm2397_vm1, %v9839_v24  ;;  %8775 = vmatmul.msk.bf16.gmra.mxu0 %vm2397_vm1, %v6596_v27  ;;  %v4454_v10 = vadd.f32 %v10648_v29, %v4453_v23  ;;  %v3539_v32 = vmax.f32 %v3062_v47, 0.0 }
 0x5fb   : > { %v5845_v3 = vpop.f32.mrf.mxu3 }
 0x5fc   : > { %v5846_v51 = vadd.f32 %v10790_v19, %v5845_v3  ;;  %v4958_v1 = vmax.f32 %v4454_v10, 0.0 }
 0x5fe   : > { %v6377_v22 = vmax.f32 %v5846_v51, 0.0 }
 0x5ff   : > { %v3063_v62 = vpop.f32.mrf.mxu1  ;;  %v7239_v20 = vpop.f32.mrf.mxu0 }
 0x600   : > { %v3064_v48 = vadd.f32 %v10806_v37, %v3063_v62  ;;  %v7240_v26 = vadd.f32 %v10630_v60, %v7239_v20 }
 0x601   : > { %v4455_v52 = vpop.f32.mrf.mxu2 }
 0x602   : > { %v3540_v57 = vmax.f32 %v3064_v48, 0.0  ;;  %7798 = vst.msk [vmem:[%s10334_s14 + $0x1b8] sm:$0xff] %vm7742_vm2, %v7240_v26  ;;  %v4456_v24 = vadd.f32 %v10648_v29, %v4455_v52 }
 0x603   : > { %v5847_v50 = vpop.f32.mrf.mxu3 }
 0x604   : > { %v3741_v6 = vpack.c.bf16 %v3540_v57, %v3539_v32  ;;  %v4959_v63 = vmax.f32 %v4456_v24, 0.0  ;;  %v5848_v36 = vadd.f32 %v10790_v19, %v5847_v50 }
 0x606   : > { %v5169_v38 = vpack.c.bf16 %v4959_v63, %v4958_v1  ;;  %v6378_v0 = vmax.f32 %v5848_v36, 0.0  ;;  %8522 = vmatmul.msk.bf16.gmra.mxu2 %vm2397_vm1, %v3741_v6 }
 0x607   : > { %v3066_v12 = vpop.f32.mrf.mxu1  ;;  %v7242_v2 = vpop.f32.mrf.mxu0 }
 0x608   : > { %v6597_v49 = vpack.c.bf16 %v6378_v0, %v6377_v22  ;;  %v7243_v46 = vadd.f32 %v10630_v60, %v7242_v2  ;;  %8649 = vmatmul.msk.bf16.gmra.mxu3 %vm2397_vm1, %v5169_v38  ;;  %v3067_v4 = vadd.f32 %v10806_v37, %v3066_v12 }
 0x609   : > { %v4458_v53 = vpop.f32.mrf.mxu2 }
 0x60a   : > { %7799 = vst.msk [vmem:[%s10334_s14 + $0x1c0] sm:$0xff] %vm7742_vm2, %v7243_v46  ;;  %8395 = vmatmul.msk.bf16.gmra.mxu1 %vm2397_vm1, %v9864_v11  ;;  %8776 = vmatmul.msk.bf16.gmra.mxu0 %vm2397_vm1, %v6597_v49  ;;  %v4459_v7 = vadd.f32 %v10648_v29, %v4458_v53  ;;  %v3541_v33 = vmax.f32 %v3067_v4, 0.0 }
 0x60b   : > { %v5850_v40 = vpop.f32.mrf.mxu3 }
 0x60c   : > { %v5851_v5 = vadd.f32 %v10790_v19, %v5850_v40  ;;  %v4960_v58 = vmax.f32 %v4459_v7, 0.0 }
 0x60e   : > { %v6379_v9 = vmax.f32 %v5851_v5, 0.0 }
 0x60f   : > { %v3068_v39 = vpop.f32.mrf.mxu1  ;;  %v7244_v17 = vpop.f32.mrf.mxu0 }
 0x610   : > { %v3069_v25 = vadd.f32 %v10806_v37, %v3068_v39  ;;  %v7245_v56 = vadd.f32 %v10630_v60, %v7244_v17 }
 0x611   : > { %v4460_v43 = vpop.f32.mrf.mxu2 }
 0x612   : > { %v3542_v55 = vmax.f32 %v3069_v25, 0.0  ;;  %7800 = vst.msk [vmem:[%s10334_s14 + $0x1c8] sm:$0xff] %vm7742_vm2, %v7245_v56  ;;  %v4461_v11 = vadd.f32 %v10648_v29, %v4460_v43 }
 0x613   : > { %v5852_v13 = vpop.f32.mrf.mxu3 }
 0x614   : > { %v3742_v15 = vpack.c.bf16 %v3542_v55, %v3541_v33  ;;  %v4961_v54 = vmax.f32 %v4461_v11, 0.0  ;;  %v5853_v44 = vadd.f32 %v10790_v19, %v5852_v13 }
 0x616   : > { %v5170_v30 = vpack.c.bf16 %v4961_v54, %v4960_v58  ;;  %v6380_v28 = vmax.f32 %v5853_v44, 0.0  ;;  %8523 = vmatmul.msk.bf16.gmra.mxu2 %vm2397_vm1, %v3742_v15 }
 0x617   : > { %v3071_v31 = vpop.f32.mrf.mxu1  ;;  %v7247_v14 = vpop.f32.mrf.mxu0 }
 0x618   : > { %v6598_v16 = vpack.c.bf16 %v6380_v28, %v6379_v9  ;;  %v7248_v42 = vadd.f32 %v10630_v60, %v7247_v14  ;;  %8650 = vmatmul.msk.bf16.gmra.mxu3 %vm2397_vm1, %v5170_v30  ;;  %v3072_v34 = vadd.f32 %v10806_v37, %v3071_v31 }
 0x619   : > { %v4463_v59 = vpop.f32.mrf.mxu2 }
 0x61a   : > { %7801 = vst.msk [vmem:[%s10334_s14 + $0x1d0] sm:$0xff] %vm7742_vm2, %v7248_v42  ;;  %8396 = vmatmul.msk.bf16.gmra.mxu1 %vm2397_vm1, %v9258_v18  ;;  %8777 = vmatmul.msk.bf16.gmra.mxu0 %vm2397_vm1, %v6598_v16  ;;  %v4464_v21 = vadd.f32 %v10648_v29, %v4463_v59  ;;  %v3543_v62 = vmax.f32 %v3072_v34, 0.0 }
 0x61b   : > { %v5855_v61 = vpop.f32.mrf.mxu3 }
 0x61c   : > { %v5856_v20 = vadd.f32 %v10790_v19, %v5855_v61  ;;  %v4962_v26 = vmax.f32 %v4464_v21, 0.0 }
 0x61e   : > { %v6381_v57 = vmax.f32 %v5856_v20, 0.0 }
 0x61f   : > { %v3073_v41 = vpop.f32.mrf.mxu1  ;;  %v7249_v27 = vpop.f32.mrf.mxu0 }
 0x620   : > { %v3074_v23 = vadd.f32 %v10806_v37, %v3073_v41  ;;  %v7250_v3 = vadd.f32 %v10630_v60, %v7249_v27 }
 0x621   : > { %v4465_v47 = vpop.f32.mrf.mxu2 }
 0x622   : > { %v3544_v10 = vmax.f32 %v3074_v23, 0.0  ;;  %7802 = vst.msk [vmem:[%s10334_s14 + $0x1d8] sm:$0xff] %vm7742_vm2, %v7250_v3  ;;  %v4466_v18 = vadd.f32 %v10648_v29, %v4465_v47 }
 0x623   : > { %v5857_v48 = vpop.f32.mrf.mxu3 }
 0x624   : > { %v3743_v52 = vpack.c.bf16 %v3544_v10, %v3543_v62  ;;  %v4963_v32 = vmax.f32 %v4466_v18, 0.0  ;;  %v5858_v51 = vadd.f32 %v10790_v19, %v5857_v48 }
 0x626   : > { %v5171_v24 = vpack.c.bf16 %v4963_v32, %v4962_v26  ;;  %v6382_v50 = vmax.f32 %v5858_v51, 0.0  ;;  %8524 = vmatmul.msk.bf16.gmra.mxu2 %vm2397_vm1, %v3743_v52 }
 0x627   : > { %v3076_v1 = vpop.f32.mrf.mxu1  ;;  %v7252_v6 = vpop.f32.mrf.mxu0 }
 0x628   : > { %v6599_v63 = vpack.c.bf16 %v6382_v50, %v6381_v57  ;;  %v7253_v36 = vadd.f32 %v10630_v60, %v7252_v6  ;;  %8651 = vmatmul.msk.bf16.gmra.mxu3 %vm2397_vm1, %v5171_v24  ;;  %v3077_v0 = vadd.f32 %v10806_v37, %v3076_v1 }
 0x629   : > { %v4468_v22 = vpop.f32.mrf.mxu2 }
 0x62a   : > { %7803 = vst.msk [vmem:[%s10334_s14 + $0x1e0] sm:$0xff] %vm7742_vm2, %v7253_v36  ;;  %8397 = vmatmul.msk.bf16.gmra.mxu1 %vm2397_vm1, %v9282_v45  ;;  %8778 = vmatmul.msk.bf16.gmra.mxu0 %vm2397_vm1, %v6599_v63  ;;  %v4469_v49 = vadd.f32 %v10648_v29, %v4468_v22  ;;  %v3545_v4 = vmax.f32 %v3077_v0, 0.0 }
 0x62b   : > { %v5860_v38 = vpop.f32.mrf.mxu3 }
 0x62c   : > { %v5861_v39 = vadd.f32 %v10790_v19, %v5860_v38  ;;  %v4964_v25 = vmax.f32 %v4469_v49, 0.0 }
 0x62e   : > { %v6383_v5 = vmax.f32 %v5861_v39, 0.0 }
 0x62f   : > { %v3078_v12 = vpop.f32.mrf.mxu1  ;;  %v7254_v2 = vpop.f32.mrf.mxu0 }
 0x630   : > { %v3079_v46 = vadd.f32 %v10806_v37, %v3078_v12  ;;  %v7255_v53 = vadd.f32 %v10630_v60, %v7254_v2 }
 0x631   : > { %v4470_v40 = vpop.f32.mrf.mxu2 }
 0x632   : > { %v3546_v17 = vmax.f32 %v3079_v46, 0.0  ;;  %7804 = vst.msk [vmem:[%s10334_s14 + $0x1e8] sm:$0xff] %vm7742_vm2, %v7255_v53  ;;  %v4471_v45 = vadd.f32 %v10648_v29, %v4470_v40 }
 0x633   : > { %v5862_v7 = vpop.f32.mrf.mxu3 }
 0x634   : > { %v3744_v56 = vpack.c.bf16 %v3546_v17, %v3545_v4  ;;  %v4965_v43 = vmax.f32 %v4471_v45, 0.0  ;;  %v5863_v33 = vadd.f32 %v10790_v19, %v5862_v7  ;;  %v10923_v7 = vld [vmem:[%s12473_s10] ss:$0 sm:$0xff] }
 0x636   : > { %v5172_v55 = vpack.c.bf16 %v4965_v43, %v4964_v25  ;;  %v6384_v11 = vmax.f32 %v5863_v33, 0.0  ;;  %8525 = vmatmul.msk.bf16.gmra.mxu2 %vm2397_vm1, %v3744_v56  ;;  %v12561_v43 = vld [vmem:[#allocation4_spill] sm:$0xff] }
 0x637   : > { %v3081_v13 = vpop.f32.mrf.mxu1  ;;  %v7257_v58 = vpop.f32.mrf.mxu0 }
 0x638   : > { %v6600_v15 = vpack.c.bf16 %v6384_v11, %v6383_v5  ;;  %v7258_v54 = vadd.f32 %v10630_v60, %v7257_v58  ;;  %8652 = vmatmul.msk.bf16.gmra.mxu3 %vm2397_vm1, %v5172_v55  ;;  %v3082_v30 = vadd.f32 %v10806_v37, %v3081_v13 }
 0x639   : > { %v4473_v44 = vpop.f32.mrf.mxu2 }
 0x63a   : > { %7805 = vst.msk [vmem:[%s10334_s14 + $0x1f0] sm:$0xff] %vm7742_vm2, %v7258_v54  ;;  %8398 = vmatmul.msk.bf16.gmra.mxu1 %vm2397_vm1, %v9299_v8  ;;  %8779 = vmatmul.msk.bf16.gmra.mxu0 %vm2397_vm1, %v6600_v15  ;;  %v4474_v14 = vadd.f32 %v10648_v29, %v4473_v44  ;;  %v3547_v61 = vmax.f32 %v3082_v30, 0.0 }
 0x63b   : > { %v5865_v9 = vpop.f32.mrf.mxu3 }
 0x63c   : > { %v5866_v34 = vadd.f32 %v10790_v19, %v5865_v9  ;;  %v4966_v21 = vmax.f32 %v4474_v14, 0.0 }
 0x63e   : > { %v6385_v62 = vmax.f32 %v5866_v34, 0.0 }
 0x63f   : > { %v3083_v28 = vpop.f32.mrf.mxu1  ;;  %v7259_v31 = vpop.f32.mrf.mxu0 }
 0x640   : > { %v3084_v16 = vadd.f32 %v10806_v37, %v3083_v28  ;;  %v7260_v42 = vadd.f32 %v10630_v60, %v7259_v31 }
 0x641   : > { %v4475_v59 = vpop.f32.mrf.mxu2 }
 0x642   : > { %v3548_v41 = vmax.f32 %v3084_v16, 0.0  ;;  %7806 = vst.msk [vmem:[%s10334_s14 + $0x1f8] sm:$0xff] %vm7742_vm2, %v7260_v42  ;;  %v4476_v8 = vadd.f32 %v10648_v29, %v4475_v59 }
 0x643   : > { %v5867_v27 = vpop.f32.mrf.mxu3 }
 0x644   : > { %v3745_v23 = vpack.c.bf16 %v3548_v41, %v3547_v61  ;;  %v4967_v3 = vmax.f32 %v4476_v8, 0.0  ;;  %v5868_v47 = vadd.f32 %v10790_v19, %v5867_v27 }
 0x646   : > { %v5173_v20 = vpack.c.bf16 %v4967_v3, %v4966_v21  ;;  %v6386_v10 = vmax.f32 %v5868_v47, 0.0  ;;  %8526 = vmatmul.msk.bf16.gmra.mxu2 %vm2397_vm1, %v3745_v23  ;;  %v12562_v3 = vld [vmem:[#allocation5_spill] sm:$0xff] }
 0x647   : > { %v3086_v18 = vpop.f32.mrf.mxu1  ;;  %v7262_v48 = vpop.f32.mrf.mxu0 }
 0x648   : > { %v6601_v26 = vpack.c.bf16 %v6386_v10, %v6385_v62  ;;  %v7263_v52 = vadd.f32 %v10630_v60, %v7262_v48  ;;  %8653 = vmatmul.msk.bf16.gmra.mxu3 %vm2397_vm1, %v5173_v20  ;;  %v3087_v57 = vadd.f32 %v10806_v37, %v3086_v18  ;;  %v10951_v18 = vld [vmem:[%s9113_s22] ss:$0 sm:$0xff] }
 0x649   : > { %v4478_v32 = vpop.f32.mrf.mxu2 }
 0x64a   : > { %7807 = vst.msk [vmem:[%s10334_s14 + $0x200] sm:$0xff] %vm7742_vm2, %v7263_v52  ;;  %8399 = vmatmul.msk.bf16.gmra.mxu1 %vm2397_vm1, %v9316_v35  ;;  %8780 = vmatmul.msk.bf16.gmra.mxu0 %vm2397_vm1, %v6601_v26  ;;  %v4479_v1 = vadd.f32 %v10648_v29, %v4478_v32  ;;  %v3549_v22 = vmax.f32 %v3087_v57, 0.0 }
 0x64b   : > { %v5870_v51 = vpop.f32.mrf.mxu3 }
 0x64c   : > { %v5871_v38 = vadd.f32 %v10790_v19, %v5870_v51  ;;  %v4968_v2 = vmax.f32 %v4479_v1, 0.0 }
 0x64e   : > { %v6387_v40 = vmax.f32 %v5871_v38, 0.0 }
 0x64f   : > { %v3088_v24 = vpop.f32.mrf.mxu1  ;;  %v7264_v50 = vpop.f32.mrf.mxu0 }
 0x650   : > { %v3089_v6 = vadd.f32 %v10806_v37, %v3088_v24  ;;  %v7265_v63 = vadd.f32 %v10630_v60, %v7264_v50 }
 0x651   : > { %v4480_v36 = vpop.f32.mrf.mxu2 }
 0x652   : > { %v3550_v0 = vmax.f32 %v3089_v6, 0.0  ;;  %7808 = vst.msk [vmem:[%s10334_s14 + $0x208] sm:$0xff] %vm7742_vm2, %v7265_v63  ;;  %v4481_v35 = vadd.f32 %v10648_v29, %v4480_v36 }
 0x653   : > { %v5872_v12 = vpop.f32.mrf.mxu3 }
 0x654   : > { %v3746_v49 = vpack.c.bf16 %v3550_v0, %v3549_v22  ;;  %v4969_v46 = vmax.f32 %v4481_v35, 0.0  ;;  %v5873_v53 = vadd.f32 %v10790_v19, %v5872_v12 }
 0x656   : > { %v5174_v4 = vpack.c.bf16 %v4969_v46, %v4968_v2  ;;  %v6388_v39 = vmax.f32 %v5873_v53, 0.0  ;;  %8527 = vmatmul.msk.bf16.gmra.mxu2 %vm2397_vm1, %v3746_v49 }
 0x657   : > { %v3091_v60 = vpop.f32.mrf.mxu1  ;;  %v7267_v17 = vpop.f32.mrf.mxu0 }
 0x658   : > { %v6602_v45 = vpack.c.bf16 %v6388_v39, %v6387_v40  ;;  %v7268_v25 = vadd.f32 %v10923_v7, %v7267_v17  ;;  %8654 = vmatmul.msk.bf16.gmra.mxu3 %vm2397_vm1, %v5174_v4  ;;  %v3092_v5 = vadd.f32 %v10806_v37, %v3091_v60  ;;  %v12563_v40 = vld [vmem:[#allocation6_spill] sm:$0xff] }
 0x659   : > { %v4483_v56 = vpop.f32.mrf.mxu2 }
 0x65a   : > { %7809 = vst.msk [vmem:[%s10334_s14 + $0x210] sm:$0xff] %vm7742_vm2, %v7268_v25  ;;  %8400 = vmatmul.msk.bf16.gmra.mxu1 %vm2397_vm1, %v12561_v43  ;;  %8781 = vmatmul.msk.bf16.gmra.mxu0 %vm2397_vm1, %v6602_v45  ;;  %v4484_v13 = vadd.f32 %v10648_v29, %v4483_v56  ;;  %v3551_v44 = vmax.f32 %v3092_v5, 0.0 }
 0x65b   : > { %v5875_v33 = vpop.f32.mrf.mxu3 }
 0x65c   : > { %v5876_v9 = vadd.f32 %v10790_v19, %v5875_v33  ;;  %v4970_v14 = vmax.f32 %v4484_v13, 0.0 }
 0x65e   : > { %v6389_v61 = vmax.f32 %v5876_v9, 0.0 }
 0x65f   : > { %v3093_v55 = vpop.f32.mrf.mxu1  ;;  %v7269_v11 = vpop.f32.mrf.mxu0 }
 0x660   : > { %v3094_v58 = vadd.f32 %v10806_v37, %v3093_v55  ;;  %v7270_v15 = vadd.f32 %v10923_v7, %v7269_v11 }
 0x661   : > { %v4485_v54 = vpop.f32.mrf.mxu2 }
 0x662   : > { %v3552_v30 = vmax.f32 %v3094_v58, 0.0  ;;  %7810 = vst.msk [vmem:[%s10334_s14 + $0x218] sm:$0xff] %vm7742_vm2, %v7270_v15  ;;  %v4486_v28 = vadd.f32 %v10648_v29, %v4485_v54 }
 0x663   : > { %v5877_v31 = vpop.f32.mrf.mxu3 }
 0x664   : > { %v3747_v16 = vpack.c.bf16 %v3552_v30, %v3551_v44  ;;  %v4971_v42 = vmax.f32 %v4486_v28, 0.0  ;;  %v5878_v59 = vadd.f32 %v10790_v19, %v5877_v31 }
 0x666   : > { %v5175_v34 = vpack.c.bf16 %v4971_v42, %v4970_v14  ;;  %v6390_v41 = vmax.f32 %v5878_v59, 0.0  ;;  %8528 = vmatmul.msk.bf16.gmra.mxu2 %vm2397_vm1, %v3747_v16 }
 0x667   : > { %v3096_v8 = vpop.f32.mrf.mxu1  ;;  %v7272_v27 = vpop.f32.mrf.mxu0 }
 0x668   : > { %v6603_v21 = vpack.c.bf16 %v6390_v41, %v6389_v61  ;;  %v7273_v23 = vadd.f32 %v10923_v7, %v7272_v27  ;;  %8655 = vmatmul.msk.bf16.gmra.mxu3 %vm2397_vm1, %v5175_v34  ;;  %v3097_v62 = vadd.f32 %v10806_v37, %v3096_v8  ;;  %v12564_v61 = vld [vmem:[#allocation7_spill] sm:$0xff] }
 0x669   : > { %v4488_v29 = vpop.f32.mrf.mxu2 }
 0x66a   : > { %7811 = vst.msk [vmem:[%s10334_s14 + $0x220] sm:$0xff] %vm7742_vm2, %v7273_v23  ;;  %8401 = vmatmul.msk.bf16.gmra.mxu1 %vm2397_vm1, %v12562_v3  ;;  %8782 = vmatmul.msk.bf16.gmra.mxu0 %vm2397_vm1, %v6603_v21  ;;  %v4489_v48 = vadd.f32 %v10951_v18, %v4488_v29  ;;  %v3553_v51 = vmax.f32 %v3097_v62, 0.0 }
 0x66b   : > { %v5880_v47 = vpop.f32.mrf.mxu3 }
 0x66c   : > { %v5881_v57 = vadd.f32 %v10790_v19, %v5880_v47  ;;  %v4972_v6 = vmax.f32 %v4489_v48, 0.0 }
 0x66e   : > { %v6391_v38 = vmax.f32 %v5881_v57, 0.0 }
 0x66f   : > { %v3098_v20 = vpop.f32.mrf.mxu1  ;;  %v7274_v10 = vpop.f32.mrf.mxu0 }
 0x670   : > { %v3099_v26 = vadd.f32 %v10806_v37, %v3098_v20  ;;  %v7275_v52 = vadd.f32 %v10923_v7, %v7274_v10 }
 0x671   : > { %v4490_v32 = vpop.f32.mrf.mxu2 }
 0x672   : > { %v3554_v24 = vmax.f32 %v3099_v26, 0.0  ;;  %7812 = vst.msk [vmem:[%s10334_s14 + $0x228] sm:$0xff] %vm7742_vm2, %v7275_v52  ;;  %v4491_v50 = vadd.f32 %v10951_v18, %v4490_v32 }
 0x673   : > { %v5882_v1 = vpop.f32.mrf.mxu3 }
 0x674   : > { %v3748_v63 = vpack.c.bf16 %v3554_v24, %v3553_v51  ;;  %v4973_v36 = vmax.f32 %v4491_v50, 0.0  ;;  %v5883_v22 = vadd.f32 %v10790_v19, %v5882_v1 }
 0x676   : > { %v5176_v0 = vpack.c.bf16 %v4973_v36, %v4972_v6  ;;  %v6392_v35 = vmax.f32 %v5883_v22, 0.0  ;;  %8529 = vmatmul.msk.bf16.gmra.mxu2 %vm2397_vm1, %v3748_v63 }
 0x677   : > { %v3101_v12 = vpop.f32.mrf.mxu1  ;;  %v7277_v2 = vpop.f32.mrf.mxu0 }
 0x678   : > { %v6604_v49 = vpack.c.bf16 %v6392_v35, %v6391_v38  ;;  %v7278_v46 = vadd.f32 %v10923_v7, %v7277_v2  ;;  %8656 = vmatmul.msk.bf16.gmra.mxu3 %vm2397_vm1, %v5176_v0  ;;  %v3102_v39 = vadd.f32 %v10806_v37, %v3101_v12  ;;  %v12565_v38 = vld [vmem:[#allocation8_spill] sm:$0xff] }
 0x679   : > { %v4493_v53 = vpop.f32.mrf.mxu2 }
 0x67a   : > { %7813 = vst.msk [vmem:[%s10334_s14 + $0x230] sm:$0xff] %vm7742_vm2, %v7278_v46  ;;  %8402 = vmatmul.msk.bf16.gmra.mxu1 %vm2397_vm1, %v12563_v40  ;;  %8783 = vmatmul.msk.bf16.gmra.mxu0 %vm2397_vm1, %v6604_v49  ;;  %v4494_v45 = vadd.f32 %v10951_v18, %v4493_v53  ;;  %v3555_v33 = vmax.f32 %v3102_v39, 0.0 }
 0x67b   : > { %v5885_v4 = vpop.f32.mrf.mxu3 }
 0x67c   : > { %v5886_v5 = vadd.f32 %v10790_v19, %v5885_v4  ;;  %v4974_v58 = vmax.f32 %v4494_v45, 0.0 }
 0x67e   : > { %v6393_v9 = vmax.f32 %v5886_v5, 0.0 }
 0x67f   : > { %v3103_v60 = vpop.f32.mrf.mxu1  ;;  %v7279_v17 = vpop.f32.mrf.mxu0 }
 0x680   : > { %v3104_v25 = vadd.f32 %v10806_v37, %v3103_v60  ;;  %v7280_v56 = vadd.f32 %v10923_v7, %v7279_v17 }
 0x681   : > { %v4495_v43 = vpop.f32.mrf.mxu2 }
 0x682   : > { %v3556_v55 = vmax.f32 %v3104_v25, 0.0  ;;  %7814 = vst.msk [vmem:[%s10334_s14 + $0x238] sm:$0xff] %vm7742_vm2, %v7280_v56  ;;  %v4496_v11 = vadd.f32 %v10951_v18, %v4495_v43 }
 0x683   : > { %v5887_v13 = vpop.f32.mrf.mxu3 }
 0x684   : > { %v3749_v15 = vpack.c.bf16 %v3556_v55, %v3555_v33  ;;  %v4975_v54 = vmax.f32 %v4496_v11, 0.0  ;;  %v5888_v44 = vadd.f32 %v10790_v19, %v5887_v13 }
 0x686   : > { %v5177_v30 = vpack.c.bf16 %v4975_v54, %v4974_v58  ;;  %v6394_v28 = vmax.f32 %v5888_v44, 0.0  ;;  %8530 = vmatmul.msk.bf16.gmra.mxu2 %vm2397_vm1, %v3749_v15 }
 0x687   : > { %v3106_v31 = vpop.f32.mrf.mxu1  ;;  %v7282_v14 = vpop.f32.mrf.mxu0 }
 0x688   : > { %v6605_v16 = vpack.c.bf16 %v6394_v28, %v6393_v9  ;;  %v7283_v42 = vadd.f32 %v10923_v7, %v7282_v14  ;;  %8657 = vmatmul.msk.bf16.gmra.mxu3 %vm2397_vm1, %v5177_v30  ;;  %v3107_v41 = vadd.f32 %v10806_v37, %v3106_v31  ;;  %v12566_v9 = vld [vmem:[#allocation9_spill] sm:$0xff] }
 0x689   : > { %v4498_v59 = vpop.f32.mrf.mxu2 }
 0x68a   : > { %7815 = vst.msk [vmem:[%s10334_s14 + $0x240] sm:$0xff] %vm7742_vm2, %v7283_v42  ;;  %8403 = vmatmul.msk.bf16.gmra.mxu1 %vm2397_vm1, %v12564_v61  ;;  %8784 = vmatmul.msk.bf16.gmra.mxu0 %vm2397_vm1, %v6605_v16  ;;  %v4499_v21 = vadd.f32 %v10951_v18, %v4498_v59  ;;  %v3557_v47 = vmax.f32 %v3107_v41, 0.0 }
 0x68b   : > { %v5890_v34 = vpop.f32.mrf.mxu3 }
 0x68c   : > { %v5891_v62 = vadd.f32 %v10790_v19, %v5890_v34  ;;  %v4976_v26 = vmax.f32 %v4499_v21, 0.0 }
 0x68e   : > { %v6395_v57 = vmax.f32 %v5891_v62, 0.0 }
 0x68f   : > { %v3108_v8 = vpop.f32.mrf.mxu1  ;;  %v7284_v27 = vpop.f32.mrf.mxu0 }
 0x690   : > { %v3109_v23 = vadd.f32 %v10806_v37, %v3108_v8  ;;  %v7285_v29 = vadd.f32 %v10923_v7, %v7284_v27 }
 0x691   : > { %v4500_v3 = vpop.f32.mrf.mxu2 }
 0x692   : > { %v3558_v20 = vmax.f32 %v3109_v23, 0.0  ;;  %7816 = vst.msk [vmem:[%s10334_s14 + $0x248] sm:$0xff] %vm7742_vm2, %v7285_v29  ;;  %v4501_v10 = vadd.f32 %v10951_v18, %v4500_v3 }
 0x693   : > { %v5892_v48 = vpop.f32.mrf.mxu3 }
 0x694   : > { %v3750_v52 = vpack.c.bf16 %v3558_v20, %v3557_v47  ;;  %v4977_v32 = vmax.f32 %v4501_v10, 0.0  ;;  %v5893_v51 = vadd.f32 %v10790_v19, %v5892_v48 }
 0x696   : > { %v5178_v24 = vpack.c.bf16 %v4977_v32, %v4976_v26  ;;  %v6396_v50 = vmax.f32 %v5893_v51, 0.0  ;;  %8531 = vmatmul.msk.bf16.gmra.mxu2 %vm2397_vm1, %v3750_v52 }
 0x697   : > { %v3111_v1 = vpop.f32.mrf.mxu1  ;;  %v7287_v6 = vpop.f32.mrf.mxu0 }
 0x698   : > { %v6606_v63 = vpack.c.bf16 %v6396_v50, %v6395_v57  ;;  %v7288_v36 = vadd.f32 %v10923_v7, %v7287_v6  ;;  %8658 = vmatmul.msk.bf16.gmra.mxu3 %vm2397_vm1, %v5178_v24  ;;  %v3112_v35 = vadd.f32 %v10806_v37, %v3111_v1  ;;  %v12567_v57 = vld [vmem:[#allocation11_spill] sm:$0xff] }
 0x699   : > { %v4503_v22 = vpop.f32.mrf.mxu2 }
 0x69a   : > { %7817 = vst.msk [vmem:[%s10334_s14 + $0x250] sm:$0xff] %vm7742_vm2, %v7288_v36  ;;  %8404 = vmatmul.msk.bf16.gmra.mxu1 %vm2397_vm1, %v12565_v38  ;;  %8785 = vmatmul.msk.bf16.gmra.mxu0 %vm2397_vm1, %v6606_v63  ;;  %v4504_v49 = vadd.f32 %v10951_v18, %v4503_v22  ;;  %v3559_v4 = vmax.f32 %v3112_v35, 0.0 }
 0x69b   : > { %v5895_v0 = vpop.f32.mrf.mxu3 }
 0x69c   : > { %v5896_v39 = vadd.f32 %v10790_v19, %v5895_v0  ;;  %v4978_v25 = vmax.f32 %v4504_v49, 0.0 }
 0x69e   : > { %v6397_v5 = vmax.f32 %v5896_v39, 0.0 }
 0x69f   : > { %v3113_v12 = vpop.f32.mrf.mxu1  ;;  %v7289_v2 = vpop.f32.mrf.mxu0 }
 0x6a0   : > { %v3114_v46 = vadd.f32 %v10806_v37, %v3113_v12  ;;  %v7290_v53 = vadd.f32 %v10923_v7, %v7289_v2 }
 0x6a1   : > { %v4505_v40 = vpop.f32.mrf.mxu2 }
 0x6a2   : > { %v3560_v60 = vmax.f32 %v3114_v46, 0.0  ;;  %7818 = vst.msk [vmem:[%s10334_s14 + $0x258] sm:$0xff] %vm7742_vm2, %v7290_v53  ;;  %v4506_v17 = vadd.f32 %v10951_v18, %v4505_v40 }
 0x6a3   : > { %v5897_v45 = vpop.f32.mrf.mxu3 }
 0x6a4   : > { %v3751_v56 = vpack.c.bf16 %v3560_v60, %v3559_v4  ;;  %v4979_v43 = vmax.f32 %v4506_v17, 0.0  ;;  %v5898_v33 = vadd.f32 %v10790_v19, %v5897_v45 }
 0x6a6   : > { %v5179_v55 = vpack.c.bf16 %v4979_v43, %v4978_v25  ;;  %v6398_v11 = vmax.f32 %v5898_v33, 0.0  ;;  %8532 = vmatmul.msk.bf16.gmra.mxu2 %vm2397_vm1, %v3751_v56 }
 0x6a7   : > { %v3116_v13 = vpop.f32.mrf.mxu1  ;;  %v7292_v58 = vpop.f32.mrf.mxu0 }
 0x6a8   : > { %v6607_v15 = vpack.c.bf16 %v6398_v11, %v6397_v5  ;;  %v7293_v54 = vadd.f32 %v10923_v7, %v7292_v58  ;;  %8659 = vmatmul.msk.bf16.gmra.mxu3 %vm2397_vm1, %v5179_v55  ;;  %v3117_v28 = vadd.f32 %v10806_v37, %v3116_v13  ;;  %v12568_v5 = vld [vmem:[#allocation13_spill] sm:$0xff] }
 0x6a9   : > { %v4508_v44 = vpop.f32.mrf.mxu2 }
 0x6aa   : > { %7819 = vst.msk [vmem:[%s10334_s14 + $0x260] sm:$0xff] %vm7742_vm2, %v7293_v54  ;;  %8405 = vmatmul.msk.bf16.gmra.mxu1 %vm2397_vm1, %v12566_v9  ;;  %8786 = vmatmul.msk.bf16.gmra.mxu0 %vm2397_vm1, %v6607_v15  ;;  %v4509_v16 = vadd.f32 %v10951_v18, %v4508_v44  ;;  %v3561_v34 = vmax.f32 %v3117_v28, 0.0 }
 0x6ab   : > { %v5900_v30 = vpop.f32.mrf.mxu3 }
 0x6ac   : > { %v5901_v41 = vadd.f32 %v10790_v19, %v5900_v30  ;;  %v4980_v23 = vmax.f32 %v4509_v16, 0.0 }
 0x6ae   : > { %v6399_v62 = vmax.f32 %v5901_v41, 0.0 }
 0x6af   : > { %v3118_v31 = vpop.f32.mrf.mxu1  ;;  %v7294_v14 = vpop.f32.mrf.mxu0 }
 0x6b0   : > { %v3119_v42 = vadd.f32 %v10806_v37, %v3118_v31  ;;  %v7295_v59 = vadd.f32 %v10923_v7, %v7294_v14 }
 0x6b1   : > { %v4510_v61 = vpop.f32.mrf.mxu2 }
 0x6b2   : > { %v3562_v8 = vmax.f32 %v3119_v42, 0.0  ;;  %7820 = vst.msk [vmem:[%s10334_s14 + $0x268] sm:$0xff] %vm7742_vm2, %v7295_v59  ;;  %v4511_v27 = vadd.f32 %v10951_v18, %v4510_v61 }
 0x6b3   : > { %v5902_v21 = vpop.f32.mrf.mxu3 }
 0x6b4   : > { %v3752_v29 = vpack.c.bf16 %v3562_v8, %v3561_v34  ;;  %v4981_v3 = vmax.f32 %v4511_v27, 0.0  ;;  %v5903_v47 = vadd.f32 %v10790_v19, %v5902_v21 }
 0x6b6   : > { %v5180_v20 = vpack.c.bf16 %v4981_v3, %v4980_v23  ;;  %v6400_v10 = vmax.f32 %v5903_v47, 0.0  ;;  %8533 = vmatmul.msk.bf16.gmra.mxu2 %vm2397_vm1, %v3752_v29 }
 0x6b7   : > { %v3121_v48 = vpop.f32.mrf.mxu1  ;;  %v7297_v26 = vpop.f32.mrf.mxu0 }
 0x6b8   : > { %v6608_v52 = vpack.c.bf16 %v6400_v10, %v6399_v62  ;;  %v7298_v32 = vadd.f32 %v10923_v7, %v7297_v26  ;;  %8660 = vmatmul.msk.bf16.gmra.mxu3 %vm2397_vm1, %v5180_v20  ;;  %v3122_v50 = vadd.f32 %v10806_v37, %v3121_v48  ;;  %v12569_v62 = vld [vmem:[#allocation15_spill] sm:$0xff] }
 0x6b9   : > { %v4513_v51 = vpop.f32.mrf.mxu2 }
 0x6ba   : > { %7821 = vst.msk [vmem:[%s10334_s14 + $0x270] sm:$0xff] %vm7742_vm2, %v7298_v32  ;;  %8406 = vmatmul.msk.bf16.gmra.mxu1 %vm2397_vm1, %v12567_v57  ;;  %8787 = vmatmul.msk.bf16.gmra.mxu0 %vm2397_vm1, %v6608_v52  ;;  %v4514_v63 = vadd.f32 %v10951_v18, %v4513_v51  ;;  %v3563_v0 = vmax.f32 %v3122_v50, 0.0 }
 0x6bb   : > { %v5905_v24 = vpop.f32.mrf.mxu3 }
 0x6bc   : > { %v5906_v35 = vadd.f32 %v10790_v19, %v5905_v24  ;;  %v4982_v46 = vmax.f32 %v4514_v63, 0.0 }
 0x6be   : > { %v6401_v39 = vmax.f32 %v5906_v35, 0.0 }
 0x6bf   : > { %v3123_v1 = vpop.f32.mrf.mxu1  ;;  %v7299_v6 = vpop.f32.mrf.mxu0 }
 0x6c0   : > { %v3124_v36 = vadd.f32 %v10806_v37, %v3123_v1  ;;  %v7300_v22 = vadd.f32 %v10923_v7, %v7299_v6 }
 0x6c1   : > { %v4515_v38 = vpop.f32.mrf.mxu2 }
 0x6c2   : > { %v3564_v12 = vmax.f32 %v3124_v36, 0.0  ;;  %7822 = vst.msk [vmem:[%s10334_s14 + $0x278] sm:$0xff] %vm7742_vm2, %v7300_v22  ;;  %v4516_v2 = vadd.f32 %v10951_v18, %v4515_v38 }
 0x6c3   : > { %v5907_v49 = vpop.f32.mrf.mxu3 }
 0x6c4   : > { %v3753_v53 = vpack.c.bf16 %v3564_v12, %v3563_v0  ;;  %v4983_v40 = vmax.f32 %v4516_v2, 0.0  ;;  %v5908_v4 = vadd.f32 %v10790_v19, %v5907_v49 }
 0x6c6   : > { %v5181_v60 = vpack.c.bf16 %v4983_v40, %v4982_v46  ;;  %v6402_v17 = vmax.f32 %v5908_v4, 0.0  ;;  %8534 = vmatmul.msk.bf16.gmra.mxu2 %vm2397_vm1, %v3753_v53 }
 0x6c7   : > { %v3126_v45 = vpop.f32.mrf.mxu1  ;;  %v7302_v25 = vpop.f32.mrf.mxu0 }
 0x6c8   : > { %v6609_v56 = vpack.c.bf16 %v6402_v17, %v6401_v39  ;;  %v7303_v43 = vadd.f32 %v10923_v7, %v7302_v25  ;;  %8661 = vmatmul.msk.bf16.gmra.mxu3 %vm2397_vm1, %v5181_v60  ;;  %v3127_v11 = vadd.f32 %v10806_v37, %v3126_v45  ;;  %v12570_v39 = vld [vmem:[#allocation17_spill] sm:$0xff] }
 0x6c9   : > { %v4518_v33 = vpop.f32.mrf.mxu2 }
 0x6ca   : > { %7823 = vst.msk [vmem:[%s10334_s14 + $0x280] sm:$0xff] %vm7742_vm2, %v7303_v43  ;;  %8407 = vmatmul.msk.bf16.gmra.mxu1 %vm2397_vm1, %v12568_v5  ;;  %8788 = vmatmul.msk.bf16.gmra.mxu0 %vm2397_vm1, %v6609_v56  ;;  %v4519_v15 = vadd.f32 %v10951_v18, %v4518_v33  ;;  %v3565_v30 = vmax.f32 %v3127_v11, 0.0 }
 0x6cb   : > { %v5910_v55 = vpop.f32.mrf.mxu3 }
 0x6cc   : > { %v5911_v28 = vadd.f32 %v10790_v19, %v5910_v55  ;;  %v4984_v42 = vmax.f32 %v4519_v15, 0.0  ;;  %v11093_v55 = vld [vmem:[%s9118_s26] ss:$0 sm:$0xff] }
 0x6ce   : > { %v6403_v41 = vmax.f32 %v5911_v28, 0.0 }
 0x6cf   : > { %v3128_v13 = vpop.f32.mrf.mxu1  ;;  %v7304_v58 = vpop.f32.mrf.mxu0 }
 0x6d0   : > { %v3129_v54 = vadd.f32 %v10806_v37, %v3128_v13  ;;  %v7305_v44 = vadd.f32 %v10923_v7, %v7304_v58 }
 0x6d1   : > { %v4520_v9 = vpop.f32.mrf.mxu2 }
 0x6d2   : > { %v3566_v31 = vmax.f32 %v3129_v54, 0.0  ;;  %7824 = vst.msk [vmem:[%s10334_s14 + $0x288] sm:$0xff] %vm7742_vm2, %v7305_v44  ;;  %v4521_v14 = vadd.f32 %v10951_v18, %v4520_v9 }
 0x6d3   : > { %v5912_v16 = vpop.f32.mrf.mxu3 }
 0x6d4   : > { %v3754_v59 = vpack.c.bf16 %v3566_v31, %v3565_v30  ;;  %v4985_v61 = vmax.f32 %v4521_v14, 0.0  ;;  %v5913_v34 = vadd.f32 %v10790_v19, %v5912_v16 }
 0x6d6   : > { %v5182_v8 = vpack.c.bf16 %v4985_v61, %v4984_v42  ;;  %v6404_v27 = vmax.f32 %v5913_v34, 0.0  ;;  %8535 = vmatmul.msk.bf16.gmra.mxu2 %vm2397_vm1, %v3754_v59  ;;  %v12571_v34 = vld [vmem:[#allocation19_spill] sm:$0xff] }
 0x6d7   : > { %v3131_v21 = vpop.f32.mrf.mxu1  ;;  %v7307_v23 = vpop.f32.mrf.mxu0 }
 0x6d8   : > { %v6610_v29 = vpack.c.bf16 %v6404_v27, %v6403_v41  ;;  %v7308_v3 = vadd.f32 %v10923_v7, %v7307_v23  ;;  %8662 = vmatmul.msk.bf16.gmra.mxu3 %vm2397_vm1, %v5182_v8  ;;  %v3132_v10 = vadd.f32 %v10806_v37, %v3131_v21  ;;  %v11109_v8 = vld [vmem:[%s9108_s23] ss:$0 sm:$0xff] }
 0x6d9   : > { %v4523_v47 = vpop.f32.mrf.mxu2 }
 0x6da   : > { %7825 = vst.msk [vmem:[%s10334_s14 + $0x290] sm:$0xff] %vm7742_vm2, %v7308_v3  ;;  %8408 = vmatmul.msk.bf16.gmra.mxu1 %vm2397_vm1, %v12569_v62  ;;  %8789 = vmatmul.msk.bf16.gmra.mxu0 %vm2397_vm1, %v6610_v29  ;;  %v4524_v52 = vadd.f32 %v10951_v18, %v4523_v47  ;;  %v3567_v24 = vmax.f32 %v3132_v10, 0.0 }
 0x6db   : > { %v5915_v20 = vpop.f32.mrf.mxu3 }
 0x6dc   : > { %v5916_v50 = vadd.f32 %v10790_v19, %v5915_v20  ;;  %v4986_v36 = vmax.f32 %v4524_v52, 0.0 }
 0x6de   : > { %v6405_v35 = vmax.f32 %v5916_v50, 0.0 }
 0x6df   : > { %v3133_v48 = vpop.f32.mrf.mxu1  ;;  %v7309_v26 = vpop.f32.mrf.mxu0 }
 0x6e0   : > { %v3134_v32 = vadd.f32 %v10806_v37, %v3133_v48  ;;  %v7310_v51 = vadd.f32 %v10923_v7, %v7309_v26 }
 0x6e1   : > { %v4525_v57 = vpop.f32.mrf.mxu2 }
 0x6e2   : > { %v3568_v1 = vmax.f32 %v3134_v32, 0.0  ;;  %7826 = vst.msk [vmem:[%s10334_s14 + $0x298] sm:$0xff] %vm7742_vm2, %v7310_v51  ;;  %v4526_v6 = vadd.f32 %v10951_v18, %v4525_v57 }
 0x6e3   : > { %v5917_v63 = vpop.f32.mrf.mxu3 }
 0x6e4   : > { %v3755_v22 = vpack.c.bf16 %v3568_v1, %v3567_v24  ;;  %v4987_v38 = vmax.f32 %v4526_v6, 0.0  ;;  %v5918_v0 = vadd.f32 %v10790_v19, %v5917_v63 }
 0x6e6   : > { %v5183_v12 = vpack.c.bf16 %v4987_v38, %v4986_v36  ;;  %v6406_v2 = vmax.f32 %v5918_v0, 0.0  ;;  %8536 = vmatmul.msk.bf16.gmra.mxu2 %vm2397_vm1, %v3755_v22 }
 0x6e7   : > { %v3136_v49 = vpop.f32.mrf.mxu1  ;;  %v7312_v46 = vpop.f32.mrf.mxu0 }
 0x6e8   : > { %v6611_v53 = vpack.c.bf16 %v6406_v2, %v6405_v35  ;;  %v7313_v40 = vadd.f32 %v10923_v7, %v7312_v46  ;;  %8663 = vmatmul.msk.bf16.gmra.mxu3 %vm2397_vm1, %v5183_v12  ;;  %v3137_v60 = vadd.f32 %v10806_v37, %v3136_v49  ;;  %v12572_v35 = vld [vmem:[#allocation21_spill] sm:$0xff] }
 0x6e9   : > { %v4528_v4 = vpop.f32.mrf.mxu2 }
 0x6ea   : > { %7827 = vst.msk [vmem:[%s10334_s14 + $0x2a0] sm:$0xff] %vm7742_vm2, %v7313_v40  ;;  %8409 = vmatmul.msk.bf16.gmra.mxu1 %vm2397_vm1, %v12570_v39  ;;  %8790 = vmatmul.msk.bf16.gmra.mxu0 %vm2397_vm1, %v6611_v53  ;;  %v4529_v25 = vadd.f32 %v10951_v18, %v4528_v4  ;;  %v3569_v5 = vmax.f32 %v3137_v60, 0.0 }
 0x6eb   : > { %v5920_v19 = vpop.f32.mrf.mxu3 }
 0x6ec   : > { %v5921_v11 = vadd.f32 %v11093_v55, %v5920_v19  ;;  %v4988_v54 = vmax.f32 %v4529_v25, 0.0 }
 0x6ee   : > { %v6407_v30 = vmax.f32 %v5921_v11, 0.0 }
 0x6ef   : > { %v3138_v17 = vpop.f32.mrf.mxu1  ;;  %v7314_v45 = vpop.f32.mrf.mxu0 }
 0x6f0   : > { %v3139_v56 = vadd.f32 %v10806_v37, %v3138_v17  ;;  %v7315_v43 = vadd.f32 %v10923_v7, %v7314_v45 }
 0x6f1   : > { %v4530_v33 = vpop.f32.mrf.mxu2 }
 0x6f2   : > { %v3570_v13 = vmax.f32 %v3139_v56, 0.0  ;;  %7828 = vst.msk [vmem:[%s10334_s14 + $0x2a8] sm:$0xff] %vm7742_vm2, %v7315_v43  ;;  %v4531_v58 = vadd.f32 %v10951_v18, %v4530_v33 }
 0x6f3   : > { %v5922_v15 = vpop.f32.mrf.mxu3 }
 0x6f4   : > { %v3756_v44 = vpack.c.bf16 %v3570_v13, %v3569_v5  ;;  %v4989_v9 = vmax.f32 %v4531_v58, 0.0  ;;  %v5923_v37 = vadd.f32 %v11093_v55, %v5922_v15 }
 0x6f6   : > { %v5184_v28 = vpack.c.bf16 %v4989_v9, %v4988_v54  ;;  %v6408_v31 = vmax.f32 %v5923_v37, 0.0  ;;  %8537 = vmatmul.msk.bf16.gmra.mxu2 %vm2397_vm1, %v3756_v44 }
 0x6f7   : > { %v3141_v14 = vpop.f32.mrf.mxu1  ;;  %v7317_v16 = vpop.f32.mrf.mxu0 }
 0x6f8   : > { %v6612_v42 = vpack.c.bf16 %v6408_v31, %v6407_v30  ;;  %v7318_v59 = vadd.f32 %v10923_v7, %v7317_v16  ;;  %8664 = vmatmul.msk.bf16.gmra.mxu3 %vm2397_vm1, %v5184_v28  ;;  %v3142_v27 = vadd.f32 %v11109_v8, %v3141_v14  ;;  %v12573_v30 = vld [vmem:[#allocation23_spill] sm:$0xff] }
 0x6f9   : > { %v4533_v61 = vpop.f32.mrf.mxu2 }
 0x6fa   : > { %7829 = vst.msk [vmem:[%s10334_s14 + $0x2b0] sm:$0xff] %vm7742_vm2, %v7318_v59  ;;  %8410 = vmatmul.msk.bf16.gmra.mxu1 %vm2397_vm1, %v12571_v34  ;;  %8791 = vmatmul.msk.bf16.gmra.mxu0 %vm2397_vm1, %v6612_v42  ;;  %v4534_v29 = vadd.f32 %v10951_v18, %v4533_v61  ;;  %v3571_v20 = vmax.f32 %v3142_v27, 0.0 }
 0x6fb   : > { %v5925_v41 = vpop.f32.mrf.mxu3 }
 0x6fc   : > { %v5926_v10 = vadd.f32 %v11093_v55, %v5925_v41  ;;  %v4990_v32 = vmax.f32 %v4534_v29, 0.0 }
 0x6fe   : > { %v6409_v50 = vmax.f32 %v5926_v10, 0.0 }
 0x6ff   : > { %v3143_v21 = vpop.f32.mrf.mxu1  ;;  %v7319_v23 = vpop.f32.mrf.mxu0 }
 0x700   : > { %v3144_v3 = vadd.f32 %v11109_v8, %v3143_v21  ;;  %v7320_v47 = vadd.f32 %v10923_v7, %v7319_v23 }
 0x701   : > { %v4535_v62 = vpop.f32.mrf.mxu2 }
 0x702   : > { %v3572_v48 = vmax.f32 %v3144_v3, 0.0  ;;  %7830 = vst.msk [vmem:[%s10334_s14 + $0x2b8] sm:$0xff] %vm7742_vm2, %v7320_v47  ;;  %v4536_v26 = vadd.f32 %v10951_v18, %v4535_v62 }
 0x703   : > { %v5927_v52 = vpop.f32.mrf.mxu3 }
 0x704   : > { %v3757_v51 = vpack.c.bf16 %v3572_v48, %v3571_v20  ;;  %v4991_v57 = vmax.f32 %v4536_v26, 0.0  ;;  %v5928_v24 = vadd.f32 %v11093_v55, %v5927_v52 }
 0x706   : > { %v5185_v1 = vpack.c.bf16 %v4991_v57, %v4990_v32  ;;  %v6410_v6 = vmax.f32 %v5928_v24, 0.0  ;;  %8538 = vmatmul.msk.bf16.gmra.mxu2 %vm2397_vm1, %v3757_v51 }
 0x707   : > { %v3146_v63 = vpop.f32.mrf.mxu1  ;;  %v7322_v36 = vpop.f32.mrf.mxu0 }
 0x708   : > { %v6613_v22 = vpack.c.bf16 %v6410_v6, %v6409_v50  ;;  %v7323_v38 = vadd.f32 %v10923_v7, %v7322_v36  ;;  %8665 = vmatmul.msk.bf16.gmra.mxu3 %vm2397_vm1, %v5185_v1  ;;  %v3147_v2 = vadd.f32 %v11109_v8, %v3146_v63  ;;  %v12574_v50 = vld [vmem:[#allocation25_spill] sm:$0xff] }
 0x709   : > { %v4538_v0 = vpop.f32.mrf.mxu2 }
 0x70a   : > { %7831 = vst.msk [vmem:[%s10334_s14 + $0x2c0] sm:$0xff] %vm7742_vm2, %v7323_v38  ;;  %8411 = vmatmul.msk.bf16.gmra.mxu1 %vm2397_vm1, %v12572_v35  ;;  %8792 = vmatmul.msk.bf16.gmra.mxu0 %vm2397_vm1, %v6613_v22  ;;  %v4539_v53 = vadd.f32 %v10951_v18, %v4538_v0  ;;  %v3573_v19 = vmax.f32 %v3147_v2, 0.0 }
 0x70b   : > { %v5930_v12 = vpop.f32.mrf.mxu3 }
 0x70c   : > { %v5931_v60 = vadd.f32 %v11093_v55, %v5930_v12  ;;  %v4992_v56 = vmax.f32 %v4539_v53, 0.0 }
 0x70e   : > { %v6411_v11 = vmax.f32 %v5931_v60, 0.0 }
 0x70f   : > { %v3148_v49 = vpop.f32.mrf.mxu1  ;;  %v7324_v46 = vpop.f32.mrf.mxu0 }
 0x710   : > { %v3149_v40 = vadd.f32 %v11109_v8, %v3148_v49  ;;  %v7325_v4 = vadd.f32 %v10923_v7, %v7324_v46 }
 0x711   : > { %v4540_v39 = vpop.f32.mrf.mxu2 }
 0x712   : > { %v3574_v17 = vmax.f32 %v3149_v40, 0.0  ;;  %7832 = vst.msk [vmem:[%s10334_s14 + $0x2c8] sm:$0xff] %vm7742_vm2, %v7325_v4  ;;  %v4541_v45 = vadd.f32 %v10951_v18, %v4540_v39 }
 0x713   : > { %v5932_v25 = vpop.f32.mrf.mxu3 }
 0x714   : > { %v3758_v43 = vpack.c.bf16 %v3574_v17, %v3573_v19  ;;  %v4993_v33 = vmax.f32 %v4541_v45, 0.0  ;;  %v5933_v5 = vadd.f32 %v11093_v55, %v5932_v25 }
 0x716   : > { %v5186_v13 = vpack.c.bf16 %v4993_v33, %v4992_v56  ;;  %v6412_v58 = vmax.f32 %v5933_v5, 0.0  ;;  %8539 = vmatmul.msk.bf16.gmra.mxu2 %vm2397_vm1, %v3758_v43 }
 0x717   : > { %v3151_v15 = vpop.f32.mrf.mxu1  ;;  %v7327_v54 = vpop.f32.mrf.mxu0 }
 0x718   : > { %v6614_v44 = vpack.c.bf16 %v6412_v58, %v6411_v11  ;;  %v7328_v9 = vadd.f32 %v10923_v7, %v7327_v54  ;;  %8666 = vmatmul.msk.bf16.gmra.mxu3 %vm2397_vm1, %v5186_v13  ;;  %v3152_v31 = vadd.f32 %v11109_v8, %v3151_v15  ;;  %v12575_v11 = vld [vmem:[#allocation27_spill] sm:$0xff] }
 0x719   : > { %v4543_v37 = vpop.f32.mrf.mxu2 }
 0x71a   : > { %7833 = vst.msk [vmem:[%s10334_s14 + $0x2d0] sm:$0xff] %vm7742_vm2, %v7328_v9  ;;  %8412 = vmatmul.msk.bf16.gmra.mxu1 %vm2397_vm1, %v12573_v30  ;;  %8793 = vmatmul.msk.bf16.gmra.mxu0 %vm2397_vm1, %v6614_v44  ;;  %v4544_v42 = vadd.f32 %v10951_v18, %v4543_v37  ;;  %v3575_v41 = vmax.f32 %v3152_v31, 0.0 }
 0x71b   : > { %v5935_v28 = vpop.f32.mrf.mxu3 }
 0x71c   : > { %v5936_v27 = vadd.f32 %v11093_v55, %v5935_v28  ;;  %v4994_v3 = vmax.f32 %v4544_v42, 0.0 }
 0x71e   : > { %v6413_v10 = vmax.f32 %v5936_v27, 0.0 }
 0x71f   : > { %v3153_v14 = vpop.f32.mrf.mxu1  ;;  %v7329_v16 = vpop.f32.mrf.mxu0 }
 0x720   : > { %v3154_v59 = vadd.f32 %v11109_v8, %v3153_v14  ;;  %v7330_v61 = vadd.f32 %v10923_v7, %v7329_v16 }
 0x721   : > { %v4545_v34 = vpop.f32.mrf.mxu2 }
 0x722   : > { %v3576_v21 = vmax.f32 %v3154_v59, 0.0  ;;  %7834 = vst.msk [vmem:[%s10334_s14 + $0x2d8] sm:$0xff] %vm7742_vm2, %v7330_v61  ;;  %v4546_v23 = vadd.f32 %v10951_v18, %v4545_v34 }
 0x723   : > { %v5937_v29 = vpop.f32.mrf.mxu3 }
 0x724   : > { %v3759_v47 = vpack.c.bf16 %v3576_v21, %v3575_v41  ;;  %v4995_v62 = vmax.f32 %v4546_v23, 0.0  ;;  %v5938_v20 = vadd.f32 %v11093_v55, %v5937_v29 }
 0x726   : > { %v5187_v48 = vpack.c.bf16 %v4995_v62, %v4994_v3  ;;  %v6414_v26 = vmax.f32 %v5938_v20, 0.0  ;;  %8540 = vmatmul.msk.bf16.gmra.mxu2 %vm2397_vm1, %v3759_v47 }
 0x727   : > { %v3156_v52 = vpop.f32.mrf.mxu1  ;;  %v7332_v32 = vpop.f32.mrf.mxu0 }
 0x728   : > { %v6615_v51 = vpack.c.bf16 %v6414_v26, %v6413_v10  ;;  %v7333_v57 = vadd.f32 %v10923_v7, %v7332_v32  ;;  %8667 = vmatmul.msk.bf16.gmra.mxu3 %vm2397_vm1, %v5187_v48  ;;  %v3157_v6 = vadd.f32 %v11109_v8, %v3156_v52  ;;  %v12576_v10 = vld [vmem:[#allocation29_spill] sm:$0xff]  ;;  %v11198_v52 = vld [vmem:[%s9103_s15] ss:$0 sm:$0xff]  ;;  %v12577_v32 = vld [vmem:[#allocation31_spill] sm:$0xff] }
 0x729   : > { %v4548_v24 = vpop.f32.mrf.mxu2 }
 0x72a   : > { %7835 = vst.msk [vmem:[%s10334_s14 + $0x2e0] sm:$0xff] %vm7742_vm2, %v7333_v57  ;;  %8413 = vmatmul.msk.bf16.gmra.mxu1 %vm2397_vm1, %v12574_v50  ;;  %8794 = vmatmul.msk.bf16.gmra.mxu0 %vm2397_vm1, %v6615_v51  ;;  %v4549_v22 = vadd.f32 %v10951_v18, %v4548_v24  ;;  %v3577_v12 = vmax.f32 %v3157_v6, 0.0  ;;  %v1774_v51 = vadd.f32 %v11198_v52, %v12577_v32  ;;  %v12578_v57 = vld [vmem:[#allocation32_spill] sm:$0xff] }
 0x72b   : > { %v5940_v1 = vpop.f32.mrf.mxu3  ;;  %v1776_v24 = vadd.f32 %v11198_v52, %v12578_v57 }
 0x72c   : > { %v5941_v2 = vadd.f32 %v11093_v55, %v5940_v1  ;;  %v4996_v40 = vmax.f32 %v4549_v22, 0.0 }
 0x72e   : > { %v6415_v60 = vmax.f32 %v5941_v2, 0.0  ;;  %v2161_v2 = vmax.f32 %v1774_v51, 0.0 }
 0x72f   : > { %v3158_v63 = vpop.f32.mrf.mxu1  ;;  %v7334_v36 = vpop.f32.mrf.mxu0 }
 0x730   : > { %v3159_v38 = vadd.f32 %v11109_v8, %v3158_v63  ;;  %v7335_v0 = vadd.f32 %v10923_v7, %v7334_v36 }
 0x731   : > { %v4550_v35 = vpop.f32.mrf.mxu2 }
 0x732   : > { %v3578_v49 = vmax.f32 %v3159_v38, 0.0  ;;  %7836 = vst.msk [vmem:[%s10334_s14 + $0x2e8] sm:$0xff] %vm7742_vm2, %v7335_v0  ;;  %v4551_v46 = vadd.f32 %v10951_v18, %v4550_v35 }
 0x733   : > { %v5942_v53 = vpop.f32.mrf.mxu3 }
 0x734   : > { %v3760_v4 = vpack.c.bf16 %v3578_v49, %v3577_v12  ;;  %v4997_v39 = vmax.f32 %v4551_v46, 0.0  ;;  %v5943_v19 = vadd.f32 %v11093_v55, %v5942_v53  ;;  %v2162_v49 = vmax.f32 %v1776_v24, 0.0 }
 0x736   : > { %v5188_v17 = vpack.c.bf16 %v4997_v39, %v4996_v40  ;;  %v6416_v45 = vmax.f32 %v5943_v19, 0.0  ;;  %8541 = vmatmul.msk.bf16.gmra.mxu2 %vm2397_vm1, %v3760_v4 }
 0x737   : > { %v3161_v25 = vpop.f32.mrf.mxu1  ;;  %v7337_v56 = vpop.f32.mrf.mxu0 }
 0x738   : > { %v6616_v43 = vpack.c.bf16 %v6416_v45, %v6415_v60  ;;  %v7338_v33 = vadd.f32 %v10923_v7, %v7337_v56  ;;  %8668 = vmatmul.msk.bf16.gmra.mxu3 %vm2397_vm1, %v5188_v17  ;;  %v3162_v58 = vadd.f32 %v11109_v8, %v3161_v25  ;;  %v2333_v56 = vpack.c.bf16 %v2162_v49, %v2161_v2 }
 0x739   : > { %v4553_v5 = vpop.f32.mrf.mxu2 }
 0x73a   : > { %7837 = vst.msk [vmem:[%s10334_s14 + $0x2f0] sm:$0xff] %vm7742_vm2, %v7338_v33  ;;  %8414 = vmatmul.msk.bf16.gmra.mxu1 %vm2397_vm1, %v12575_v11  ;;  %8795 = vmatmul.msk.bf16.gmra.mxu0 %vm2397_vm1, %v6616_v43  ;;  %v4554_v44 = vadd.f32 %v10951_v18, %v4553_v5  ;;  %v3579_v28 = vmax.f32 %v3162_v58, 0.0  ;;  %v12579_v58 = vld [vmem:[#allocation34_spill] sm:$0xff] }
 0x73b   : > { %v5945_v13 = vpop.f32.mrf.mxu3 }
 0x73c   : > { %v5946_v31 = vadd.f32 %v11093_v55, %v5945_v13  ;;  %v4998_v59 = vmax.f32 %v4554_v44, 0.0 }
 0x73e   : > { %v6417_v27 = vmax.f32 %v5946_v31, 0.0 }
 0x73f   : > { %v3163_v15 = vpop.f32.mrf.mxu1  ;;  %v7339_v54 = vpop.f32.mrf.mxu0 }
 0x740   : > { %v3164_v9 = vadd.f32 %v11109_v8, %v3163_v15  ;;  %v7340_v37 = vadd.f32 %v10923_v7, %v7339_v54  ;;  %v1779_v15 = vadd.f32 %v11198_v52, %v12579_v58  ;;  %v12580_v54 = vld [vmem:[#allocation35_spill] sm:$0xff] }
 0x741   : > { %v4555_v30 = vpop.f32.mrf.mxu2  ;;  %v1781_v44 = vadd.f32 %v11198_v52, %v12580_v54 }
 0x742   : > { %v3580_v14 = vmax.f32 %v3164_v9, 0.0  ;;  %7838 = vst.msk [vmem:[%s10334_s14 + $0x2f8] sm:$0xff] %vm7742_vm2, %v7340_v37  ;;  %v4556_v16 = vadd.f32 %v10951_v18, %v4555_v30 }
 0x743   : > { %v5947_v42 = vpop.f32.mrf.mxu3 }
 0x744   : > { %v3761_v61 = vpack.c.bf16 %v3580_v14, %v3579_v28  ;;  %v4999_v34 = vmax.f32 %v4556_v16, 0.0  ;;  %v5948_v41 = vadd.f32 %v11093_v55, %v5947_v42  ;;  %v11229_v28 = vld [vmem:[%s12473_s10] ss:$0 sm:$0xff] }
 0x746   : > { %v5189_v21 = vpack.c.bf16 %v4999_v34, %v4998_v59  ;;  %v6418_v23 = vmax.f32 %v5948_v41, 0.0  ;;  %8542 = vmatmul.msk.bf16.gmra.mxu2 %vm2397_vm1, %v3761_v61  ;;  %v2163_v34 = vmax.f32 %v1779_v15, 0.0  ;;  %v2164_v41 = vmax.f32 %v1781_v44, 0.0 }
 0x747   : > { %v3166_v29 = vpop.f32.mrf.mxu1  ;;  %v7342_v3 = vpop.f32.mrf.mxu0 }
 0x748   : > { %v6617_v47 = vpack.c.bf16 %v6418_v23, %v6417_v27  ;;  %v7343_v62 = vadd.f32 %v10923_v7, %v7342_v3  ;;  %8669 = vmatmul.msk.bf16.gmra.mxu3 %vm2397_vm1, %v5189_v21  ;;  %v3167_v26 = vadd.f32 %v11109_v8, %v3166_v29 }
 0x749   : > { %v4558_v20 = vpop.f32.mrf.mxu2 }
 0x74a   : > { %7839 = vst.msk [vmem:[%s10334_s14 + $0x300] sm:$0xff] %vm7742_vm2, %v7343_v62  ;;  %8415 = vmatmul.msk.bf16.gmra.mxu1 %vm2397_vm1, %v12576_v10  ;;  %8796 = vmatmul.msk.bf16.gmra.mxu0 %vm2397_vm1, %v6617_v47  ;;  %v4559_v6 = vadd.f32 %v10951_v18, %v4558_v20  ;;  %v3581_v38 = vmax.f32 %v3167_v26, 0.0  ;;  %v2334_v26 = vpack.c.bf16 %v2164_v41, %v2163_v34 }
 0x74b   : > { %v5950_v48 = vpop.f32.mrf.mxu3 }
 0x74c   : > { %v5951_v0 = vadd.f32 %v11093_v55, %v5950_v48  ;;  %v5000_v53 = vmax.f32 %v4559_v6, 0.0 }
 0x74e   : > { %v6419_v19 = vmax.f32 %v5951_v0, 0.0 }
 0x74f   : > { %v3168_v50 = vpop.f32.mrf.mxu1  ;;  %v7344_v1 = vpop.f32.mrf.mxu0 }
 0x750   : > { %v3169_v63 = vadd.f32 %v11109_v8, %v3168_v50  ;;  %v7345_v36 = vadd.f32 %v10923_v7, %v7344_v1  ;;  %v12581_v1 = vld [vmem:[#allocation37_spill] sm:$0xff] }
 0x751   : > { %v4560_v22 = vpop.f32.mrf.mxu2  ;;  %v1784_v6 = vadd.f32 %v11198_v52, %v12581_v1 }
 0x752   : > { %v3582_v35 = vmax.f32 %v3169_v63, 0.0  ;;  %7840 = vst.msk [vmem:[%s10334_s14 + $0x308] sm:$0xff] %vm7742_vm2, %v7345_v36  ;;  %v4561_v12 = vadd.f32 %v10951_v18, %v4560_v22  ;;  %v12582_v63 = vld [vmem:[#allocation38_spill] sm:$0xff] }
 0x753   : > { %v5952_v46 = vpop.f32.mrf.mxu3  ;;  %v1786_v36 = vadd.f32 %v11198_v52, %v12582_v63 }
 0x754   : > { %v3762_v40 = vpack.c.bf16 %v3582_v35, %v3581_v38  ;;  %v5001_v4 = vmax.f32 %v4561_v12, 0.0  ;;  %v5953_v39 = vadd.f32 %v11093_v55, %v5952_v46 }
 0x756   : > { %v5190_v60 = vpack.c.bf16 %v5001_v4, %v5000_v53  ;;  %v6420_v17 = vmax.f32 %v5953_v39, 0.0  ;;  %8543 = vmatmul.msk.bf16.gmra.mxu2 %vm2397_vm1, %v3762_v40  ;;  %v11256_v40 = vld [vmem:[%s9113_s22] ss:$0 sm:$0xff]  ;;  %v2165_v39 = vmax.f32 %v1784_v6, 0.0 }
 0x757   : > { %v3171_v45 = vpop.f32.mrf.mxu1  ;;  %v7347_v25 = vpop.f32.mrf.mxu0 }
 0x758   : > { %v6618_v43 = vpack.c.bf16 %v6420_v17, %v6419_v19  ;;  %v7348_v33 = vadd.f32 %v10923_v7, %v7347_v25  ;;  %8670 = vmatmul.msk.bf16.gmra.mxu3 %vm2397_vm1, %v5190_v60  ;;  %v3172_v13 = vadd.f32 %v11109_v8, %v3171_v45  ;;  %v2166_v19 = vmax.f32 %v1786_v36, 0.0 }
 0x759   : > { %v4563_v5 = vpop.f32.mrf.mxu2 }
 0x75a   : > { %7841 = vst.msk [vmem:[%s10334_s14 + $0x310] sm:$0xff] %vm7742_vm2, %v7348_v33  ;;  %8416 = vmatmul.msk.bf16.gmra.mxu1 %vm2397_vm1, %v2333_v56  ;;  %8797 = vmatmul.msk.bf16.gmra.mxu0 %vm2397_vm1, %v6618_v43  ;;  %v4564_v37 = vadd.f32 %v10951_v18, %v4563_v5  ;;  %v3583_v16 = vmax.f32 %v3172_v13, 0.0  ;;  %v2335_v13 = vpack.c.bf16 %v2166_v19, %v2165_v39 }
 0x75b   : > { %v5955_v11 = vpop.f32.mrf.mxu3 }
 0x75c   : > { %v5956_v42 = vadd.f32 %v11093_v55, %v5955_v11  ;;  %v5002_v21 = vmax.f32 %v4564_v37, 0.0 }
 0x75e   : > { %v6421_v47 = vmax.f32 %v5956_v42, 0.0 }
 0x75f   : > { %v3173_v7 = vpop.f32.mrf.mxu1  ;;  %v7349_v9 = vpop.f32.mrf.mxu0 }
 0x760   : > { %v3174_v30 = vadd.f32 %v11109_v8, %v3173_v7  ;;  %v7350_v31 = vadd.f32 %v11229_v28, %v7349_v9  ;;  %v12583_v9 = vld [vmem:[#allocation40_spill] sm:$0xff] }
 0x761   : > { %v4565_v14 = vpop.f32.mrf.mxu2  ;;  %v1789_v37 = vadd.f32 %v11198_v52, %v12583_v9 }
 0x762   : > { %v3584_v59 = vmax.f32 %v3174_v30, 0.0  ;;  %7842 = vst.msk [vmem:[%s10334_s14 + $0x318] sm:$0xff] %vm7742_vm2, %v7350_v31  ;;  %v4566_v61 = vadd.f32 %v10951_v18, %v4565_v14  ;;  %v12584_v30 = vld [vmem:[#allocation42_spill] sm:$0xff] }
 0x763   : > { %v5957_v27 = vpop.f32.mrf.mxu3  ;;  %v1791_v31 = vadd.f32 %v11198_v52, %v12584_v30 }
 0x764   : > { %v3763_v23 = vpack.c.bf16 %v3584_v59, %v3583_v16  ;;  %v5003_v29 = vmax.f32 %v4566_v61, 0.0  ;;  %v5958_v3 = vadd.f32 %v11093_v55, %v5957_v27 }
 0x766   : > { %v5191_v62 = vpack.c.bf16 %v5003_v29, %v5002_v21  ;;  %v6422_v20 = vmax.f32 %v5958_v3, 0.0  ;;  %8544 = vmatmul.msk.bf16.gmra.mxu2 %vm2397_vm1, %v3763_v23  ;;  %v2167_v29 = vmax.f32 %v1789_v37, 0.0  ;;  %v2168_v3 = vmax.f32 %v1791_v31, 0.0 }
 0x767   : > { %v3176_v10 = vpop.f32.mrf.mxu1  ;;  %v7352_v48 = vpop.f32.mrf.mxu0 }
 0x768   : > { %v6619_v32 = vpack.c.bf16 %v6422_v20, %v6421_v47  ;;  %v7353_v51 = vadd.f32 %v11229_v28, %v7352_v48  ;;  %8671 = vmatmul.msk.bf16.gmra.mxu3 %vm2397_vm1, %v5191_v62  ;;  %v3177_v50 = vadd.f32 %v11109_v8, %v3176_v10 }
 0x769   : > { %v4568_v57 = vpop.f32.mrf.mxu2 }
 0x76a   : > { %7843 = vst.msk [vmem:[%s10334_s14 + $0x320] sm:$0xff] %vm7742_vm2, %v7353_v51  ;;  %8417 = vmatmul.msk.bf16.gmra.mxu1 %vm2397_vm1, %v2334_v26  ;;  %8798 = vmatmul.msk.bf16.gmra.mxu0 %vm2397_vm1, %v6619_v32  ;;  %v4569_v0 = vadd.f32 %v10951_v18, %v4568_v57  ;;  %v3585_v49 = vmax.f32 %v3177_v50, 0.0  ;;  %v2336_v50 = vpack.c.bf16 %v2168_v3, %v2167_v29 }
 0x76b   : > { %v5960_v24 = vpop.f32.mrf.mxu3 }
 0x76c   : > { %v5961_v46 = vadd.f32 %v11093_v55, %v5960_v24  ;;  %v5004_v18 = vmax.f32 %v4569_v0, 0.0 }
 0x76e   : > { %v6423_v56 = vmax.f32 %v5961_v46, 0.0 }
 0x76f   : > { %v3178_v22 = vpop.f32.mrf.mxu1  ;;  %v7354_v38 = vpop.f32.mrf.mxu0 }
 0x770   : > { %v3179_v35 = vadd.f32 %v11109_v8, %v3178_v22  ;;  %v7355_v12 = vadd.f32 %v11229_v28, %v7354_v38  ;;  %v12585_v38 = vld [vmem:[#allocation43_spill] sm:$0xff] }
 0x771   : > { %v4570_v2 = vpop.f32.mrf.mxu2  ;;  %v1794_v0 = vadd.f32 %v11198_v52, %v12585_v38 }
 0x772   : > { %v3586_v53 = vmax.f32 %v3179_v35, 0.0  ;;  %7844 = vst.msk [vmem:[%s10334_s14 + $0x328] sm:$0xff] %vm7742_vm2, %v7355_v12  ;;  %v4571_v4 = vadd.f32 %v11256_v40, %v4570_v2  ;;  %v12586_v35 = vld [vmem:[#allocation45_spill] sm:$0xff] }
 0x773   : > { %v5962_v60 = vpop.f32.mrf.mxu3  ;;  %v1796_v12 = vadd.f32 %v11198_v52, %v12586_v35 }
 0x774   : > { %v3764_v17 = vpack.c.bf16 %v3586_v53, %v3585_v49  ;;  %v5005_v45 = vmax.f32 %v4571_v4, 0.0  ;;  %v5963_v25 = vadd.f32 %v11093_v55, %v5962_v60 }
 0x776   : > { %v5192_v43 = vpack.c.bf16 %v5005_v45, %v5004_v18  ;;  %v6424_v33 = vmax.f32 %v5963_v25, 0.0  ;;  %8545 = vmatmul.msk.bf16.gmra.mxu2 %vm2397_vm1, %v3764_v17  ;;  %v2169_v45 = vmax.f32 %v1794_v0, 0.0  ;;  %v2170_v25 = vmax.f32 %v1796_v12, 0.0 }
 0x777   : > { %v3181_v5 = vpop.f32.mrf.mxu1  ;;  %v7357_v11 = vpop.f32.mrf.mxu0 }
 0x778   : > { %v6620_v58 = vpack.c.bf16 %v6424_v33, %v6423_v56  ;;  %v7358_v15 = vadd.f32 %v11229_v28, %v7357_v11  ;;  %8672 = vmatmul.msk.bf16.gmra.mxu3 %vm2397_vm1, %v5192_v43  ;;  %v3182_v7 = vadd.f32 %v11109_v8, %v3181_v5 }
 0x779   : > { %v4573_v54 = vpop.f32.mrf.mxu2 }
 0x77a   : > { %7845 = vst.msk [vmem:[%s10334_s14 + $0x330] sm:$0xff] %vm7742_vm2, %v7358_v15  ;;  %8418 = vmatmul.msk.bf16.gmra.mxu1 %vm2397_vm1, %v2335_v13  ;;  %8799 = vmatmul.msk.bf16.gmra.mxu0 %vm2397_vm1, %v6620_v58  ;;  %v4574_v42 = vadd.f32 %v11256_v40, %v4573_v54  ;;  %v3587_v41 = vmax.f32 %v3182_v7, 0.0  ;;  %v2337_v7 = vpack.c.bf16 %v2170_v25, %v2169_v45 }
 0x77b   : > { %v5965_v44 = vpop.f32.mrf.mxu3 }
 0x77c   : > { %v5966_v27 = vadd.f32 %v11093_v55, %v5965_v44  ;;  %v5006_v62 = vmax.f32 %v4574_v42, 0.0 }
 0x77e   : > { %v6425_v26 = vmax.f32 %v5966_v27, 0.0 }
 0x77f   : > { %v3183_v14 = vpop.f32.mrf.mxu1  ;;  %v7359_v16 = vpop.f32.mrf.mxu0 }
 0x780   : > { %v3184_v59 = vadd.f32 %v11109_v8, %v3183_v14  ;;  %v7360_v61 = vadd.f32 %v11229_v28, %v7359_v16  ;;  %v12587_v16 = vld [vmem:[#allocation46_spill] sm:$0xff] }
 0x781   : > { %v4575_v34 = vpop.f32.mrf.mxu2  ;;  %v1799_v42 = vadd.f32 %v11198_v52, %v12587_v16 }
 0x782   : > { %v3588_v21 = vmax.f32 %v3184_v59, 0.0  ;;  %7846 = vst.msk [vmem:[%s10334_s14 + $0x338] sm:$0xff] %vm7742_vm2, %v7360_v61  ;;  %v4576_v23 = vadd.f32 %v11256_v40, %v4575_v34  ;;  %v12588_v59 = vld [vmem:[#allocation48_spill] sm:$0xff] }
 0x783   : > { %v5967_v47 = vpop.f32.mrf.mxu3  ;;  %v1801_v61 = vadd.f32 %v11198_v52, %v12588_v59 }
 0x784   : > { %v3765_v20 = vpack.c.bf16 %v3588_v21, %v3587_v41  ;;  %v5007_v10 = vmax.f32 %v4576_v23, 0.0  ;;  %v5968_v48 = vadd.f32 %v11093_v55, %v5967_v47 }
 0x786   : > { %v5193_v32 = vpack.c.bf16 %v5007_v10, %v5006_v62  ;;  %v6426_v51 = vmax.f32 %v5968_v48, 0.0  ;;  %8546 = vmatmul.msk.bf16.gmra.mxu2 %vm2397_vm1, %v3765_v20  ;;  %v2171_v10 = vmax.f32 %v1799_v42, 0.0  ;;  %v2172_v48 = vmax.f32 %v1801_v61, 0.0 }
 0x787   : > { %v3186_v57 = vpop.f32.mrf.mxu1  ;;  %v7362_v24 = vpop.f32.mrf.mxu0 }
 0x788   : > { %v6621_v1 = vpack.c.bf16 %v6426_v51, %v6425_v26  ;;  %v7363_v6 = vadd.f32 %v11229_v28, %v7362_v24  ;;  %8673 = vmatmul.msk.bf16.gmra.mxu3 %vm2397_vm1, %v5193_v32  ;;  %v3187_v22 = vadd.f32 %v11109_v8, %v3186_v57 }
 0x789   : > { %v4578_v63 = vpop.f32.mrf.mxu2 }
 0x78a   : > { %7847 = vst.msk [vmem:[%s10334_s14 + $0x340] sm:$0xff] %vm7742_vm2, %v7363_v6  ;;  %8419 = vmatmul.msk.bf16.gmra.mxu1 %vm2397_vm1, %v2336_v50  ;;  %8800 = vmatmul.msk.bf16.gmra.mxu0 %vm2397_vm1, %v6621_v1  ;;  %v4579_v46 = vadd.f32 %v11256_v40, %v4578_v63  ;;  %v3589_v19 = vmax.f32 %v3187_v22, 0.0  ;;  %v2338_v22 = vpack.c.bf16 %v2172_v48, %v2171_v10 }
 0x78b   : > { %v5970_v36 = vpop.f32.mrf.mxu3 }
 0x78c   : > { %v5971_v60 = vadd.f32 %v11093_v55, %v5970_v36  ;;  %v5008_v43 = vmax.f32 %v4579_v46, 0.0 }
 0x78e   : > { %v6427_v13 = vmax.f32 %v5971_v60, 0.0 }
 0x78f   : > { %v3188_v2 = vpop.f32.mrf.mxu1  ;;  %v7364_v49 = vpop.f32.mrf.mxu0 }
 0x790   : > { %v3189_v53 = vadd.f32 %v11109_v8, %v3188_v2  ;;  %v7365_v4 = vadd.f32 %v11229_v28, %v7364_v49  ;;  %v12589_v49 = vld [vmem:[#allocation50_spill] sm:$0xff] }
 0x791   : > { %v4580_v39 = vpop.f32.mrf.mxu2  ;;  %v1804_v46 = vadd.f32 %v11198_v52, %v12589_v49 }
 0x792   : > { %v3590_v18 = vmax.f32 %v3189_v53, 0.0  ;;  %7848 = vst.msk [vmem:[%s10334_s14 + $0x348] sm:$0xff] %vm7742_vm2, %v7365_v4  ;;  %v4581_v17 = vadd.f32 %v11256_v40, %v4580_v39  ;;  %v12590_v53 = vld [vmem:[#allocation51_spill] sm:$0xff] }
 0x793   : > { %v5972_v56 = vpop.f32.mrf.mxu3  ;;  %v1806_v4 = vadd.f32 %v11198_v52, %v12590_v53 }
 0x794   : > { %v3766_v33 = vpack.c.bf16 %v3590_v18, %v3589_v19  ;;  %v5009_v5 = vmax.f32 %v4581_v17, 0.0  ;;  %v5973_v11 = vadd.f32 %v11093_v55, %v5972_v56 }
 0x796   : > { %v5194_v58 = vpack.c.bf16 %v5009_v5, %v5008_v43  ;;  %v6428_v15 = vmax.f32 %v5973_v11, 0.0  ;;  %8547 = vmatmul.msk.bf16.gmra.mxu2 %vm2397_vm1, %v3766_v33  ;;  %v2173_v5 = vmax.f32 %v1804_v46, 0.0  ;;  %v2174_v11 = vmax.f32 %v1806_v4, 0.0 }
 0x797   : > { %v3191_v54 = vpop.f32.mrf.mxu1  ;;  %v7367_v44 = vpop.f32.mrf.mxu0 }
 0x798   : > { %v6622_v9 = vpack.c.bf16 %v6428_v15, %v6427_v13  ;;  %v7368_v37 = vadd.f32 %v11229_v28, %v7367_v44  ;;  %8674 = vmatmul.msk.bf16.gmra.mxu3 %vm2397_vm1, %v5194_v58  ;;  %v3192_v14 = vadd.f32 %v11109_v8, %v3191_v54 }
 0x799   : > { %v4583_v30 = vpop.f32.mrf.mxu2 }
 0x79a   : > { %7849 = vst.msk [vmem:[%s10334_s14 + $0x350] sm:$0xff] %vm7742_vm2, %v7368_v37  ;;  %8420 = vmatmul.msk.bf16.gmra.mxu1 %vm2397_vm1, %v2337_v7  ;;  %8801 = vmatmul.msk.bf16.gmra.mxu0 %vm2397_vm1, %v6622_v9  ;;  %v4584_v27 = vadd.f32 %v11256_v40, %v4583_v30  ;;  %v3591_v3 = vmax.f32 %v3192_v14, 0.0  ;;  %v2339_v14 = vpack.c.bf16 %v2174_v11, %v2173_v5 }
 0x79b   : > { %v5975_v31 = vpop.f32.mrf.mxu3 }
 0x79c   : > { %v5976_v47 = vadd.f32 %v11093_v55, %v5975_v31  ;;  %v5010_v32 = vmax.f32 %v4584_v27, 0.0 }
 0x79e   : > { %v6429_v50 = vmax.f32 %v5976_v47, 0.0 }
 0x79f   : > { %v3193_v34 = vpop.f32.mrf.mxu1  ;;  %v7369_v41 = vpop.f32.mrf.mxu0 }
 0x7a0   : > { %v3194_v21 = vadd.f32 %v11109_v8, %v3193_v34  ;;  %v7370_v23 = vadd.f32 %v11229_v28, %v7369_v41  ;;  %v12591_v41 = vld [vmem:[#allocation53_spill] sm:$0xff] }
 0x7a1   : > { %v4585_v29 = vpop.f32.mrf.mxu2  ;;  %v1809_v27 = vadd.f32 %v11198_v52, %v12591_v41 }
 0x7a2   : > { %v3592_v62 = vmax.f32 %v3194_v21, 0.0  ;;  %7850 = vst.msk [vmem:[%s10334_s14 + $0x358] sm:$0xff] %vm7742_vm2, %v7370_v23  ;;  %v4586_v20 = vadd.f32 %v11256_v40, %v4585_v29  ;;  %v12592_v21 = vld [vmem:[#allocation55_spill] sm:$0xff] }
 0x7a3   : > { %v5977_v26 = vpop.f32.mrf.mxu3  ;;  %v1811_v23 = vadd.f32 %v11198_v52, %v12592_v21 }
 0x7a4   : > { %v3767_v51 = vpack.c.bf16 %v3592_v62, %v3591_v3  ;;  %v5011_v57 = vmax.f32 %v4586_v20, 0.0  ;;  %v5978_v24 = vadd.f32 %v11093_v55, %v5977_v26 }
 0x7a6   : > { %v5195_v1 = vpack.c.bf16 %v5011_v57, %v5010_v32  ;;  %v6430_v6 = vmax.f32 %v5978_v24, 0.0  ;;  %8548 = vmatmul.msk.bf16.gmra.mxu2 %vm2397_vm1, %v3767_v51  ;;  %v2175_v57 = vmax.f32 %v1809_v27, 0.0  ;;  %v2176_v24 = vmax.f32 %v1811_v23, 0.0 }
 0x7a7   : > { %v3196_v63 = vpop.f32.mrf.mxu1  ;;  %v7372_v36 = vpop.f32.mrf.mxu0 }
 0x7a8   : > { %v6623_v38 = vpack.c.bf16 %v6430_v6, %v6429_v50  ;;  %v7373_v0 = vadd.f32 %v11229_v28, %v7372_v36  ;;  %8675 = vmatmul.msk.bf16.gmra.mxu3 %vm2397_vm1, %v5195_v1  ;;  %v3197_v2 = vadd.f32 %v11109_v8, %v3196_v63 }
 0x7a9   : > { %v4588_v35 = vpop.f32.mrf.mxu2 }
 0x7aa   : > { %7851 = vst.msk [vmem:[%s10334_s14 + $0x360] sm:$0xff] %vm7742_vm2, %v7373_v0  ;;  %8421 = vmatmul.msk.bf16.gmra.mxu1 %vm2397_vm1, %v2338_v22  ;;  %8802 = vmatmul.msk.bf16.gmra.mxu0 %vm2397_vm1, %v6623_v38  ;;  %v4589_v60 = vadd.f32 %v11256_v40, %v4588_v35  ;;  %v3593_v25 = vmax.f32 %v3197_v2, 0.0  ;;  %v2340_v2 = vpack.c.bf16 %v2176_v24, %v2175_v57  ;;  %v11396_v24 = vld [vmem:[%s9118_s26] ss:$0 sm:$0xff] }
 0x7ab   : > { %v5980_v12 = vpop.f32.mrf.mxu3 }
 0x7ac   : > { %v5981_v56 = vadd.f32 %v11093_v55, %v5980_v12  ;;  %v5012_v58 = vmax.f32 %v4589_v60, 0.0 }
 0x7ae   : > { %v6431_v7 = vmax.f32 %v5981_v56, 0.0 }
 0x7af   : > { %v3198_v39 = vpop.f32.mrf.mxu1  ;;  %v7374_v19 = vpop.f32.mrf.mxu0 }
 0x7b0   : > { %v3199_v18 = vadd.f32 %v11109_v8, %v3198_v39  ;;  %v7375_v17 = vadd.f32 %v11229_v28, %v7374_v19  ;;  %v12593_v19 = vld [vmem:[#allocation57_spill] sm:$0xff] }
 0x7b1   : > { %v4590_v45 = vpop.f32.mrf.mxu2  ;;  %v1814_v60 = vadd.f32 %v11198_v52, %v12593_v19 }
 0x7b2   : > { %v3594_v43 = vmax.f32 %v3199_v18, 0.0  ;;  %7852 = vst.msk [vmem:[%s10334_s14 + $0x368] sm:$0xff] %vm7742_vm2, %v7375_v17  ;;  %v4591_v33 = vadd.f32 %v11256_v40, %v4590_v45  ;;  %v12594_v18 = vld [vmem:[#allocation60_spill] sm:$0xff] }
 0x7b3   : > { %v5982_v13 = vpop.f32.mrf.mxu3  ;;  %v1816_v17 = vadd.f32 %v11198_v52, %v12594_v18 }
 0x7b4   : > { %v3768_v15 = vpack.c.bf16 %v3594_v43, %v3593_v25  ;;  %v5013_v54 = vmax.f32 %v4591_v33, 0.0  ;;  %v5983_v44 = vadd.f32 %v11093_v55, %v5982_v13 }
 0x7b6   : > { %v5196_v9 = vpack.c.bf16 %v5013_v54, %v5012_v58  ;;  %v6432_v37 = vmax.f32 %v5983_v44, 0.0  ;;  %8549 = vmatmul.msk.bf16.gmra.mxu2 %vm2397_vm1, %v3768_v15  ;;  %v2177_v54 = vmax.f32 %v1814_v60, 0.0  ;;  %v2178_v44 = vmax.f32 %v1816_v17, 0.0  ;;  %v11411_v17 = vld [vmem:[%s9108_s23] ss:$0 sm:$0xff] }
 0x7b7   : > { %v3201_v30 = vpop.f32.mrf.mxu1  ;;  %v7377_v31 = vpop.f32.mrf.mxu0 }
 0x7b8   : > { %v6624_v16 = vpack.c.bf16 %v6432_v37, %v6431_v7  ;;  %v7378_v42 = vadd.f32 %v11229_v28, %v7377_v31  ;;  %8676 = vmatmul.msk.bf16.gmra.mxu3 %vm2397_vm1, %v5196_v9  ;;  %v3202_v34 = vadd.f32 %v11109_v8, %v3201_v30 }
 0x7b9   : > { %v4593_v59 = vpop.f32.mrf.mxu2 }
 0x7ba   : > { %7853 = vst.msk [vmem:[%s10334_s14 + $0x370] sm:$0xff] %vm7742_vm2, %v7378_v42  ;;  %8422 = vmatmul.msk.bf16.gmra.mxu1 %vm2397_vm1, %v2339_v14  ;;  %8803 = vmatmul.msk.bf16.gmra.mxu0 %vm2397_vm1, %v6624_v16  ;;  %v4594_v47 = vadd.f32 %v11256_v40, %v4593_v59  ;;  %v3595_v48 = vmax.f32 %v3202_v34, 0.0  ;;  %v2341_v34 = vpack.c.bf16 %v2178_v44, %v2177_v54 }
 0x7bb   : > { %v5985_v61 = vpop.f32.mrf.mxu3 }
 0x7bc   : > { %v5986_v26 = vadd.f32 %v11093_v55, %v5985_v61  ;;  %v5014_v1 = vmax.f32 %v4594_v47, 0.0  ;;  %v12596_v47 = vld [vmem:[#allocation64_spill] sm:$0xff] }
 0x7be   : > { %v6433_v22 = vmax.f32 %v5986_v26, 0.0 }
 0x7bf   : > { %v3203_v29 = vpop.f32.mrf.mxu1  ;;  %v7379_v3 = vpop.f32.mrf.mxu0 }
 0x7c0   : > { %v3204_v62 = vadd.f32 %v11109_v8, %v3203_v29  ;;  %v7380_v20 = vadd.f32 %v11229_v28, %v7379_v3  ;;  %v12595_v29 = vld [vmem:[#allocation62_spill] sm:$0xff] }
 0x7c1   : > { %v4595_v10 = vpop.f32.mrf.mxu2  ;;  %v1819_v3 = vadd.f32 %v11198_v52, %v12595_v29 }
 0x7c2   : > { %v3596_v32 = vmax.f32 %v3204_v62, 0.0  ;;  %7854 = vst.msk [vmem:[%s10334_s14 + $0x378] sm:$0xff] %vm7742_vm2, %v7380_v20  ;;  %v4596_v51 = vadd.f32 %v11256_v40, %v4595_v10  ;;  %v1821_v62 = vadd.f32 %v11198_v52, %v12596_v47 }
 0x7c3   : > { %v5987_v50 = vpop.f32.mrf.mxu3 }
 0x7c4   : > { %v3769_v6 = vpack.c.bf16 %v3596_v32, %v3595_v48  ;;  %v5015_v63 = vmax.f32 %v4596_v51, 0.0  ;;  %v5988_v36 = vadd.f32 %v11093_v55, %v5987_v50 }
 0x7c6   : > { %v5197_v38 = vpack.c.bf16 %v5015_v63, %v5014_v1  ;;  %v6434_v0 = vmax.f32 %v5988_v36, 0.0  ;;  %8550 = vmatmul.msk.bf16.gmra.mxu2 %vm2397_vm1, %v3769_v6  ;;  %v2179_v63 = vmax.f32 %v1819_v3, 0.0  ;;  %v2180_v36 = vmax.f32 %v1821_v62, 0.0 }
 0x7c7   : > { %v3206_v35 = vpop.f32.mrf.mxu1  ;;  %v7382_v12 = vpop.f32.mrf.mxu0 }
 0x7c8   : > { %v6625_v49 = vpack.c.bf16 %v6434_v0, %v6433_v22  ;;  %v7383_v46 = vadd.f32 %v11229_v28, %v7382_v12  ;;  %8677 = vmatmul.msk.bf16.gmra.mxu3 %vm2397_vm1, %v5197_v38  ;;  %v3207_v39 = vadd.f32 %v11109_v8, %v3206_v35 }
 0x7c9   : > { %v4598_v53 = vpop.f32.mrf.mxu2 }
 0x7ca   : > { %7855 = vst.msk [vmem:[%s10334_s14 + $0x380] sm:$0xff] %vm7742_vm2, %v7383_v46  ;;  %8423 = vmatmul.msk.bf16.gmra.mxu1 %vm2397_vm1, %v2340_v2  ;;  %8804 = vmatmul.msk.bf16.gmra.mxu0 %vm2397_vm1, %v6625_v49  ;;  %v4599_v56 = vadd.f32 %v11256_v40, %v4598_v53  ;;  %v3597_v11 = vmax.f32 %v3207_v39, 0.0 }
 0x7cb   : > { %v5990_v4 = vpop.f32.mrf.mxu3 }
 0x7cc   : > { %v5991_v13 = vadd.f32 %v11093_v55, %v5990_v4  ;;  %v5016_v9 = vmax.f32 %v4599_v56, 0.0  ;;  %v2342_v4 = vpack.c.bf16 %v2180_v36, %v2179_v63 }
 0x7ce   : > { %v6435_v14 = vmax.f32 %v5991_v13, 0.0 }
 0x7cf   : > { %v3208_v45 = vpop.f32.mrf.mxu1  ;;  %v7384_v25 = vpop.f32.mrf.mxu0 }
 0x7d0   : > { %v3209_v43 = vadd.f32 %v11109_v8, %v3208_v45  ;;  %v7385_v33 = vadd.f32 %v11229_v28, %v7384_v25  ;;  %v12597_v25 = vld [vmem:[#allocation66_spill] sm:$0xff] }
 0x7d1   : > { %v4600_v5 = vpop.f32.mrf.mxu2  ;;  %v1824_v56 = vadd.f32 %v11198_v52, %v12597_v25 }
 0x7d2   : > { %v3598_v58 = vmax.f32 %v3209_v43, 0.0  ;;  %7856 = vst.msk [vmem:[%s10334_s14 + $0x388] sm:$0xff] %vm7742_vm2, %v7385_v33  ;;  %v4601_v15 = vadd.f32 %v11256_v40, %v4600_v5  ;;  %v12598_v43 = vld [vmem:[#allocation68_spill] sm:$0xff] }
 0x7d3   : > { %v5992_v7 = vpop.f32.mrf.mxu3  ;;  %v1826_v33 = vadd.f32 %v11198_v52, %v12598_v43 }
 0x7d4   : > { %v3770_v37 = vpack.c.bf16 %v3598_v58, %v3597_v11  ;;  %v5017_v30 = vmax.f32 %v4601_v15, 0.0  ;;  %v5993_v31 = vadd.f32 %v11093_v55, %v5992_v7 }
 0x7d6   : > { %v5198_v16 = vpack.c.bf16 %v5017_v30, %v5016_v9  ;;  %v6436_v42 = vmax.f32 %v5993_v31, 0.0  ;;  %8551 = vmatmul.msk.bf16.gmra.mxu2 %vm2397_vm1, %v3770_v37  ;;  %v2181_v30 = vmax.f32 %v1824_v56, 0.0  ;;  %v2182_v31 = vmax.f32 %v1826_v33, 0.0 }
 0x7d7   : > { %v3211_v59 = vpop.f32.mrf.mxu1  ;;  %v7387_v61 = vpop.f32.mrf.mxu0 }
 0x7d8   : > { %v6626_v41 = vpack.c.bf16 %v6436_v42, %v6435_v14  ;;  %v7388_v27 = vadd.f32 %v11229_v28, %v7387_v61  ;;  %8678 = vmatmul.msk.bf16.gmra.mxu3 %vm2397_vm1, %v5198_v16  ;;  %v3212_v23 = vadd.f32 %v11109_v8, %v3211_v59 }
 0x7d9   : > { %v4603_v21 = vpop.f32.mrf.mxu2 }
 0x7da   : > { %7857 = vst.msk [vmem:[%s10334_s14 + $0x390] sm:$0xff] %vm7742_vm2, %v7388_v27  ;;  %8424 = vmatmul.msk.bf16.gmra.mxu1 %vm2397_vm1, %v2341_v34  ;;  %8805 = vmatmul.msk.bf16.gmra.mxu0 %vm2397_vm1, %v6626_v41  ;;  %v4604_v48 = vadd.f32 %v11256_v40, %v4603_v21  ;;  %v3599_v57 = vmax.f32 %v3212_v23, 0.0  ;;  %v2343_v23 = vpack.c.bf16 %v2182_v31, %v2181_v30 }
 0x7db   : > { %v5995_v55 = vpop.f32.mrf.mxu3 }
 0x7dc   : > { %v5996_v50 = vadd.f32 %v11396_v24, %v5995_v55  ;;  %v5018_v38 = vmax.f32 %v4604_v48, 0.0 }
 0x7de   : > { %v6437_v12 = vmax.f32 %v5996_v50, 0.0 }
 0x7df   : > { %v3213_v20 = vpop.f32.mrf.mxu1  ;;  %v7389_v10 = vpop.f32.mrf.mxu0 }
 0x7e0   : > { %v3214_v26 = vadd.f32 %v11109_v8, %v3213_v20  ;;  %v7390_v32 = vadd.f32 %v11229_v28, %v7389_v10  ;;  %v12599_v10 = vld [vmem:[#allocation70_spill] sm:$0xff] }
 0x7e1   : > { %v4605_v51 = vpop.f32.mrf.mxu2  ;;  %v1829_v48 = vadd.f32 %v11198_v52, %v12599_v10 }
 0x7e2   : > { %v3600_v1 = vmax.f32 %v3214_v26, 0.0  ;;  %7858 = vst.msk [vmem:[%s10334_s14 + $0x398] sm:$0xff] %vm7742_vm2, %v7390_v32  ;;  %v4606_v6 = vadd.f32 %v11256_v40, %v4605_v51  ;;  %v12600_v26 = vld [vmem:[#allocation72_spill] sm:$0xff] }
 0x7e3   : > { %v5997_v22 = vpop.f32.mrf.mxu3  ;;  %v1831_v32 = vadd.f32 %v11198_v52, %v12600_v26 }
 0x7e4   : > { %v3771_v0 = vpack.c.bf16 %v3600_v1, %v3599_v57  ;;  %v5019_v8 = vmax.f32 %v4606_v6, 0.0  ;;  %v5998_v35 = vadd.f32 %v11396_v24, %v5997_v22 }
 0x7e6   : > { %v5199_v2 = vpack.c.bf16 %v5019_v8, %v5018_v38  ;;  %v6438_v49 = vmax.f32 %v5998_v35, 0.0  ;;  %8552 = vmatmul.msk.bf16.gmra.mxu2 %vm2397_vm1, %v3771_v0  ;;  %v2183_v8 = vmax.f32 %v1829_v48, 0.0  ;;  %v2184_v35 = vmax.f32 %v1831_v32, 0.0 }
 0x7e7   : > { %v3216_v46 = vpop.f32.mrf.mxu1  ;;  %v7392_v53 = vpop.f32.mrf.mxu0 }
 0x7e8   : > { %v6627_v39 = vpack.c.bf16 %v6438_v49, %v6437_v12  ;;  %v7393_v19 = vadd.f32 %v11229_v28, %v7392_v53  ;;  %8679 = vmatmul.msk.bf16.gmra.mxu3 %vm2397_vm1, %v5199_v2  ;;  %v3217_v45 = vadd.f32 %v11411_v17, %v3216_v46 }
 0x7e9   : > { %v4608_v60 = vpop.f32.mrf.mxu2 }
 0x7ea   : > { %7859 = vst.msk [vmem:[%s10334_s14 + $0x3a0] sm:$0xff] %vm7742_vm2, %v7393_v19  ;;  %8425 = vmatmul.msk.bf16.gmra.mxu1 %vm2397_vm1, %v2342_v4  ;;  %8806 = vmatmul.msk.bf16.gmra.mxu0 %vm2397_vm1, %v6627_v39  ;;  %v4609_v13 = vadd.f32 %v11256_v40, %v4608_v60  ;;  %v3601_v44 = vmax.f32 %v3217_v45, 0.0 }
 0x7eb   : > { %v6000_v18 = vpop.f32.mrf.mxu3 }
 0x7ec   : > { %v6001_v7 = vadd.f32 %v11396_v24, %v6000_v18  ;;  %v5020_v16 = vmax.f32 %v4609_v13, 0.0  ;;  %v2344_v18 = vpack.c.bf16 %v2184_v35, %v2183_v8 }
 0x7ee   : > { %v6439_v34 = vmax.f32 %v6001_v7, 0.0 }
 0x7ef   : > { %v3218_v5 = vpop.f32.mrf.mxu1  ;;  %v7394_v11 = vpop.f32.mrf.mxu0 }
 0x7f0   : > { %v3219_v58 = vadd.f32 %v11411_v17, %v3218_v5  ;;  %v7395_v15 = vadd.f32 %v11229_v28, %v7394_v11 }
 0x7f1   : > { %v4610_v54 = vpop.f32.mrf.mxu2 }
 0x7f2   : > { %v3602_v9 = vmax.f32 %v3219_v58, 0.0  ;;  %7860 = vst.msk [vmem:[%s10334_s14 + $0x3a8] sm:$0xff] %vm7742_vm2, %v7395_v15  ;;  %v4611_v37 = vadd.f32 %v11256_v40, %v4610_v54 }
 0x7f3   : > { %v6002_v14 = vpop.f32.mrf.mxu3 }
 0x7f4   : > { %v3772_v42 = vpack.c.bf16 %v3602_v9, %v3601_v44  ;;  %v5021_v59 = vmax.f32 %v4611_v37, 0.0  ;;  %v6003_v61 = vadd.f32 %v11396_v24, %v6002_v14 }
 0x7f6   : > { %v5200_v41 = vpack.c.bf16 %v5021_v59, %v5020_v16  ;;  %v6440_v27 = vmax.f32 %v6003_v61, 0.0  ;;  %8553 = vmatmul.msk.bf16.gmra.mxu2 %vm2397_vm1, %v3772_v42 }
 0x7f7   : > { %v3221_v21 = vpop.f32.mrf.mxu1  ;;  %v7397_v55 = vpop.f32.mrf.mxu0 }
 0x7f8   : > { %v6628_v29 = vpack.c.bf16 %v6440_v27, %v6439_v34  ;;  %v7398_v3 = vadd.f32 %v11229_v28, %v7397_v55  ;;  %8680 = vmatmul.msk.bf16.gmra.mxu3 %vm2397_vm1, %v5200_v41  ;;  %v3222_v20 = vadd.f32 %v11411_v17, %v3221_v21 }
 0x7f9   : > { %v4613_v47 = vpop.f32.mrf.mxu2 }
 0x7fa   : > { %7861 = vst.msk [vmem:[%s10334_s14 + $0x3b0] sm:$0xff] %vm7742_vm2, %v7398_v3  ;;  %8426 = vmatmul.msk.bf16.gmra.mxu1 %vm2397_vm1, %v2343_v23  ;;  %8807 = vmatmul.msk.bf16.gmra.mxu0 %vm2397_vm1, %v6628_v29  ;;  %v4614_v50 = vadd.f32 %v11256_v40, %v4613_v47  ;;  %v3603_v36 = vmax.f32 %v3222_v20, 0.0  ;;  %v12601_v29 = vld [vmem:[#allocation10_spill] sm:$0xff] }
 0x7fb   : > { %v6005_v62 = vpop.f32.mrf.mxu3 }
 0x7fc   : > { %v6006_v22 = vadd.f32 %v11396_v24, %v6005_v62  ;;  %v5022_v12 = vmax.f32 %v4614_v50, 0.0 }
 0x7fe   : > { %v6441_v53 = vmax.f32 %v6006_v22, 0.0 }
 0x7ff   : > { %v3223_v51 = vpop.f32.mrf.mxu1  ;;  %v7399_v57 = vpop.f32.mrf.mxu0 }
 0x800   : > { %v3224_v1 = vadd.f32 %v11411_v17, %v3223_v51  ;;  %v7400_v6 = vadd.f32 %v11229_v28, %v7399_v57 }
 0x801   : > { %v4615_v63 = vpop.f32.mrf.mxu2 }
 0x802   : > { %v3604_v38 = vmax.f32 %v3224_v1, 0.0  ;;  %7862 = vst.msk [vmem:[%s10334_s14 + $0x3b8] sm:$0xff] %vm7742_vm2, %v7400_v6  ;;  %v4616_v0 = vadd.f32 %v11256_v40, %v4615_v63 }
 0x803   : > { %v6007_v52 = vpop.f32.mrf.mxu3 }
 0x804   : > { %v3773_v2 = vpack.c.bf16 %v3604_v38, %v3603_v36  ;;  %v5023_v49 = vmax.f32 %v4616_v0, 0.0  ;;  %v6008_v46 = vadd.f32 %v11396_v24, %v6007_v52 }
 0x806   : > { %v5201_v4 = vpack.c.bf16 %v5023_v49, %v5022_v12  ;;  %v6442_v39 = vmax.f32 %v6008_v46, 0.0  ;;  %8554 = vmatmul.msk.bf16.gmra.mxu2 %vm2397_vm1, %v3773_v2 }
 0x807   : > { %v3226_v19 = vpop.f32.mrf.mxu1  ;;  %v7402_v60 = vpop.f32.mrf.mxu0 }
 0x808   : > { %v6629_v45 = vpack.c.bf16 %v6442_v39, %v6441_v53  ;;  %v7403_v25 = vadd.f32 %v11229_v28, %v7402_v60  ;;  %8681 = vmatmul.msk.bf16.gmra.mxu3 %vm2397_vm1, %v5201_v4  ;;  %v3227_v33 = vadd.f32 %v11411_v17, %v3226_v19  ;;  %v12602_v53 = vld [vmem:[#allocation12_spill] sm:$0xff] }
 0x809   : > { %v4618_v56 = vpop.f32.mrf.mxu2 }
 0x80a   : > { %7863 = vst.msk [vmem:[%s10334_s14 + $0x3c0] sm:$0xff] %vm7742_vm2, %v7403_v25  ;;  %8427 = vmatmul.msk.bf16.gmra.mxu1 %vm2397_vm1, %v2344_v18  ;;  %8808 = vmatmul.msk.bf16.gmra.mxu0 %vm2397_vm1, %v6629_v45  ;;  %v4619_v13 = vadd.f32 %v11256_v40, %v4618_v56  ;;  %v3605_v44 = vmax.f32 %v3227_v33, 0.0 }
 0x80b   : > { %v6010_v43 = vpop.f32.mrf.mxu3 }
 0x80c   : > { %v6011_v7 = vadd.f32 %v11396_v24, %v6010_v43  ;;  %v5024_v31 = vmax.f32 %v4619_v13, 0.0 }
 0x80e   : > { %v6443_v59 = vmax.f32 %v6011_v7, 0.0 }
 0x80f   : > { %v3228_v5 = vpop.f32.mrf.mxu1  ;;  %v7404_v11 = vpop.f32.mrf.mxu0 }
 0x810   : > { %v3229_v58 = vadd.f32 %v11411_v17, %v3228_v5  ;;  %v7405_v15 = vadd.f32 %v11229_v28, %v7404_v11 }
 0x811   : > { %v4620_v54 = vpop.f32.mrf.mxu2 }
 0x812   : > { %v3606_v9 = vmax.f32 %v3229_v58, 0.0  ;;  %7864 = vst.msk [vmem:[%s10334_s14 + $0x3c8] sm:$0xff] %vm7742_vm2, %v7405_v15  ;;  %v4621_v37 = vadd.f32 %v11256_v40, %v4620_v54 }
 0x813   : > { %v6012_v30 = vpop.f32.mrf.mxu3 }
 0x814   : > { %v3774_v14 = vpack.c.bf16 %v3606_v9, %v3605_v44  ;;  %v5025_v16 = vmax.f32 %v4621_v37, 0.0  ;;  %v6013_v42 = vadd.f32 %v11396_v24, %v6012_v30 }
 0x816   : > { %v5202_v61 = vpack.c.bf16 %v5025_v16, %v5024_v31  ;;  %v6444_v34 = vmax.f32 %v6013_v42, 0.0  ;;  %8555 = vmatmul.msk.bf16.gmra.mxu2 %vm2397_vm1, %v3774_v14 }
 0x817   : > { %v3231_v41 = vpop.f32.mrf.mxu1  ;;  %v7407_v27 = vpop.f32.mrf.mxu0 }
 0x818   : > { %v6630_v21 = vpack.c.bf16 %v6444_v34, %v6443_v59  ;;  %v7408_v55 = vadd.f32 %v11229_v28, %v7407_v27  ;;  %8682 = vmatmul.msk.bf16.gmra.mxu3 %vm2397_vm1, %v5202_v61  ;;  %v3232_v47 = vadd.f32 %v11411_v17, %v3231_v41  ;;  %v12603_v59 = vld [vmem:[#allocation14_spill] sm:$0xff] }
 0x819   : > { %v4623_v23 = vpop.f32.mrf.mxu2 }
 0x81a   : > { %7865 = vst.msk [vmem:[%s10334_s14 + $0x3d0] sm:$0xff] %vm7742_vm2, %v7408_v55  ;;  %8428 = vmatmul.msk.bf16.gmra.mxu1 %vm2397_vm1, %v12601_v29  ;;  %8809 = vmatmul.msk.bf16.gmra.mxu0 %vm2397_vm1, %v6630_v21  ;;  %v4624_v10 = vadd.f32 %v11256_v40, %v4623_v23  ;;  %v3607_v51 = vmax.f32 %v3232_v47, 0.0 }
 0x81b   : > { %v6015_v3 = vpop.f32.mrf.mxu3 }
 0x81c   : > { %v6016_v57 = vadd.f32 %v11396_v24, %v6015_v3  ;;  %v5026_v63 = vmax.f32 %v4624_v10, 0.0 }
 0x81e   : > { %v6445_v0 = vmax.f32 %v6016_v57, 0.0 }
 0x81f   : > { %v3233_v62 = vpop.f32.mrf.mxu1  ;;  %v7409_v20 = vpop.f32.mrf.mxu0 }
 0x820   : > { %v3234_v48 = vadd.f32 %v11411_v17, %v3233_v62  ;;  %v7410_v26 = vadd.f32 %v11229_v28, %v7409_v20 }
 0x821   : > { %v4625_v32 = vpop.f32.mrf.mxu2 }
 0x822   : > { %v3608_v50 = vmax.f32 %v3234_v48, 0.0  ;;  %7866 = vst.msk [vmem:[%s10334_s14 + $0x3d8] sm:$0xff] %vm7742_vm2, %v7410_v26  ;;  %v4626_v1 = vadd.f32 %v11256_v40, %v4625_v32 }
 0x823   : > { %v6017_v6 = vpop.f32.mrf.mxu3 }
 0x824   : > { %v3775_v36 = vpack.c.bf16 %v3608_v50, %v3607_v51  ;;  %v5027_v22 = vmax.f32 %v4626_v1, 0.0  ;;  %v6018_v38 = vadd.f32 %v11396_v24, %v6017_v6 }
 0x826   : > { %v5203_v8 = vpack.c.bf16 %v5027_v22, %v5026_v63  ;;  %v6446_v35 = vmax.f32 %v6018_v38, 0.0  ;;  %8556 = vmatmul.msk.bf16.gmra.mxu2 %vm2397_vm1, %v3775_v36 }
 0x827   : > { %v3236_v52 = vpop.f32.mrf.mxu1  ;;  %v7412_v12 = vpop.f32.mrf.mxu0 }
 0x828   : > { %v6631_v2 = vpack.c.bf16 %v6446_v35, %v6445_v0  ;;  %v7413_v49 = vadd.f32 %v11229_v28, %v7412_v12  ;;  %8683 = vmatmul.msk.bf16.gmra.mxu3 %vm2397_vm1, %v5203_v8  ;;  %v3237_v39 = vadd.f32 %v11411_v17, %v3236_v52  ;;  %v12604_v0 = vld [vmem:[#allocation16_spill] sm:$0xff] }
 0x829   : > { %v4628_v46 = vpop.f32.mrf.mxu2 }
 0x82a   : > { %7867 = vst.msk [vmem:[%s10334_s14 + $0x3e0] sm:$0xff] %vm7742_vm2, %v7413_v49  ;;  %8429 = vmatmul.msk.bf16.gmra.mxu1 %vm2397_vm1, %v12602_v53  ;;  %8810 = vmatmul.msk.bf16.gmra.mxu0 %vm2397_vm1, %v6631_v2  ;;  %v4629_v18 = vadd.f32 %v11256_v40, %v4628_v46  ;;  %v3609_v43 = vmax.f32 %v3237_v39, 0.0  ;;  %v11527_v49 = vld [vmem:[%s12473_s10] ss:$0 sm:$0xff] }
 0x82b   : > { %v6020_v4 = vpop.f32.mrf.mxu3 }
 0x82c   : > { %v6021_v33 = vadd.f32 %v11396_v24, %v6020_v4  ;;  %v5028_v58 = vmax.f32 %v4629_v18, 0.0 }
 0x82e   : > { %v6447_v7 = vmax.f32 %v6021_v33, 0.0 }
 0x82f   : > { %v3238_v19 = vpop.f32.mrf.mxu1  ;;  %v7414_v60 = vpop.f32.mrf.mxu0 }
 0x830   : > { %v3239_v45 = vadd.f32 %v11411_v17, %v3238_v19  ;;  %v7415_v25 = vadd.f32 %v11229_v28, %v7414_v60 }
 0x831   : > { %v4630_v56 = vpop.f32.mrf.mxu2 }
 0x832   : > { %v3610_v5 = vmax.f32 %v3239_v45, 0.0  ;;  %7868 = vst.msk [vmem:[%s10334_s14 + $0x3e8] sm:$0xff] %vm7742_vm2, %v7415_v25  ;;  %v4631_v11 = vadd.f32 %v11256_v40, %v4630_v56 }
 0x833   : > { %v6022_v13 = vpop.f32.mrf.mxu3 }
 0x834   : > { %v3776_v15 = vpack.c.bf16 %v3610_v5, %v3609_v43  ;;  %v5029_v54 = vmax.f32 %v4631_v11, 0.0  ;;  %v6023_v44 = vadd.f32 %v11396_v24, %v6022_v13 }
 0x836   : > { %v5204_v9 = vpack.c.bf16 %v5029_v54, %v5028_v58  ;;  %v6448_v37 = vmax.f32 %v6023_v44, 0.0  ;;  %8557 = vmatmul.msk.bf16.gmra.mxu2 %vm2397_vm1, %v3776_v15 }
 0x837   : > { %v3241_v30 = vpop.f32.mrf.mxu1  ;;  %v7417_v31 = vpop.f32.mrf.mxu0 }
 0x838   : > { %v6632_v14 = vpack.c.bf16 %v6448_v37, %v6447_v7  ;;  %v7418_v16 = vadd.f32 %v11229_v28, %v7417_v31  ;;  %8684 = vmatmul.msk.bf16.gmra.mxu3 %vm2397_vm1, %v5204_v9  ;;  %v3242_v34 = vadd.f32 %v11411_v17, %v3241_v30  ;;  %v12605_v7 = vld [vmem:[#allocation18_spill] sm:$0xff] }
 0x839   : > { %v4633_v42 = vpop.f32.mrf.mxu2 }
 0x83a   : > { %7869 = vst.msk [vmem:[%s10334_s14 + $0x3f0] sm:$0xff] %vm7742_vm2, %v7418_v16  ;;  %8430 = vmatmul.msk.bf16.gmra.mxu1 %vm2397_vm1, %v12603_v59  ;;  %8811 = vmatmul.msk.bf16.gmra.mxu0 %vm2397_vm1, %v6632_v14  ;;  %v4634_v21 = vadd.f32 %v11256_v40, %v4633_v42  ;;  %v3611_v3 = vmax.f32 %v3242_v34, 0.0 }
 0x83b   : > { %v6025_v61 = vpop.f32.mrf.mxu3 }
 0x83c   : > { %v6026_v47 = vadd.f32 %v11396_v24, %v6025_v61  ;;  %v5030_v48 = vmax.f32 %v4634_v21, 0.0 }
 0x83e   : > { %v6449_v57 = vmax.f32 %v6026_v47, 0.0 }
 0x83f   : > { %v3243_v41 = vpop.f32.mrf.mxu1  ;;  %v7419_v27 = vpop.f32.mrf.mxu0 }
 0x840   : > { %v3244_v55 = vadd.f32 %v11411_v17, %v3243_v41  ;;  %v7420_v23 = vadd.f32 %v11229_v28, %v7419_v27  ;;  %v11551_v27 = vld [vmem:[%s9113_s22] ss:$0 sm:$0xff] }
 0x841   : > { %v4635_v29 = vpop.f32.mrf.mxu2 }
 0x842   : > { %v3612_v62 = vmax.f32 %v3244_v55, 0.0  ;;  %7870 = vst.msk [vmem:[%s10334_s14 + $0x3f8] sm:$0xff] %vm7742_vm2, %v7420_v23  ;;  %v4636_v20 = vadd.f32 %v11256_v40, %v4635_v29 }
 0x843   : > { %v6027_v10 = vpop.f32.mrf.mxu3 }
 0x844   : > { %v3777_v26 = vpack.c.bf16 %v3612_v62, %v3611_v3  ;;  %v5031_v32 = vmax.f32 %v4636_v20, 0.0  ;;  %v6028_v51 = vadd.f32 %v11396_v24, %v6027_v10 }
 0x846   : > { %v5205_v50 = vpack.c.bf16 %v5031_v32, %v5030_v48  ;;  %v6450_v1 = vmax.f32 %v6028_v51, 0.0  ;;  %8558 = vmatmul.msk.bf16.gmra.mxu2 %vm2397_vm1, %v3777_v26 }
 0x847   : > { %v3246_v6 = vpop.f32.mrf.mxu1  ;;  %v7422_v63 = vpop.f32.mrf.mxu0 }
 0x848   : > { %v6633_v36 = vpack.c.bf16 %v6450_v1, %v6449_v57  ;;  %v7423_v22 = vadd.f32 %v11229_v28, %v7422_v63  ;;  %8685 = vmatmul.msk.bf16.gmra.mxu3 %vm2397_vm1, %v5205_v50  ;;  %v3247_v35 = vadd.f32 %v11411_v17, %v3246_v6  ;;  %v12606_v57 = vld [vmem:[#allocation20_spill] sm:$0xff] }
 0x849   : > { %v4638_v38 = vpop.f32.mrf.mxu2 }
 0x84a   : > { %7871 = vst.msk [vmem:[%s10334_s14 + $0x400] sm:$0xff] %vm7742_vm2, %v7423_v22  ;;  %8431 = vmatmul.msk.bf16.gmra.mxu1 %vm2397_vm1, %v12604_v0  ;;  %8812 = vmatmul.msk.bf16.gmra.mxu0 %vm2397_vm1, %v6633_v36  ;;  %v4639_v2 = vadd.f32 %v11256_v40, %v4638_v38  ;;  %v3613_v4 = vmax.f32 %v3247_v35, 0.0 }
 0x84b   : > { %v6030_v8 = vpop.f32.mrf.mxu3 }
 0x84c   : > { %v6031_v39 = vadd.f32 %v11396_v24, %v6030_v8  ;;  %v5032_v45 = vmax.f32 %v4639_v2, 0.0 }
 0x84e   : > { %v6451_v33 = vmax.f32 %v6031_v39, 0.0 }
 0x84f   : > { %v3248_v52 = vpop.f32.mrf.mxu1  ;;  %v7424_v12 = vpop.f32.mrf.mxu0 }
 0x850   : > { %v3249_v28 = vadd.f32 %v11411_v17, %v3248_v52  ;;  %v7425_v46 = vadd.f32 %v11527_v49, %v7424_v12 }
 0x851   : > { %v4640_v53 = vpop.f32.mrf.mxu2 }
 0x852   : > { %v3614_v19 = vmax.f32 %v3249_v28, 0.0  ;;  %7872 = vst.msk [vmem:[%s10334_s14 + $0x408] sm:$0xff] %vm7742_vm2, %v7425_v46  ;;  %v4641_v60 = vadd.f32 %v11256_v40, %v4640_v53 }
 0x853   : > { %v6032_v18 = vpop.f32.mrf.mxu3 }
 0x854   : > { %v3778_v25 = vpack.c.bf16 %v3614_v19, %v3613_v4  ;;  %v5033_v56 = vmax.f32 %v4641_v60, 0.0  ;;  %v6033_v43 = vadd.f32 %v11396_v24, %v6032_v18 }
 0x856   : > { %v5206_v5 = vpack.c.bf16 %v5033_v56, %v5032_v45  ;;  %v6452_v11 = vmax.f32 %v6033_v43, 0.0  ;;  %8559 = vmatmul.msk.bf16.gmra.mxu2 %vm2397_vm1, %v3778_v25 }
 0x857   : > { %v3251_v13 = vpop.f32.mrf.mxu1  ;;  %v7427_v58 = vpop.f32.mrf.mxu0 }
 0x858   : > { %v6634_v15 = vpack.c.bf16 %v6452_v11, %v6451_v33  ;;  %v7428_v54 = vadd.f32 %v11527_v49, %v7427_v58  ;;  %8686 = vmatmul.msk.bf16.gmra.mxu3 %vm2397_vm1, %v5206_v5  ;;  %v3252_v37 = vadd.f32 %v11411_v17, %v3251_v13  ;;  %v12607_v33 = vld [vmem:[#allocation22_spill] sm:$0xff] }
 0x859   : > { %v4643_v44 = vpop.f32.mrf.mxu2 }
 0x85a   : > { %7873 = vst.msk [vmem:[%s10334_s14 + $0x410] sm:$0xff] %vm7742_vm2, %v7428_v54  ;;  %8432 = vmatmul.msk.bf16.gmra.mxu1 %vm2397_vm1, %v12605_v7  ;;  %8813 = vmatmul.msk.bf16.gmra.mxu0 %vm2397_vm1, %v6634_v15  ;;  %v4644_v14 = vadd.f32 %v11256_v40, %v4643_v44  ;;  %v3615_v61 = vmax.f32 %v3252_v37, 0.0 }
 0x85b   : > { %v6035_v9 = vpop.f32.mrf.mxu3 }
 0x85c   : > { %v6036_v34 = vadd.f32 %v11396_v24, %v6035_v9  ;;  %v5034_v23 = vmax.f32 %v4644_v14, 0.0 }
 0x85e   : > { %v6453_v47 = vmax.f32 %v6036_v34, 0.0 }
 0x85f   : > { %v3253_v30 = vpop.f32.mrf.mxu1  ;;  %v7429_v31 = vpop.f32.mrf.mxu0 }
 0x860   : > { %v3254_v16 = vadd.f32 %v11411_v17, %v3253_v30  ;;  %v7430_v42 = vadd.f32 %v11527_v49, %v7429_v31 }
 0x861   : > { %v4645_v59 = vpop.f32.mrf.mxu2 }
 0x862   : > { %v3616_v41 = vmax.f32 %v3254_v16, 0.0  ;;  %7874 = vst.msk [vmem:[%s10334_s14 + $0x418] sm:$0xff] %vm7742_vm2, %v7430_v42  ;;  %v4646_v21 = vadd.f32 %v11551_v27, %v4645_v59 }
 0x863   : > { %v6037_v55 = vpop.f32.mrf.mxu3 }
 0x864   : > { %v3779_v29 = vpack.c.bf16 %v3616_v41, %v3615_v61  ;;  %v5035_v40 = vmax.f32 %v4646_v21, 0.0  ;;  %v6038_v3 = vadd.f32 %v11396_v24, %v6037_v55 }
 0x866   : > { %v5207_v62 = vpack.c.bf16 %v5035_v40, %v5034_v23  ;;  %v6454_v20 = vmax.f32 %v6038_v3, 0.0  ;;  %8560 = vmatmul.msk.bf16.gmra.mxu2 %vm2397_vm1, %v3779_v29 }
 0x867   : > { %v3256_v10 = vpop.f32.mrf.mxu1  ;;  %v7432_v48 = vpop.f32.mrf.mxu0 }
 0x868   : > { %v6635_v26 = vpack.c.bf16 %v6454_v20, %v6453_v47  ;;  %v7433_v32 = vadd.f32 %v11527_v49, %v7432_v48  ;;  %8687 = vmatmul.msk.bf16.gmra.mxu3 %vm2397_vm1, %v5207_v62  ;;  %v3257_v1 = vadd.f32 %v11411_v17, %v3256_v10  ;;  %v12608_v47 = vld [vmem:[#allocation24_spill] sm:$0xff] }
 0x869   : > { %v4648_v51 = vpop.f32.mrf.mxu2 }
 0x86a   : > { %7875 = vst.msk [vmem:[%s10334_s14 + $0x420] sm:$0xff] %vm7742_vm2, %v7433_v32  ;;  %8433 = vmatmul.msk.bf16.gmra.mxu1 %vm2397_vm1, %v12606_v57  ;;  %8814 = vmatmul.msk.bf16.gmra.mxu0 %vm2397_vm1, %v6635_v26  ;;  %v4649_v36 = vadd.f32 %v11551_v27, %v4648_v51  ;;  %v3617_v8 = vmax.f32 %v3257_v1, 0.0 }
 0x86b   : > { %v6040_v50 = vpop.f32.mrf.mxu3 }
 0x86c   : > { %v6041_v35 = vadd.f32 %v11396_v24, %v6040_v50  ;;  %v5036_v28 = vmax.f32 %v4649_v36, 0.0 }
 0x86e   : > { %v6455_v39 = vmax.f32 %v6041_v35, 0.0 }
 0x86f   : > { %v3258_v6 = vpop.f32.mrf.mxu1  ;;  %v7434_v63 = vpop.f32.mrf.mxu0 }
 0x870   : > { %v3259_v22 = vadd.f32 %v11411_v17, %v3258_v6  ;;  %v7435_v38 = vadd.f32 %v11527_v49, %v7434_v63 }
 0x871   : > { %v4650_v0 = vpop.f32.mrf.mxu2 }
 0x872   : > { %v3618_v52 = vmax.f32 %v3259_v22, 0.0  ;;  %7876 = vst.msk [vmem:[%s10334_s14 + $0x428] sm:$0xff] %vm7742_vm2, %v7435_v38  ;;  %v4651_v12 = vadd.f32 %v11551_v27, %v4650_v0 }
 0x873   : > { %v6042_v2 = vpop.f32.mrf.mxu3 }
 0x874   : > { %v3780_v46 = vpack.c.bf16 %v3618_v52, %v3617_v8  ;;  %v5037_v53 = vmax.f32 %v4651_v12, 0.0  ;;  %v6043_v4 = vadd.f32 %v11396_v24, %v6042_v2 }
 0x876   : > { %v5208_v19 = vpack.c.bf16 %v5037_v53, %v5036_v28  ;;  %v6456_v60 = vmax.f32 %v6043_v4, 0.0  ;;  %8561 = vmatmul.msk.bf16.gmra.mxu2 %vm2397_vm1, %v3780_v46 }
 0x877   : > { %v3261_v18 = vpop.f32.mrf.mxu1  ;;  %v7437_v45 = vpop.f32.mrf.mxu0 }
 0x878   : > { %v6636_v25 = vpack.c.bf16 %v6456_v60, %v6455_v39  ;;  %v7438_v56 = vadd.f32 %v11527_v49, %v7437_v45  ;;  %8688 = vmatmul.msk.bf16.gmra.mxu3 %vm2397_vm1, %v5208_v19  ;;  %v3262_v11 = vadd.f32 %v11411_v17, %v3261_v18  ;;  %v12609_v39 = vld [vmem:[#allocation26_spill] sm:$0xff] }
 0x879   : > { %v4653_v43 = vpop.f32.mrf.mxu2 }
 0x87a   : > { %7877 = vst.msk [vmem:[%s10334_s14 + $0x430] sm:$0xff] %vm7742_vm2, %v7438_v56  ;;  %8434 = vmatmul.msk.bf16.gmra.mxu1 %vm2397_vm1, %v12607_v33  ;;  %8815 = vmatmul.msk.bf16.gmra.mxu0 %vm2397_vm1, %v6636_v25  ;;  %v4654_v15 = vadd.f32 %v11551_v27, %v4653_v43  ;;  %v3619_v9 = vmax.f32 %v3262_v11, 0.0 }
 0x87b   : > { %v6045_v5 = vpop.f32.mrf.mxu3 }
 0x87c   : > { %v6046_v37 = vadd.f32 %v11396_v24, %v6045_v5  ;;  %v5038_v16 = vmax.f32 %v4654_v15, 0.0 }
 0x87e   : > { %v6457_v34 = vmax.f32 %v6046_v37, 0.0 }
 0x87f   : > { %v3263_v13 = vpop.f32.mrf.mxu1  ;;  %v7439_v58 = vpop.f32.mrf.mxu0 }
 0x880   : > { %v3264_v54 = vadd.f32 %v11411_v17, %v3263_v13  ;;  %v7440_v44 = vadd.f32 %v11527_v49, %v7439_v58 }
 0x881   : > { %v4655_v7 = vpop.f32.mrf.mxu2 }
 0x882   : > { %v3620_v30 = vmax.f32 %v3264_v54, 0.0  ;;  %7878 = vst.msk [vmem:[%s10334_s14 + $0x438] sm:$0xff] %vm7742_vm2, %v7440_v44  ;;  %v4656_v31 = vadd.f32 %v11551_v27, %v4655_v7 }
 0x883   : > { %v6047_v14 = vpop.f32.mrf.mxu3 }
 0x884   : > { %v3781_v42 = vpack.c.bf16 %v3620_v30, %v3619_v9  ;;  %v5039_v59 = vmax.f32 %v4656_v31, 0.0  ;;  %v6048_v61 = vadd.f32 %v11396_v24, %v6047_v14 }
 0x886   : > { %v5209_v41 = vpack.c.bf16 %v5039_v59, %v5038_v16  ;;  %v6458_v21 = vmax.f32 %v6048_v61, 0.0  ;;  %8562 = vmatmul.msk.bf16.gmra.mxu2 %vm2397_vm1, %v3781_v42 }
 0x887   : > { %v3266_v55 = vpop.f32.mrf.mxu1  ;;  %v7442_v23 = vpop.f32.mrf.mxu0 }
 0x888   : > { %v6637_v29 = vpack.c.bf16 %v6458_v21, %v6457_v34  ;;  %v7443_v40 = vadd.f32 %v11527_v49, %v7442_v23  ;;  %8689 = vmatmul.msk.bf16.gmra.mxu3 %vm2397_vm1, %v5209_v41  ;;  %v3267_v20 = vadd.f32 %v11411_v17, %v3266_v55  ;;  %v12610_v34 = vld [vmem:[#allocation28_spill] sm:$0xff] }
 0x889   : > { %v4658_v3 = vpop.f32.mrf.mxu2 }
 0x88a   : > { %7879 = vst.msk [vmem:[%s10334_s14 + $0x440] sm:$0xff] %vm7742_vm2, %v7443_v40  ;;  %8435 = vmatmul.msk.bf16.gmra.mxu1 %vm2397_vm1, %v12608_v47  ;;  %8816 = vmatmul.msk.bf16.gmra.mxu0 %vm2397_vm1, %v6637_v29  ;;  %v4659_v26 = vadd.f32 %v11551_v27, %v4658_v3  ;;  %v3621_v50 = vmax.f32 %v3267_v20, 0.0 }
 0x88b   : > { %v6050_v62 = vpop.f32.mrf.mxu3 }
 0x88c   : > { %v6051_v1 = vadd.f32 %v11396_v24, %v6050_v62  ;;  %v5040_v22 = vmax.f32 %v4659_v26, 0.0 }
 0x88e   : > { %v6459_v35 = vmax.f32 %v6051_v1, 0.0 }
 0x88f   : > { %v3268_v10 = vpop.f32.mrf.mxu1  ;;  %v7444_v48 = vpop.f32.mrf.mxu0 }
 0x890   : > { %v3269_v32 = vadd.f32 %v11411_v17, %v3268_v10  ;;  %v7445_v51 = vadd.f32 %v11527_v49, %v7444_v48 }
 0x891   : > { %v4660_v57 = vpop.f32.mrf.mxu2 }
 0x892   : > { %v3622_v6 = vmax.f32 %v3269_v32, 0.0  ;;  %7880 = vst.msk [vmem:[%s10334_s14 + $0x448] sm:$0xff] %vm7742_vm2, %v7445_v51  ;;  %v4661_v63 = vadd.f32 %v11551_v27, %v4660_v57 }
 0x893   : > { %v6052_v36 = vpop.f32.mrf.mxu3 }
 0x894   : > { %v3782_v38 = vpack.c.bf16 %v3622_v6, %v3621_v50  ;;  %v5041_v0 = vmax.f32 %v4661_v63, 0.0  ;;  %v6053_v8 = vadd.f32 %v11396_v24, %v6052_v36 }
 0x896   : > { %v5210_v52 = vpack.c.bf16 %v5041_v0, %v5040_v22  ;;  %v6460_v12 = vmax.f32 %v6053_v8, 0.0  ;;  %8563 = vmatmul.msk.bf16.gmra.mxu2 %vm2397_vm1, %v3782_v38 }
 0x897   : > { %v3271_v2 = vpop.f32.mrf.mxu1  ;;  %v7447_v28 = vpop.f32.mrf.mxu0 }
 0x898   : > { %v6638_v46 = vpack.c.bf16 %v6460_v12, %v6459_v35  ;;  %v7448_v53 = vadd.f32 %v11527_v49, %v7447_v28  ;;  %8690 = vmatmul.msk.bf16.gmra.mxu3 %vm2397_vm1, %v5210_v52  ;;  %v3272_v60 = vadd.f32 %v11411_v17, %v3271_v2  ;;  %v12611_v35 = vld [vmem:[#allocation30_spill] sm:$0xff] }
 0x899   : > { %v4663_v4 = vpop.f32.mrf.mxu2 }
 0x89a   : > { %7881 = vst.msk [vmem:[%s10334_s14 + $0x450] sm:$0xff] %vm7742_vm2, %v7448_v53  ;;  %8436 = vmatmul.msk.bf16.gmra.mxu1 %vm2397_vm1, %v12609_v39  ;;  %8817 = vmatmul.msk.bf16.gmra.mxu0 %vm2397_vm1, %v6638_v46  ;;  %v4664_v25 = vadd.f32 %v11551_v27, %v4663_v4  ;;  %v3623_v5 = vmax.f32 %v3272_v60, 0.0 }
 0x89b   : > { %v6055_v19 = vpop.f32.mrf.mxu3 }
 0x89c   : > { %v6056_v11 = vadd.f32 %v11396_v24, %v6055_v19  ;;  %v5042_v54 = vmax.f32 %v4664_v25, 0.0 }
 0x89e   : > { %v6461_v37 = vmax.f32 %v6056_v11, 0.0 }
 0x89f   : > { %v3273_v18 = vpop.f32.mrf.mxu1  ;;  %v7449_v45 = vpop.f32.mrf.mxu0 }
 0x8a0   : > { %v3274_v56 = vadd.f32 %v11411_v17, %v3273_v18  ;;  %v7450_v43 = vadd.f32 %v11527_v49, %v7449_v45 }
 0x8a1   : > { %v4665_v33 = vpop.f32.mrf.mxu2 }
 0x8a2   : > { %v3624_v13 = vmax.f32 %v3274_v56, 0.0  ;;  %7882 = vst.msk [vmem:[%s10334_s14 + $0x458] sm:$0xff] %vm7742_vm2, %v7450_v43  ;;  %v4666_v58 = vadd.f32 %v11551_v27, %v4665_v33 }
 0x8a3   : > { %v6057_v15 = vpop.f32.mrf.mxu3 }
 0x8a4   : > { %v3783_v44 = vpack.c.bf16 %v3624_v13, %v3623_v5  ;;  %v5043_v7 = vmax.f32 %v4666_v58, 0.0  ;;  %v6058_v9 = vadd.f32 %v11396_v24, %v6057_v15 }
 0x8a6   : > { %v5211_v30 = vpack.c.bf16 %v5043_v7, %v5042_v54  ;;  %v6462_v31 = vmax.f32 %v6058_v9, 0.0  ;;  %8564 = vmatmul.msk.bf16.gmra.mxu2 %vm2397_vm1, %v3783_v44 }
 0x8a7   : > { %v3276_v14 = vpop.f32.mrf.mxu1  ;;  %v7452_v16 = vpop.f32.mrf.mxu0 }
 0x8a8   : > { %v6639_v42 = vpack.c.bf16 %v6462_v31, %v6461_v37  ;;  %v7453_v59 = vadd.f32 %v11527_v49, %v7452_v16  ;;  %8691 = vmatmul.msk.bf16.gmra.mxu3 %vm2397_vm1, %v5211_v30  ;;  %v3277_v21 = vadd.f32 %v11411_v17, %v3276_v14  ;;  %v12612_v37 = vld [vmem:[#allocation33_spill] sm:$0xff] }
 0x8a9   : > { %v4668_v61 = vpop.f32.mrf.mxu2 }
 0x8aa   : > { %7883 = vst.msk [vmem:[%s10334_s14 + $0x460] sm:$0xff] %vm7742_vm2, %v7453_v59  ;;  %8437 = vmatmul.msk.bf16.gmra.mxu1 %vm2397_vm1, %v12610_v34  ;;  %8818 = vmatmul.msk.bf16.gmra.mxu0 %vm2397_vm1, %v6639_v42  ;;  %v4669_v29 = vadd.f32 %v11551_v27, %v4668_v61  ;;  %v3625_v62 = vmax.f32 %v3277_v21, 0.0 }
 0x8ab   : > { %v6060_v41 = vpop.f32.mrf.mxu3 }
 0x8ac   : > { %v6061_v20 = vadd.f32 %v11396_v24, %v6060_v41  ;;  %v5044_v32 = vmax.f32 %v4669_v29, 0.0 }
 0x8ae   : > { %v6463_v1 = vmax.f32 %v6061_v20, 0.0 }
 0x8af   : > { %v3278_v55 = vpop.f32.mrf.mxu1  ;;  %v7454_v23 = vpop.f32.mrf.mxu0 }
 0x8b0   : > { %v3279_v40 = vadd.f32 %v11411_v17, %v3278_v55  ;;  %v7455_v3 = vadd.f32 %v11527_v49, %v7454_v23 }
 0x8b1   : > { %v4670_v47 = vpop.f32.mrf.mxu2 }
 0x8b2   : > { %v3626_v10 = vmax.f32 %v3279_v40, 0.0  ;;  %7884 = vst.msk [vmem:[%s10334_s14 + $0x468] sm:$0xff] %vm7742_vm2, %v7455_v3  ;;  %v4671_v48 = vadd.f32 %v11551_v27, %v4670_v47 }
 0x8b3   : > { %v6062_v26 = vpop.f32.mrf.mxu3 }
 0x8b4   : > { %v3784_v51 = vpack.c.bf16 %v3626_v10, %v3625_v62  ;;  %v5045_v57 = vmax.f32 %v4671_v48, 0.0  ;;  %v6063_v50 = vadd.f32 %v11396_v24, %v6062_v26 }
 0x8b6   : > { %v5212_v6 = vpack.c.bf16 %v5045_v57, %v5044_v32  ;;  %v6464_v63 = vmax.f32 %v6063_v50, 0.0  ;;  %8565 = vmatmul.msk.bf16.gmra.mxu2 %vm2397_vm1, %v3784_v51 }
 0x8b7   : > { %v3281_v36 = vpop.f32.mrf.mxu1  ;;  %v7457_v22 = vpop.f32.mrf.mxu0 }
 0x8b8   : > { %v6640_v38 = vpack.c.bf16 %v6464_v63, %v6463_v1  ;;  %v7458_v0 = vadd.f32 %v11527_v49, %v7457_v22  ;;  %8692 = vmatmul.msk.bf16.gmra.mxu3 %vm2397_vm1, %v5212_v6  ;;  %v3282_v12 = vadd.f32 %v11411_v17, %v3281_v36  ;;  %v12613_v1 = vld [vmem:[#allocation36_spill] sm:$0xff] }
 0x8b9   : > { %v4673_v8 = vpop.f32.mrf.mxu2 }
 0x8ba   : > { %7885 = vst.msk [vmem:[%s10334_s14 + $0x470] sm:$0xff] %vm7742_vm2, %v7458_v0  ;;  %8438 = vmatmul.msk.bf16.gmra.mxu1 %vm2397_vm1, %v12611_v35  ;;  %8819 = vmatmul.msk.bf16.gmra.mxu0 %vm2397_vm1, %v6640_v38  ;;  %v4674_v46 = vadd.f32 %v11551_v27, %v4673_v8  ;;  %v3627_v19 = vmax.f32 %v3282_v12, 0.0 }
 0x8bb   : > { %v6065_v52 = vpop.f32.mrf.mxu3 }
 0x8bc   : > { %v6066_v60 = vadd.f32 %v11396_v24, %v6065_v52  ;;  %v5046_v56 = vmax.f32 %v4674_v46, 0.0 }
 0x8be   : > { %v6465_v11 = vmax.f32 %v6066_v60, 0.0 }
 0x8bf   : > { %v3283_v2 = vpop.f32.mrf.mxu1  ;;  %v7459_v28 = vpop.f32.mrf.mxu0 }
 0x8c0   : > { %v3284_v53 = vadd.f32 %v11411_v17, %v3283_v2  ;;  %v7460_v4 = vadd.f32 %v11527_v49, %v7459_v28 }
 0x8c1   : > { %v4675_v39 = vpop.f32.mrf.mxu2 }
 0x8c2   : > { %v3628_v18 = vmax.f32 %v3284_v53, 0.0  ;;  %7886 = vst.msk [vmem:[%s10334_s14 + $0x478] sm:$0xff] %vm7742_vm2, %v7460_v4  ;;  %v4676_v45 = vadd.f32 %v11551_v27, %v4675_v39 }
 0x8c3   : > { %v6067_v25 = vpop.f32.mrf.mxu3 }
 0x8c4   : > { %v3785_v43 = vpack.c.bf16 %v3628_v18, %v3627_v19  ;;  %v5047_v33 = vmax.f32 %v4676_v45, 0.0  ;;  %v6068_v5 = vadd.f32 %v11396_v24, %v6067_v25  ;;  %v11691_v19 = vld [vmem:[%s9118_s26] ss:$0 sm:$0xff] }
 0x8c6   : > { %v5213_v13 = vpack.c.bf16 %v5047_v33, %v5046_v56  ;;  %v6466_v58 = vmax.f32 %v6068_v5, 0.0  ;;  %8566 = vmatmul.msk.bf16.gmra.mxu2 %vm2397_vm1, %v3785_v43 }
 0x8c7   : > { %v3286_v15 = vpop.f32.mrf.mxu1  ;;  %v7462_v54 = vpop.f32.mrf.mxu0 }
 0x8c8   : > { %v6641_v44 = vpack.c.bf16 %v6466_v58, %v6465_v11  ;;  %v7463_v7 = vadd.f32 %v11527_v49, %v7462_v54  ;;  %8693 = vmatmul.msk.bf16.gmra.mxu3 %vm2397_vm1, %v5213_v13  ;;  %v3287_v31 = vadd.f32 %v11411_v17, %v3286_v15  ;;  %v12614_v11 = vld [vmem:[#allocation39_spill] sm:$0xff] }
 0x8c9   : > { %v4678_v9 = vpop.f32.mrf.mxu2 }
 0x8ca   : > { %7887 = vst.msk [vmem:[%s10334_s14 + $0x480] sm:$0xff] %vm7742_vm2, %v7463_v7  ;;  %8439 = vmatmul.msk.bf16.gmra.mxu1 %vm2397_vm1, %v12612_v37  ;;  %8820 = vmatmul.msk.bf16.gmra.mxu0 %vm2397_vm1, %v6641_v44  ;;  %v4679_v42 = vadd.f32 %v11551_v27, %v4678_v9  ;;  %v3629_v41 = vmax.f32 %v3287_v31, 0.0 }
 0x8cb   : > { %v6070_v30 = vpop.f32.mrf.mxu3 }
 0x8cc   : > { %v6071_v21 = vadd.f32 %v11396_v24, %v6070_v30  ;;  %v5048_v40 = vmax.f32 %v4679_v42, 0.0 }
 0x8ce   : > { %v6467_v20 = vmax.f32 %v6071_v21, 0.0 }
 0x8cf   : > { %v3288_v14 = vpop.f32.mrf.mxu1  ;;  %v7464_v16 = vpop.f32.mrf.mxu0 }
 0x8d0   : > { %v3289_v59 = vadd.f32 %v11411_v17, %v3288_v14  ;;  %v7465_v61 = vadd.f32 %v11527_v49, %v7464_v16 }
 0x8d1   : > { %v4680_v34 = vpop.f32.mrf.mxu2 }
 0x8d2   : > { %v3630_v55 = vmax.f32 %v3289_v59, 0.0  ;;  %7888 = vst.msk [vmem:[%s10334_s14 + $0x488] sm:$0xff] %vm7742_vm2, %v7465_v61  ;;  %v4681_v23 = vadd.f32 %v11551_v27, %v4680_v34 }
 0x8d3   : > { %v6072_v29 = vpop.f32.mrf.mxu3 }
 0x8d4   : > { %v3786_v3 = vpack.c.bf16 %v3630_v55, %v3629_v41  ;;  %v5049_v47 = vmax.f32 %v4681_v23, 0.0  ;;  %v6073_v62 = vadd.f32 %v11396_v24, %v6072_v29 }
 0x8d6   : > { %v5214_v10 = vpack.c.bf16 %v5049_v47, %v5048_v40  ;;  %v6468_v48 = vmax.f32 %v6073_v62, 0.0  ;;  %8567 = vmatmul.msk.bf16.gmra.mxu2 %vm2397_vm1, %v3786_v3  ;;  %v12615_v62 = vld [vmem:[#allocation41_spill] sm:$0xff] }
 0x8d7   : > { %v3291_v26 = vpop.f32.mrf.mxu1  ;;  %v7467_v32 = vpop.f32.mrf.mxu0 }
 0x8d8   : > { %v6642_v51 = vpack.c.bf16 %v6468_v48, %v6467_v20  ;;  %v7468_v57 = vadd.f32 %v11527_v49, %v7467_v32  ;;  %8694 = vmatmul.msk.bf16.gmra.mxu3 %vm2397_vm1, %v5214_v10  ;;  %v3292_v63 = vadd.f32 %v11411_v17, %v3291_v26  ;;  %v11720_v10 = vld [vmem:[%s9108_s23] ss:$0 sm:$0xff] }
 0x8d9   : > { %v4683_v50 = vpop.f32.mrf.mxu2 }
 0x8da   : > { %7889 = vst.msk [vmem:[%s10334_s14 + $0x490] sm:$0xff] %vm7742_vm2, %v7468_v57  ;;  %8440 = vmatmul.msk.bf16.gmra.mxu1 %vm2397_vm1, %v12613_v1  ;;  %8821 = vmatmul.msk.bf16.gmra.mxu0 %vm2397_vm1, %v6642_v51  ;;  %v4684_v38 = vadd.f32 %v11551_v27, %v4683_v50  ;;  %v3631_v52 = vmax.f32 %v3292_v63, 0.0 }
 0x8db   : > { %v6075_v6 = vpop.f32.mrf.mxu3 }
 0x8dc   : > { %v6076_v12 = vadd.f32 %v11396_v24, %v6075_v6  ;;  %v5050_v53 = vmax.f32 %v4684_v38, 0.0 }
 0x8de   : > { %v6469_v18 = vmax.f32 %v6076_v12, 0.0 }
 0x8df   : > { %v3293_v36 = vpop.f32.mrf.mxu1  ;;  %v7469_v22 = vpop.f32.mrf.mxu0 }
 0x8e0   : > { %v3294_v0 = vadd.f32 %v11411_v17, %v3293_v36  ;;  %v7470_v8 = vadd.f32 %v11527_v49, %v7469_v22 }
 0x8e1   : > { %v4685_v35 = vpop.f32.mrf.mxu2 }
 0x8e2   : > { %v3632_v2 = vmax.f32 %v3294_v0, 0.0  ;;  %7890 = vst.msk [vmem:[%s10334_s14 + $0x498] sm:$0xff] %vm7742_vm2, %v7470_v8  ;;  %v4686_v28 = vadd.f32 %v11551_v27, %v4685_v35 }
 0x8e3   : > { %v6077_v46 = vpop.f32.mrf.mxu3 }
 0x8e4   : > { %v3787_v4 = vpack.c.bf16 %v3632_v2, %v3631_v52  ;;  %v5051_v39 = vmax.f32 %v4686_v28, 0.0  ;;  %v6078_v60 = vadd.f32 %v11691_v19, %v6077_v46 }
 0x8e6   : > { %v5215_v45 = vpack.c.bf16 %v5051_v39, %v5050_v53  ;;  %v6470_v25 = vmax.f32 %v6078_v60, 0.0  ;;  %8568 = vmatmul.msk.bf16.gmra.mxu2 %vm2397_vm1, %v3787_v4 }
 0x8e7   : > { %v3296_v24 = vpop.f32.mrf.mxu1  ;;  %v7472_v56 = vpop.f32.mrf.mxu0 }
 0x8e8   : > { %v6643_v43 = vpack.c.bf16 %v6470_v25, %v6469_v18  ;;  %v7473_v33 = vadd.f32 %v11527_v49, %v7472_v56  ;;  %8695 = vmatmul.msk.bf16.gmra.mxu3 %vm2397_vm1, %v5215_v45  ;;  %v3297_v58 = vadd.f32 %v11411_v17, %v3296_v24  ;;  %v12616_v18 = vld [vmem:[#allocation44_spill] sm:$0xff] }
 0x8e9   : > { %v4688_v5 = vpop.f32.mrf.mxu2 }
 0x8ea   : > { %7891 = vst.msk [vmem:[%s10334_s14 + $0x4a0] sm:$0xff] %vm7742_vm2, %v7473_v33  ;;  %8441 = vmatmul.msk.bf16.gmra.mxu1 %vm2397_vm1, %v12614_v11  ;;  %8822 = vmatmul.msk.bf16.gmra.mxu0 %vm2397_vm1, %v6643_v43  ;;  %v4689_v44 = vadd.f32 %v11551_v27, %v4688_v5  ;;  %v3633_v30 = vmax.f32 %v3297_v58, 0.0 }
 0x8eb   : > { %v6080_v13 = vpop.f32.mrf.mxu3 }
 0x8ec   : > { %v6081_v31 = vadd.f32 %v11691_v19, %v6080_v13  ;;  %v5052_v59 = vmax.f32 %v4689_v44, 0.0 }
 0x8ef   : > { %v3298_v15 = vpop.f32.mrf.mxu1  ;;  %v7474_v54 = vpop.f32.mrf.mxu0 }
 0x8f0   : > { %v3299_v7 = vadd.f32 %v11411_v17, %v3298_v15  ;;  %v7475_v9 = vadd.f32 %v11527_v49, %v7474_v54  ;;  %v6471_v17 = vmax.f32 %v6081_v31, 0.0 }
 0x8f1   : > { %v4690_v37 = vpop.f32.mrf.mxu2 }
 0x8f2   : > { %v3634_v14 = vmax.f32 %v3299_v7, 0.0  ;;  %7892 = vst.msk [vmem:[%s10334_s14 + $0x4a8] sm:$0xff] %vm7742_vm2, %v7475_v9  ;;  %v4691_v16 = vadd.f32 %v11551_v27, %v4690_v37 }
 0x8f3   : > { %v6082_v42 = vpop.f32.mrf.mxu3 }
 0x8f4   : > { %v3788_v61 = vpack.c.bf16 %v3634_v14, %v3633_v30  ;;  %v5053_v34 = vmax.f32 %v4691_v16, 0.0  ;;  %v6083_v41 = vadd.f32 %v11691_v19, %v6082_v42 }
 0x8f6   : > { %v5216_v21 = vpack.c.bf16 %v5053_v34, %v5052_v59  ;;  %v6472_v55 = vmax.f32 %v6083_v41, 0.0  ;;  %8569 = vmatmul.msk.bf16.gmra.mxu2 %vm2397_vm1, %v3788_v61 }
 0x8f7   : > { %v3301_v23 = vpop.f32.mrf.mxu1  ;;  %v7477_v29 = vpop.f32.mrf.mxu0 }
 0x8f8   : > { %v6644_v40 = vpack.c.bf16 %v6472_v55, %v6471_v17  ;;  %v7478_v3 = vadd.f32 %v11527_v49, %v7477_v29  ;;  %8696 = vmatmul.msk.bf16.gmra.mxu3 %vm2397_vm1, %v5216_v21  ;;  %v3302_v48 = vadd.f32 %v11720_v10, %v3301_v23  ;;  %v12617_v17 = vld [vmem:[#allocation47_spill] sm:$0xff] }
 0x8f9   : > { %v4693_v47 = vpop.f32.mrf.mxu2 }
 0x8fa   : > { %7893 = vst.msk [vmem:[%s10334_s14 + $0x4b0] sm:$0xff] %vm7742_vm2, %v7478_v3  ;;  %8442 = vmatmul.msk.bf16.gmra.mxu1 %vm2397_vm1, %v12615_v62  ;;  %8823 = vmatmul.msk.bf16.gmra.mxu0 %vm2397_vm1, %v6644_v40  ;;  %v4694_v51 = vadd.f32 %v11551_v27, %v4693_v47  ;;  %v3635_v6 = vmax.f32 %v3302_v48, 0.0 }
 0x8fb   : > { %v6085_v20 = vpop.f32.mrf.mxu3 }
 0x8fc   : > { %v6086_v63 = vadd.f32 %v11691_v19, %v6085_v20  ;;  %v5054_v0 = vmax.f32 %v4694_v51, 0.0 }
 0x8fe   : > { %v6473_v12 = vmax.f32 %v6086_v63, 0.0 }
 0x8ff   : > { %v3303_v26 = vpop.f32.mrf.mxu1  ;;  %v7479_v32 = vpop.f32.mrf.mxu0 }
 0x900   : > { %v3304_v57 = vadd.f32 %v11720_v10, %v3303_v26  ;;  %v7480_v50 = vadd.f32 %v11527_v49, %v7479_v32 }
 0x901   : > { %v4695_v1 = vpop.f32.mrf.mxu2 }
 0x902   : > { %v3636_v36 = vmax.f32 %v3304_v57, 0.0  ;;  %7894 = vst.msk [vmem:[%s10334_s14 + $0x4b8] sm:$0xff] %vm7742_vm2, %v7480_v50  ;;  %v4696_v22 = vadd.f32 %v11551_v27, %v4695_v1 }
 0x903   : > { %v6087_v38 = vpop.f32.mrf.mxu3 }
 0x904   : > { %v3789_v8 = vpack.c.bf16 %v3636_v36, %v3635_v6  ;;  %v5055_v35 = vmax.f32 %v4696_v22, 0.0  ;;  %v6088_v52 = vadd.f32 %v11691_v19, %v6087_v38 }
 0x906   : > { %v5217_v2 = vpack.c.bf16 %v5055_v35, %v5054_v0  ;;  %v6474_v28 = vmax.f32 %v6088_v52, 0.0  ;;  %8570 = vmatmul.msk.bf16.gmra.mxu2 %vm2397_vm1, %v3789_v8 }
 0x907   : > { %v3306_v46 = vpop.f32.mrf.mxu1  ;;  %v7482_v53 = vpop.f32.mrf.mxu0 }
 0x908   : > { %v6645_v4 = vpack.c.bf16 %v6474_v28, %v6473_v12  ;;  %v7483_v39 = vadd.f32 %v11527_v49, %v7482_v53  ;;  %8697 = vmatmul.msk.bf16.gmra.mxu3 %vm2397_vm1, %v5217_v2  ;;  %v3307_v25 = vadd.f32 %v11720_v10, %v3306_v46  ;;  %v12618_v12 = vld [vmem:[#allocation49_spill] sm:$0xff] }
 0x909   : > { %v4698_v60 = vpop.f32.mrf.mxu2 }
 0x90a   : > { %7895 = vst.msk [vmem:[%s10334_s14 + $0x4c0] sm:$0xff] %vm7742_vm2, %v7483_v39  ;;  %8443 = vmatmul.msk.bf16.gmra.mxu1 %vm2397_vm1, %v12616_v18  ;;  %8824 = vmatmul.msk.bf16.gmra.mxu0 %vm2397_vm1, %v6645_v4  ;;  %v4699_v43 = vadd.f32 %v11551_v27, %v4698_v60  ;;  %v3637_v13 = vmax.f32 %v3307_v25, 0.0 }
 0x90b   : > { %v6090_v45 = vpop.f32.mrf.mxu3 }
 0x90c   : > { %v6091_v58 = vadd.f32 %v11691_v19, %v6090_v45  ;;  %v5056_v7 = vmax.f32 %v4699_v43, 0.0 }
 0x90e   : > { %v6475_v31 = vmax.f32 %v6091_v58, 0.0 }
 0x90f   : > { %v3308_v24 = vpop.f32.mrf.mxu1  ;;  %v7484_v56 = vpop.f32.mrf.mxu0 }
 0x910   : > { %v3309_v33 = vadd.f32 %v11720_v10, %v3308_v24  ;;  %v7485_v5 = vadd.f32 %v11527_v49, %v7484_v56 }
 0x911   : > { %v4700_v11 = vpop.f32.mrf.mxu2 }
 0x912   : > { %v3638_v15 = vmax.f32 %v3309_v33, 0.0  ;;  %7896 = vst.msk [vmem:[%s10334_s14 + $0x4c8] sm:$0xff] %vm7742_vm2, %v7485_v5  ;;  %v4701_v54 = vadd.f32 %v11551_v27, %v4700_v11 }
 0x913   : > { %v6092_v44 = vpop.f32.mrf.mxu3 }
 0x914   : > { %v3790_v9 = vpack.c.bf16 %v3638_v15, %v3637_v13  ;;  %v5057_v37 = vmax.f32 %v4701_v54, 0.0  ;;  %v6093_v30 = vadd.f32 %v11691_v19, %v6092_v44 }
 0x916   : > { %v5218_v14 = vpack.c.bf16 %v5057_v37, %v5056_v7  ;;  %v6476_v16 = vmax.f32 %v6093_v30, 0.0  ;;  %8571 = vmatmul.msk.bf16.gmra.mxu2 %vm2397_vm1, %v3790_v9 }
 0x917   : > { %v3311_v42 = vpop.f32.mrf.mxu1  ;;  %v7487_v59 = vpop.f32.mrf.mxu0 }
 0x918   : > { %v6646_v61 = vpack.c.bf16 %v6476_v16, %v6475_v31  ;;  %v7488_v34 = vadd.f32 %v11527_v49, %v7487_v59  ;;  %8698 = vmatmul.msk.bf16.gmra.mxu3 %vm2397_vm1, %v5218_v14  ;;  %v3312_v55 = vadd.f32 %v11720_v10, %v3311_v42  ;;  %v12619_v31 = vld [vmem:[#allocation52_spill] sm:$0xff] }
 0x919   : > { %v4703_v41 = vpop.f32.mrf.mxu2 }
 0x91a   : > { %7897 = vst.msk [vmem:[%s10334_s14 + $0x4d0] sm:$0xff] %vm7742_vm2, %v7488_v34  ;;  %8444 = vmatmul.msk.bf16.gmra.mxu1 %vm2397_vm1, %v12617_v17  ;;  %8825 = vmatmul.msk.bf16.gmra.mxu0 %vm2397_vm1, %v6646_v61  ;;  %v4704_v40 = vadd.f32 %v11551_v27, %v4703_v41  ;;  %v3639_v20 = vmax.f32 %v3312_v55, 0.0 }
 0x91b   : > { %v6095_v21 = vpop.f32.mrf.mxu3 }
 0x91c   : > { %v6096_v48 = vadd.f32 %v11691_v19, %v6095_v21  ;;  %v5058_v57 = vmax.f32 %v4704_v40, 0.0 }
 0x91e   : > { %v6477_v63 = vmax.f32 %v6096_v48, 0.0 }
 0x91f   : > { %v3313_v23 = vpop.f32.mrf.mxu1  ;;  %v7489_v29 = vpop.f32.mrf.mxu0 }
 0x920   : > { %v3314_v3 = vadd.f32 %v11720_v10, %v3313_v23  ;;  %v7490_v47 = vadd.f32 %v11527_v49, %v7489_v29 }
 0x921   : > { %v4705_v62 = vpop.f32.mrf.mxu2 }
 0x922   : > { %v3640_v26 = vmax.f32 %v3314_v3, 0.0  ;;  %7898 = vst.msk [vmem:[%s10334_s14 + $0x4d8] sm:$0xff] %vm7742_vm2, %v7490_v47  ;;  %v4706_v32 = vadd.f32 %v11551_v27, %v4705_v62 }
 0x923   : > { %v6097_v51 = vpop.f32.mrf.mxu3 }
 0x924   : > { %v3791_v50 = vpack.c.bf16 %v3640_v26, %v3639_v20  ;;  %v5059_v1 = vmax.f32 %v4706_v32, 0.0  ;;  %v6098_v6 = vadd.f32 %v11691_v19, %v6097_v51 }
 0x926   : > { %v5219_v36 = vpack.c.bf16 %v5059_v1, %v5058_v57  ;;  %v6478_v22 = vmax.f32 %v6098_v6, 0.0  ;;  %8572 = vmatmul.msk.bf16.gmra.mxu2 %vm2397_vm1, %v3791_v50 }
 0x927   : > { %v3316_v38 = vpop.f32.mrf.mxu1  ;;  %v7492_v0 = vpop.f32.mrf.mxu0 }
 0x928   : > { %v6647_v8 = vpack.c.bf16 %v6478_v22, %v6477_v63  ;;  %v7493_v35 = vadd.f32 %v11527_v49, %v7492_v0  ;;  %8699 = vmatmul.msk.bf16.gmra.mxu3 %vm2397_vm1, %v5219_v36  ;;  %v3317_v28 = vadd.f32 %v11720_v10, %v3316_v38  ;;  %v12620_v63 = vld [vmem:[#allocation54_spill] sm:$0xff]  ;;  %v11809_v38 = vld [vmem:[%s9103_s15] ss:$0 sm:$0xff] }
 0x929   : > { %v4708_v52 = vpop.f32.mrf.mxu2  ;;  %v12621_v0 = vld [vmem:[#allocation56_spill] sm:$0xff] }
 0x92a   : > { %7899 = vst.msk [vmem:[%s10334_s14 + $0x4e0] sm:$0xff] %vm7742_vm2, %v7493_v35  ;;  %8445 = vmatmul.msk.bf16.gmra.mxu1 %vm2397_vm1, %v12618_v12  ;;  %8826 = vmatmul.msk.bf16.gmra.mxu0 %vm2397_vm1, %v6647_v8  ;;  %v4709_v4 = vadd.f32 %v11551_v27, %v4708_v52  ;;  %v3641_v45 = vmax.f32 %v3317_v28, 0.0  ;;  %v1934_v8 = vadd.f32 %v11809_v38, %v12621_v0  ;;  %v12622_v35 = vld [vmem:[#allocation58_spill] sm:$0xff] }
 0x92b   : > { %v6100_v2 = vpop.f32.mrf.mxu3  ;;  %v1936_v52 = vadd.f32 %v11809_v38, %v12622_v35 }
 0x92c   : > { %v6101_v25 = vadd.f32 %v11691_v19, %v6100_v2  ;;  %v5060_v33 = vmax.f32 %v4709_v4, 0.0 }
 0x92e   : > { %v6479_v58 = vmax.f32 %v6101_v25, 0.0  ;;  %v2225_v25 = vmax.f32 %v1934_v8, 0.0 }
 0x92f   : > { %v3318_v46 = vpop.f32.mrf.mxu1  ;;  %v7494_v53 = vpop.f32.mrf.mxu0 }
 0x930   : > { %v3319_v39 = vadd.f32 %v11720_v10, %v3318_v46  ;;  %v7495_v60 = vadd.f32 %v11527_v49, %v7494_v53 }
 0x931   : > { %v4710_v18 = vpop.f32.mrf.mxu2 }
 0x932   : > { %v3642_v24 = vmax.f32 %v3319_v39, 0.0  ;;  %7900 = vst.msk [vmem:[%s10334_s14 + $0x4e8] sm:$0xff] %vm7742_vm2, %v7495_v60  ;;  %v4711_v56 = vadd.f32 %v11551_v27, %v4710_v18 }
 0x933   : > { %v6102_v43 = vpop.f32.mrf.mxu3 }
 0x934   : > { %v3792_v5 = vpack.c.bf16 %v3642_v24, %v3641_v45  ;;  %v5061_v11 = vmax.f32 %v4711_v56, 0.0  ;;  %v6103_v13 = vadd.f32 %v11691_v19, %v6102_v43  ;;  %v2226_v24 = vmax.f32 %v1936_v52, 0.0 }
 0x936   : > { %v5220_v15 = vpack.c.bf16 %v5061_v11, %v5060_v33  ;;  %v6480_v54 = vmax.f32 %v6103_v13, 0.0  ;;  %8573 = vmatmul.msk.bf16.gmra.mxu2 %vm2397_vm1, %v3792_v5 }
 0x937   : > { %v3321_v44 = vpop.f32.mrf.mxu1  ;;  %v7497_v7 = vpop.f32.mrf.mxu0 }
 0x938   : > { %v6648_v9 = vpack.c.bf16 %v6480_v54, %v6479_v58  ;;  %v7498_v37 = vadd.f32 %v11527_v49, %v7497_v7  ;;  %8700 = vmatmul.msk.bf16.gmra.mxu3 %vm2397_vm1, %v5220_v15  ;;  %v3322_v16 = vadd.f32 %v11720_v10, %v3321_v44  ;;  %v2365_v44 = vpack.c.bf16 %v2226_v24, %v2225_v25 }
 0x939   : > { %v4713_v30 = vpop.f32.mrf.mxu2 }
 0x93a   : > { %7901 = vst.msk [vmem:[%s10334_s14 + $0x4f0] sm:$0xff] %vm7742_vm2, %v7498_v37  ;;  %8446 = vmatmul.msk.bf16.gmra.mxu1 %vm2397_vm1, %v12619_v31  ;;  %8827 = vmatmul.msk.bf16.gmra.mxu0 %vm2397_vm1, %v6648_v9  ;;  %v4714_v61 = vadd.f32 %v11551_v27, %v4713_v30  ;;  %v3643_v21 = vmax.f32 %v3322_v16, 0.0  ;;  %v11827_v9 = vld [vmem:[%s12473_s10] ss:$0 sm:$0xff]  ;;  %v12623_v16 = vld [vmem:[#allocation59_spill] sm:$0xff] }
 0x93b   : > { %v6105_v14 = vpop.f32.mrf.mxu3 }
 0x93c   : > { %v6106_v55 = vadd.f32 %v11691_v19, %v6105_v14  ;;  %v5062_v3 = vmax.f32 %v4714_v61, 0.0 }
 0x93e   : > { %v6481_v48 = vmax.f32 %v6106_v55, 0.0 }
 0x93f   : > { %v3323_v42 = vpop.f32.mrf.mxu1  ;;  %v7499_v59 = vpop.f32.mrf.mxu0 }
 0x940   : > { %v3324_v34 = vadd.f32 %v11720_v10, %v3323_v42  ;;  %v7500_v41 = vadd.f32 %v11527_v49, %v7499_v59  ;;  %v1939_v42 = vadd.f32 %v11809_v38, %v12623_v16  ;;  %v12624_v59 = vld [vmem:[#allocation61_spill] sm:$0xff] }
 0x941   : > { %v4715_v17 = vpop.f32.mrf.mxu2  ;;  %v1941_v61 = vadd.f32 %v11809_v38, %v12624_v59 }
 0x942   : > { %v3644_v23 = vmax.f32 %v3324_v34, 0.0  ;;  %7902 = vst.msk [vmem:[%s10334_s14 + $0x4f8] sm:$0xff] %vm7742_vm2, %v7500_v41  ;;  %v4716_v29 = vadd.f32 %v11551_v27, %v4715_v17 }
 0x943   : > { %v6107_v40 = vpop.f32.mrf.mxu3 }
 0x944   : > { %v3793_v47 = vpack.c.bf16 %v3644_v23, %v3643_v21  ;;  %v5063_v62 = vmax.f32 %v4716_v29, 0.0  ;;  %v6108_v20 = vadd.f32 %v11691_v19, %v6107_v40 }
 0x946   : > { %v5221_v26 = vpack.c.bf16 %v5063_v62, %v5062_v3  ;;  %v6482_v32 = vmax.f32 %v6108_v20, 0.0  ;;  %8574 = vmatmul.msk.bf16.gmra.mxu2 %vm2397_vm1, %v3793_v47  ;;  %v2227_v62 = vmax.f32 %v1939_v42, 0.0  ;;  %v2228_v20 = vmax.f32 %v1941_v61, 0.0 }
 0x947   : > { %v3326_v51 = vpop.f32.mrf.mxu1  ;;  %v7502_v57 = vpop.f32.mrf.mxu0 }
 0x948   : > { %v6649_v50 = vpack.c.bf16 %v6482_v32, %v6481_v48  ;;  %v7503_v1 = vadd.f32 %v11527_v49, %v7502_v57  ;;  %8701 = vmatmul.msk.bf16.gmra.mxu3 %vm2397_vm1, %v5221_v26  ;;  %v3327_v22 = vadd.f32 %v11720_v10, %v3326_v51 }
 0x949   : > { %v4718_v6 = vpop.f32.mrf.mxu2 }
 0x94a   : > { %7903 = vst.msk [vmem:[%s10334_s14 + $0x500] sm:$0xff] %vm7742_vm2, %v7503_v1  ;;  %8447 = vmatmul.msk.bf16.gmra.mxu1 %vm2397_vm1, %v12620_v63  ;;  %8828 = vmatmul.msk.bf16.gmra.mxu0 %vm2397_vm1, %v6649_v50  ;;  %v4719_v28 = vadd.f32 %v11551_v27, %v4718_v6  ;;  %v3645_v39 = vmax.f32 %v3327_v22, 0.0  ;;  %v2366_v22 = vpack.c.bf16 %v2228_v20, %v2227_v62 }
 0x94b   : > { %v6110_v36 = vpop.f32.mrf.mxu3 }
 0x94c   : > { %v6111_v60 = vadd.f32 %v11691_v19, %v6110_v36  ;;  %v5064_v43 = vmax.f32 %v4719_v28, 0.0  ;;  %v12626_v28 = vld [vmem:[#allocation65_spill] sm:$0xff] }
 0x94e   : > { %v6483_v13 = vmax.f32 %v6111_v60, 0.0 }
 0x94f   : > { %v3328_v12 = vpop.f32.mrf.mxu1  ;;  %v7504_v2 = vpop.f32.mrf.mxu0 }
 0x950   : > { %v3329_v46 = vadd.f32 %v11720_v10, %v3328_v12  ;;  %v7505_v53 = vadd.f32 %v11527_v49, %v7504_v2  ;;  %v12625_v12 = vld [vmem:[#allocation63_spill] sm:$0xff] }
 0x951   : > { %v4720_v4 = vpop.f32.mrf.mxu2  ;;  %v1944_v2 = vadd.f32 %v11809_v38, %v12625_v12 }
 0x952   : > { %v3646_v18 = vmax.f32 %v3329_v46, 0.0  ;;  %7904 = vst.msk [vmem:[%s10334_s14 + $0x508] sm:$0xff] %vm7742_vm2, %v7505_v53  ;;  %v4721_v45 = vadd.f32 %v11551_v27, %v4720_v4  ;;  %v1946_v46 = vadd.f32 %v11809_v38, %v12626_v28 }
 0x953   : > { %v6112_v56 = vpop.f32.mrf.mxu3 }
 0x954   : > { %v3794_v33 = vpack.c.bf16 %v3646_v18, %v3645_v39  ;;  %v5065_v5 = vmax.f32 %v4721_v45, 0.0  ;;  %v6113_v11 = vadd.f32 %v11691_v19, %v6112_v56  ;;  %v11861_v39 = vld [vmem:[%s9113_s22] ss:$0 sm:$0xff] }
 0x956   : > { %v5222_v49 = vpack.c.bf16 %v5065_v5, %v5064_v43  ;;  %v6484_v58 = vmax.f32 %v6113_v11, 0.0  ;;  %8575 = vmatmul.msk.bf16.gmra.mxu2 %vm2397_vm1, %v3794_v33  ;;  %v2229_v5 = vmax.f32 %v1944_v2, 0.0  ;;  %v2230_v11 = vmax.f32 %v1946_v46, 0.0 }
 0x957   : > { %v3331_v15 = vpop.f32.mrf.mxu1  ;;  %v7507_v54 = vpop.f32.mrf.mxu0 }
 0x958   : > { %v6650_v7 = vpack.c.bf16 %v6484_v58, %v6483_v13  ;;  %v7508_v37 = vadd.f32 %v11827_v9, %v7507_v54  ;;  %8702 = vmatmul.msk.bf16.gmra.mxu3 %vm2397_vm1, %v5222_v49  ;;  %v3332_v14 = vadd.f32 %v11720_v10, %v3331_v15 }
 0x959   : > { %v4723_v30 = vpop.f32.mrf.mxu2 }
 0x95a   : > { %7905 = vst.msk [vmem:[%s10334_s14 + $0x510] sm:$0xff] %vm7742_vm2, %v7508_v37  ;;  %8448 = vmatmul.msk.bf16.gmra.mxu1 %vm2397_vm1, %v2365_v44  ;;  %8829 = vmatmul.msk.bf16.gmra.mxu0 %vm2397_vm1, %v6650_v7  ;;  %v4724_v17 = vadd.f32 %v11551_v27, %v4723_v30  ;;  %v3647_v29 = vmax.f32 %v3332_v14, 0.0  ;;  %v2367_v14 = vpack.c.bf16 %v2230_v11, %v2229_v5 }
 0x95b   : > { %v6115_v31 = vpop.f32.mrf.mxu3 }
 0x95c   : > { %v6116_v40 = vadd.f32 %v11691_v19, %v6115_v31  ;;  %v5066_v26 = vmax.f32 %v4724_v17, 0.0 }
 0x95e   : > { %v6485_v50 = vmax.f32 %v6116_v40, 0.0 }
 0x95f   : > { %v3333_v34 = vpop.f32.mrf.mxu1  ;;  %v7509_v41 = vpop.f32.mrf.mxu0 }
 0x960   : > { %v3334_v21 = vadd.f32 %v11720_v10, %v3333_v34  ;;  %v7510_v55 = vadd.f32 %v11827_v9, %v7509_v41  ;;  %v12627_v41 = vld [vmem:[#allocation67_spill] sm:$0xff] }
 0x961   : > { %v4725_v23 = vpop.f32.mrf.mxu2  ;;  %v1949_v17 = vadd.f32 %v11809_v38, %v12627_v41 }
 0x962   : > { %v3648_v3 = vmax.f32 %v3334_v21, 0.0  ;;  %7906 = vst.msk [vmem:[%s10334_s14 + $0x518] sm:$0xff] %vm7742_vm2, %v7510_v55  ;;  %v4726_v47 = vadd.f32 %v11551_v27, %v4725_v23  ;;  %v12628_v21 = vld [vmem:[#allocation69_spill] sm:$0xff] }
 0x963   : > { %v6117_v48 = vpop.f32.mrf.mxu3  ;;  %v1951_v55 = vadd.f32 %v11809_v38, %v12628_v21 }
 0x964   : > { %v3795_v32 = vpack.c.bf16 %v3648_v3, %v3647_v29  ;;  %v5067_v51 = vmax.f32 %v4726_v47, 0.0  ;;  %v6118_v57 = vadd.f32 %v11691_v19, %v6117_v48 }
 0x966   : > { %v5223_v1 = vpack.c.bf16 %v5067_v51, %v5066_v26  ;;  %v6486_v6 = vmax.f32 %v6118_v57, 0.0  ;;  %8576 = vmatmul.msk.bf16.gmra.mxu2 %vm2397_vm1, %v3795_v32  ;;  %v2231_v51 = vmax.f32 %v1949_v17, 0.0  ;;  %v2232_v57 = vmax.f32 %v1951_v55, 0.0 }
 0x967   : > { %v3336_v63 = vpop.f32.mrf.mxu1  ;;  %v7512_v36 = vpop.f32.mrf.mxu0 }
 0x968   : > { %v6651_v0 = vpack.c.bf16 %v6486_v6, %v6485_v50  ;;  %v7513_v27 = vadd.f32 %v11827_v9, %v7512_v36  ;;  %8703 = vmatmul.msk.bf16.gmra.mxu3 %vm2397_vm1, %v5223_v1  ;;  %v3337_v52 = vadd.f32 %v11720_v10, %v3336_v63 }
 0x969   : > { %v4728_v8 = vpop.f32.mrf.mxu2 }
 0x96a   : > { %7907 = vst.msk [vmem:[%s10334_s14 + $0x520] sm:$0xff] %vm7742_vm2, %v7513_v27  ;;  %8449 = vmatmul.msk.bf16.gmra.mxu1 %vm2397_vm1, %v2366_v22  ;;  %8830 = vmatmul.msk.bf16.gmra.mxu0 %vm2397_vm1, %v6651_v0  ;;  %v4729_v60 = vadd.f32 %v11861_v39, %v4728_v8  ;;  %v3649_v24 = vmax.f32 %v3337_v52, 0.0  ;;  %v2368_v52 = vpack.c.bf16 %v2232_v57, %v2231_v51 }
 0x96b   : > { %v6120_v35 = vpop.f32.mrf.mxu3 }
 0x96c   : > { %v6121_v56 = vadd.f32 %v11691_v19, %v6120_v35  ;;  %v5068_v49 = vmax.f32 %v4729_v60, 0.0 }
 0x96e   : > { %v6487_v44 = vmax.f32 %v6121_v56, 0.0 }
 0x96f   : > { %v3338_v53 = vpop.f32.mrf.mxu1  ;;  %v7514_v4 = vpop.f32.mrf.mxu0 }
 0x970   : > { %v3339_v18 = vadd.f32 %v11720_v10, %v3338_v53  ;;  %v7515_v45 = vadd.f32 %v11827_v9, %v7514_v4  ;;  %v12629_v4 = vld [vmem:[#allocation71_spill] sm:$0xff] }
 0x971   : > { %v4730_v25 = vpop.f32.mrf.mxu2  ;;  %v1954_v60 = vadd.f32 %v11809_v38, %v12629_v4 }
 0x972   : > { %v3650_v43 = vmax.f32 %v3339_v18, 0.0  ;;  %7908 = vst.msk [vmem:[%s10334_s14 + $0x528] sm:$0xff] %vm7742_vm2, %v7515_v45  ;;  %v4731_v33 = vadd.f32 %v11861_v39, %v4730_v25  ;;  %v12630_v18 = vld [vmem:[#allocation73_spill] sm:$0xff] }
 0x973   : > { %v6122_v13 = vpop.f32.mrf.mxu3  ;;  %v1956_v45 = vadd.f32 %v11809_v38, %v12630_v18 }
 0x974   : > { %v3796_v58 = vpack.c.bf16 %v3650_v43, %v3649_v24  ;;  %v5069_v15 = vmax.f32 %v4731_v33, 0.0  ;;  %v6123_v54 = vadd.f32 %v11691_v19, %v6122_v13 }
 0x976   : > { %v5224_v7 = vpack.c.bf16 %v5069_v15, %v5068_v49  ;;  %v6488_v37 = vmax.f32 %v6123_v54, 0.0  ;;  %8577 = vmatmul.msk.bf16.gmra.mxu2 %vm2397_vm1, %v3796_v58  ;;  %v2233_v15 = vmax.f32 %v1954_v60, 0.0  ;;  %v2234_v54 = vmax.f32 %v1956_v45, 0.0 }
 0x977   : > { %v3341_v30 = vpop.f32.mrf.mxu1  ;;  %v7517_v31 = vpop.f32.mrf.mxu0 }
 0x978   : > { %v6652_v16 = vpack.c.bf16 %v6488_v37, %v6487_v44  ;;  %v7518_v42 = vadd.f32 %v11827_v9, %v7517_v31  ;;  %8704 = vmatmul.msk.bf16.gmra.mxu3 %vm2397_vm1, %v5224_v7  ;;  %v3342_v34 = vadd.f32 %v11720_v10, %v3341_v30 }
 0x979   : > { %v4733_v59 = vpop.f32.mrf.mxu2 }
 0x97a   : > { %7909 = vst.msk [vmem:[%s10334_s14 + $0x530] sm:$0xff] %vm7742_vm2, %v7518_v42  ;;  %8450 = vmatmul.msk.bf16.gmra.mxu1 %vm2397_vm1, %v2367_v14  ;;  %8831 = vmatmul.msk.bf16.gmra.mxu0 %vm2397_vm1, %v6652_v16  ;;  %v4734_v40 = vadd.f32 %v11861_v39, %v4733_v59  ;;  %v3651_v20 = vmax.f32 %v3342_v34, 0.0  ;;  %v2369_v34 = vpack.c.bf16 %v2234_v54, %v2233_v15 }
 0x97b   : > { %v6125_v61 = vpop.f32.mrf.mxu3 }
 0x97c   : > { %v6126_v48 = vadd.f32 %v11691_v19, %v6125_v61  ;;  %v5070_v1 = vmax.f32 %v4734_v40, 0.0 }
 0x97e   : > { %v6489_v22 = vmax.f32 %v6126_v48, 0.0 }
 0x97f   : > { %v3343_v23 = vpop.f32.mrf.mxu1  ;;  %v7519_v29 = vpop.f32.mrf.mxu0 }
 0x980   : > { %v3344_v3 = vadd.f32 %v11720_v10, %v3343_v23  ;;  %v7520_v47 = vadd.f32 %v11827_v9, %v7519_v29  ;;  %v12631_v29 = vld [vmem:[#allocation74_spill] sm:$0xff] }
 0x981   : > { %v4735_v62 = vpop.f32.mrf.mxu2  ;;  %v1959_v40 = vadd.f32 %v11809_v38, %v12631_v29 }
 0x982   : > { %v3652_v26 = vmax.f32 %v3344_v3, 0.0  ;;  %7910 = vst.msk [vmem:[%s10334_s14 + $0x538] sm:$0xff] %vm7742_vm2, %v7520_v47  ;;  %v4736_v32 = vadd.f32 %v11861_v39, %v4735_v62  ;;  %v12632_v3 = vld [vmem:[#allocation75_spill] sm:$0xff] }
 0x983   : > { %v6127_v50 = vpop.f32.mrf.mxu3  ;;  %v1961_v47 = vadd.f32 %v11809_v38, %v12632_v3 }
 0x984   : > { %v3797_v6 = vpack.c.bf16 %v3652_v26, %v3651_v20  ;;  %v5071_v63 = vmax.f32 %v4736_v32, 0.0  ;;  %v6128_v36 = vadd.f32 %v11691_v19, %v6127_v50 }
 0x986   : > { %v5225_v0 = vpack.c.bf16 %v5071_v63, %v5070_v1  ;;  %v6490_v27 = vmax.f32 %v6128_v36, 0.0  ;;  %8578 = vmatmul.msk.bf16.gmra.mxu2 %vm2397_vm1, %v3797_v6  ;;  %v2235_v63 = vmax.f32 %v1959_v40, 0.0  ;;  %v2236_v36 = vmax.f32 %v1961_v47, 0.0 }
 0x987   : > { %v3346_v8 = vpop.f32.mrf.mxu1  ;;  %v7522_v35 = vpop.f32.mrf.mxu0 }
 0x988   : > { %v6653_v12 = vpack.c.bf16 %v6490_v27, %v6489_v22  ;;  %v7523_v2 = vadd.f32 %v11827_v9, %v7522_v35  ;;  %8705 = vmatmul.msk.bf16.gmra.mxu3 %vm2397_vm1, %v5225_v0  ;;  %v3347_v53 = vadd.f32 %v11720_v10, %v3346_v8 }
 0x989   : > { %v4738_v28 = vpop.f32.mrf.mxu2 }
 0x98a   : > { %7911 = vst.msk [vmem:[%s10334_s14 + $0x540] sm:$0xff] %vm7742_vm2, %v7523_v2  ;;  %8451 = vmatmul.msk.bf16.gmra.mxu1 %vm2397_vm1, %v2368_v52  ;;  %8832 = vmatmul.msk.bf16.gmra.mxu0 %vm2397_vm1, %v6653_v12  ;;  %v4739_v56 = vadd.f32 %v11861_v39, %v4738_v28  ;;  %v3653_v11 = vmax.f32 %v3347_v53, 0.0  ;;  %v2370_v53 = vpack.c.bf16 %v2236_v36, %v2235_v63 }
 0x98b   : > { %v6130_v46 = vpop.f32.mrf.mxu3 }
 0x98c   : > { %v6131_v13 = vadd.f32 %v11691_v19, %v6130_v46  ;;  %v5072_v7 = vmax.f32 %v4739_v56, 0.0 }
 0x98e   : > { %v6491_v14 = vmax.f32 %v6131_v13, 0.0 }
 0x98f   : > { %v3348_v25 = vpop.f32.mrf.mxu1  ;;  %v7524_v24 = vpop.f32.mrf.mxu0 }
 0x990   : > { %v3349_v43 = vadd.f32 %v11720_v10, %v3348_v25  ;;  %v7525_v33 = vadd.f32 %v11827_v9, %v7524_v24  ;;  %v12633_v24 = vld [vmem:[#allocation76_spill] sm:$0xff] }
 0x991   : > { %v4740_v5 = vpop.f32.mrf.mxu2  ;;  %v1964_v56 = vadd.f32 %v11809_v38, %v12633_v24 }
 0x992   : > { %v3654_v49 = vmax.f32 %v3349_v43, 0.0  ;;  %7912 = vst.msk [vmem:[%s10334_s14 + $0x548] sm:$0xff] %vm7742_vm2, %v7525_v33  ;;  %v4741_v58 = vadd.f32 %v11861_v39, %v4740_v5  ;;  %v12634_v43 = vld [vmem:[#allocation77_spill] sm:$0xff] }
 0x993   : > { %v6132_v44 = vpop.f32.mrf.mxu3  ;;  %v1966_v33 = vadd.f32 %v11809_v38, %v12634_v43 }
 0x994   : > { %v3798_v37 = vpack.c.bf16 %v3654_v49, %v3653_v11  ;;  %v5073_v30 = vmax.f32 %v4741_v58, 0.0  ;;  %v6133_v31 = vadd.f32 %v11691_v19, %v6132_v44 }
 0x996   : > { %v5226_v16 = vpack.c.bf16 %v5073_v30, %v5072_v7  ;;  %v6492_v42 = vmax.f32 %v6133_v31, 0.0  ;;  %8579 = vmatmul.msk.bf16.gmra.mxu2 %vm2397_vm1, %v3798_v37  ;;  %v2237_v30 = vmax.f32 %v1964_v56, 0.0  ;;  %v2238_v31 = vmax.f32 %v1966_v33, 0.0 }
 0x997   : > { %v3351_v59 = vpop.f32.mrf.mxu1  ;;  %v7527_v61 = vpop.f32.mrf.mxu0 }
 0x998   : > { %v6654_v41 = vpack.c.bf16 %v6492_v42, %v6491_v14  ;;  %v7528_v17 = vadd.f32 %v11827_v9, %v7527_v61  ;;  %8706 = vmatmul.msk.bf16.gmra.mxu3 %vm2397_vm1, %v5226_v16  ;;  %v3352_v23 = vadd.f32 %v11720_v10, %v3351_v59 }
 0x999   : > { %v4743_v21 = vpop.f32.mrf.mxu2 }
 0x99a   : > { %7913 = vst.msk [vmem:[%s10334_s14 + $0x550] sm:$0xff] %vm7742_vm2, %v7528_v17  ;;  %8452 = vmatmul.msk.bf16.gmra.mxu1 %vm2397_vm1, %v2369_v34  ;;  %8833 = vmatmul.msk.bf16.gmra.mxu0 %vm2397_vm1, %v6654_v41  ;;  %v4744_v48 = vadd.f32 %v11861_v39, %v4743_v21  ;;  %v3655_v57 = vmax.f32 %v3352_v23, 0.0  ;;  %v2371_v23 = vpack.c.bf16 %v2238_v31, %v2237_v30 }
 0x99b   : > { %v6135_v55 = vpop.f32.mrf.mxu3 }
 0x99c   : > { %v6136_v50 = vadd.f32 %v11691_v19, %v6135_v55  ;;  %v5074_v0 = vmax.f32 %v4744_v48, 0.0 }
 0x99e   : > { %v6493_v52 = vmax.f32 %v6136_v50, 0.0 }
 0x99f   : > { %v3353_v62 = vpop.f32.mrf.mxu1  ;;  %v7529_v20 = vpop.f32.mrf.mxu0 }
 0x9a0   : > { %v3354_v26 = vadd.f32 %v11720_v10, %v3353_v62  ;;  %v7530_v32 = vadd.f32 %v11827_v9, %v7529_v20  ;;  %v12635_v20 = vld [vmem:[#allocation78_spill] sm:$0xff] }
 0x9a1   : > { %v4745_v51 = vpop.f32.mrf.mxu2  ;;  %v1969_v48 = vadd.f32 %v11809_v38, %v12635_v20 }
 0x9a2   : > { %v3656_v1 = vmax.f32 %v3354_v26, 0.0  ;;  %7914 = vst.msk [vmem:[%s10334_s14 + $0x558] sm:$0xff] %vm7742_vm2, %v7530_v32  ;;  %v4746_v6 = vadd.f32 %v11861_v39, %v4745_v51  ;;  %v12636_v26 = vld [vmem:[#allocation79_spill] sm:$0xff] }
 0x9a3   : > { %v6137_v22 = vpop.f32.mrf.mxu3  ;;  %v1971_v32 = vadd.f32 %v11809_v38, %v12636_v26 }
 0x9a4   : > { %v3799_v27 = vpack.c.bf16 %v3656_v1, %v3655_v57  ;;  %v5075_v8 = vmax.f32 %v4746_v6, 0.0  ;;  %v6138_v35 = vadd.f32 %v11691_v19, %v6137_v22 }
 0x9a6   : > { %v5227_v12 = vpack.c.bf16 %v5075_v8, %v5074_v0  ;;  %v6494_v2 = vmax.f32 %v6138_v35, 0.0  ;;  %8580 = vmatmul.msk.bf16.gmra.mxu2 %vm2397_vm1, %v3799_v27  ;;  %v2239_v8 = vmax.f32 %v1969_v48, 0.0  ;;  %v2240_v35 = vmax.f32 %v1971_v32, 0.0 }
 0x9a7   : > { %v3356_v28 = vpop.f32.mrf.mxu1  ;;  %v7532_v46 = vpop.f32.mrf.mxu0 }
 0x9a8   : > { %v6655_v4 = vpack.c.bf16 %v6494_v2, %v6493_v52  ;;  %v7533_v60 = vadd.f32 %v11827_v9, %v7532_v46  ;;  %8707 = vmatmul.msk.bf16.gmra.mxu3 %vm2397_vm1, %v5227_v12  ;;  %v3357_v25 = vadd.f32 %v11720_v10, %v3356_v28 }
 0x9a9   : > { %v4748_v18 = vpop.f32.mrf.mxu2 }
 0x9aa   : > { %7915 = vst.msk [vmem:[%s10334_s14 + $0x560] sm:$0xff] %vm7742_vm2, %v7533_v60  ;;  %8453 = vmatmul.msk.bf16.gmra.mxu1 %vm2397_vm1, %v2370_v53  ;;  %8834 = vmatmul.msk.bf16.gmra.mxu0 %vm2397_vm1, %v6655_v4  ;;  %v4749_v13 = vadd.f32 %v11861_v39, %v4748_v18  ;;  %v3657_v54 = vmax.f32 %v3357_v25, 0.0  ;;  %v2372_v25 = vpack.c.bf16 %v2240_v35, %v2239_v8  ;;  %v12007_v35 = vld [vmem:[%s9118_s26] ss:$0 sm:$0xff] }
 0x9ab   : > { %v6140_v45 = vpop.f32.mrf.mxu3 }
 0x9ac   : > { %v6141_v44 = vadd.f32 %v11691_v19, %v6140_v45  ;;  %v5076_v16 = vmax.f32 %v4749_v13, 0.0 }
 0x9ae   : > { %v6495_v34 = vmax.f32 %v6141_v44, 0.0 }
 0x9af   : > { %v3358_v5 = vpop.f32.mrf.mxu1  ;;  %v7534_v11 = vpop.f32.mrf.mxu0 }
 0x9b0   : > { %v3359_v49 = vadd.f32 %v11720_v10, %v3358_v5  ;;  %v7535_v58 = vadd.f32 %v11827_v9, %v7534_v11  ;;  %v12637_v11 = vld [vmem:[#allocation80_spill] sm:$0xff] }
 0x9b1   : > { %v4750_v15 = vpop.f32.mrf.mxu2  ;;  %v1974_v13 = vadd.f32 %v11809_v38, %v12637_v11 }
 0x9b2   : > { %v3658_v7 = vmax.f32 %v3359_v49, 0.0  ;;  %7916 = vst.msk [vmem:[%s10334_s14 + $0x568] sm:$0xff] %vm7742_vm2, %v7535_v58  ;;  %v4751_v37 = vadd.f32 %v11861_v39, %v4750_v15  ;;  %v12638_v49 = vld [vmem:[#allocation81_spill] sm:$0xff] }
 0x9b3   : > { %v6142_v14 = vpop.f32.mrf.mxu3  ;;  %v1976_v58 = vadd.f32 %v11809_v38, %v12638_v49 }
 0x9b4   : > { %v3800_v42 = vpack.c.bf16 %v3658_v7, %v3657_v54  ;;  %v5077_v59 = vmax.f32 %v4751_v37, 0.0  ;;  %v6143_v61 = vadd.f32 %v11691_v19, %v6142_v14 }
 0x9b6   : > { %v5228_v41 = vpack.c.bf16 %v5077_v59, %v5076_v16  ;;  %v6496_v17 = vmax.f32 %v6143_v61, 0.0  ;;  %8581 = vmatmul.msk.bf16.gmra.mxu2 %vm2397_vm1, %v3800_v42  ;;  %v2241_v59 = vmax.f32 %v1974_v13, 0.0  ;;  %v2242_v61 = vmax.f32 %v1976_v58, 0.0  ;;  %v12022_v58 = vld [vmem:[%s9108_s23] ss:$0 sm:$0xff] }
 0x9b7   : > { %v3361_v21 = vpop.f32.mrf.mxu1  ;;  %v7537_v55 = vpop.f32.mrf.mxu0 }
 0x9b8   : > { %v6656_v29 = vpack.c.bf16 %v6496_v17, %v6495_v34  ;;  %v7538_v40 = vadd.f32 %v11827_v9, %v7537_v55  ;;  %8708 = vmatmul.msk.bf16.gmra.mxu3 %vm2397_vm1, %v5228_v41  ;;  %v3362_v62 = vadd.f32 %v11720_v10, %v3361_v21 }
 0x9b9   : > { %v4753_v3 = vpop.f32.mrf.mxu2 }
 0x9ba   : > { %7917 = vst.msk [vmem:[%s10334_s14 + $0x570] sm:$0xff] %vm7742_vm2, %v7538_v40  ;;  %8454 = vmatmul.msk.bf16.gmra.mxu1 %vm2397_vm1, %v2371_v23  ;;  %8835 = vmatmul.msk.bf16.gmra.mxu0 %vm2397_vm1, %v6656_v29  ;;  %v4754_v50 = vadd.f32 %v11861_v39, %v4753_v3  ;;  %v3659_v36 = vmax.f32 %v3362_v62, 0.0  ;;  %v2373_v62 = vpack.c.bf16 %v2242_v61, %v2241_v59 }
 0x9bb   : > { %v6145_v47 = vpop.f32.mrf.mxu3 }
 0x9bc   : > { %v6146_v22 = vadd.f32 %v11691_v19, %v6145_v47  ;;  %v5078_v12 = vmax.f32 %v4754_v50, 0.0  ;;  %v12640_v50 = vld [vmem:[#allocation83_spill] sm:$0xff] }
 0x9be   : > { %v6497_v53 = vmax.f32 %v6146_v22, 0.0 }
 0x9bf   : > { %v3363_v51 = vpop.f32.mrf.mxu1  ;;  %v7539_v57 = vpop.f32.mrf.mxu0 }
 0x9c0   : > { %v3364_v1 = vadd.f32 %v11720_v10, %v3363_v51  ;;  %v7540_v6 = vadd.f32 %v11827_v9, %v7539_v57  ;;  %v12639_v51 = vld [vmem:[#allocation82_spill] sm:$0xff] }
 0x9c1   : > { %v4755_v63 = vpop.f32.mrf.mxu2  ;;  %v1979_v57 = vadd.f32 %v11809_v38, %v12639_v51 }
 0x9c2   : > { %v3660_v0 = vmax.f32 %v3364_v1, 0.0  ;;  %7918 = vst.msk [vmem:[%s10334_s14 + $0x578] sm:$0xff] %vm7742_vm2, %v7540_v6  ;;  %v4756_v27 = vadd.f32 %v11861_v39, %v4755_v63  ;;  %v1981_v1 = vadd.f32 %v11809_v38, %v12640_v50 }
 0x9c3   : > { %v6147_v52 = vpop.f32.mrf.mxu3 }
 0x9c4   : > { %v3801_v2 = vpack.c.bf16 %v3660_v0, %v3659_v36  ;;  %v5079_v28 = vmax.f32 %v4756_v27, 0.0  ;;  %v6148_v46 = vadd.f32 %v11691_v19, %v6147_v52 }
 0x9c6   : > { %v5229_v4 = vpack.c.bf16 %v5079_v28, %v5078_v12  ;;  %v6498_v60 = vmax.f32 %v6148_v46, 0.0  ;;  %8582 = vmatmul.msk.bf16.gmra.mxu2 %vm2397_vm1, %v3801_v2  ;;  %v2243_v28 = vmax.f32 %v1979_v57, 0.0  ;;  %v2244_v46 = vmax.f32 %v1981_v1, 0.0 }
 0x9c7   : > { %v3366_v18 = vpop.f32.mrf.mxu1  ;;  %v7542_v45 = vpop.f32.mrf.mxu0 }
 0x9c8   : > { %v6657_v24 = vpack.c.bf16 %v6498_v60, %v6497_v53  ;;  %v7543_v56 = vadd.f32 %v11827_v9, %v7542_v45  ;;  %8709 = vmatmul.msk.bf16.gmra.mxu3 %vm2397_vm1, %v5229_v4  ;;  %v3367_v5 = vadd.f32 %v11720_v10, %v3366_v18 }
 0x9c9   : > { %v4758_v43 = vpop.f32.mrf.mxu2 }
 0x9ca   : > { %7919 = vst.msk [vmem:[%s10334_s14 + $0x580] sm:$0xff] %vm7742_vm2, %v7543_v56  ;;  %8455 = vmatmul.msk.bf16.gmra.mxu1 %vm2397_vm1, %v2372_v25  ;;  %8836 = vmatmul.msk.bf16.gmra.mxu0 %vm2397_vm1, %v6657_v24  ;;  %v4759_v44 = vadd.f32 %v11861_v39, %v4758_v43  ;;  %v3661_v31 = vmax.f32 %v3367_v5, 0.0 }
 0x9cb   : > { %v6150_v33 = vpop.f32.mrf.mxu3 }
 0x9cc   : > { %v6151_v14 = vadd.f32 %v11691_v19, %v6150_v33  ;;  %v5080_v41 = vmax.f32 %v4759_v44, 0.0  ;;  %v2374_v33 = vpack.c.bf16 %v2244_v46, %v2243_v28 }
 0x9ce   : > { %v6499_v23 = vmax.f32 %v6151_v14, 0.0 }
 0x9cf   : > { %v3368_v15 = vpop.f32.mrf.mxu1  ;;  %v7544_v54 = vpop.f32.mrf.mxu0 }
 0x9d0   : > { %v3369_v7 = vadd.f32 %v11720_v10, %v3368_v15  ;;  %v7545_v37 = vadd.f32 %v11827_v9, %v7544_v54  ;;  %v12641_v54 = vld [vmem:[#allocation84_spill] sm:$0xff] }
 0x9d1   : > { %v4760_v30 = vpop.f32.mrf.mxu2  ;;  %v1984_v44 = vadd.f32 %v11809_v38, %v12641_v54 }
 0x9d2   : > { %v3662_v16 = vmax.f32 %v3369_v7, 0.0  ;;  %7920 = vst.msk [vmem:[%s10334_s14 + $0x588] sm:$0xff] %vm7742_vm2, %v7545_v37  ;;  %v4761_v42 = vadd.f32 %v11861_v39, %v4760_v30  ;;  %v12642_v7 = vld [vmem:[#allocation85_spill] sm:$0xff] }
 0x9d3   : > { %v6152_v34 = vpop.f32.mrf.mxu3  ;;  %v1986_v37 = vadd.f32 %v11809_v38, %v12642_v7 }
 0x9d4   : > { %v3802_v17 = vpack.c.bf16 %v3662_v16, %v3661_v31  ;;  %v5081_v21 = vmax.f32 %v4761_v42, 0.0  ;;  %v6153_v55 = vadd.f32 %v11691_v19, %v6152_v34 }
 0x9d6   : > { %v5230_v29 = vpack.c.bf16 %v5081_v21, %v5080_v41  ;;  %v6500_v40 = vmax.f32 %v6153_v55, 0.0  ;;  %8583 = vmatmul.msk.bf16.gmra.mxu2 %vm2397_vm1, %v3802_v17  ;;  %v2245_v21 = vmax.f32 %v1984_v44, 0.0  ;;  %v2246_v55 = vmax.f32 %v1986_v37, 0.0 }
 0x9d7   : > { %v3371_v3 = vpop.f32.mrf.mxu1  ;;  %v7547_v47 = vpop.f32.mrf.mxu0 }
 0x9d8   : > { %v6658_v20 = vpack.c.bf16 %v6500_v40, %v6499_v23  ;;  %v7548_v48 = vadd.f32 %v11827_v9, %v7547_v47  ;;  %8710 = vmatmul.msk.bf16.gmra.mxu3 %vm2397_vm1, %v5230_v29  ;;  %v3372_v32 = vadd.f32 %v11720_v10, %v3371_v3 }
 0x9d9   : > { %v4763_v26 = vpop.f32.mrf.mxu2 }
 0x9da   : > { %7921 = vst.msk [vmem:[%s10334_s14 + $0x590] sm:$0xff] %vm7742_vm2, %v7548_v48  ;;  %8456 = vmatmul.msk.bf16.gmra.mxu1 %vm2397_vm1, %v2373_v62  ;;  %8837 = vmatmul.msk.bf16.gmra.mxu0 %vm2397_vm1, %v6658_v20  ;;  %v4764_v36 = vadd.f32 %v11861_v39, %v4763_v26  ;;  %v3663_v8 = vmax.f32 %v3372_v32, 0.0  ;;  %v2375_v32 = vpack.c.bf16 %v2246_v55, %v2245_v21 }
 0x9db   : > { %v6155_v19 = vpop.f32.mrf.mxu3 }
 0x9dc   : > { %v6156_v52 = vadd.f32 %v12007_v35, %v6155_v19  ;;  %v5082_v4 = vmax.f32 %v4764_v36, 0.0 }
 0x9de   : > { %v6501_v45 = vmax.f32 %v6156_v52, 0.0 }
 0x9df   : > { %v3373_v6 = vpop.f32.mrf.mxu1  ;;  %v7549_v63 = vpop.f32.mrf.mxu0 }
 0x9e0   : > { %v3374_v22 = vadd.f32 %v11720_v10, %v3373_v6  ;;  %v7550_v0 = vadd.f32 %v11827_v9, %v7549_v63  ;;  %v12643_v63 = vld [vmem:[#allocation86_spill] sm:$0xff] }
 0x9e1   : > { %v4765_v27 = vpop.f32.mrf.mxu2  ;;  %v1989_v36 = vadd.f32 %v11809_v38, %v12643_v63 }
 0x9e2   : > { %v3664_v12 = vmax.f32 %v3374_v22, 0.0  ;;  %7922 = vst.msk [vmem:[%s10334_s14 + $0x598] sm:$0xff] %vm7742_vm2, %v7550_v0  ;;  %v4766_v2 = vadd.f32 %v11861_v39, %v4765_v27  ;;  %v12644_v22 = vld [vmem:[#allocation87_spill] sm:$0xff] }
 0x9e3   : > { %v6157_v53 = vpop.f32.mrf.mxu3  ;;  %v1991_v0 = vadd.f32 %v11809_v38, %v12644_v22 }
 0x9e4   : > { %v3803_v60 = vpack.c.bf16 %v3664_v12, %v3663_v8  ;;  %v5083_v10 = vmax.f32 %v4766_v2, 0.0  ;;  %v6158_v18 = vadd.f32 %v12007_v35, %v6157_v53 }
 0x9e6   : > { %v5231_v25 = vpack.c.bf16 %v5083_v10, %v5082_v4  ;;  %v6502_v24 = vmax.f32 %v6158_v18, 0.0  ;;  %8584 = vmatmul.msk.bf16.gmra.mxu2 %vm2397_vm1, %v3803_v60  ;;  %v2247_v10 = vmax.f32 %v1989_v36, 0.0  ;;  %v2248_v18 = vmax.f32 %v1991_v0, 0.0 }
 0x9e7   : > { %v3376_v56 = vpop.f32.mrf.mxu1  ;;  %v7552_v43 = vpop.f32.mrf.mxu0 }
 0x9e8   : > { %v6659_v5 = vpack.c.bf16 %v6502_v24, %v6501_v45  ;;  %v7553_v11 = vadd.f32 %v11827_v9, %v7552_v43  ;;  %8711 = vmatmul.msk.bf16.gmra.mxu3 %vm2397_vm1, %v5231_v25  ;;  %v3377_v15 = vadd.f32 %v12022_v58, %v3376_v56 }
 0x9e9   : > { %v4768_v13 = vpop.f32.mrf.mxu2 }
 0x9ea   : > { %7923 = vst.msk [vmem:[%s10334_s14 + $0x5a0] sm:$0xff] %vm7742_vm2, %v7553_v11  ;;  %8457 = vmatmul.msk.bf16.gmra.mxu1 %vm2397_vm1, %v2374_v33  ;;  %8838 = vmatmul.msk.bf16.gmra.mxu0 %vm2397_vm1, %v6659_v5  ;;  %v4769_v14 = vadd.f32 %v11861_v39, %v4768_v13  ;;  %v3665_v61 = vmax.f32 %v3377_v15, 0.0 }
 0x9eb   : > { %v6160_v49 = vpop.f32.mrf.mxu3 }
 0x9ec   : > { %v6161_v34 = vadd.f32 %v12007_v35, %v6160_v49  ;;  %v5084_v29 = vmax.f32 %v4769_v14, 0.0  ;;  %v2376_v49 = vpack.c.bf16 %v2248_v18, %v2247_v10 }
 0x9ee   : > { %v6503_v62 = vmax.f32 %v6161_v34, 0.0 }
 0x9ef   : > { %v3378_v30 = vpop.f32.mrf.mxu1  ;;  %v7554_v31 = vpop.f32.mrf.mxu0 }
 0x9f0   : > { %v3379_v16 = vadd.f32 %v12022_v58, %v3378_v30  ;;  %v7555_v42 = vadd.f32 %v11827_v9, %v7554_v31 }
 0x9f1   : > { %v4770_v59 = vpop.f32.mrf.mxu2 }
 0x9f2   : > { %v3666_v41 = vmax.f32 %v3379_v16, 0.0  ;;  %7924 = vst.msk [vmem:[%s10334_s14 + $0x5a8] sm:$0xff] %vm7742_vm2, %v7555_v42  ;;  %v4771_v17 = vadd.f32 %v11861_v39, %v4770_v59 }
 0x9f3   : > { %v6162_v23 = vpop.f32.mrf.mxu3 }
 0x9f4   : > { %v3804_v40 = vpack.c.bf16 %v3666_v41, %v3665_v61  ;;  %v5085_v3 = vmax.f32 %v4771_v17, 0.0  ;;  %v6163_v47 = vadd.f32 %v12007_v35, %v6162_v23 }
 0x9f6   : > { %v5232_v20 = vpack.c.bf16 %v5085_v3, %v5084_v29  ;;  %v6504_v48 = vmax.f32 %v6163_v47, 0.0  ;;  %8585 = vmatmul.msk.bf16.gmra.mxu2 %vm2397_vm1, %v3804_v40 }
 0x9f7   : > { %v3381_v26 = vpop.f32.mrf.mxu1  ;;  %v7557_v19 = vpop.f32.mrf.mxu0 }
 0x9f8   : > { %v6660_v51 = vpack.c.bf16 %v6504_v48, %v6503_v62  ;;  %v7558_v57 = vadd.f32 %v11827_v9, %v7557_v19  ;;  %8712 = vmatmul.msk.bf16.gmra.mxu3 %vm2397_vm1, %v5232_v20  ;;  %v3382_v6 = vadd.f32 %v12022_v58, %v3381_v26 }
 0x9f9   : > { %v4773_v50 = vpop.f32.mrf.mxu2 }
 0x9fa   : > { %7925 = vst.msk [vmem:[%s10334_s14 + $0x5b0] sm:$0xff] %vm7742_vm2, %v7558_v57  ;;  %8458 = vmatmul.msk.bf16.gmra.mxu1 %vm2397_vm1, %v2375_v32  ;;  %8839 = vmatmul.msk.bf16.gmra.mxu0 %vm2397_vm1, %v6660_v51  ;;  %v4774_v52 = vadd.f32 %v11861_v39, %v4773_v50  ;;  %v3667_v46 = vmax.f32 %v3382_v6, 0.0 }
 0x9fb   : > { %v6165_v1 = vpop.f32.mrf.mxu3 }
 0x9fc   : > { %v6166_v53 = vadd.f32 %v12007_v35, %v6165_v1  ;;  %v5086_v45 = vmax.f32 %v4774_v52, 0.0 }
 0x9fe   : > { %v6505_v43 = vmax.f32 %v6166_v53, 0.0 }
 0x9ff   : > { %v3383_v27 = vpop.f32.mrf.mxu1  ;;  %v7559_v8 = vpop.f32.mrf.mxu0 }
 0xa00   : > { %v3384_v12 = vadd.f32 %v12022_v58, %v3383_v27  ;;  %v7560_v2 = vadd.f32 %v11827_v9, %v7559_v8 }
 0xa01   : > { %v4775_v28 = vpop.f32.mrf.mxu2 }
 0xa02   : > { %v3668_v4 = vmax.f32 %v3384_v12, 0.0  ;;  %7926 = vst.msk [vmem:[%s10334_s14 + $0x5b8] sm:$0xff] %vm7742_vm2, %v7560_v2  ;;  %v4776_v60 = vadd.f32 %v11861_v39, %v4775_v28 }
 0xa03   : > { %v6167_v38 = vpop.f32.mrf.mxu3 }
 0xa04   : > { %v3805_v25 = vpack.c.bf16 %v3668_v4, %v3667_v46  ;;  %v5087_v24 = vmax.f32 %v4776_v60, 0.0  ;;  %v6168_v56 = vadd.f32 %v12007_v35, %v6167_v38 }
 0xa06   : > { %v5233_v33 = vpack.c.bf16 %v5087_v24, %v5086_v45  ;;  %v6506_v5 = vmax.f32 %v6168_v56, 0.0  ;;  %8586 = vmatmul.msk.bf16.gmra.mxu2 %vm2397_vm1, %v3805_v25 }
 0xa07   : > { %v3386_v11 = vpop.f32.mrf.mxu1  ;;  %v7562_v13 = vpop.f32.mrf.mxu0 }
 0xa08   : > { %v6661_v15 = vpack.c.bf16 %v6506_v5, %v6505_v43  ;;  %v7563_v54 = vadd.f32 %v11827_v9, %v7562_v13  ;;  %8713 = vmatmul.msk.bf16.gmra.mxu3 %vm2397_vm1, %v5233_v33  ;;  %v3387_v37 = vadd.f32 %v12022_v58, %v3386_v11 }
 0xa09   : > { %v4778_v44 = vpop.f32.mrf.mxu2 }
 0xa0a   : > { %7927 = vst.msk [vmem:[%s10334_s14 + $0x5c0] sm:$0xff] %vm7742_vm2, %v7563_v54  ;;  %8459 = vmatmul.msk.bf16.gmra.mxu1 %vm2397_vm1, %v2376_v49  ;;  %8840 = vmatmul.msk.bf16.gmra.mxu0 %vm2397_vm1, %v6661_v15  ;;  %v4779_v14 = vadd.f32 %v11861_v39, %v4778_v44  ;;  %v3669_v61 = vmax.f32 %v3387_v37, 0.0 }
 0xa0b   : > { %v6170_v7 = vpop.f32.mrf.mxu3 }
 0xa0c   : > { %v6171_v34 = vadd.f32 %v12007_v35, %v6170_v7  ;;  %v5088_v55 = vmax.f32 %v4779_v14, 0.0 }
 0xa0e   : > { %v6507_v3 = vmax.f32 %v6171_v34, 0.0 }
 0xa0f   : > { %v3388_v30 = vpop.f32.mrf.mxu1  ;;  %v7564_v31 = vpop.f32.mrf.mxu0 }
 0xa10   : > { %v3389_v16 = vadd.f32 %v12022_v58, %v3388_v30  ;;  %v7565_v42 = vadd.f32 %v11827_v9, %v7564_v31 }
 0xa11   : > { %v4780_v59 = vpop.f32.mrf.mxu2 }
 0xa12   : > { %v3670_v41 = vmax.f32 %v3389_v16, 0.0  ;;  %7928 = vst.msk [vmem:[%s10334_s14 + $0x5c8] sm:$0xff] %vm7742_vm2, %v7565_v42  ;;  %v4781_v17 = vadd.f32 %v11861_v39, %v4780_v59 }
 0xa13   : > { %v6172_v21 = vpop.f32.mrf.mxu3 }
 0xa14   : > { %v3806_v23 = vpack.c.bf16 %v3670_v41, %v3669_v61  ;;  %v5089_v29 = vmax.f32 %v4781_v17, 0.0  ;;  %v6173_v40 = vadd.f32 %v12007_v35, %v6172_v21 }
 0xa16   : > { %v5234_v47 = vpack.c.bf16 %v5089_v29, %v5088_v55  ;;  %v6508_v62 = vmax.f32 %v6173_v40, 0.0  ;;  %8587 = vmatmul.msk.bf16.gmra.mxu2 %vm2397_vm1, %v3806_v23 }
 0xa17   : > { %v3391_v20 = vpop.f32.mrf.mxu1  ;;  %v7567_v48 = vpop.f32.mrf.mxu0 }
 0xa18   : > { %v6662_v26 = vpack.c.bf16 %v6508_v62, %v6507_v3  ;;  %v7568_v19 = vadd.f32 %v11827_v9, %v7567_v48  ;;  %8714 = vmatmul.msk.bf16.gmra.mxu3 %vm2397_vm1, %v5234_v47  ;;  %v3392_v57 = vadd.f32 %v12022_v58, %v3391_v20 }
 0xa19   : > { %v4783_v32 = vpop.f32.mrf.mxu2 }
 0xa1a   : > { %7929 = vst.msk [vmem:[%s10334_s14 + $0x5d0] sm:$0xff] %vm7742_vm2, %v7568_v19  ;;  %8841 = vmatmul.msk.bf16.gmra.mxu0 %vm2397_vm1, %v6662_v26  ;;  %v4784_v6 = vadd.f32 %v11861_v39, %v4783_v32  ;;  %v3671_v0 = vmax.f32 %v3392_v57, 0.0 }
 0xa1b   : > { %v6175_v51 = vpop.f32.mrf.mxu3 }
 0xa1c   : > { %v6176_v27 = vadd.f32 %v12007_v35, %v6175_v51  ;;  %v5090_v2 = vmax.f32 %v4784_v6, 0.0 }
 0xa1e   : > { %v6509_v4 = vmax.f32 %v6176_v27, 0.0 }
 0xa1f   : > { %v3393_v50 = vpop.f32.mrf.mxu1  ;;  %v7569_v1 = vpop.f32.mrf.mxu0 }
 0xa20   : > { %v3394_v63 = vadd.f32 %v12022_v58, %v3393_v50  ;;  %v7570_v36 = vadd.f32 %v11827_v9, %v7569_v1 }
 0xa21   : > { %v4785_v22 = vpop.f32.mrf.mxu2 }
 0xa22   : > { %v3672_v8 = vmax.f32 %v3394_v63, 0.0  ;;  %7930 = vst.msk [vmem:[%s10334_s14 + $0x5d8] sm:$0xff] %vm7742_vm2, %v7570_v36  ;;  %v4786_v52 = vadd.f32 %v11861_v39, %v4785_v22 }
 0xa23   : > { %v6177_v12 = vpop.f32.mrf.mxu3 }
 0xa24   : > { %v3807_v28 = vpack.c.bf16 %v3672_v8, %v3671_v0  ;;  %v5091_v46 = vmax.f32 %v4786_v52, 0.0  ;;  %v6178_v53 = vadd.f32 %v12007_v35, %v6177_v12  ;;  %v12122_v12 = vld [vmem:[%s12473_s10] ss:$0 sm:$0xff] }
 0xa26   : > { %v5235_v60 = vpack.c.bf16 %v5091_v46, %v5090_v2  ;;  %v6510_v10 = vmax.f32 %v6178_v53, 0.0  ;;  %8588 = vmatmul.msk.bf16.gmra.mxu2 %vm2397_vm1, %v3807_v28 }
 0xa27   : > { %v3396_v18 = vpop.f32.mrf.mxu1  ;;  %v7572_v38 = vpop.f32.mrf.mxu0 }
 0xa28   : > { %v6663_v45 = vpack.c.bf16 %v6510_v10, %v6509_v4  ;;  %v7573_v25 = vadd.f32 %v11827_v9, %v7572_v38  ;;  %8715 = vmatmul.msk.bf16.gmra.mxu3 %vm2397_vm1, %v5235_v60  ;;  %v3397_v43 = vadd.f32 %v12022_v58, %v3396_v18 }
 0xa29   : > { %v4788_v24 = vpop.f32.mrf.mxu2 }
 0xa2a   : > { %7931 = vst.msk [vmem:[%s10334_s14 + $0x5e0] sm:$0xff] %vm7742_vm2, %v7573_v25  ;;  %8842 = vmatmul.msk.bf16.gmra.mxu0 %vm2397_vm1, %v6663_v45  ;;  %v4789_v11 = vadd.f32 %v11861_v39, %v4788_v24  ;;  %v3673_v54 = vmax.f32 %v3397_v43, 0.0 }
 0xa2b   : > { %v6180_v56 = vpop.f32.mrf.mxu3 }
 0xa2c   : > { %v6181_v44 = vadd.f32 %v12007_v35, %v6180_v56  ;;  %v5092_v31 = vmax.f32 %v4789_v11, 0.0 }
 0xa2e   : > { %v6511_v59 = vmax.f32 %v6181_v44, 0.0 }
 0xa2f   : > { %v3398_v33 = vpop.f32.mrf.mxu1  ;;  %v7574_v5 = vpop.f32.mrf.mxu0 }
 0xa30   : > { %v3399_v13 = vadd.f32 %v12022_v58, %v3398_v33  ;;  %v7575_v49 = vadd.f32 %v11827_v9, %v7574_v5 }
 0xa31   : > { %v4790_v15 = vpop.f32.mrf.mxu2 }
 0xa32   : > { %v3674_v7 = vmax.f32 %v3399_v13, 0.0  ;;  %7932 = vst.msk [vmem:[%s10334_s14 + $0x5e8] sm:$0xff] %vm7742_vm2, %v7575_v49  ;;  %v4791_v37 = vadd.f32 %v11861_v39, %v4790_v15 }
 0xa33   : > { %v6182_v30 = vpop.f32.mrf.mxu3 }
 0xa34   : > { %v3808_v14 = vpack.c.bf16 %v3674_v7, %v3673_v54  ;;  %v5093_v16 = vmax.f32 %v4791_v37, 0.0  ;;  %v6183_v42 = vadd.f32 %v12007_v35, %v6182_v30 }
 0xa36   : > { %v5236_v61 = vpack.c.bf16 %v5093_v16, %v5092_v31  ;;  %v6512_v34 = vmax.f32 %v6183_v42, 0.0  ;;  %8589 = vmatmul.msk.bf16.gmra.mxu2 %vm2397_vm1, %v3808_v14 }
 0xa37   : > { %v3401_v41 = vpop.f32.mrf.mxu1  ;;  %v7577_v17 = vpop.f32.mrf.mxu0 }
 0xa38   : > { %v6664_v21 = vpack.c.bf16 %v6512_v34, %v6511_v59  ;;  %v7578_v55 = vadd.f32 %v11827_v9, %v7577_v17  ;;  %8716 = vmatmul.msk.bf16.gmra.mxu3 %vm2397_vm1, %v5236_v61  ;;  %v3402_v40 = vadd.f32 %v12022_v58, %v3401_v41 }
 0xa39   : > { %v4793_v23 = vpop.f32.mrf.mxu2 }
 0xa3a   : > { %7933 = vst.msk [vmem:[%s10334_s14 + $0x5f0] sm:$0xff] %vm7742_vm2, %v7578_v55  ;;  %8843 = vmatmul.msk.bf16.gmra.mxu0 %vm2397_vm1, %v6664_v21  ;;  %v4794_v62 = vadd.f32 %v11861_v39, %v4793_v23  ;;  %v3675_v19 = vmax.f32 %v3402_v40, 0.0  ;;  %v12152_v40 = vld [vmem:[%s9113_s22] ss:$0 sm:$0xff] }
 0xa3b   : > { %v6185_v29 = vpop.f32.mrf.mxu3 }
 0xa3c   : > { %v6186_v32 = vadd.f32 %v12007_v35, %v6185_v29  ;;  %v5094_v1 = vmax.f32 %v4794_v62, 0.0 }
 0xa3e   : > { %v6513_v22 = vmax.f32 %v6186_v32, 0.0 }
 0xa3f   : > { %v3403_v3 = vpop.f32.mrf.mxu1  ;;  %v7579_v47 = vpop.f32.mrf.mxu0 }
 0xa40   : > { %v3404_v20 = vadd.f32 %v12022_v58, %v3403_v3  ;;  %v7580_v48 = vadd.f32 %v11827_v9, %v7579_v47 }
 0xa41   : > { %v4795_v26 = vpop.f32.mrf.mxu2 }
 0xa42   : > { %v3676_v51 = vmax.f32 %v3404_v20, 0.0  ;;  %7934 = vst.msk [vmem:[%s10334_s14 + $0x5f8] sm:$0xff] %vm7742_vm2, %v7580_v48  ;;  %v4796_v57 = vadd.f32 %v11861_v39, %v4795_v26 }
 0xa43   : > { %v6187_v50 = vpop.f32.mrf.mxu3 }
 0xa44   : > { %v3809_v6 = vpack.c.bf16 %v3676_v51, %v3675_v19  ;;  %v5095_v63 = vmax.f32 %v4796_v57, 0.0  ;;  %v6188_v36 = vadd.f32 %v12007_v35, %v6187_v50 }
 0xa46   : > { %v5237_v0 = vpack.c.bf16 %v5095_v63, %v5094_v1  ;;  %v6514_v27 = vmax.f32 %v6188_v36, 0.0  ;;  %8590 = vmatmul.msk.bf16.gmra.mxu2 %vm2397_vm1, %v3809_v6 }
 0xa47   : > { %v3406_v9 = vpop.f32.mrf.mxu1  ;;  %v7582_v8 = vpop.f32.mrf.mxu0 }
 0xa48   : > { %v6665_v52 = vpack.c.bf16 %v6514_v27, %v6513_v22  ;;  %v7583_v2 = vadd.f32 %v12122_v12, %v7582_v8  ;;  %8717 = vmatmul.msk.bf16.gmra.mxu3 %vm2397_vm1, %v5237_v0  ;;  %v3407_v53 = vadd.f32 %v12022_v58, %v3406_v9 }
 0xa49   : > { %v4798_v28 = vpop.f32.mrf.mxu2 }
 0xa4a   : > { %7935 = vst.msk [vmem:[%s10334_s14 + $0x600] sm:$0xff] %vm7742_vm2, %v7583_v2  ;;  %8844 = vmatmul.msk.bf16.gmra.mxu0 %vm2397_vm1, %v6665_v52  ;;  %v4799_v10 = vadd.f32 %v11861_v39, %v4798_v28  ;;  %v3677_v25 = vmax.f32 %v3407_v53, 0.0 }
 0xa4b   : > { %v6190_v46 = vpop.f32.mrf.mxu3 }
 0xa4c   : > { %v6191_v24 = vadd.f32 %v12007_v35, %v6190_v46  ;;  %v5096_v5 = vmax.f32 %v4799_v10, 0.0 }
 0xa4e   : > { %v6515_v15 = vmax.f32 %v6191_v24, 0.0 }
 0xa4f   : > { %v3408_v4 = vpop.f32.mrf.mxu1  ;;  %v7584_v60 = vpop.f32.mrf.mxu0 }
 0xa50   : > { %v3409_v18 = vadd.f32 %v12022_v58, %v3408_v4  ;;  %v7585_v38 = vadd.f32 %v12122_v12, %v7584_v60 }
 0xa51   : > { %v4800_v45 = vpop.f32.mrf.mxu2 }
 0xa52   : > { %v3678_v56 = vmax.f32 %v3409_v18, 0.0  ;;  %7936 = vst.msk [vmem:[%s10334_s14 + $0x608] sm:$0xff] %vm7742_vm2, %v7585_v38  ;;  %v4801_v43 = vadd.f32 %v11861_v39, %v4800_v45 }
 0xa53   : > { %v6192_v33 = vpop.f32.mrf.mxu3 }
 0xa54   : > { %v3810_v11 = vpack.c.bf16 %v3678_v56, %v3677_v25  ;;  %v5097_v13 = vmax.f32 %v4801_v43, 0.0  ;;  %v6193_v49 = vadd.f32 %v12007_v35, %v6192_v33 }
 0xa56   : > { %v5238_v54 = vpack.c.bf16 %v5097_v13, %v5096_v5  ;;  %v6516_v44 = vmax.f32 %v6193_v49, 0.0  ;;  %8591 = vmatmul.msk.bf16.gmra.mxu2 %vm2397_vm1, %v3810_v11 }
 0xa57   : > { %v3411_v7 = vpop.f32.mrf.mxu1  ;;  %v7587_v37 = vpop.f32.mrf.mxu0 }
 0xa58   : > { %v6666_v30 = vpack.c.bf16 %v6516_v44, %v6515_v15  ;;  %v7588_v31 = vadd.f32 %v12122_v12, %v7587_v37  ;;  %8718 = vmatmul.msk.bf16.gmra.mxu3 %vm2397_vm1, %v5238_v54  ;;  %v3412_v42 = vadd.f32 %v12022_v58, %v3411_v7 }
 0xa59   : > { %v4803_v14 = vpop.f32.mrf.mxu2 }
 0xa5a   : > { %7937 = vst.msk [vmem:[%s10334_s14 + $0x610] sm:$0xff] %vm7742_vm2, %v7588_v31  ;;  %8845 = vmatmul.msk.bf16.gmra.mxu0 %vm2397_vm1, %v6666_v30  ;;  %v4804_v34 = vadd.f32 %v11861_v39, %v4803_v14  ;;  %v3679_v55 = vmax.f32 %v3412_v42, 0.0 }
 0xa5b   : > { %v6195_v16 = vpop.f32.mrf.mxu3 }
 0xa5c   : > { %v6196_v23 = vadd.f32 %v12007_v35, %v6195_v16  ;;  %v5098_v62 = vmax.f32 %v4804_v34, 0.0 }
 0xa5e   : > { %v6517_v26 = vmax.f32 %v6196_v23, 0.0 }
 0xa5f   : > { %v3413_v59 = vpop.f32.mrf.mxu1  ;;  %v7589_v61 = vpop.f32.mrf.mxu0 }
 0xa60   : > { %v3414_v41 = vadd.f32 %v12022_v58, %v3413_v59  ;;  %v7590_v17 = vadd.f32 %v12122_v12, %v7589_v61 }
 0xa61   : > { %v4805_v21 = vpop.f32.mrf.mxu2 }
 0xa62   : > { %v3680_v29 = vmax.f32 %v3414_v41, 0.0  ;;  %7938 = vst.msk [vmem:[%s10334_s14 + $0x618] sm:$0xff] %vm7742_vm2, %v7590_v17  ;;  %v4806_v3 = vadd.f32 %v12152_v40, %v4805_v21 }
 0xa63   : > { %v6197_v47 = vpop.f32.mrf.mxu3 }
 0xa64   : > { %v3811_v20 = vpack.c.bf16 %v3680_v29, %v3679_v55  ;;  %v5099_v39 = vmax.f32 %v4806_v3, 0.0  ;;  %v6198_v48 = vadd.f32 %v12007_v35, %v6197_v47 }
 0xa66   : > { %v5239_v19 = vpack.c.bf16 %v5099_v39, %v5098_v62  ;;  %v6518_v32 = vmax.f32 %v6198_v48, 0.0  ;;  %8592 = vmatmul.msk.bf16.gmra.mxu2 %vm2397_vm1, %v3811_v20 }
 0xa67   : > { %v3416_v51 = vpop.f32.mrf.mxu1  ;;  %v7592_v57 = vpop.f32.mrf.mxu0 }
 0xa68   : > { %v6667_v50 = vpack.c.bf16 %v6518_v32, %v6517_v26  ;;  %v7593_v1 = vadd.f32 %v12122_v12, %v7592_v57  ;;  %8719 = vmatmul.msk.bf16.gmra.mxu3 %vm2397_vm1, %v5239_v19  ;;  %v3417_v36 = vadd.f32 %v12022_v58, %v3416_v51 }
 0xa69   : > { %v4808_v6 = vpop.f32.mrf.mxu2 }
 0xa6a   : > { %7939 = vst.msk [vmem:[%s10334_s14 + $0x620] sm:$0xff] %vm7742_vm2, %v7593_v1  ;;  %8846 = vmatmul.msk.bf16.gmra.mxu0 %vm2397_vm1, %v6667_v50  ;;  %v4809_v27 = vadd.f32 %v12152_v40, %v4808_v6  ;;  %v3681_v2 = vmax.f32 %v3417_v36, 0.0 }
 0xa6b   : > { %v6200_v63 = vpop.f32.mrf.mxu3 }
 0xa6c   : > { %v6201_v28 = vadd.f32 %v12007_v35, %v6200_v63  ;;  %v5100_v60 = vmax.f32 %v4809_v27, 0.0 }
 0xa6e   : > { %v6519_v45 = vmax.f32 %v6201_v28, 0.0 }
 0xa6f   : > { %v3418_v22 = vpop.f32.mrf.mxu1  ;;  %v7594_v0 = vpop.f32.mrf.mxu0 }
 0xa70   : > { %v3419_v9 = vadd.f32 %v12022_v58, %v3418_v22  ;;  %v7595_v8 = vadd.f32 %v12122_v12, %v7594_v0 }
 0xa71   : > { %v4810_v52 = vpop.f32.mrf.mxu2 }
 0xa72   : > { %v3682_v46 = vmax.f32 %v3419_v9, 0.0  ;;  %7940 = vst.msk [vmem:[%s10334_s14 + $0x628] sm:$0xff] %vm7742_vm2, %v7595_v8  ;;  %v4811_v53 = vadd.f32 %v12152_v40, %v4810_v52 }
 0xa73   : > { %v6202_v4 = vpop.f32.mrf.mxu3 }
 0xa74   : > { %v3812_v10 = vpack.c.bf16 %v3682_v46, %v3681_v2  ;;  %v5101_v18 = vmax.f32 %v4811_v53, 0.0  ;;  %v6203_v38 = vadd.f32 %v12007_v35, %v6202_v4 }
 0xa76   : > { %v5240_v25 = vpack.c.bf16 %v5101_v18, %v5100_v60  ;;  %v6520_v24 = vmax.f32 %v6203_v38, 0.0  ;;  %8593 = vmatmul.msk.bf16.gmra.mxu2 %vm2397_vm1, %v3812_v10 }
 0xa77   : > { %v3421_v56 = vpop.f32.mrf.mxu1  ;;  %v7597_v43 = vpop.f32.mrf.mxu0 }
 0xa78   : > { %v6668_v33 = vpack.c.bf16 %v6520_v24, %v6519_v45  ;;  %v7598_v5 = vadd.f32 %v12122_v12, %v7597_v43  ;;  %8720 = vmatmul.msk.bf16.gmra.mxu3 %vm2397_vm1, %v5240_v25  ;;  %v3422_v49 = vadd.f32 %v12022_v58, %v3421_v56 }
 0xa79   : > { %v4813_v11 = vpop.f32.mrf.mxu2 }
 0xa7a   : > { %7941 = vst.msk [vmem:[%s10334_s14 + $0x630] sm:$0xff] %vm7742_vm2, %v7598_v5  ;;  %8847 = vmatmul.msk.bf16.gmra.mxu0 %vm2397_vm1, %v6668_v33  ;;  %v4814_v44 = vadd.f32 %v12152_v40, %v4813_v11  ;;  %v3683_v31 = vmax.f32 %v3422_v49, 0.0 }
 0xa7b   : > { %v6205_v13 = vpop.f32.mrf.mxu3 }
 0xa7c   : > { %v6206_v14 = vadd.f32 %v12007_v35, %v6205_v13  ;;  %v5102_v61 = vmax.f32 %v4814_v44, 0.0 }
 0xa7e   : > { %v6521_v21 = vmax.f32 %v6206_v14, 0.0 }
 0xa7f   : > { %v3423_v15 = vpop.f32.mrf.mxu1  ;;  %v7599_v54 = vpop.f32.mrf.mxu0 }
 0xa80   : > { %v3424_v7 = vadd.f32 %v12022_v58, %v3423_v15  ;;  %v7600_v37 = vadd.f32 %v12122_v12, %v7599_v54 }
 0xa81   : > { %v4815_v30 = vpop.f32.mrf.mxu2 }
 0xa82   : > { %v3684_v16 = vmax.f32 %v3424_v7, 0.0  ;;  %7942 = vst.msk [vmem:[%s10334_s14 + $0x638] sm:$0xff] %vm7742_vm2, %v7600_v37  ;;  %v4816_v42 = vadd.f32 %v12152_v40, %v4815_v30 }
 0xa83   : > { %v6207_v59 = vpop.f32.mrf.mxu3 }
 0xa84   : > { %v3813_v34 = vpack.c.bf16 %v3684_v16, %v3683_v31  ;;  %v5103_v41 = vmax.f32 %v4816_v42, 0.0  ;;  %v6208_v17 = vadd.f32 %v12007_v35, %v6207_v59 }
 0xa86   : > { %v5241_v55 = vpack.c.bf16 %v5103_v41, %v5102_v61  ;;  %v6522_v23 = vmax.f32 %v6208_v17, 0.0  ;;  %8594 = vmatmul.msk.bf16.gmra.mxu2 %vm2397_vm1, %v3813_v34 }
 0xa87   : > { %v3426_v29 = vpop.f32.mrf.mxu1  ;;  %v7602_v3 = vpop.f32.mrf.mxu0 }
 0xa88   : > { %v6669_v47 = vpack.c.bf16 %v6522_v23, %v6521_v21  ;;  %v7603_v62 = vadd.f32 %v12122_v12, %v7602_v3  ;;  %8721 = vmatmul.msk.bf16.gmra.mxu3 %vm2397_vm1, %v5241_v55  ;;  %v3427_v48 = vadd.f32 %v12022_v58, %v3426_v29 }
 0xa89   : > { %v4818_v20 = vpop.f32.mrf.mxu2 }
 0xa8a   : > { %7943 = vst.msk [vmem:[%s10334_s14 + $0x640] sm:$0xff] %vm7742_vm2, %v7603_v62  ;;  %8848 = vmatmul.msk.bf16.gmra.mxu0 %vm2397_vm1, %v6669_v47  ;;  %v4819_v32 = vadd.f32 %v12152_v40, %v4818_v20  ;;  %v3685_v1 = vmax.f32 %v3427_v48, 0.0 }
 0xa8b   : > { %v6210_v39 = vpop.f32.mrf.mxu3 }
 0xa8c   : > { %v6211_v6 = vadd.f32 %v12007_v35, %v6210_v39  ;;  %v5104_v0 = vmax.f32 %v4819_v32, 0.0 }
 0xa8e   : > { %v6523_v52 = vmax.f32 %v6211_v6, 0.0 }
 0xa8f   : > { %v3428_v26 = vpop.f32.mrf.mxu1  ;;  %v7604_v19 = vpop.f32.mrf.mxu0 }
 0xa90   : > { %v3429_v51 = vadd.f32 %v12022_v58, %v3428_v26  ;;  %v7605_v57 = vadd.f32 %v12122_v12, %v7604_v19 }
 0xa91   : > { %v4820_v50 = vpop.f32.mrf.mxu2 }
 0xa92   : > { %v3686_v63 = vmax.f32 %v3429_v51, 0.0  ;;  %7944 = vst.msk [vmem:[%s10334_s14 + $0x648] sm:$0xff] %vm7742_vm2, %v7605_v57  ;;  %v4821_v36 = vadd.f32 %v12152_v40, %v4820_v50 }
 0xa93   : > { %v6212_v22 = vpop.f32.mrf.mxu3 }
 0xa94   : > { %v3814_v27 = vpack.c.bf16 %v3686_v63, %v3685_v1  ;;  %v5105_v9 = vmax.f32 %v4821_v36, 0.0  ;;  %v6213_v8 = vadd.f32 %v12007_v35, %v6212_v22 }
 0xa96   : > { %v5242_v58 = vpack.c.bf16 %v5105_v9, %v5104_v0  ;;  %v6524_v2 = vmax.f32 %v6213_v8, 0.0  ;;  %8595 = vmatmul.msk.bf16.gmra.mxu2 %vm2397_vm1, %v3814_v27 }
 0xa97   : > { %v7607_v28 = vpop.f32.mrf.mxu0 }
 0xa98   : > { %v6670_v46 = vpack.c.bf16 %v6524_v2, %v6523_v52  ;;  %v7608_v53 = vadd.f32 %v12122_v12, %v7607_v28  ;;  %8722 = vmatmul.msk.bf16.gmra.mxu3 %vm2397_vm1, %v5242_v58 }
 0xa99   : > { %v4823_v4 = vpop.f32.mrf.mxu2 }
 0xa9a   : > { %7945 = vst.msk [vmem:[%s10334_s14 + $0x650] sm:$0xff] %vm7742_vm2, %v7608_v53  ;;  %8849 = vmatmul.msk.bf16.gmra.mxu0 %vm2397_vm1, %v6670_v46  ;;  %v4824_v18 = vadd.f32 %v12152_v40, %v4823_v4 }
 0xa9b   : > { %v6215_v60 = vpop.f32.mrf.mxu3 }
 0xa9c   : > { %v6216_v25 = vadd.f32 %v12007_v35, %v6215_v60  ;;  %v5106_v43 = vmax.f32 %v4824_v18, 0.0 }
 0xa9e   : > { %v6525_v11 = vmax.f32 %v6216_v25, 0.0 }
 0xa9f   : > { %v7609_v10 = vpop.f32.mrf.mxu0 }
 0xaa0   : > { %v7610_v38 = vadd.f32 %v12122_v12, %v7609_v10 }
 0xaa1   : > { %v4825_v45 = vpop.f32.mrf.mxu2 }
 0xaa2   : > { %7946 = vst.msk [vmem:[%s10334_s14 + $0x658] sm:$0xff] %vm7742_vm2, %v7610_v38  ;;  %v4826_v24 = vadd.f32 %v12152_v40, %v4825_v45 }
 0xaa3   : > { %v6217_v56 = vpop.f32.mrf.mxu3 }
 0xaa4   : > { %v5107_v33 = vmax.f32 %v4826_v24, 0.0  ;;  %v6218_v5 = vadd.f32 %v12007_v35, %v6217_v56 }
 0xaa6   : > { %v5243_v13 = vpack.c.bf16 %v5107_v33, %v5106_v43  ;;  %v6526_v49 = vmax.f32 %v6218_v5, 0.0 }
 0xaa7   : > { %v7612_v15 = vpop.f32.mrf.mxu0 }
 0xaa8   : > { %v6671_v54 = vpack.c.bf16 %v6526_v49, %v6525_v11  ;;  %v7613_v44 = vadd.f32 %v12122_v12, %v7612_v15  ;;  %8723 = vmatmul.msk.bf16.gmra.mxu3 %vm2397_vm1, %v5243_v13 }
 0xaa9   : > { %v4828_v7 = vpop.f32.mrf.mxu2 }
 0xaaa   : > { %7947 = vst.msk [vmem:[%s10334_s14 + $0x660] sm:$0xff] %vm7742_vm2, %v7613_v44  ;;  %8850 = vmatmul.msk.bf16.gmra.mxu0 %vm2397_vm1, %v6671_v54  ;;  %v4829_v31 = vadd.f32 %v12152_v40, %v4828_v7 }
 0xaab   : > { %v6220_v37 = vpop.f32.mrf.mxu3 }
 0xaac   : > { %v6221_v42 = vadd.f32 %v12007_v35, %v6220_v37  ;;  %v5108_v34 = vmax.f32 %v4829_v31, 0.0 }
 0xaae   : > { %v6527_v21 = vmax.f32 %v6221_v42, 0.0 }
 0xaaf   : > { %v7614_v30 = vpop.f32.mrf.mxu0 }
 0xab0   : > { %v7615_v14 = vadd.f32 %v12122_v12, %v7614_v30 }
 0xab1   : > { %v4830_v16 = vpop.f32.mrf.mxu2 }
 0xab2   : > { %7948 = vst.msk [vmem:[%s10334_s14 + $0x668] sm:$0xff] %vm7742_vm2, %v7615_v14  ;;  %v4831_v59 = vadd.f32 %v12152_v40, %v4830_v16 }
 0xab3   : > { %v6222_v61 = vpop.f32.mrf.mxu3 }
 0xab4   : > { %v5109_v41 = vmax.f32 %v4831_v59, 0.0  ;;  %v6223_v17 = vadd.f32 %v12007_v35, %v6222_v61 }
 0xab6   : > { %v5244_v55 = vpack.c.bf16 %v5109_v41, %v5108_v34  ;;  %v6528_v23 = vmax.f32 %v6223_v17, 0.0 }
 0xab7   : > { %v7617_v29 = vpop.f32.mrf.mxu0 }
 0xab8   : > { %v6672_v3 = vpack.c.bf16 %v6528_v23, %v6527_v21  ;;  %v7618_v47 = vadd.f32 %v12122_v12, %v7617_v29  ;;  %8724 = vmatmul.msk.bf16.gmra.mxu3 %vm2397_vm1, %v5244_v55 }
 0xab9   : > { %v4833_v62 = vpop.f32.mrf.mxu2 }
 0xaba   : > { %7949 = vst.msk [vmem:[%s10334_s14 + $0x670] sm:$0xff] %vm7742_vm2, %v7618_v47  ;;  %8851 = vmatmul.msk.bf16.gmra.mxu0 %vm2397_vm1, %v6672_v3  ;;  %v4834_v48 = vadd.f32 %v12152_v40, %v4833_v62 }
 0xabb   : > { %v6225_v20 = vpop.f32.mrf.mxu3 }
 0xabc   : > { %v6226_v32 = vadd.f32 %v12007_v35, %v6225_v20  ;;  %v5110_v50 = vmax.f32 %v4834_v48, 0.0 }
 0xabe   : > { %v6529_v63 = vmax.f32 %v6226_v32, 0.0 }
 0xabf   : > { %v7619_v39 = vpop.f32.mrf.mxu0 }
 0xac0   : > { %v7620_v26 = vadd.f32 %v12122_v12, %v7619_v39 }
 0xac1   : > { %v4835_v19 = vpop.f32.mrf.mxu2 }
 0xac2   : > { %7950 = vst.msk [vmem:[%s10334_s14 + $0x678] sm:$0xff] %vm7742_vm2, %v7620_v26  ;;  %v4836_v51 = vadd.f32 %v12152_v40, %v4835_v19 }
 0xac3   : > { %v6227_v57 = vpop.f32.mrf.mxu3 }
 0xac4   : > { %v5111_v1 = vmax.f32 %v4836_v51, 0.0  ;;  %v6228_v6 = vadd.f32 %v12007_v35, %v6227_v57 }
 0xac6   : > { %v5245_v36 = vpack.c.bf16 %v5111_v1, %v5110_v50  ;;  %v6530_v22 = vmax.f32 %v6228_v6, 0.0 }
 0xac7   : > { %v7622_v0 = vpop.f32.mrf.mxu0 }
 0xac8   : > { %v6673_v27 = vpack.c.bf16 %v6530_v22, %v6529_v63  ;;  %v7623_v9 = vadd.f32 %v12122_v12, %v7622_v0  ;;  %8725 = vmatmul.msk.bf16.gmra.mxu3 %vm2397_vm1, %v5245_v36 }
 0xac9   : > { %v4838_v8 = vpop.f32.mrf.mxu2 }
 0xaca   : > { %7951 = vst.msk [vmem:[%s10334_s14 + $0x680] sm:$0xff] %vm7742_vm2, %v7623_v9  ;;  %8852 = vmatmul.msk.bf16.gmra.mxu0 %vm2397_vm1, %v6673_v27  ;;  %v4839_v2 = vadd.f32 %v12152_v40, %v4838_v8 }
 0xacb   : > { %v6230_v52 = vpop.f32.mrf.mxu3 }
 0xacc   : > { %v6231_v53 = vadd.f32 %v12007_v35, %v6230_v52  ;;  %v5112_v10 = vmax.f32 %v4839_v2, 0.0 }
 0xace   : > { %v6531_v45 = vmax.f32 %v6231_v53, 0.0 }
 0xacf   : > { %v7624_v58 = vpop.f32.mrf.mxu0 }
 0xad0   : > { %v7625_v28 = vadd.f32 %v12122_v12, %v7624_v58 }
 0xad1   : > { %v4840_v46 = vpop.f32.mrf.mxu2 }
 0xad2   : > { %7952 = vst.msk [vmem:[%s10334_s14 + $0x688] sm:$0xff] %vm7742_vm2, %v7625_v28  ;;  %v4841_v4 = vadd.f32 %v12152_v40, %v4840_v46 }
 0xad3   : > { %v6232_v60 = vpop.f32.mrf.mxu3 }
 0xad4   : > { %v5113_v18 = vmax.f32 %v4841_v4, 0.0  ;;  %v6233_v38 = vadd.f32 %v12007_v35, %v6232_v60 }
 0xad6   : > { %v5246_v25 = vpack.c.bf16 %v5113_v18, %v5112_v10  ;;  %v6532_v24 = vmax.f32 %v6233_v38, 0.0 }
 0xad7   : > { %v7627_v56 = vpop.f32.mrf.mxu0 }
 0xad8   : > { %v6674_v43 = vpack.c.bf16 %v6532_v24, %v6531_v45  ;;  %v7628_v33 = vadd.f32 %v12122_v12, %v7627_v56  ;;  %8726 = vmatmul.msk.bf16.gmra.mxu3 %vm2397_vm1, %v5246_v25 }
 0xad9   : > { %v4843_v5 = vpop.f32.mrf.mxu2 }
 0xada   : > { %7953 = vst.msk [vmem:[%s10334_s14 + $0x690] sm:$0xff] %vm7742_vm2, %v7628_v33  ;;  %8853 = vmatmul.msk.bf16.gmra.mxu0 %vm2397_vm1, %v6674_v43  ;;  %v4844_v49 = vadd.f32 %v12152_v40, %v4843_v5  ;;  %v12294_v43 = vld [vmem:[%s9118_s26] ss:$0 sm:$0xff] }
 0xadb   : > { %v6235_v11 = vpop.f32.mrf.mxu3 }
 0xadc   : > { %v6236_v44 = vadd.f32 %v12007_v35, %v6235_v11  ;;  %v5114_v30 = vmax.f32 %v4844_v49, 0.0 }
 0xade   : > { %v6533_v16 = vmax.f32 %v6236_v44, 0.0 }
 0xadf   : > { %v7629_v13 = vpop.f32.mrf.mxu0 }
 0xae0   : > { %v7630_v15 = vadd.f32 %v12122_v12, %v7629_v13 }
 0xae1   : > { %v4845_v54 = vpop.f32.mrf.mxu2 }
 0xae2   : > { %7954 = vst.msk [vmem:[%s10334_s14 + $0x698] sm:$0xff] %vm7742_vm2, %v7630_v15  ;;  %v4846_v7 = vadd.f32 %v12152_v40, %v4845_v54 }
 0xae3   : > { %v6237_v37 = vpop.f32.mrf.mxu3 }
 0xae4   : > { %v5115_v31 = vmax.f32 %v4846_v7, 0.0  ;;  %v6238_v14 = vadd.f32 %v12007_v35, %v6237_v37 }
 0xae6   : > { %v5247_v42 = vpack.c.bf16 %v5115_v31, %v5114_v30  ;;  %v6534_v59 = vmax.f32 %v6238_v14, 0.0 }
 0xae7   : > { %v7632_v61 = vpop.f32.mrf.mxu0 }
 0xae8   : > { %v6675_v34 = vpack.c.bf16 %v6534_v59, %v6533_v16  ;;  %v7633_v41 = vadd.f32 %v12122_v12, %v7632_v61  ;;  %8727 = vmatmul.msk.bf16.gmra.mxu3 %vm2397_vm1, %v5247_v42 }
 0xae9   : > { %v4848_v17 = vpop.f32.mrf.mxu2 }
 0xaea   : > { %7955 = vst.msk [vmem:[%s10334_s14 + $0x6a0] sm:$0xff] %vm7742_vm2, %v7633_v41  ;;  %8854 = vmatmul.msk.bf16.gmra.mxu0 %vm2397_vm1, %v6675_v34  ;;  %v4849_v23 = vadd.f32 %v12152_v40, %v4848_v17 }
 0xaeb   : > { %v6240_v21 = vpop.f32.mrf.mxu3 }
 0xaec   : > { %v6241_v47 = vadd.f32 %v12007_v35, %v6240_v21  ;;  %v5116_v39 = vmax.f32 %v4849_v23, 0.0 }
 0xaee   : > { %v6535_v19 = vmax.f32 %v6241_v47, 0.0 }
 0xaef   : > { %v7634_v55 = vpop.f32.mrf.mxu0 }
 0xaf0   : > { %v7635_v29 = vadd.f32 %v12122_v12, %v7634_v55 }
 0xaf1   : > { %v4850_v3 = vpop.f32.mrf.mxu2 }
 0xaf2   : > { %7956 = vst.msk [vmem:[%s10334_s14 + $0x6a8] sm:$0xff] %vm7742_vm2, %v7635_v29  ;;  %v4851_v62 = vadd.f32 %v12152_v40, %v4850_v3 }
 0xaf3   : > { %v6242_v20 = vpop.f32.mrf.mxu3 }
 0xaf4   : > { %v5117_v48 = vmax.f32 %v4851_v62, 0.0  ;;  %v6243_v26 = vadd.f32 %v12007_v35, %v6242_v20 }
 0xaf6   : > { %v5248_v32 = vpack.c.bf16 %v5117_v48, %v5116_v39  ;;  %v6536_v51 = vmax.f32 %v6243_v26, 0.0 }
 0xaf7   : > { %v7637_v57 = vpop.f32.mrf.mxu0 }
 0xaf8   : > { %v6676_v50 = vpack.c.bf16 %v6536_v51, %v6535_v19  ;;  %v7638_v1 = vadd.f32 %v12122_v12, %v7637_v57  ;;  %8728 = vmatmul.msk.bf16.gmra.mxu3 %vm2397_vm1, %v5248_v32 }
 0xaf9   : > { %v4853_v6 = vpop.f32.mrf.mxu2 }
 0xafa   : > { %7957 = vst.msk [vmem:[%s10334_s14 + $0x6b0] sm:$0xff] %vm7742_vm2, %v7638_v1  ;;  %8855 = vmatmul.msk.bf16.gmra.mxu0 %vm2397_vm1, %v6676_v50  ;;  %v4854_v22 = vadd.f32 %v12152_v40, %v4853_v6 }
 0xafb   : > { %v6245_v63 = vpop.f32.mrf.mxu3 }
 0xafc   : > { %v6246_v9 = vadd.f32 %v12007_v35, %v6245_v63  ;;  %v5118_v58 = vmax.f32 %v4854_v22, 0.0 }
 0xafe   : > { %v6537_v46 = vmax.f32 %v6246_v9, 0.0 }
 0xaff   : > { %v7639_v36 = vpop.f32.mrf.mxu0 }
 0xb00   : > { %v7640_v0 = vadd.f32 %v12122_v12, %v7639_v36 }
 0xb01   : > { %v4855_v27 = vpop.f32.mrf.mxu2 }
 0xb02   : > { %7958 = vst.msk [vmem:[%s10334_s14 + $0x6b8] sm:$0xff] %vm7742_vm2, %v7640_v0  ;;  %v4856_v8 = vadd.f32 %v12152_v40, %v4855_v27 }
 0xb03   : > { %v6247_v52 = vpop.f32.mrf.mxu3 }
 0xb04   : > { %v5119_v2 = vmax.f32 %v4856_v8, 0.0  ;;  %v6248_v28 = vadd.f32 %v12007_v35, %v6247_v52 }
 0xb06   : > { %v5249_v53 = vpack.c.bf16 %v5119_v2, %v5118_v58  ;;  %v6538_v4 = vmax.f32 %v6248_v28, 0.0 }
 0xb07   : > { %v7642_v60 = vpop.f32.mrf.mxu0 }
 0xb08   : > { %v6677_v10 = vpack.c.bf16 %v6538_v4, %v6537_v46  ;;  %v7643_v18 = vadd.f32 %v12122_v12, %v7642_v60  ;;  %8729 = vmatmul.msk.bf16.gmra.mxu3 %vm2397_vm1, %v5249_v53 }
 0xb09   : > { %v4858_v38 = vpop.f32.mrf.mxu2 }
 0xb0a   : > { %7959 = vst.msk [vmem:[%s10334_s14 + $0x6c0] sm:$0xff] %vm7742_vm2, %v7643_v18  ;;  %8856 = vmatmul.msk.bf16.gmra.mxu0 %vm2397_vm1, %v6677_v10  ;;  %v4859_v35 = vadd.f32 %v12152_v40, %v4858_v38 }
 0xb0b   : > { %v6250_v45 = vpop.f32.mrf.mxu3 }
 0xb0c   : > { %v6251_v33 = vadd.f32 %v12294_v43, %v6250_v45  ;;  %v5120_v13 = vmax.f32 %v4859_v35, 0.0 }
 0xb0e   : > { %v6539_v54 = vmax.f32 %v6251_v33, 0.0 }
 0xb0f   : > { %v7644_v25 = vpop.f32.mrf.mxu0 }
 0xb10   : > { %v7645_v24 = vadd.f32 %v12122_v12, %v7644_v25 }
 0xb11   : > { %v4860_v56 = vpop.f32.mrf.mxu2 }
 0xb12   : > { %7960 = vst.msk [vmem:[%s10334_s14 + $0x6c8] sm:$0xff] %vm7742_vm2, %v7645_v24  ;;  %v4861_v5 = vadd.f32 %v12152_v40, %v4860_v56 }
 0xb13   : > { %v6252_v11 = vpop.f32.mrf.mxu3 }
 0xb14   : > { %v5121_v49 = vmax.f32 %v4861_v5, 0.0  ;;  %v6253_v15 = vadd.f32 %v12294_v43, %v6252_v11 }
 0xb16   : > { %v5250_v44 = vpack.c.bf16 %v5121_v49, %v5120_v13  ;;  %v6540_v7 = vmax.f32 %v6253_v15, 0.0 }
 0xb17   : > { %v7647_v37 = vpop.f32.mrf.mxu0 }
 0xb18   : > { %v6678_v30 = vpack.c.bf16 %v6540_v7, %v6539_v54  ;;  %v7648_v31 = vadd.f32 %v12122_v12, %v7647_v37  ;;  %8730 = vmatmul.msk.bf16.gmra.mxu3 %vm2397_vm1, %v5250_v44 }
 0xb19   : > { %v4863_v14 = vpop.f32.mrf.mxu2 }
 0xb1a   : > { %7961 = vst.msk [vmem:[%s10334_s14 + $0x6d0] sm:$0xff] %vm7742_vm2, %v7648_v31  ;;  %8857 = vmatmul.msk.bf16.gmra.mxu0 %vm2397_vm1, %v6678_v30  ;;  %v4864_v59 = vadd.f32 %v12152_v40, %v4863_v14 }
 0xb1b   : > { %v6255_v16 = vpop.f32.mrf.mxu3 }
 0xb1c   : > { %v6256_v41 = vadd.f32 %v12294_v43, %v6255_v16  ;;  %v5122_v55 = vmax.f32 %v4864_v59, 0.0 }
 0xb1e   : > { %v6541_v3 = vmax.f32 %v6256_v41, 0.0 }
 0xb1f   : > { %v7649_v42 = vpop.f32.mrf.mxu0 }
 0xb20   : > { %v7650_v61 = vadd.f32 %v12122_v12, %v7649_v42 }
 0xb21   : > { %v4865_v34 = vpop.f32.mrf.mxu2 }
 0xb22   : > { %7962 = vst.msk [vmem:[%s10334_s14 + $0x6d8] sm:$0xff] %vm7742_vm2, %v7650_v61  ;;  %v4866_v17 = vadd.f32 %v12152_v40, %v4865_v34 }
 0xb23   : > { %v6257_v21 = vpop.f32.mrf.mxu3 }
 0xb24   : > { %v5123_v23 = vmax.f32 %v4866_v17, 0.0  ;;  %v6258_v29 = vadd.f32 %v12294_v43, %v6257_v21 }
 0xb26   : > { %v5251_v47 = vpack.c.bf16 %v5123_v23, %v5122_v55  ;;  %v6542_v62 = vmax.f32 %v6258_v29, 0.0 }
 0xb27   : > { %v7652_v20 = vpop.f32.mrf.mxu0 }
 0xb28   : > { %v6679_v39 = vpack.c.bf16 %v6542_v62, %v6541_v3  ;;  %v7653_v48 = vadd.f32 %v12122_v12, %v7652_v20  ;;  %8731 = vmatmul.msk.bf16.gmra.mxu3 %vm2397_vm1, %v5251_v47 }
 0xb2a   : > { %7963 = vst.msk [vmem:[%s10334_s14 + $0x6e0] sm:$0xff] %vm7742_vm2, %v7653_v48  ;;  %8858 = vmatmul.msk.bf16.gmra.mxu0 %vm2397_vm1, %v6679_v39 }
 0xb2b   : > { %v6260_v40 = vpop.f32.mrf.mxu3 }
 0xb2c   : > { %v6261_v32 = vadd.f32 %v12294_v43, %v6260_v40 }
 0xb2e   : > { %v6543_v50 = vmax.f32 %v6261_v32, 0.0 }
 0xb2f   : > { %v7654_v26 = vpop.f32.mrf.mxu0 }
 0xb30   : > { %v7655_v19 = vadd.f32 %v12122_v12, %v7654_v26 }
 0xb32   : > { %7964 = vst.msk [vmem:[%s10334_s14 + $0x6e8] sm:$0xff] %vm7742_vm2, %v7655_v19 }
 0xb33   : > { %v6262_v51 = vpop.f32.mrf.mxu3 }
 0xb34   : > { %v6263_v57 = vadd.f32 %v12294_v43, %v6262_v51 }
 0xb36   : > { %v6544_v1 = vmax.f32 %v6263_v57, 0.0 }
 0xb37   : > { %v7657_v6 = vpop.f32.mrf.mxu0 }
 0xb38   : > { %v6680_v63 = vpack.c.bf16 %v6544_v1, %v6543_v50  ;;  %v7658_v36 = vadd.f32 %v12122_v12, %v7657_v6 }
 0xb3a   : > { %7965 = vst.msk [vmem:[%s10334_s14 + $0x6f0] sm:$0xff] %vm7742_vm2, %v7658_v36  ;;  %8859 = vmatmul.msk.bf16.gmra.mxu0 %vm2397_vm1, %v6680_v63 }
 0xb3b   : > { %v6265_v22 = vpop.f32.mrf.mxu3 }
 0xb3c   : > { %v6266_v9 = vadd.f32 %v12294_v43, %v6265_v22 }
 0xb3e   : > { %v6545_v58 = vmax.f32 %v6266_v9, 0.0 }
 0xb3f   : > { %v7659_v0 = vpop.f32.mrf.mxu0 }
 0xb40   : > { %v7660_v27 = vadd.f32 %v12122_v12, %v7659_v0 }
 0xb42   : > { %7966 = vst.msk [vmem:[%s10334_s14 + $0x6f8] sm:$0xff] %vm7742_vm2, %v7660_v27 }
 0xb43   : > { %v6267_v8 = vpop.f32.mrf.mxu3 }
 0xb44   : > { %v6268_v52 = vadd.f32 %v12294_v43, %v6267_v8 }
 0xb46   : > { %v6546_v2 = vmax.f32 %v6268_v52, 0.0 }
 0xb47   : > { %v7662_v28 = vpop.f32.mrf.mxu0 }
 0xb48   : > { %v6681_v46 = vpack.c.bf16 %v6546_v2, %v6545_v58  ;;  %v7663_v53 = vadd.f32 %v12122_v12, %v7662_v28 }
 0xb4a   : > { %7967 = vst.msk [vmem:[%s10334_s14 + $0x700] sm:$0xff] %vm7742_vm2, %v7663_v53  ;;  %8860 = vmatmul.msk.bf16.gmra.mxu0 %vm2397_vm1, %v6681_v46 }
 0xb4b   : > { %v6270_v4 = vpop.f32.mrf.mxu3 }
 0xb4c   : > { %v6271_v18 = vadd.f32 %v12294_v43, %v6270_v4 }
 0xb4e   : > { %v6547_v25 = vmax.f32 %v6271_v18, 0.0 }
 0xb4f   : > { %v7664_v60 = vpop.f32.mrf.mxu0 }
 0xb50   : > { %v7665_v10 = vadd.f32 %v12122_v12, %v7664_v60 }
 0xb52   : > { %7968 = vst.msk [vmem:[%s10334_s14 + $0x708] sm:$0xff] %vm7742_vm2, %v7665_v10 }
 0xb53   : > { %v6272_v38 = vpop.f32.mrf.mxu3 }
 0xb54   : > { %v6273_v45 = vadd.f32 %v12294_v43, %v6272_v38 }
 0xb56   : > { %v6548_v35 = vmax.f32 %v6273_v45, 0.0 }
 0xb57   : > { %v7667_v24 = vpop.f32.mrf.mxu0 }
 0xb58   : > { %v6682_v56 = vpack.c.bf16 %v6548_v35, %v6547_v25  ;;  %v7668_v33 = vadd.f32 %v12122_v12, %v7667_v24 }
 0xb5a   : > { %7969 = vst.msk [vmem:[%s10334_s14 + $0x710] sm:$0xff] %vm7742_vm2, %v7668_v33  ;;  %8861 = vmatmul.msk.bf16.gmra.mxu0 %vm2397_vm1, %v6682_v56 }
 0xb5b   : > { %v6275_v5 = vpop.f32.mrf.mxu3 }
 0xb5c   : > { %v6276_v49 = vadd.f32 %v12294_v43, %v6275_v5 }
 0xb5e   : > { %v6549_v44 = vmax.f32 %v6276_v49, 0.0 }
 0xb5f   : > { %v7669_v11 = vpop.f32.mrf.mxu0 }
 0xb60   : > { %v7670_v13 = vadd.f32 %v12122_v12, %v7669_v11 }
 0xb62   : > { %7970 = vst.msk [vmem:[%s10334_s14 + $0x718] sm:$0xff] %vm7742_vm2, %v7670_v13 }
 0xb63   : > { %v6277_v15 = vpop.f32.mrf.mxu3 }
 0xb64   : > { %v6278_v54 = vadd.f32 %v12294_v43, %v6277_v15 }
 0xb66   : > { %v6550_v7 = vmax.f32 %v6278_v54, 0.0 }
 0xb67   : > { %v7672_v37 = vpop.f32.mrf.mxu0 }
 0xb68   : > { %v6683_v30 = vpack.c.bf16 %v6550_v7, %v6549_v44  ;;  %v7673_v31 = vadd.f32 %v12122_v12, %v7672_v37 }
 0xb6a   : > { %7971 = vst.msk [vmem:[%s10334_s14 + $0x720] sm:$0xff] %vm7742_vm2, %v7673_v31  ;;  %8862 = vmatmul.msk.bf16.gmra.mxu0 %vm2397_vm1, %v6683_v30 }
 0xb6b   : > { %v6280_v14 = vpop.f32.mrf.mxu3 }
 0xb6c   : > { %v6281_v59 = vadd.f32 %v12294_v43, %v6280_v14 }
 0xb6e   : > { %v6551_v41 = vmax.f32 %v6281_v59, 0.0 }
 0xb6f   : > { %v7674_v16 = vpop.f32.mrf.mxu0 }
 0xb70   : > { %v7675_v42 = vadd.f32 %v12122_v12, %v7674_v16 }
 0xb72   : > { %7972 = vst.msk [vmem:[%s10334_s14 + $0x728] sm:$0xff] %vm7742_vm2, %v7675_v42 }
 0xb73   : > { %v6282_v61 = vpop.f32.mrf.mxu3 }
 0xb74   : > { %v6283_v34 = vadd.f32 %v12294_v43, %v6282_v61 }
 0xb76   : > { %v6552_v17 = vmax.f32 %v6283_v34, 0.0 }
 0xb77   : > { %v7677_v21 = vpop.f32.mrf.mxu0 }
 0xb78   : > { %v6684_v55 = vpack.c.bf16 %v6552_v17, %v6551_v41  ;;  %v7678_v23 = vadd.f32 %v12122_v12, %v7677_v21 }
 0xb7a   : > { %7973 = vst.msk [vmem:[%s10334_s14 + $0x730] sm:$0xff] %vm7742_vm2, %v7678_v23  ;;  %8863 = vmatmul.msk.bf16.gmra.mxu0 %vm2397_vm1, %v6684_v55 }
 0xb7b   : > { %v6285_v29 = vpop.f32.mrf.mxu3 }
 0xb7c   : > { %v6286_v62 = vadd.f32 %v12294_v43, %v6285_v29 }
 0xb7e   : > { %v6553_v48 = vmax.f32 %v6286_v62, 0.0 }
 0xb7f   : > { %v7679_v3 = vpop.f32.mrf.mxu0 }
 0xb80   : > { %v7680_v47 = vadd.f32 %v12122_v12, %v7679_v3 }
 0xb82   : > { %7974 = vst.msk [vmem:[%s10334_s14 + $0x738] sm:$0xff] %vm7742_vm2, %v7680_v47 }
 0xb83   : > { %v6287_v20 = vpop.f32.mrf.mxu3 }
 0xb84   : > { %v6288_v39 = vadd.f32 %v12294_v43, %v6287_v20 }
 0xb86   : > { %v6554_v40 = vmax.f32 %v6288_v39, 0.0 }
 0xb87   : > { %v7682_v26 = vpop.f32.mrf.mxu0 }
 0xb88   : > { %v6685_v19 = vpack.c.bf16 %v6554_v40, %v6553_v48  ;;  %v7683_v32 = vadd.f32 %v12122_v12, %v7682_v26  ;;  %v8963_v48 = vld [vmem:[%s12473_s10] ss:$0 sm:$0xff] }
 0xb8a   : > { %7975 = vst.msk [vmem:[%s10334_s14 + $0x740] sm:$0xff] %vm7742_vm2, %v7683_v32  ;;  %8864 = vmatmul.msk.bf16.gmra.mxu0 %vm2397_vm1, %v6685_v19 }
 0xb8b   : > { %v6290_v51 = vpop.f32.mrf.mxu3 }
 0xb8c   : > { %v6291_v1 = vadd.f32 %v12294_v43, %v6290_v51 }
 0xb8e   : > { %v6555_v36 = vmax.f32 %v6291_v1, 0.0 }
 0xb8f   : > { %v7684_v57 = vpop.f32.mrf.mxu0 }
 0xb90   : > { %v7685_v50 = vadd.f32 %v12122_v12, %v7684_v57 }
 0xb92   : > { %7976 = vst.msk [vmem:[%s10334_s14 + $0x748] sm:$0xff] %vm7742_vm2, %v7685_v50 }
 0xb93   : > { %v6292_v6 = vpop.f32.mrf.mxu3 }
 0xb94   : > { %v6293_v63 = vadd.f32 %v12294_v43, %v6292_v6 }
 0xb96   : > { %v6556_v22 = vmax.f32 %v6293_v63, 0.0 }
 0xb97   : > { %v7687_v0 = vpop.f32.mrf.mxu0 }
 0xb98   : > { %v6686_v27 = vpack.c.bf16 %v6556_v22, %v6555_v36  ;;  %v7688_v9 = vadd.f32 %v12122_v12, %v7687_v0 }
 0xb9a   : > { %7977 = vst.msk [vmem:[%s10334_s14 + $0x750] sm:$0xff] %vm7742_vm2, %v7688_v9  ;;  %8865 = vmatmul.msk.bf16.gmra.mxu0 %vm2397_vm1, %v6686_v27 }
 0xb9b   : > { %v6295_v8 = vpop.f32.mrf.mxu3 }
 0xb9c   : > { %v6296_v2 = vadd.f32 %v12294_v43, %v6295_v8 }
 0xb9e   : > { %v6557_v53 = vmax.f32 %v6296_v2, 0.0 }
 0xb9f   : > { %v7689_v52 = vpop.f32.mrf.mxu0 }
 0xba0   : > { %v7690_v58 = vadd.f32 %v12122_v12, %v7689_v52 }
 0xba2   : > { %7978 = vst.msk [vmem:[%s10334_s14 + $0x758] sm:$0xff] %vm7742_vm2, %v7690_v58 }
 0xba3   : > { %v6297_v28 = vpop.f32.mrf.mxu3 }
 0xba4   : > { %v6298_v46 = vadd.f32 %v12294_v43, %v6297_v28 }
 0xba6   : > { %v6558_v4 = vmax.f32 %v6298_v46, 0.0 }
 0xba7   : > { %v7692_v60 = vpop.f32.mrf.mxu0 }
 0xba8   : > { %v6687_v10 = vpack.c.bf16 %v6558_v4, %v6557_v53  ;;  %v7693_v18 = vadd.f32 %v12122_v12, %v7692_v60 }
 0xbaa   : > { %7979 = vst.msk [vmem:[%s10334_s14 + $0x760] sm:$0xff] %vm7742_vm2, %v7693_v18  ;;  %8866 = vmatmul.msk.bf16.gmra.mxu0 %vm2397_vm1, %v6687_v10 }
 0xbab   : > { %v6300_v38 = vpop.f32.mrf.mxu3 }
 0xbac   : > { %v6301_v35 = vadd.f32 %v12294_v43, %v6300_v38 }
 0xbae   : > { %v6559_v33 = vmax.f32 %v6301_v35, 0.0 }
 0xbaf   : > { %v7694_v45 = vpop.f32.mrf.mxu0 }
 0xbb0   : > { %v7695_v25 = vadd.f32 %v12122_v12, %v7694_v45 }
 0xbb2   : > { %7980 = vst.msk [vmem:[%s10334_s14 + $0x768] sm:$0xff] %vm7742_vm2, %v7695_v25 }
 0xbb3   : > { %v6302_v24 = vpop.f32.mrf.mxu3 }
 0xbb4   : > { %v6303_v56 = vadd.f32 %v12294_v43, %v6302_v24 }
 0xbb6   : > { %v6560_v5 = vmax.f32 %v6303_v56, 0.0 }
 0xbb7   : > { %v7697_v11 = vpop.f32.mrf.mxu0 }
 0xbb8   : > { %v6688_v13 = vpack.c.bf16 %v6560_v5, %v6559_v33  ;;  %v7698_v49 = vadd.f32 %v12122_v12, %v7697_v11 }
 0xbba   : > { %7981 = vst.msk [vmem:[%s10334_s14 + $0x770] sm:$0xff] %vm7742_vm2, %v7698_v49  ;;  %8867 = vmatmul.msk.bf16.gmra.mxu0 %vm2397_vm1, %v6688_v13 }
 0xbbf   : > { %v7699_v15 = vpop.f32.mrf.mxu0 }
 0xbc0   : > { %v7700_v54 = vadd.f32 %v12122_v12, %v7699_v15 }
 0xbc2   : > { %7982 = vst.msk [vmem:[%s10334_s14 + $0x778] sm:$0xff] %vm7742_vm2, %v7700_v54 }
 0xbc7   : > { %v7702_v43 = vpop.f32.mrf.mxu0 }
 0xbc8   : > { %v7703_v44 = vadd.f32 %v12122_v12, %v7702_v43 }
 0xbca   : > { %7983 = vst.msk [vmem:[%s10334_s14 + $0x780] sm:$0xff] %vm7742_vm2, %v7703_v44 }
 0xbcf   : > { %v7704_v7 = vpop.f32.mrf.mxu0 }
 0xbd0   : > { %v7705_v37 = vadd.f32 %v12122_v12, %v7704_v7 }
 0xbd2   : > { %7984 = vst.msk [vmem:[%s10334_s14 + $0x788] sm:$0xff] %vm7742_vm2, %v7705_v37 }
 0xbd7   : > { %v7707_v30 = vpop.f32.mrf.mxu0 }
 0xbd8   : > { %v7708_v31 = vadd.f32 %v12122_v12, %v7707_v30 }
 0xbda   : > { %7985 = vst.msk [vmem:[%s10334_s14 + $0x790] sm:$0xff] %vm7742_vm2, %v7708_v31 }
 0xbdf   : > { %v7709_v14 = vpop.f32.mrf.mxu0 }
 0xbe0   : > { %v7710_v16 = vadd.f32 %v12122_v12, %v7709_v14 }
 0xbe2   : > { %7986 = vst.msk [vmem:[%s10334_s14 + $0x798] sm:$0xff] %vm7742_vm2, %v7710_v16 }
 0xbe7   : > { %v7712_v42 = vpop.f32.mrf.mxu0 }
 0xbe8   : > { %v7713_v59 = vadd.f32 %v12122_v12, %v7712_v42 }
 0xbea   : > { %7987 = vst.msk [vmem:[%s10334_s14 + $0x7a0] sm:$0xff] %vm7742_vm2, %v7713_v59 }
 0xbef   : > { %v7714_v61 = vpop.f32.mrf.mxu0 }
 0xbf0   : > { %v7715_v34 = vadd.f32 %v12122_v12, %v7714_v61 }
 0xbf2   : > { %7988 = vst.msk [vmem:[%s10334_s14 + $0x7a8] sm:$0xff] %vm7742_vm2, %v7715_v34 }
 0xbf7   : > { %v7717_v41 = vpop.f32.mrf.mxu0 }
 0xbf8   : > { %v7718_v17 = vadd.f32 %v12122_v12, %v7717_v41 }
 0xbfa   : > { %7989 = vst.msk [vmem:[%s10334_s14 + $0x7b0] sm:$0xff] %vm7742_vm2, %v7718_v17 }
 0xbff   : > { %v7719_v21 = vpop.f32.mrf.mxu0 }
 0xc00   : > { %v7720_v55 = vadd.f32 %v12122_v12, %v7719_v21 }
 0xc02   : > { %7990 = vst.msk [vmem:[%s10334_s14 + $0x7b8] sm:$0xff] %vm7742_vm2, %v7720_v55 }
 0xc07   : > { %v7722_v23 = vpop.f32.mrf.mxu0 }
 0xc08   : > { %v7723_v29 = vadd.f32 %v12122_v12, %v7722_v23 }
 0xc0a   : > { %7991 = vst.msk [vmem:[%s10334_s14 + $0x7c0] sm:$0xff] %vm7742_vm2, %v7723_v29 }
 0xc0f   : > { %v7724_v3 = vpop.f32.mrf.mxu0 }
 0xc10   : > { %v7725_v47 = vadd.f32 %v12122_v12, %v7724_v3 }
 0xc12   : > { %7992 = vst.msk [vmem:[%s10334_s14 + $0x7c8] sm:$0xff] %vm7742_vm2, %v7725_v47 }
 0xc17   : > { %v7727_v62 = vpop.f32.mrf.mxu0 }
 0xc18   : > { %v7728_v20 = vadd.f32 %v12122_v12, %v7727_v62 }
 0xc1a   : > { %7993 = vst.msk [vmem:[%s10334_s14 + $0x7d0] sm:$0xff] %vm7742_vm2, %v7728_v20 }
 0xc1f   : > { %v7729_v39 = vpop.f32.mrf.mxu0 }
 0xc20   : > { %v7730_v40 = vadd.f32 %v8963_v48, %v7729_v39 }
 0xc22   : > { %7994 = vst.msk [vmem:[%s10334_s14 + $0x7d8] sm:$0xff] %vm7742_vm2, %v7730_v40 }
 0xc27   : > { %v7732_v26 = vpop.f32.mrf.mxu0 }
 0xc28   : > { %v7733_v19 = vadd.f32 %v8963_v48, %v7732_v26 }
 0xc2a   : > { %7995 = vst.msk [vmem:[%s10334_s14 + $0x7e0] sm:$0xff] %vm7742_vm2, %v7733_v19 }
 0xc2f   : > { %v7734_v32 = vpop.f32.mrf.mxu0 }
 0xc30   : > { %v7735_v51 = vadd.f32 %v8963_v48, %v7734_v32 }
 0xc32   : > { %7996 = vst.msk [vmem:[%s10334_s14 + $0x7e8] sm:$0xff] %vm7742_vm2, %v7735_v51 }
 0xc37   : > { %v7737_v12 = vpop.f32.mrf.mxu0 }
 0xc38   : > { %v7738_v57 = vadd.f32 %v8963_v48, %v7737_v12 }
 0xc3a   : > { %7997 = vst.msk [vmem:[%s10334_s14 + $0x7f0] sm:$0xff] %vm7742_vm2, %v7738_v57 }
 0xc3f   : > { %v7739_v50 = vpop.f32.mrf.mxu0 }
 0xc40   : > { %v7740_v1 = vadd.f32 %v8963_v48, %v7739_v50 }
 0xc42   : > { %7998 = vst.msk [vmem:[%s10334_s14 + $0x7f8] sm:$0xff] %vm7742_vm2, %v7740_v1 }
 0xc43 PF: > { %s21_s21 = sadd.s32 1, %s9002_s21   ;;  %s12645_s13 = sld [smem:[#allocation2_spill]] }
 0xc44   : > { %p18_p7 = scmp.ge.s32.totalorder %s21_s21, 6   ;;  %s12646_s27 = sld [smem:[#allocation3_spill]] }
 0xc45   : > { %s12647_s17 = smov %s8994_s19  ;;  %s12648_s18 = smov %s8998_s20 }
 0xc46   :  { %20 = sbr.rel (!%p18_p7) target bundleno = 3 (0x3), region = 118 }
 0xc49   : > { %s12649_s19 = smov %s12645_s13 }
 0xc4a   : > { %s12650_s20 = smov %s12646_s27 }

</bundles_post_ra>
